<compile_context>
chip_gen: v6e
topology: v6e:2x2x1
jax: 0.10.0
libtpu: 0.0.40
codegen_flags: <defaults>
</compile_context>

<pallas_src>
import functools

import numpy as np
import jax
import jax.numpy as jnp
from jax import lax
from jax.experimental import pallas as pl
from jax.experimental.pallas import tpu as pltpu

_BN_EPS = 1e-5


# ----------------------------------------------------------------------------
# Bilinear interpolation (align_corners=False) expressed as resize matrices.
# ----------------------------------------------------------------------------
def _bilinear_resize_matrix(out_size, in_size):
    """R[o, i] such that out = R @ in reproduces torch F.interpolate(bilinear,
    align_corners=False) along one axis."""
    scale = in_size / out_size
    dst = np.arange(out_size)
    src = (dst + 0.5) * scale - 0.5
    src = np.clip(src, 0.0, None)                       # PyTorch clamps negatives
    i0 = np.minimum(np.floor(src).astype(np.int64), in_size - 1)
    i1 = np.minimum(i0 + 1, in_size - 1)
    lam = src - i0
    R = np.zeros((out_size, in_size), np.float32)
    R[dst, i0] += (1.0 - lam)
    R[dst, i1] += lam
    return jnp.asarray(R, jnp.float32)


# ----------------------------------------------------------------------------
# In-kernel helpers (traced inside the Pallas bodies).
# ----------------------------------------------------------------------------
def _mish(a):
    """mish(x) = x * tanh(softplus(x)) = x * n/(n+2), n = e^x (e^x + 2).
    One EUP exp + one approx EUP reciprocal, no overflow (clamp at 30)."""
    ex = jnp.exp(jnp.minimum(a, 30.0))
    n = ex * (ex + 2.0)
    return a * (n * pl.reciprocal(n + 2.0, approx=True))


def _conv3x3_affine_mish(xp_ref, w_ref, sc_ref, sh_ref, H, W):
    """3x3 conv (zero-padded input already sitting in VMEM scratch `xp_ref`
    with a 1-pixel halo) as a single im2col matmul with K = 9*Cin, followed by
    the folded (conv-bias + eval BatchNorm) affine and Mish.

    xp_ref: (Cin, H+2, W+2) VMEM scratch
    w_ref : (Cout, 9*Cin)   column order = (kh*3 + kw)*Cin + ci
    sc_ref, sh_ref: (Cout, 1, 1)
    returns (Cout, H, W) float32
    """
    taps = []
    for kh in range(3):                                  # statically unrolled
        for kw in range(3):
            taps.append(xp_ref[:, kh:kh + H, kw:kw + W])        # (Cin, H, W)
    xcol = jnp.concatenate(taps, axis=0)                        # (9*Cin, H, W)
    acc = lax.dot_general(w_ref[...], xcol,
                          (((1,), (0,)), ((), ())),
                          preferred_element_type=jnp.float32)   # (Cout, H, W)
    acc = acc * sc_ref[...] + sh_ref[...]                       # folded bias+BN
    return _mish(acc)


# ----------------------------------------------------------------------------
# Kernel 1: bilinear resize + conv1(3x3) + BN1 + Mish   (one image per step)
# ----------------------------------------------------------------------------
def _resize_conv1_kernel(rh_ref, rwt_ref, x_ref, w_ref, sc_ref, sh_ref,
                         o_ref, xp_ref):
    C = x_ref.shape[1]
    Hout, Hin = rh_ref.shape
    Wout = rwt_ref.shape[1]

    # ---- bilinear upsample, channel-batched ------------------------------
    x = x_ref[0]                                                # (Cin, Hin, Win)
    # W-axis interp: single contraction over Win for all (Cin, Hin) rows.
    a = lax.dot_general(x, rwt_ref[...],
                        (((2,), (0,)), ((), ())),
                        preferred_element_type=jnp.float32)     # (Cin, Hin, Wout)
    # H-axis interp: batched over channels, lane dim (Wout) stays in place.
    rh_b = jnp.broadcast_to(rh_ref[...], (C, Hout, Hin))
    up = lax.dot_general(rh_b, a,
                         (((2,), (1,)), ((0,), (0,))),
                         preferred_element_type=jnp.float32)    # (Cin, Hout, Wout)

    # ---- zero halo in VMEM (no host-side pad / extra HBM pass) -----------
    xp_ref[...] = jnp.zeros_like(xp_ref)
    xp_ref[:, 1:Hout + 1, 1:Wout + 1] = up

    # ---- conv1 + folded BN1 + Mish ----------------------------------------
    y = _conv3x3_affine_mish(xp_ref, w_ref, sc_ref, sh_ref, Hout, Wout)
    o_ref[0] = y.astype(o_ref.dtype)


def _resize_conv1_pallas(x_nchw, Rh, RwT, w1, s1, t1, Hout, Wout):
    N, Cin, Hin, Win = x_nchw.shape
    Cout = w1.shape[0]
    return pl.pallas_call(
        _resize_conv1_kernel,
        out_shape=jax.ShapeDtypeStruct((N, Cout, Hout, Wout), jnp.float32),
        grid=(N,),
        in_specs=[
            pl.BlockSpec((Hout, Hin), lambda n: (0, 0)),
            pl.BlockSpec((Win, Wout), lambda n: (0, 0)),
            pl.BlockSpec((1, Cin, Hin, Win), lambda n: (n, 0, 0, 0)),
            pl.BlockSpec((Cout, 9 * Cin), lambda n: (0, 0)),
            pl.BlockSpec((Cout, 1, 1), lambda n: (0, 0, 0)),
            pl.BlockSpec((Cout, 1, 1), lambda n: (0, 0, 0)),
        ],
        out_specs=pl.BlockSpec((1, Cout, Hout, Wout), lambda n: (n, 0, 0, 0)),
        scratch_shapes=[pltpu.VMEM((Cin, Hout + 2, Wout + 2), jnp.float32)],
        compiler_params=pltpu.CompilerParams(dimension_semantics=("parallel",)),
    )(Rh, RwT, x_nchw, w1, s1, t1)


# ----------------------------------------------------------------------------
# Kernel 2: conv2(3x3)+BN2+Mish + conv3(1x1) + sigmoid/softmax, writes NCHW.
# ----------------------------------------------------------------------------
def _conv2_head_kernel(x_ref, w2_ref, s2_ref, t2_ref, w3_ref, b3_ref,
                       o_ref, xp_ref, *, binary):
    H, W = o_ref.shape[2], o_ref.shape[3]

    xp_ref[...] = jnp.zeros_like(xp_ref)
    xp_ref[:, 1:H + 1, 1:W + 1] = x_ref[0]

    h = _conv3x3_affine_mish(xp_ref, w2_ref, s2_ref, t2_ref, H, W)   # (C2, H, W)

    # 1x1 conv: (ncls, C2) @ (C2, H*W) -> NCHW logits, W on lanes.
    y = lax.dot_general(w3_ref[...], h,
                        (((1,), (0,)), ((), ())),
                        preferred_element_type=jnp.float32) + b3_ref[...]

    if binary:
        # numerically-stable sigmoid
        z = jnp.exp(-jnp.abs(y))
        act = jnp.where(y >= 0.0, 1.0, z) / (1.0 + z)
    else:
        # softmax over the channel axis (axis 0 of the (ncls, H, W) block)
        y = y - jnp.max(y, axis=0, keepdims=True)
        e = jnp.exp(y)
        act = e / jnp.sum(e, axis=0, keepdims=True)
    o_ref[0] = act.astype(o_ref.dtype)


def _conv2_head_pallas(h1, w2, s2, t2, w3, b3, *, binary):
    N, C1, H, W = h1.shape
    C2 = w2.shape[0]
    ncls = w3.shape[0]
    kernel = functools.partial(_conv2_head_kernel, binary=binary)
    return pl.pallas_call(
        kernel,
        out_shape=jax.ShapeDtypeStruct((N, ncls, H, W), jnp.float32),
        grid=(N,),
        in_specs=[
            pl.BlockSpec((1, C1, H, W), lambda n: (n, 0, 0, 0)),
            pl.BlockSpec((C2, 9 * C1), lambda n: (0, 0)),
            pl.BlockSpec((C2, 1, 1), lambda n: (0, 0, 0)),
            pl.BlockSpec((C2, 1, 1), lambda n: (0, 0, 0)),
            pl.BlockSpec((ncls, C2), lambda n: (0, 0)),
            pl.BlockSpec((ncls, 1, 1), lambda n: (0, 0, 0)),
        ],
        out_specs=pl.BlockSpec((1, ncls, H, W), lambda n: (n, 0, 0, 0)),
        scratch_shapes=[pltpu.VMEM((C1, H + 2, W + 2), jnp.float32)],
        compiler_params=pltpu.CompilerParams(dimension_semantics=("parallel",)),
    )(h1, w2, s2, t2, w3, b3)


# ----------------------------------------------------------------------------
# Parameters (PyTorch-like) and host-side packing / folding.
# ----------------------------------------------------------------------------
def init_params(key, in_channels, num_classes):
    c1, c2 = in_channels // 2, in_channels // 4
    ks = jax.random.split(key, 8)

    def bn(k, c):
        kg, kb, km, kv = jax.random.split(k, 4)
        return dict(gamma=1.0 + 0.1 * jax.random.normal(kg, (c,), jnp.float32),
                    beta=0.1 * jax.random.normal(kb, (c,), jnp.float32),
                    mean=0.1 * jax.random.normal(km, (c,), jnp.float32),
                    var=1.0 + 0.1 * jax.random.uniform(kv, (c,), jnp.float32))

    return {
        'w1': 0.1 * jax.random.normal(ks[0], (c1, in_channels, 3, 3), jnp.float32),
        'b1': 0.05 * jax.random.normal(ks[1], (c1,), jnp.float32),
        'bn1': bn(ks[2], c1),
        'w2': 0.1 * jax.random.normal(ks[3], (c2, c1, 3, 3), jnp.float32),
        'b2': 0.05 * jax.random.normal(ks[4], (c2,), jnp.float32),
        'bn2': bn(ks[5], c2),
        'w3': 0.1 * jax.random.normal(ks[6], (num_classes, c2, 1, 1), jnp.float32),
        'b3': 0.05 * jax.random.normal(ks[7], (num_classes,), jnp.float32),
        # bn3 intentionally omitted: unused in the PyTorch forward().
    }


def _pack_conv3x3(w_oihw, bias, bn):
    """OIHW 3x3 weight -> (Cout, 9*Cin) im2col matrix (column order matches the
    kernel's tap order), and conv bias + eval BatchNorm folded into one affine."""
    cout, cin = w_oihw.shape[0], w_oihw.shape[1]
    w2d = jnp.transpose(w_oihw, (0, 2, 3, 1)).reshape(cout, 9 * cin)
    s = bn['gamma'] / jnp.sqrt(bn['var'] + _BN_EPS)
    scale = s.reshape(cout, 1, 1).astype(jnp.float32)
    shift = (bias * s + bn['beta'] - bn['mean'] * s).reshape(cout, 1, 1)
    return w2d.astype(jnp.float32), scale, shift.astype(jnp.float32)


def custom_segmentation_head_forward(x_nchw, input_size, params, task='binary'):
    Hout, Wout = input_size
    _, _, Hin, Win = x_nchw.shape
    Rh = _bilinear_resize_matrix(Hout, Hin)
    RwT = _bilinear_resize_matrix(Wout, Win).T

    w1, s1, t1 = _pack_conv3x3(params['w1'], params['b1'], params['bn1'])
    w2, s2, t2 = _pack_conv3x3(params['w2'], params['b2'], params['bn2'])
    ncls = params['w3'].shape[0]
    w3 = params['w3'][:, :, 0, 0].astype(jnp.float32)            # (ncls, C2)
    b3 = params['b3'].reshape(ncls, 1, 1).astype(jnp.float32)

    x = x_nchw.astype(jnp.float32)
    # Kernel 1: bilinear upsample + conv1 + BN1 + Mish (fused, NCHW).
    h1 = _resize_conv1_pallas(x, Rh, RwT, w1, s1, t1, Hout, Wout)
    # nn.Dropout2d(p=0.0) is the identity (no RNG / masking needed).
    # Kernel 2: conv2 + BN2 + Mish + conv1x1 + activation, writes final NCHW.
    out = _conv2_head_pallas(h1, w2, s2, t2, w3, b3, binary=(task == 'binary'))
    return out


# ----------------------------------------------------------------------------
# Pure-JAX reference (same math, XLA ops) for validation.
# ----------------------------------------------------------------------------
def reference_forward(x_nchw, input_size, params, task='binary'):
    Hout, Wout = input_size
    _, _, Hin, Win = x_nchw.shape
    Rh = _bilinear_resize_matrix(Hout, Hin)
    Rw = _bilinear_resize_matrix(Wout, Win)
    hi = lax.Precision.HIGHEST
    x = jnp.einsum('oh,nchw->ncow', Rh, x_nchw, precision=hi)
    x = jnp.einsum('pw,nchw->nchp', Rw, x, precision=hi)

    def conv(x, w, b):
        return lax.conv_general_dilated(
            x, w, (1, 1), 'SAME',
            dimension_numbers=('NCHW', 'OIHW', 'NCHW'),
            precision=hi) + b[None, :, None, None]

    def bnf(x, bn):
        s = bn['gamma'] / jnp.sqrt(bn['var'] + _BN_EPS)
        return x * s[None, :, None, None] + (bn['beta'] - bn['mean'] * s)[None, :, None, None]

    def mish(v):
        return v * jnp.tanh(jax.nn.softplus(v))

    x = mish(bnf(conv(x, params['w1'], params['b1']), params['bn1']))
    x = mish(bnf(conv(x, params['w2'], params['b2']), params['bn2']))
    y = conv(x, params['w3'], params['b3'])
    return jax.nn.sigmoid(y) if task == 'binary' else jax.nn.softmax(y, axis=1)


if __name__ == "__main__":
    key = jax.random.PRNGKey(0)
    k_x, k_p = jax.random.split(key)

    in_channels, num_classes = 16, 1
    N, Hin, Win = 2, 8, 8
    input_size = (16, 16)

    x = jax.random.normal(k_x, (N, in_channels, Hin, Win), jnp.float32)
    params = init_params(k_p, in_channels, num_classes)

    out = custom_segmentation_head_forward(x, input_size, params, task='binary')
    out = jax.block_until_ready(out)
    assert out.shape == (N, num_classes, input_size[0], input_size[1])

    ref = reference_forward(x, input_size, params, task='binary')
    np.testing.assert_allclose(np.asarray(out), np.asarray(ref),
                               rtol=2e-3, atol=2e-3)
    print("KERNEL_OK")
</pallas_src>

<mosaic_0001>
module attributes {stable_mosaic.version = 11 : i64} {
  func.func @_resize_conv1_kernel(%arg0: i32, %arg1: memref<16x8xf32, #tpu.memory_space<vmem>>, %arg2: memref<8x16xf32, #tpu.memory_space<vmem>>, %arg3: memref<1x16x8x8xf32, #tpu.memory_space<vmem>>, %arg4: memref<8x144xf32, #tpu.memory_space<vmem>>, %arg5: memref<8x1x1xf32, #tpu.memory_space<vmem>>, %arg6: memref<8x1x1xf32, #tpu.memory_space<vmem>>, %arg7: memref<1x8x16x16xf32, #tpu.memory_space<vmem>>, %arg8: memref<16x18x18xf32, #tpu.memory_space<vmem>>) attributes {dimension_semantics = [#tpu.dimension_semantics<parallel>], iteration_bounds = array<i64: 2>, scalar_prefetch = 0 : i64, scratch_operands = 1 : i64, tpu.core_type = #tpu.core_type<tc>, window_params = [{pipeline_mode = #tpu.pipeline_mode<synchronous>, transform_indices = @transform_0, window_bounds = array<i64: 16, 8>}, {pipeline_mode = #tpu.pipeline_mode<synchronous>, transform_indices = @transform_1, window_bounds = array<i64: 8, 16>}, {transform_indices = @transform_2, window_bounds = array<i64: 1, 16, 8, 8>}, {pipeline_mode = #tpu.pipeline_mode<synchronous>, transform_indices = @transform_3, window_bounds = array<i64: 8, 144>}, {pipeline_mode = #tpu.pipeline_mode<synchronous>, transform_indices = @transform_4, window_bounds = array<i64: 8, 1, 1>}, {pipeline_mode = #tpu.pipeline_mode<synchronous>, transform_indices = @transform_5, window_bounds = array<i64: 8, 1, 1>}, {transform_indices = @transform_6, window_bounds = array<i64: 1, 8, 16, 16>}]} {
    %c0 = arith.constant 0 : index
    %c0_0 = arith.constant 0 : index
    %c0_1 = arith.constant 0 : index
    %c0_2 = arith.constant 0 : index
    %0 = vector.load %arg3[%c0, %c0_0, %c0_1, %c0_2] : memref<1x16x8x8xf32, #tpu.memory_space<vmem>>, vector<1x16x8x8xf32>
    %1 = vector.shape_cast %0 : vector<1x16x8x8xf32> to vector<16x8x8xf32>
    %c0_3 = arith.constant 0 : index
    %c0_4 = arith.constant 0 : index
    %2 = vector.load %arg2[%c0_3, %c0_4] : memref<8x16xf32, #tpu.memory_space<vmem>>, vector<8x16xf32>
    %cst = arith.constant dense<0.000000e+00> : vector<16x8x16xf32>
    %3 = tpu.matmul %1, %2, %cst {dimension_numbers = #tpu.dot_dimension_numbers<[2], [0], [0, 1], [1], [0, 0, 0, 1, 1, 1], [], []>} : vector<16x8x8xf32>, vector<8x16xf32>, vector<16x8x16xf32> -> vector<16x8x16xf32>
    %c0_5 = arith.constant 0 : index
    %c0_6 = arith.constant 0 : index
    %4 = vector.load %arg1[%c0_5, %c0_6] : memref<16x8xf32, #tpu.memory_space<vmem>>, vector<16x8xf32>
    %5 = vector.shape_cast %4 : vector<16x8xf32> to vector<1x16x8xf32>
    %6 = vector.broadcast %5 : vector<1x16x8xf32> to vector<16x16x8xf32>
    %cst_7 = arith.constant dense<0.000000e+00> : vector<16x16x16xf32>
    %7 = tpu.matmul %6, %3, %cst_7 {dimension_numbers = #tpu.dot_dimension_numbers<[2], [1], [1], [2], [0, 0, 0, 1, 1, 2], [0], [0]>} : vector<16x16x8xf32>, vector<16x8x16xf32>, vector<16x16x16xf32> -> vector<16x16x16xf32>
    %cst_8 = arith.constant 0.000000e+00 : f32
    %8 = vector.broadcast %cst_8 : f32 to vector<16x18x18xf32>
    %c0_9 = arith.constant 0 : index
    %c0_10 = arith.constant 0 : index
    %c0_11 = arith.constant 0 : index
    %9 = vector.load %arg8[%c0_9, %c0_10, %c0_11] : memref<16x18x18xf32, #tpu.memory_space<vmem>>, vector<16x18x18xf32>
    tpu.vector_store %arg8[%c0_9, %c0_10, %c0_11], %8 {strides = array<i32>} : memref<16x18x18xf32, #tpu.memory_space<vmem>>, vector<16x18x18xf32>,
    %c0_12 = arith.constant 0 : index
    %c1 = arith.constant 1 : index
    %c1_13 = arith.constant 1 : index
    %10 = vector.load %arg8[%c0_12, %c1, %c1_13] : memref<16x18x18xf32, #tpu.memory_space<vmem>>, vector<16x16x16xf32>
    tpu.vector_store %arg8[%c0_12, %c1, %c1_13], %7 {strides = array<i32>} : memref<16x18x18xf32, #tpu.memory_space<vmem>>, vector<16x16x16xf32>,
    %c0_14 = arith.constant 0 : index
    %c0_15 = arith.constant 0 : index
    %c0_16 = arith.constant 0 : index
    %11 = vector.load %arg8[%c0_14, %c0_15, %c0_16] : memref<16x18x18xf32, #tpu.memory_space<vmem>>, vector<16x16x16xf32>
    %c0_17 = arith.constant 0 : index
    %c0_18 = arith.constant 0 : index
    %c1_19 = arith.constant 1 : index
    %12 = vector.load %arg8[%c0_17, %c0_18, %c1_19] : memref<16x18x18xf32, #tpu.memory_space<vmem>>, vector<16x16x16xf32>
    %c0_20 = arith.constant 0 : index
    %c0_21 = arith.constant 0 : index
    %c2 = arith.constant 2 : index
    %13 = vector.load %arg8[%c0_20, %c0_21, %c2] : memref<16x18x18xf32, #tpu.memory_space<vmem>>, vector<16x16x16xf32>
    %c0_22 = arith.constant 0 : index
    %c1_23 = arith.constant 1 : index
    %c0_24 = arith.constant 0 : index
    %14 = vector.load %arg8[%c0_22, %c1_23, %c0_24] : memref<16x18x18xf32, #tpu.memory_space<vmem>>, vector<16x16x16xf32>
    %c0_25 = arith.constant 0 : index
    %c1_26 = arith.constant 1 : index
    %c1_27 = arith.constant 1 : index
    %15 = vector.load %arg8[%c0_25, %c1_26, %c1_27] : memref<16x18x18xf32, #tpu.memory_space<vmem>>, vector<16x16x16xf32>
    %c0_28 = arith.constant 0 : index
    %c1_29 = arith.constant 1 : index
    %c2_30 = arith.constant 2 : index
    %16 = vector.load %arg8[%c0_28, %c1_29, %c2_30] : memref<16x18x18xf32, #tpu.memory_space<vmem>>, vector<16x16x16xf32>
    %c0_31 = arith.constant 0 : index
    %c2_32 = arith.constant 2 : index
    %c0_33 = arith.constant 0 : index
    %17 = vector.load %arg8[%c0_31, %c2_32, %c0_33] : memref<16x18x18xf32, #tpu.memory_space<vmem>>, vector<16x16x16xf32>
    %c0_34 = arith.constant 0 : index
    %c2_35 = arith.constant 2 : index
    %c1_36 = arith.constant 1 : index
    %18 = vector.load %arg8[%c0_34, %c2_35, %c1_36] : memref<16x18x18xf32, #tpu.memory_space<vmem>>, vector<16x16x16xf32>
    %c0_37 = arith.constant 0 : index
    %c2_38 = arith.constant 2 : index
    %c2_39 = arith.constant 2 : index
    %19 = vector.load %arg8[%c0_37, %c2_38, %c2_39] : memref<16x18x18xf32, #tpu.memory_space<vmem>>, vector<16x16x16xf32>
    %20 = tpu.concatenate %11, %12, %13, %14, %15, %16, %17, %18, %19 in 0 : vector<16x16x16xf32>, vector<16x16x16xf32>, vector<16x16x16xf32>, vector<16x16x16xf32>, vector<16x16x16xf32>, vector<16x16x16xf32>, vector<16x16x16xf32>, vector<16x16x16xf32>, vector<16x16x16xf32> -> vector<144x16x16xf32>
    %c0_40 = arith.constant 0 : index
    %c0_41 = arith.constant 0 : index
    %21 = vector.load %arg4[%c0_40, %c0_41] : memref<8x144xf32, #tpu.memory_space<vmem>>, vector<8x144xf32>
    %cst_42 = arith.constant dense<0.000000e+00> : vector<8x16x16xf32>
    %22 = tpu.matmul %21, %20, %cst_42 {dimension_numbers = #tpu.dot_dimension_numbers<[1], [0], [0], [1, 2], [0, 0, 1, 1, 1, 2], [], []>} : vector<8x144xf32>, vector<144x16x16xf32>, vector<8x16x16xf32> -> vector<8x16x16xf32>
    %c0_43 = arith.constant 0 : index
    %c0_44 = arith.constant 0 : index
    %c0_45 = arith.constant 0 : index
    %23 = vector.load %arg5[%c0_43, %c0_44, %c0_45] : memref<8x1x1xf32, #tpu.memory_space<vmem>>, vector<8x1x1xf32>
    %24 = vector.broadcast %23 : vector<8x1x1xf32> to vector<8x16x16xf32>
    %25 = arith.mulf %22, %24 : vector<8x16x16xf32>
    %c0_46 = arith.constant 0 : index
    %c0_47 = arith.constant 0 : index
    %c0_48 = arith.constant 0 : index
    %26 = vector.load %arg6[%c0_46, %c0_47, %c0_48] : memref<8x1x1xf32, #tpu.memory_space<vmem>>, vector<8x1x1xf32>
    %27 = vector.broadcast %26 : vector<8x1x1xf32> to vector<8x16x16xf32>
    %28 = arith.addf %25, %27 : vector<8x16x16xf32>
    %cst_49 = arith.constant 3.000000e+01 : f32
    %29 = vector.broadcast %cst_49 : f32 to vector<8x16x16xf32>
    %30 = arith.minimumf %28, %29 : vector<8x16x16xf32>
    %31 = math.exp %30 : vector<8x16x16xf32>
    %cst_50 = arith.constant 2.000000e+00 : f32
    %32 = vector.broadcast %cst_50 : f32 to vector<8x16x16xf32>
    %33 = arith.addf %31, %32 : vector<8x16x16xf32>
    %34 = arith.mulf %31, %33 : vector<8x16x16xf32>
    %cst_51 = arith.constant 2.000000e+00 : f32
    %35 = vector.broadcast %cst_51 : f32 to vector<8x16x16xf32>
    %36 = arith.addf %34, %35 : vector<8x16x16xf32>
    %37 = tpu.reciprocal %36 {approx = true} : vector<8x16x16xf32> -> vector<8x16x16xf32>
    %38 = arith.mulf %34, %37 : vector<8x16x16xf32>
    %39 = arith.mulf %28, %38 : vector<8x16x16xf32>
    %c0_52 = arith.constant 0 : index
    %c0_53 = arith.constant 0 : index
    %c0_54 = arith.constant 0 : index
    %c0_55 = arith.constant 0 : index
    %40 = vector.load %arg7[%c0_52, %c0_53, %c0_54, %c0_55] : memref<1x8x16x16xf32, #tpu.memory_space<vmem>>, vector<1x8x16x16xf32>
    %41 = vector.shape_cast %40 : vector<1x8x16x16xf32> to vector<8x16x16xf32>
    %42 = vector.shape_cast %39 : vector<8x16x16xf32> to vector<1x8x16x16xf32>
    tpu.vector_store %arg7[%c0_52, %c0_53, %c0_54, %c0_55], %42 {strides = array<i32>} : memref<1x8x16x16xf32, #tpu.memory_space<vmem>>, vector<1x8x16x16xf32>,
    return
  }
  func.func @transform_0(%arg0: i32) -> (i32, i32) {
    %c0_i32 = arith.constant 0 : i32
    %c0_i32_0 = arith.constant 0 : i32
    %c0_i32_1 = arith.constant 0 : i32
    return %c0_i32, %c0_i32_0 : i32, i32
  }
  func.func @transform_1(%arg0: i32) -> (i32, i32) {
    %c0_i32 = arith.constant 0 : i32
    %c0_i32_0 = arith.constant 0 : i32
    %c0_i32_1 = arith.constant 0 : i32
    return %c0_i32, %c0_i32_0 : i32, i32
  }
  func.func @transform_2(%arg0: i32) -> (i32, i32, i32, i32) {
    %c0_i32 = arith.constant 0 : i32
    %c0_i32_0 = arith.constant 0 : i32
    %c0_i32_1 = arith.constant 0 : i32
    %c0_i32_2 = arith.constant 0 : i32
    return %arg0, %c0_i32, %c0_i32_0, %c0_i32_1 : i32, i32, i32, i32
  }
  func.func @transform_3(%arg0: i32) -> (i32, i32) {
    %c0_i32 = arith.constant 0 : i32
    %c0_i32_0 = arith.constant 0 : i32
    %c0_i32_1 = arith.constant 0 : i32
    return %c0_i32, %c0_i32_0 : i32, i32
  }
  func.func @transform_4(%arg0: i32) -> (i32, i32, i32) {
    %c0_i32 = arith.constant 0 : i32
    %c0_i32_0 = arith.constant 0 : i32
    %c0_i32_1 = arith.constant 0 : i32
    %c0_i32_2 = arith.constant 0 : i32
    return %c0_i32, %c0_i32_0, %c0_i32_1 : i32, i32, i32
  }
  func.func @transform_5(%arg0: i32) -> (i32, i32, i32) {
    %c0_i32 = arith.constant 0 : i32
    %c0_i32_0 = arith.constant 0 : i32
    %c0_i32_1 = arith.constant 0 : i32
    %c0_i32_2 = arith.constant 0 : i32
    return %c0_i32, %c0_i32_0, %c0_i32_1 : i32, i32, i32
  }
  func.func @transform_6(%arg0: i32) -> (i32, i32, i32, i32) {
    %c0_i32 = arith.constant 0 : i32
    %c0_i32_0 = arith.constant 0 : i32
    %c0_i32_1 = arith.constant 0 : i32
    %c0_i32_2 = arith.constant 0 : i32
    return %arg0, %c0_i32, %c0_i32_0, %c0_i32_1 : i32, i32, i32, i32
  }
}

</mosaic_0001>

<bundles_post_ra>
// kernel: tpu_custom_call.1
= control target key start
LH: loop header
LB: loop body
LE: loop exit
PB: predicated region body
PF: predicated region fallthrough
CT: control target
= control target key end

     0   :  { %11 = vsyncpa [#allocation4], 0  ;;  %s16825_s0 = inlined_call_operand.vmem [shape: f32[16,8], index: 0, kind: input, shape index: {}]   ;;  %s16826_s1 = inlined_call_operand.vmem [shape: f32[8,16], index: 1, kind: input, shape index: {}]   ;;  %s16827_s2 = inlined_call_operand.vmem [shape: f32[2,16,8,8], index: 2, kind: input, shape index: {}]   ;;  %s16828_s3 = inlined_call_operand.vmem [shape: f32[8,144], index: 3, kind: input, shape index: {}]   ;;  %s16829_s4 = inlined_call_operand.vmem [shape: f32[8,1,1], index: 4, kind: input, shape index: {}]   ;;  %s16830_s5 = inlined_call_operand.vmem [shape: f32[8,1,1], index: 5, kind: input, shape index: {}]   ;;  %s16831_s6 = inlined_call_operand.hbm [shape: f32[2,8,16,16], index: 6, kind: output, shape index: {}]  }
   0x1   :  { %13 = vsyncpa [#allocation4 + $0x1], 0  ;;  %s10300_s21 = smov 0   ;;  %s10302_s22 = smov 0  }
   0x2   :  { %s10304_s23 = smov 0   ;;  %s10306_s24 = smov 0  }
   0x3 LB: > { %s10321_s25 = sadd.s32 4294967295, %s10246_s24   ;;  %s9722_s26 = sadd.s32 4294967294, %s10246_s24   ;;  %s10246_s24 = sphi %s10306_s24, %s19296_s24   ;;  %s10242_s23 = sphi %s10304_s23, %s19295_s23   ;;  %s10238_s22 = sphi %s10302_s22, %s19294_s22   ;;  %s10234_s21 = sphi %s10300_s21, %s19293_s21  }
   0x4   : > { %s10325_s27 = sadd.s32 1, %s10246_s24   ;;  %s157_s28 = sadd.s32 1, %s10242_s23 }
   0x5   : > { %s154_s29 = ssub.s32 %s10246_s24, %s10325_s27  ;;  %p167_p0 = scmp.ne.s32.totalorder %s10242_s23, %s10238_s22 }
   0x6   : > { %p155_p1 = scmp.eq.s32.totalorder %s154_s29, 0  ;;  %p168_p2 = scmp.eq.s32.totalorder %s10321_s25, 1 }
   0x7   : > { %p173_p3 = scmp.ne.s32.totalorder %s10238_s22, %s10234_s21  ;;  %p174_p4 = scmp.eq.s32.totalorder %s9722_s26, 1 }
   0x8   : > { %s10336_s30 = scalar_select %p155_p1, %s10242_s23, %s157_s28  }
   0x9   : > { %p10338_p5 = por %p168_p2, %p167_p0  ;;  %p10342_p6 = por %p174_p4, %p173_p3 }
   0xa   : > { %p9725_p7 = scmp.ge.s32.totalorder %s10246_s24, 1  ;;  %p215_p8 = scmp.lt.s32.totalorder %s10246_s24, 3 }
   0xc   : > { %p216_p9 = pnand %p9725_p7, %p215_p8 }
   0xe   : > { %219 = sbr.rel (%p216_p9) target bundleno = 2051 (0x803), region = 44 }
  0x13   : > { %v266_v0 = vld [vmem:[%s16826_s1] sm:$0xff]  ;;  %p245_p10 = scmp.lt.s32.totalorder %s10321_s25, 1  ;;  %vm267_vm0 = vcmask 64512   ;;  %v10386_v22 = vld [vmem:[%s16825_s0 + $0x8] sm:$0xff]  ;;  %vm1669_vm1 = vcmask 146432   ;;  %vm1672_vm2 = vcmask 140288  }
  0x14   : > { %9866 = vmatprep.subr.mxu0 %v266_v0  ;;  %9972 = vmatprep.subr.mxu1 %v266_v0  ;;  %v10375_v17 = vld [vmem:[%s16825_s0] sm:$0xff]  ;;  %v16832_v35 = vmov 0.0   ;;  %s10249_s20 = smov 1   ;;  %vm1847_vm3 = vcmask 138248   ;;  %s10250_s26 = smov 127   ;;  %vm8554_vm4 = vcmask 130048  }
  0x15   : > { %9867 = vmatpush3.msra.mxu0 %v266_v0  ;;  %9973 = vmatpush3.msra.mxu1 %v266_v0  ;;  %s246_s11 = scalar_select %p245_p10, %s10321_s25, 1  ;;  %1671 = vst.msk [vmem:[#allocation2 + $0x8] sm:$0xff] %vm1669_vm1, %v16832_v35  ;;  %1670 = vst.msk [vmem:[#allocation2] sm:$0xff] %vm1669_vm1, %v16832_v35  ;;  %vm8573_vm5 = vcmask 261120   ;;  %vm8592_vm6 = vcmask 392192   ;;  %vm8611_vm7 = vcmask 523264  }
  0x16   : > { %1673 = vst.msk [vmem:[#allocation2 + $0x10] sm:$0x3] %vm1672_vm2, %v16832_v35  ;;  %1676 = vst.msk [vmem:[#allocation2 + $0x28] sm:$0x3] %vm1672_vm2, %v16832_v35  ;;  %s10251_s28 = smov 126   ;;  %s10254_s29 = smov 32  }
  0x17   : > { %s9799_s12 = sshll.u32 %s246_s11, 7  ;;  %1674 = vst.msk [vmem:[#allocation2 + $0x18] sm:$0xff] %vm1669_vm1, %v16832_v35  ;;  %1675 = vst.msk [vmem:[#allocation2 + $0x20] sm:$0xff] %vm1669_vm1, %v16832_v35  ;;  %s10255_s9 = smov 16   ;;  %vm8630_vm8 = vcmask 654336   ;;  %vm8668_vm9 = vcmask 916480  }
  0x18   : > { %s249_s15 = scalar_lea.vmem %s16827_s2, %s9799_s12  ;;  %1677 = vst.msk [vmem:[#allocation2 + $0x30] sm:$0xff] %vm1669_vm1, %v16832_v35  ;;  %1678 = vst.msk [vmem:[#allocation2 + $0x38] sm:$0xff] %vm1669_vm1, %v16832_v35  ;;  %s10256_s10 = smov 48   ;;  %vm8649_vm10 = vcmask 785408  }
  0x19   : > { %v250_v1 = vld [vmem:[%s249_s15] sm:$0xff]  ;;  %v251_v3 = vld [vmem:[%s249_s15 + $0x8] sm:$0xff]  ;;  %v252_v5 = vld [vmem:[%s249_s15 + $0x10] sm:$0xff]  ;;  %1679 = vst.msk [vmem:[#allocation2 + $0x40] sm:$0x3] %vm1672_vm2, %v16832_v35  ;;  %s10257_s11 = smov 64  }
  0x1a   : > { %v258_v2 = vld [vmem:[%s249_s15 + $0x40] sm:$0xff]  ;;  %9868 = vmatprep.mubr.msk.f32.mxu0 %vm267_vm0, %v250_v1  ;;  %v259_v4 = vld [vmem:[%s249_s15 + $0x48] sm:$0xff]  ;;  %v260_v6 = vld [vmem:[%s249_s15 + $0x50] sm:$0xff]  ;;  %1680 = vst.msk [vmem:[#allocation2 + $0x48] sm:$0xff] %vm1669_vm1, %v16832_v35  ;;  %s10258_s12 = smov 80   ;;  %s10259_s13 = smov 96  }
  0x1b   : > { %9880 = vmatprep.mubr.msk.f32.mxu1 %vm267_vm0, %v258_v2  ;;  %9869 = vmatmul.mubr.msk.f32.vlgmr.msra.gmra.mxu0 %vm267_vm0, %v251_v3  ;;  %v253_v7 = vld [vmem:[%s249_s15 + $0x18] sm:$0xff]  ;;  %v254_v9 = vld [vmem:[%s249_s15 + $0x20] sm:$0xff]  ;;  %v255_v11 = vld [vmem:[%s249_s15 + $0x28] sm:$0xff]  ;;  %1681 = vst.msk [vmem:[#allocation2 + $0x50] sm:$0xff] %vm1669_vm1, %v16832_v35  ;;  %s10260_s14 = smov 112  }
  0x1c   : > { %9881 = vmatmul.mubr.msk.f32.vlgmr.msra.gmra.mxu1 %vm267_vm0, %v259_v4  ;;  %9871 = vmatprep.mubr.msk.f32.mxu0 %vm267_vm0, %v252_v5  ;;  %v261_v8 = vld [vmem:[%s249_s15 + $0x58] sm:$0xff]  ;;  %v262_v10 = vld [vmem:[%s249_s15 + $0x60] sm:$0xff]  ;;  %v263_v12 = vld [vmem:[%s249_s15 + $0x68] sm:$0xff]  ;;  %1682 = vst.msk [vmem:[#allocation2 + $0x58] sm:$0x3] %vm1672_vm2, %v16832_v35 }
  0x1d   : > { %9883 = vmatprep.mubr.msk.f32.mxu1 %vm267_vm0, %v260_v6  ;;  %v256_v13 = vld [vmem:[%s249_s15 + $0x30] sm:$0xff]  ;;  %v257_v15 = vld [vmem:[%s249_s15 + $0x38] sm:$0xff]  ;;  %1683 = vst.msk [vmem:[#allocation2 + $0x60] sm:$0xff] %vm1669_vm1, %v16832_v35  ;;  %1684 = vst.msk [vmem:[#allocation2 + $0x68] sm:$0xff] %vm1669_vm1, %v16832_v35 }
  0x1e   : > { %v264_v14 = vld [vmem:[%s249_s15 + $0x70] sm:$0xff]  ;;  %v265_v16 = vld [vmem:[%s249_s15 + $0x78] sm:$0xff]  ;;  %1685 = vst.msk [vmem:[#allocation2 + $0x70] sm:$0x3] %vm1672_vm2, %v16832_v35  ;;  %1688 = vst.msk [vmem:[#allocation2 + $0x88] sm:$0x3] %vm1672_vm2, %v16832_v35 }
  0x1f   : > { %9872 = vmatmul.mubr.msk.f32.gmra.mxu0 %vm267_vm0, %v253_v7  ;;  %1686 = vst.msk [vmem:[#allocation2 + $0x78] sm:$0xff] %vm1669_vm1, %v16832_v35  ;;  %1687 = vst.msk [vmem:[#allocation2 + $0x80] sm:$0xff] %vm1669_vm1, %v16832_v35  ;;  %s9800_s15 = sshll.u32 %s10321_s25, 11 }
  0x20   : > { %9884 = vmatmul.mubr.msk.f32.gmra.mxu1 %vm267_vm0, %v261_v8  ;;  %9874 = vmatprep.mubr.msk.f32.mxu0 %vm267_vm0, %v254_v9  ;;  %1689 = vst.msk [vmem:[#allocation2 + $0x90] sm:$0xff] %vm1669_vm1, %v16832_v35  ;;  %1690 = vst.msk [vmem:[#allocation2 + $0x98] sm:$0xff] %vm1669_vm1, %v16832_v35  ;;  %s16772_s25 = scalar_lea.hbm %s16831_s6, %s9800_s15 }
  0x21   : > { %9886 = vmatprep.mubr.msk.f32.mxu1 %vm267_vm0, %v262_v10  ;;  %1691 = vst.msk [vmem:[#allocation2 + $0xa0] sm:$0x3] %vm1672_vm2, %v16832_v35  ;;  %1694 = vst.msk [vmem:[#allocation2 + $0xb8] sm:$0x3] %vm1672_vm2, %v16832_v35 }
  0x22   : > { %1692 = vst.msk [vmem:[#allocation2 + $0xa8] sm:$0xff] %vm1669_vm1, %v16832_v35  ;;  %1693 = vst.msk [vmem:[#allocation2 + $0xb0] sm:$0xff] %vm1669_vm1, %v16832_v35 }
  0x23   : > { %9875 = vmatmul.mubr.msk.f32.gmra.mxu0 %vm267_vm0, %v255_v11  ;;  %1695 = vst.msk [vmem:[#allocation2 + $0xc0] sm:$0xff] %vm1669_vm1, %v16832_v35  ;;  %1696 = vst.msk [vmem:[#allocation2 + $0xc8] sm:$0xff] %vm1669_vm1, %v16832_v35 }
  0x24   : > { %9887 = vmatmul.mubr.msk.f32.gmra.mxu1 %vm267_vm0, %v263_v12  ;;  %9877 = vmatprep.mubr.msk.f32.mxu0 %vm267_vm0, %v256_v13  ;;  %1697 = vst.msk [vmem:[#allocation2 + $0xd0] sm:$0x3] %vm1672_vm2, %v16832_v35  ;;  %1700 = vst.msk [vmem:[#allocation2 + $0xe8] sm:$0x3] %vm1672_vm2, %v16832_v35 }
  0x25   : > { %9889 = vmatprep.mubr.msk.f32.mxu1 %vm267_vm0, %v264_v14  ;;  %1698 = vst.msk [vmem:[#allocation2 + $0xd8] sm:$0xff] %vm1669_vm1, %v16832_v35  ;;  %1699 = vst.msk [vmem:[#allocation2 + $0xe0] sm:$0xff] %vm1669_vm1, %v16832_v35 }
  0x26   : > { %1701 = vst.msk [vmem:[#allocation2 + $0xf0] sm:$0xff] %vm1669_vm1, %v16832_v35  ;;  %1702 = vst.msk [vmem:[#allocation2 + $0xf8] sm:$0xff] %vm1669_vm1, %v16832_v35 }
  0x27   : > { %9878 = vmatmul.mubr.msk.f32.gmra.mxu0 %vm267_vm0, %v257_v15  ;;  %1703 = vst.msk [vmem:[#allocation2 + $0x100] sm:$0x3] %vm1672_vm2, %v16832_v35  ;;  %1706 = vst.msk [vmem:[#allocation2 + $0x118] sm:$0x3] %vm1672_vm2, %v16832_v35 }
  0x28   : > { %9890 = vmatmul.mubr.msk.f32.gmra.mxu1 %vm267_vm0, %v265_v16  ;;  %9934 = vmatprep.mubr.msk.f32.mxu0 %vm267_vm0, %v10375_v17  ;;  %1704 = vst.msk [vmem:[#allocation2 + $0x108] sm:$0xff] %vm1669_vm1, %v16832_v35  ;;  %1705 = vst.msk [vmem:[#allocation2 + $0x110] sm:$0xff] %vm1669_vm1, %v16832_v35 }
  0x29   : > { %9894 = vmatprep.mubr.msk.f32.mxu1 %vm267_vm0, %v10375_v17  ;;  %1707 = vst.msk [vmem:[#allocation2 + $0x120] sm:$0xff] %vm1669_vm1, %v16832_v35  ;;  %1708 = vst.msk [vmem:[#allocation2 + $0x128] sm:$0xff] %vm1669_vm1, %v16832_v35 }
  0x2a   : > { %1709 = vst.msk [vmem:[#allocation2 + $0x130] sm:$0x3] %vm1672_vm2, %v16832_v35  ;;  %1712 = vst.msk [vmem:[#allocation2 + $0x148] sm:$0x3] %vm1672_vm2, %v16832_v35 }
  0x2b   : > { %1710 = vst.msk [vmem:[#allocation2 + $0x138] sm:$0xff] %vm1669_vm1, %v16832_v35  ;;  %1711 = vst.msk [vmem:[#allocation2 + $0x140] sm:$0xff] %vm1669_vm1, %v16832_v35 }
  0x2c   : > { %1713 = vst.msk [vmem:[#allocation2 + $0x150] sm:$0xff] %vm1669_vm1, %v16832_v35  ;;  %1714 = vst.msk [vmem:[#allocation2 + $0x158] sm:$0xff] %vm1669_vm1, %v16832_v35 }
  0x2d   : > { %1715 = vst.msk [vmem:[#allocation2 + $0x160] sm:$0x3] %vm1672_vm2, %v16832_v35  ;;  %1718 = vst.msk [vmem:[#allocation2 + $0x178] sm:$0x3] %vm1672_vm2, %v16832_v35 }
  0x2e   : > { %1716 = vst.msk [vmem:[#allocation2 + $0x168] sm:$0xff] %vm1669_vm1, %v16832_v35  ;;  %1717 = vst.msk [vmem:[#allocation2 + $0x170] sm:$0xff] %vm1669_vm1, %v16832_v35 }
  0xdb   : > { %v9870_v18 = vpop.f32.mrf.mxu0 }
  0xdc   : > { %v10381_v19 = vpop.f32.mrf.mxu1 }
  0xdd   : > { %v382_v20 = vpop.f32.mrf.mxu0 }
  0xde   : > { %v422_v21 = vpop.f32.mrf.mxu1  ;;  %9892 = vmatprep.subr.mxu1 %v382_v20 }
  0xdf   : > { %9932 = vmatprep.subr.mxu0 %v422_v21  ;;  %9893 = vmatpush3.msra.mxu1 %v382_v20  ;;  %v9873_v23 = vpop.f32.mrf.mxu0 }
  0xe0   : > { %9933 = vmatpush3.msra.mxu0 %v422_v21  ;;  %v9885_v24 = vpop.f32.mrf.mxu1  ;;  %9895 = vmatmul.mubr.msk.f32.vlgmr.msra.gmra.mxu1 %vm267_vm0, %v10386_v22 }
  0xe1   : > { %9897 = vmatprep.subr.mxu1 %v9870_v18  ;;  %9935 = vmatmul.mubr.msk.f32.vlgmr.msra.gmra.mxu0 %vm267_vm0, %v10386_v22  ;;  %v392_v25 = vpop.f32.mrf.mxu0 }
  0xe2   : > { %9898 = vmatpush3.msra.mxu1 %v9870_v18  ;;  %v432_v26 = vpop.f32.mrf.mxu1  ;;  %9899 = vmatprep.mubr.msk.f32.mxu1 %vm267_vm0, %v10375_v17 }
  0xe3   : > { %9902 = vmatprep.subr.mxu1 %v392_v25  ;;  %9942 = vmatprep.subr.mxu0 %v432_v26  ;;  %v9876_v27 = vpop.f32.mrf.mxu0 }
  0xe4   : > { %9944 = vmatprep.mubr.msk.f32.mxu0 %vm267_vm0, %v10375_v17  ;;  %v9888_v28 = vpop.f32.mrf.mxu1  ;;  %9900 = vmatmul.mubr.msk.f32.vlgmr.msra.gmra.mxu1 %vm267_vm0, %v10386_v22 }
  0xe5   : > { %9943 = vmatpush3.msra.mxu0 %v432_v26  ;;  %9903 = vmatpush3.msra.mxu1 %v392_v25  ;;  %v402_v30 = vpop.f32.mrf.mxu0 }
  0xe6   : > { %9904 = vmatprep.mubr.msk.f32.mxu1 %vm267_vm0, %v10375_v17  ;;  %v442_v29 = vpop.f32.mrf.mxu1  ;;  %9945 = vmatmul.mubr.msk.f32.vlgmr.msra.gmra.mxu0 %vm267_vm0, %v10386_v22 }
  0xe7   : > { %9907 = vmatprep.subr.mxu1 %v9873_v23  ;;  %9952 = vmatprep.subr.mxu0 %v442_v29  ;;  %v9879_v33 = vpop.f32.mrf.mxu0 }
  0xe8   : > { %9954 = vmatprep.mubr.msk.f32.mxu0 %vm267_vm0, %v10375_v17  ;;  %v9891_v31 = vpop.f32.mrf.mxu1  ;;  %9905 = vmatmul.mubr.msk.f32.vlgmr.msra.gmra.mxu1 %vm267_vm0, %v10386_v22 }
  0xe9   : > { %9953 = vmatpush3.msra.mxu0 %v442_v29  ;;  %9908 = vmatpush3.msra.mxu1 %v9873_v23  ;;  %v412_v34 = vpop.f32.mrf.mxu0 }
  0xea   : > { %9909 = vmatprep.mubr.msk.f32.mxu1 %vm267_vm0, %v10375_v17  ;;  %v452_v32 = vpop.f32.mrf.mxu1  ;;  %9912 = vmatprep.subr.mxu1 %v402_v30 }
  0xeb   : > { %9955 = vmatmul.mubr.msk.f32.vlgmr.msra.gmra.mxu0 %vm267_vm0, %v10386_v22  ;;  %9962 = vmatprep.subr.mxu0 %v452_v32 }
  0xec   : > { %9964 = vmatprep.mubr.msk.f32.mxu0 %vm267_vm0, %v10375_v17  ;;  %9910 = vmatmul.mubr.msk.f32.vlgmr.msra.gmra.mxu1 %vm267_vm0, %v10386_v22 }
  0xed   : > { %9963 = vmatpush3.msra.mxu0 %v452_v32  ;;  %9913 = vmatpush3.msra.mxu1 %v402_v30 }
  0xee   : > { %9914 = vmatprep.mubr.msk.f32.mxu1 %vm267_vm0, %v10375_v17  ;;  %9917 = vmatprep.subr.mxu1 %v9876_v27 }
  0xef   : > { %9965 = vmatmul.mubr.msk.f32.vlgmr.msra.gmra.mxu0 %vm267_vm0, %v10386_v22 }
  0xf0   : > { %9915 = vmatmul.mubr.msk.f32.vlgmr.msra.gmra.mxu1 %vm267_vm0, %v10386_v22 }
  0xf1   : > { %9918 = vmatpush3.msra.mxu1 %v9876_v27  ;;  %9919 = vmatprep.mubr.msk.f32.mxu1 %vm267_vm0, %v10375_v17 }
  0xf2   : > { %9922 = vmatprep.subr.mxu1 %v412_v34 }
  0xf4   : > { %9920 = vmatmul.mubr.msk.f32.vlgmr.msra.gmra.mxu1 %vm267_vm0, %v10386_v22 }
  0xf5   : > { %9923 = vmatpush3.msra.mxu1 %v412_v34  ;;  %9924 = vmatprep.mubr.msk.f32.mxu1 %vm267_vm0, %v10375_v17 }
  0xf6   : > { %9927 = vmatprep.subr.mxu1 %v9879_v33 }
  0xf8   : > { %9925 = vmatmul.mubr.msk.f32.vlgmr.msra.gmra.mxu1 %vm267_vm0, %v10386_v22 }
  0xf9   : > { %9928 = vmatpush3.msra.mxu1 %v9879_v33  ;;  %9929 = vmatprep.mubr.msk.f32.mxu1 %vm267_vm0, %v10375_v17 }
  0xfa   : > { %9937 = vmatprep.subr.mxu1 %v10381_v19 }
  0xfc   : > { %9930 = vmatmul.mubr.msk.f32.vlgmr.msra.gmra.mxu1 %vm267_vm0, %v10386_v22 }
  0xfd   : > { %9938 = vmatpush3.msra.mxu1 %v10381_v19  ;;  %9939 = vmatprep.mubr.msk.f32.mxu1 %vm267_vm0, %v10375_v17 }
  0xfe   : > { %9947 = vmatprep.subr.mxu1 %v9885_v24 }
 0x100   : > { %9940 = vmatmul.mubr.msk.f32.vlgmr.msra.gmra.mxu1 %vm267_vm0, %v10386_v22 }
 0x101   : > { %9948 = vmatpush3.msra.mxu1 %v9885_v24  ;;  %9949 = vmatprep.mubr.msk.f32.mxu1 %vm267_vm0, %v10375_v17 }
 0x102   : > { %9957 = vmatprep.subr.mxu1 %v9888_v28 }
 0x104   : > { %9950 = vmatmul.mubr.msk.f32.vlgmr.msra.gmra.mxu1 %vm267_vm0, %v10386_v22 }
 0x105   : > { %9958 = vmatpush3.msra.mxu1 %v9888_v28  ;;  %9959 = vmatprep.mubr.msk.f32.mxu1 %vm267_vm0, %v10375_v17 }
 0x106   : > { %9967 = vmatprep.subr.mxu1 %v9891_v31 }
 0x108   : > { %9960 = vmatmul.mubr.msk.f32.vlgmr.msra.gmra.mxu1 %vm267_vm0, %v10386_v22 }
 0x109   : > { %9968 = vmatpush3.msra.mxu1 %v9891_v31  ;;  %9969 = vmatprep.mubr.msk.f32.mxu1 %vm267_vm0, %v10375_v17 }
 0x10c   : > { %9970 = vmatmul.mubr.msk.f32.vlgmr.msra.gmra.mxu1 %vm267_vm0, %v10386_v22 }
 0x1a0   : > { %v9896_v36 = vpop.f32.mrf.mxu1 }
 0x1a1   : > { %v9936_v37 = vpop.f32.mrf.mxu0  ;;  %1753 = vrot.lane.b32.xlu0 %v9896_v36, %s10249_s20  ;;  %v10252_v36 = vmov 1983009808  }
 0x1a2   : > { %1785 = vrot.lane.b32.xlu1 %v9936_v37, %s10249_s20  ;;  %v535_v38 = vpop.f32.mrf.mxu1  ;;  %v2653_v37 = vunpack.c.l.s4 %v10252_v36 }
 0x1a3   : > { %v1135_v39 = vpop.f32.mrf.mxu0 }
 0x1a4   : > { %v9901_v40 = vpop.f32.mrf.mxu1 }
 0x1a5   : > { %1751 = vrot.lane.b32.xlu0 %v535_v38, %s10249_s20  ;;  %v2655_v38 = vlaneseq }
 0x1a6   : > { %1757 = vrot.lane.b32.xlu1 %v9901_v40, %s10249_s20  ;;  %v610_v41 = vpop.f32.mrf.mxu1  ;;  %v9946_v42 = vpop.f32.mrf.mxu0 }
 0x1a8   : > { %v9906_v43 = vpop.f32.mrf.mxu1  ;;  %v1285_v44 = vpop.f32.mrf.mxu0 }
 0x1a9   : > { %1783 = vrot.lane.b32.xlu0 %v1135_v39, %s10249_s20 }
 0x1aa   : > { %1793 = vrot.lane.b32.xlu1 %v9946_v42, %s10249_s20  ;;  %v685_v45 = vpop.f32.mrf.mxu1 }
 0x1ab   : > { %v9956_v47 = vpop.f32.mrf.mxu0 }
 0x1ac   : > { %v9911_v46 = vpop.f32.mrf.mxu1 }
 0x1ad   : > { %1791 = vrot.lane.b32.xlu0 %v1285_v44, %s10249_s20  ;;  %v1435_v50 = vpop.f32.mrf.mxu0 }
 0x1ae   : > { %1755 = vrot.lane.b32.xlu1 %v610_v41, %s10249_s20  ;;  %v760_v48 = vpop.f32.mrf.mxu1 }
 0x1af   : > { %v9966_v53 = vpop.f32.mrf.mxu0 }
 0x1b0   : > { %v9916_v49 = vpop.f32.mrf.mxu1 }
 0x1b1   : > { %1759 = vrot.lane.b32.xlu0 %v685_v45, %s10249_s20  ;;  %v1585_v56 = vpop.f32.mrf.mxu0 }
 0x1b2   : > { %1761 = vrot.lane.b32.xlu1 %v9906_v43, %s10249_s20  ;;  %v835_v51 = vpop.f32.mrf.mxu1 }
 0x1b4   : > { %v9921_v52 = vpop.f32.mrf.mxu1 }
 0x1b5   : > { %1799 = vrot.lane.b32.xlu0 %v1435_v50, %s10249_s20 }
 0x1b6   : > { %1801 = vrot.lane.b32.xlu1 %v9956_v47, %s10249_s20  ;;  %v910_v54 = vpop.f32.mrf.mxu1  ;;  %v2654_v47 = vunpack.c.0.s8 %v2653_v37 }
 0x1b8   : > { %v9926_v55 = vpop.f32.mrf.mxu1 }
 0x1b9   : > { %1763 = vrot.lane.b32.xlu0 %v760_v48, %s10249_s20  ;;  %v10662_v48 = vshrl.u32 %v2655_v38, 7 }
 0x1ba   : > { %1765 = vrot.lane.b32.xlu1 %v9911_v46, %s10249_s20  ;;  %v985_v57 = vpop.f32.mrf.mxu1 }
 0x1bc   : > { %v9931_v58 = vpop.f32.mrf.mxu1 }
 0x1bd   : > { %1807 = vrot.lane.b32.xlu0 %v1585_v56, %s10249_s20 }
 0x1be   : > { %1809 = vrot.lane.b32.xlu1 %v9966_v53, %s10249_s20  ;;  %v1060_v59 = vpop.f32.mrf.mxu1 }
 0x1c0   : > { %v9941_v60 = vpop.f32.mrf.mxu1 }
 0x1c1   : > { %1767 = vrot.lane.b32.xlu0 %v835_v51, %s10249_s20 }
 0x1c2   : > { %1769 = vrot.lane.b32.xlu1 %v9916_v49, %s10249_s20  ;;  %v1210_v61 = vpop.f32.mrf.mxu1 }
 0x1c4   : > { %v9951_v62 = vpop.f32.mrf.mxu1 }
 0x1c5   : > { %1771 = vrot.lane.b32.xlu0 %v910_v54, %s10249_s20 }
 0x1c6   : > { %1773 = vrot.lane.b32.xlu1 %v9921_v52, %s10249_s20  ;;  %v1360_v63 = vpop.f32.mrf.mxu1 }
 0x1c8   : > { %v9961_v0 = vpop.f32.mrf.mxu1 }
 0x1c9   : > { %1775 = vrot.lane.b32.xlu0 %v985_v57, %s10249_s20 }
 0x1ca   : > { %1777 = vrot.lane.b32.xlu1 %v9926_v55, %s10249_s20  ;;  %v1510_v1 = vpop.f32.mrf.mxu1 }
 0x1cc   : > { %v9971_v2 = vpop.f32.mrf.mxu1 }
 0x1cd   : > { %1779 = vrot.lane.b32.xlu0 %v1060_v59, %s10249_s20 }
 0x1ce   : > { %1781 = vrot.lane.b32.xlu1 %v9931_v58, %s10249_s20  ;;  %v1660_v3 = vpop.f32.mrf.mxu1 }
 0x1d1   : > { %1787 = vrot.lane.b32.xlu0 %v1210_v61, %s10249_s20 }
 0x1d2   : > { %1789 = vrot.lane.b32.xlu1 %v9941_v60, %s10249_s20 }
 0x1d5   : > { %1795 = vrot.lane.b32.xlu0 %v1360_v63, %s10249_s20 }
 0x1d6   : > { %1797 = vrot.lane.b32.xlu1 %v9951_v62, %s10249_s20  ;;  %v10693_v62 = vsub.s32 %v2654_v47, %v10662_v48 }
 0x1d8   : > { %17643 = vst [vmem:[#allocation9_spill] sm:$0xff] %v10693_v62 }
 0x1d9   : > { %1803 = vrot.lane.b32.xlu0 %v1510_v1, %s10249_s20 }
 0x1da   : > { %1805 = vrot.lane.b32.xlu1 %v9961_v0, %s10249_s20 }
 0x1dd   : > { %1811 = vrot.lane.b32.xlu0 %v1660_v3, %s10249_s20 }
 0x1de   : > { %1813 = vrot.lane.b32.xlu1 %v9971_v2, %s10249_s20 }
 0x213   : > { %v1754_v4 = vpop.permute.xlu0 %1753 }
 0x214   : > { %1849 = vst.msk [vmem:[#allocation2 + $0x9] sm:$0xff] %vm1847_vm3, %v1754_v4  ;;  %v1786_v5 = vpop.permute.xlu1 %1785 }
 0x215   : > { %1865 = vst.msk [vmem:[#allocation2 + $0xc9] sm:$0xff] %vm1847_vm3, %v1786_v5 }
 0x217   : > { %v1752_v6 = vpop.permute.xlu0 %1751 }
 0x218   : > { %1848 = vst.msk [vmem:[#allocation2 + $0x1] sm:$0xff] %vm1847_vm3, %v1752_v6  ;;  %v1758_v7 = vpop.permute.xlu1 %1757 }
 0x219   : > { %1851 = vst.msk [vmem:[#allocation2 + $0x21] sm:$0xff] %vm1847_vm3, %v1758_v7 }
 0x21b   : > { %v1784_v8 = vpop.permute.xlu0 %1783  ;;  %v10582_v9 = vld [vmem:[#allocation2 + $0x9] sm:$0xff] }
 0x21c   : > { %1864 = vst.msk [vmem:[#allocation2 + $0xc1] sm:$0xff] %vm1847_vm3, %v1784_v8  ;;  %v1794_v10 = vpop.permute.xlu1 %1793  ;;  %2234 = vrot.lane.b32.xlu1 %v10582_v9, %s10250_s26  ;;  %v10588_v11 = vld [vmem:[#allocation2 + $0xc9] sm:$0xff] }
 0x21d   : > { %1869 = vst.msk [vmem:[#allocation2 + $0xf9] sm:$0xff] %vm1847_vm3, %v1794_v10  ;;  %v10624_v27 = vld [vmem:[#allocation2 + $0xa] sm:$0xff] }
 0x21e   : > { %v10632_v30 = vld [vmem:[#allocation2 + $0xca] sm:$0xff] }
 0x21f   : > { %v1792_v12 = vpop.permute.xlu0 %1791  ;;  %v10590_v13 = vld [vmem:[#allocation2] sm:$0xff]  ;;  %v10688_v60 = vld [vmem:[#allocation2 + $0x8] sm:$0xff] }
 0x220   : > { %v1756_v14 = vpop.permute.xlu1 %1755  ;;  %1868 = vst.msk [vmem:[#allocation2 + $0xf1] sm:$0xff] %vm1847_vm3, %v1792_v12  ;;  %2266 = vrot.lane.b32.xlu1 %v10588_v11, %s10250_s26  ;;  %2008 = vrot.lane.b32.xlu0 %v10590_v13, %s10250_s26  ;;  %v10634_v31 = vld [vmem:[#allocation2 + $0x1] sm:$0xff] }
 0x221   : > { %1850 = vst.msk [vmem:[#allocation2 + $0x19] sm:$0xff] %vm1847_vm3, %v1756_v14  ;;  %v10652_v41 = vld [vmem:[#allocation2 + $0x22] sm:$0xff] }
 0x222   : > { %v10690_v61 = vld [vmem:[#allocation2 + $0x2] sm:$0xff] }
 0x223   : > { %v1760_v15 = vpop.permute.xlu0 %1759  ;;  %v10598_v16 = vld [vmem:[#allocation2 + $0xc0] sm:$0xff]  ;;  %v10720_v10 = vld [vmem:[#allocation2 + $0xc8] sm:$0xff] }
 0x224   : > { %v1762_v17 = vpop.permute.xlu1 %1761  ;;  %1852 = vst.msk [vmem:[#allocation2 + $0x31] sm:$0xff] %vm1847_vm3, %v1760_v15  ;;  %2330 = vrot.lane.b32.xlu1 %v10582_v9, %s10251_s28  ;;  %2040 = vrot.lane.b32.xlu0 %v10598_v16, %s10250_s26  ;;  %v10605_v18 = vld [vmem:[#allocation2 + $0xf9] sm:$0xff]  ;;  %v10642_v34 = vld [vmem:[#allocation2 + $0xc1] sm:$0xff]  ;;  %17647 = vst [vmem:[#allocation13_spill] sm:$0xff] %v10720_v10 }
 0x225   : > { %1853 = vst.msk [vmem:[#allocation2 + $0x39] sm:$0xff] %vm1847_vm3, %v1762_v17  ;;  %v6050_v19 = vcombine.low %v10588_v11, %v10605_v18  ;;  %v6051_v20 = vcombine.high %v10588_v11, %v10605_v18 }
 0x227   : > { %v1800_v21 = vpop.permute.xlu0 %1799  ;;  %v10612_v22 = vld [vmem:[#allocation2 + $0xf0] sm:$0xff] }
 0x228   : > { %v1802_v23 = vpop.permute.xlu1 %1801  ;;  %1872 = vst.msk [vmem:[#allocation2 + $0x121] sm:$0xff] %vm1847_vm3, %v1800_v21  ;;  %2362 = vrot.lane.b32.xlu1 %v10588_v11, %s10251_s28  ;;  %2104 = vrot.lane.b32.xlu0 %v10590_v13, %s10251_s28  ;;  %v2786_v24 = vcombine.low %v10598_v16, %v10612_v22  ;;  %v2787_v25 = vcombine.high %v10598_v16, %v10612_v22  ;;  %v10650_v40 = vld [vmem:[#allocation2 + $0x18] sm:$0xff] }
 0x229   : > { %1873 = vst.msk [vmem:[#allocation2 + $0x129] sm:$0xff] %vm1847_vm3, %v1802_v23  ;;  %v10654_v42 = vld [vmem:[#allocation2 + $0x19] sm:$0xff] }
 0x22a   : > { %v10684_v57 = vld [vmem:[#allocation2 + $0x1a] sm:$0xff] }
 0x22b   : > { %v1764_v26 = vpop.permute.xlu0 %1763  ;;  %v10669_v50 = vld [vmem:[#allocation2 + $0x30] sm:$0xff] }
 0x22c   : > { %v1766_v28 = vpop.permute.xlu1 %1765  ;;  %1854 = vst.msk [vmem:[#allocation2 + $0x49] sm:$0xff] %vm1847_vm3, %v1764_v26  ;;  %2458 = vrot.lane.b32.xlu1 %v10624_v27, %s10250_s26  ;;  %2136 = vrot.lane.b32.xlu0 %v10598_v16, %s10251_s28  ;;  %v10671_v51 = vld [vmem:[#allocation2 + $0x3a] sm:$0xff]  ;;  %v10673_v52 = vld [vmem:[#allocation2 + $0x31] sm:$0xff]  ;;  %v2650_v63 = vcombine.low %v10590_v13, %v10669_v50 }
 0x22d   : > { %1855 = vst.msk [vmem:[#allocation2 + $0x51] sm:$0xff] %vm1847_vm3, %v1766_v28  ;;  %17640 = vst [vmem:[#allocation6_spill] sm:$0xff] %v10671_v51  ;;  %v10676_v53 = vld [vmem:[#allocation2 + $0x32] sm:$0xff]  ;;  %v6730_v0 = vcombine.low %v10624_v27, %v10671_v51  ;;  %v3466_v1 = vcombine.low %v10634_v31, %v10673_v52 }
 0x22e   : > { %17641 = vst [vmem:[#allocation7_spill] sm:$0xff] %v10673_v52  ;;  %17642 = vst [vmem:[#allocation8_spill] sm:$0xff] %v10676_v53  ;;  %v4282_v3 = vcombine.low %v10690_v61, %v10676_v53  ;;  %v10723_v12 = vrot.slane %v2650_v63, %v10693_v62  ;;  %v10773_v63 = vld [vmem:[#allocation2 + $0x21] sm:$0xff] }
 0x22f   : > { %v1808_v29 = vpop.permute.xlu0 %1807  ;;  %v10726_v14 = vrot.slane %v6730_v0, %v10693_v62  ;;  %v10729_v15 = vrot.slane %v3466_v1, %v10693_v62  ;;  %v10781_v1 = vld [vmem:[#allocation2 + $0xfa] sm:$0xff] }
 0x230   : > { %v1810_v32 = vpop.permute.xlu1 %1809  ;;  %1876 = vst.msk [vmem:[#allocation2 + $0x151] sm:$0xff] %vm1847_vm3, %v1808_v29  ;;  %2490 = vrot.lane.b32.xlu1 %v10632_v30, %s10250_s26  ;;  %2232 = vrot.lane.b32.xlu0 %v10634_v31, %s10250_s26  ;;  %17648 = vst [vmem:[#allocation14_spill] sm:$0xff] %v10723_v12  ;;  %v10740_v23 = vrot.slane %v4282_v3, %v10693_v62  ;;  %v10948_v28 = vld [vmem:[#allocation2 + $0x121] sm:$0xff] }
 0x231   : > { %1877 = vst.msk [vmem:[#allocation2 + $0x159] sm:$0xff] %vm1847_vm3, %v1810_v32  ;;  %17649 = vst [vmem:[#allocation15_spill] sm:$0xff] %v10726_v14 }
 0x232   : > { %17650 = vst [vmem:[#allocation16_spill] sm:$0xff] %v10729_v15  ;;  %17652 = vst [vmem:[#allocation18_spill] sm:$0xff] %v10740_v23 }
 0x233   : > { %v1768_v33 = vpop.permute.xlu0 %1767  ;;  %v10656_v43 = vld [vmem:[#allocation2 + $0x48] sm:$0xff]  ;;  %17677 = vst [vmem:[#allocation43_spill] sm:$0xff] %v10948_v28 }
 0x234   : > { %v1770_v39 = vpop.permute.xlu1 %1769  ;;  %1856 = vst.msk [vmem:[#allocation2 + $0x61] sm:$0xff] %vm1847_vm3, %v1768_v33  ;;  %2554 = vrot.lane.b32.xlu1 %v10624_v27, %s10251_s28  ;;  %2264 = vrot.lane.b32.xlu0 %v10642_v34, %s10250_s26  ;;  %v10658_v44 = vld [vmem:[#allocation2 + $0x52] sm:$0xff]  ;;  %v10660_v45 = vld [vmem:[#allocation2 + $0x49] sm:$0xff]  ;;  %v2666_v54 = vcombine.low %v10650_v40, %v10656_v43 }
 0x235   : > { %1857 = vst.msk [vmem:[#allocation2 + $0x69] sm:$0xff] %vm1847_vm3, %v1770_v39  ;;  %v6746_v55 = vcombine.low %v10652_v41, %v10658_v44  ;;  %v3482_v56 = vcombine.low %v10654_v42, %v10660_v45  ;;  %v10686_v58 = vld [vmem:[#allocation2 + $0x4a] sm:$0xff] }
 0x236   : > { %v10710_v4 = vrot.slane %v2666_v54, %v10693_v62  ;;  %v4298_v7 = vcombine.low %v10684_v57, %v10686_v58  ;;  %v10869_v37 = vld [vmem:[#allocation2 + $0x51] sm:$0xff] }
 0x237   : > { %v1772_v46 = vpop.permute.xlu0 %1771  ;;  %v10713_v5 = vrot.slane %v6746_v55, %v10693_v62  ;;  %v10716_v6 = vrot.slane %v3482_v56, %v10693_v62  ;;  %v10253_v55 = vmov 1934713408   ;;  %17661 = vst [vmem:[#allocation27_spill] sm:$0xff] %v10869_v37  ;;  %v10893_v36 = vld [vmem:[#allocation2 + $0x150] sm:$0xff] }
 0x238   : > { %v1774_v49 = vpop.permute.xlu1 %1773  ;;  %1858 = vst.msk [vmem:[#allocation2 + $0x79] sm:$0xff] %vm1847_vm3, %v1772_v46  ;;  %2586 = vrot.lane.b32.xlu1 %v10632_v30, %s10251_s28  ;;  %2328 = vrot.lane.b32.xlu0 %v10634_v31, %s10251_s28  ;;  %17644 = vst [vmem:[#allocation10_spill] sm:$0xff] %v10710_v4  ;;  %v10732_v17 = vrot.slane %v4298_v7, %v10693_v62  ;;  %v10759_v46 = vld [vmem:[#allocation2 + $0xc2] sm:$0xff]  ;;  %v2717_v56 = vunpack.c.l.s4 %v10253_v55  ;;  %v10806_v55 = vrot.slane %v6050_v19, %v10693_v62  ;;  %v10932_v33 = vld [vmem:[#allocation2 + $0x15a] sm:$0xff] }
 0x239   : > { %1859 = vst.msk [vmem:[#allocation2 + $0x81] sm:$0xff] %vm1847_vm3, %v1774_v49  ;;  %17645 = vst [vmem:[#allocation11_spill] sm:$0xff] %v10713_v5 }
 0x23a   : > { %17646 = vst [vmem:[#allocation12_spill] sm:$0xff] %v10716_v6  ;;  %17651 = vst [vmem:[#allocation17_spill] sm:$0xff] %v10732_v17 }
 0x23b   : > { %v1776_v59 = vpop.permute.xlu0 %1775  ;;  %17653 = vst [vmem:[#allocation19_spill] sm:$0xff] %v10806_v55  ;;  %17664 = vst [vmem:[#allocation30_spill] sm:$0xff] %v10893_v36 }
 0x23c   : > { %v1778_v2 = vpop.permute.xlu1 %1777  ;;  %1860 = vst.msk [vmem:[#allocation2 + $0x91] sm:$0xff] %vm1847_vm3, %v1776_v59  ;;  %2010 = vrot.lane.b32.xlu1 %v10688_v60, %s10250_s26  ;;  %2360 = vrot.lane.b32.xlu0 %v10642_v34, %s10251_s28  ;;  %17672 = vst [vmem:[#allocation38_spill] sm:$0xff] %v10932_v33 }
 0x23d   : > { %1861 = vst.msk [vmem:[#allocation2 + $0x99] sm:$0xff] %vm1847_vm3, %v1778_v2  ;;  %v2718_v2 = vunpack.c.0.s8 %v2717_v56 }
 0x23f   : > { %v1780_v8 = vpop.permute.xlu0 %1779 }
 0x240   : > { %v1782_v21 = vpop.permute.xlu1 %1781  ;;  %1862 = vst.msk [vmem:[#allocation2 + $0xa9] sm:$0xff] %vm1847_vm3, %v1780_v8  ;;  %2042 = vrot.lane.b32.xlu1 %v10720_v10, %s10250_s26  ;;  %2456 = vrot.lane.b32.xlu0 %v10690_v61, %s10250_s26  ;;  %v10788_v8 = vld [vmem:[#allocation2 + $0xf1] sm:$0xff] }
 0x241   : > { %1863 = vst.msk [vmem:[#allocation2 + $0xb1] sm:$0xff] %vm1847_vm3, %v1782_v21  ;;  %v10790_v21 = vld [vmem:[#allocation2 + $0xf8] sm:$0xff]  ;;  %v3602_v56 = vcombine.low %v10642_v34, %v10788_v8 }
 0x243   : > { %v1788_v39 = vpop.permute.xlu0 %1787  ;;  %v10859_v35 = vrot.slane %v3602_v56, %v10693_v62  ;;  %v3467_v56 = vcombine.high %v10634_v31, %v10673_v52  ;;  %v11011_v52 = vld [vmem:[#allocation2 + $0x60] sm:$0xff] }
 0x244   : > { %v1790_v47 = vpop.permute.xlu1 %1789  ;;  %1866 = vst.msk [vmem:[#allocation2 + $0xd9] sm:$0xff] %vm1847_vm3, %v1788_v39  ;;  %2106 = vrot.lane.b32.xlu1 %v10688_v60, %s10251_s28  ;;  %2488 = vrot.lane.b32.xlu0 %v10759_v46, %s10250_s26  ;;  %v6866_v39 = vcombine.low %v10632_v30, %v10781_v1  ;;  %17693 = vst [vmem:[#allocation59_spill] sm:$0xff] %v11011_v52  ;;  %v11059_v55 = vld [vmem:[#allocation2 + $0x99] sm:$0xff] }
 0x245   : > { %1867 = vst.msk [vmem:[#allocation2 + $0xe1] sm:$0xff] %vm1847_vm3, %v1790_v47  ;;  %v6867_v47 = vcombine.high %v10632_v30, %v10781_v1  ;;  %v5234_v30 = vcombine.low %v10720_v10, %v10790_v21  ;;  %17658 = vst [vmem:[#allocation24_spill] sm:$0xff] %v10859_v35 }
 0x246   : > { %v10837_v11 = vrot.slane %v6866_v39, %v10693_v62  ;;  %v2651_v39 = vcombine.high %v10590_v13, %v10669_v50  ;;  %17704 = vst [vmem:[#allocation70_spill] sm:$0xff] %v11059_v55 }
 0x247   : > { %v1796_v49 = vpop.permute.xlu0 %1795  ;;  %v10865_v16 = vrot.slane %v5234_v30, %v10693_v62  ;;  %v4283_v30 = vcombine.high %v10690_v61, %v10676_v53  ;;  %v10957_v53 = vld [vmem:[#allocation2 + $0x151] sm:$0xff] }
 0x248   : > { %v1798_v54 = vpop.permute.xlu1 %1797  ;;  %1870 = vst.msk [vmem:[#allocation2 + $0x109] sm:$0xff] %vm1847_vm3, %v1796_v49  ;;  %2138 = vrot.lane.b32.xlu1 %v10720_v10, %s10251_s28  ;;  %2552 = vrot.lane.b32.xlu0 %v10690_v61, %s10251_s28  ;;  %v10797_v49 = vld [vmem:[#allocation2 + $0xf2] sm:$0xff]  ;;  %v10902_v26 = vrot.slane %v2651_v39, %v10693_v62  ;;  %v10923_v39 = vld [vmem:[#allocation2 + $0x12a] sm:$0xff]  ;;  %17679 = vst [vmem:[#allocation45_spill] sm:$0xff] %v10957_v53 }
 0x249   : > { %1871 = vst.msk [vmem:[#allocation2 + $0x111] sm:$0xff] %vm1847_vm3, %v1798_v54  ;;  %v10800_v54 = vsub.s32 %v2718_v2, %v10662_v48  ;;  %v10820_v48 = vrot.slane %v6051_v20, %v10693_v62  ;;  %v4418_v19 = vcombine.low %v10759_v46, %v10797_v49  ;;  %v10834_v2 = vrot.slane %v2786_v24, %v10693_v62 }
 0x24a   : > { %v10840_v20 = vrot.slane %v6867_v47, %v10693_v62  ;;  %v10856_v47 = vld [vmem:[#allocation2 + $0x38] sm:$0xff]  ;;  %17660 = vst [vmem:[#allocation26_spill] sm:$0xff] %v10865_v16  ;;  %17667 = vst [vmem:[#allocation33_spill] sm:$0xff] %v10902_v26  ;;  %v10943_v29 = vrot.slane %v4283_v30, %v10693_v62  ;;  %v4299_v30 = vcombine.high %v10684_v57, %v10686_v58  ;;  %v10980_v58 = vld [vmem:[#allocation2 + $0x122] sm:$0xff] }
 0x24b   : > { %v1804_v59 = vpop.permute.xlu0 %1803  ;;  %17654 = vst [vmem:[#allocation20_spill] sm:$0xff] %v10820_v48  ;;  %17655 = vst [vmem:[#allocation21_spill] sm:$0xff] %v10834_v2  ;;  %v6898_v16 = vcombine.low %v10923_v39, %v10932_v33  ;;  %v3635_v48 = vcombine.high %v10948_v28, %v10957_v53 }
 0x24c   : > { %v1806_v0 = vpop.permute.xlu1 %1805  ;;  %1874 = vst.msk [vmem:[#allocation2 + $0x139] sm:$0xff] %vm1847_vm3, %v1804_v59  ;;  %2238 = vrot.lane.b32.xlu1 %v10773_v63, %s10250_s26  ;;  %2584 = vrot.lane.b32.xlu0 %v10759_v46, %s10251_s28  ;;  %v3603_v59 = vcombine.high %v10642_v34, %v10788_v8  ;;  %v4419_v34 = vcombine.high %v10759_v46, %v10797_v49  ;;  %17657 = vst [vmem:[#allocation23_spill] sm:$0xff] %v10856_v47 }
 0x24d   : > { %1875 = vst.msk [vmem:[#allocation2 + $0x141] sm:$0xff] %vm1847_vm3, %v1806_v0  ;;  %v10814_v0 = vld [vmem:[#allocation2 + $0x39] sm:$0xff]  ;;  %v10848_v46 = vrot.slane %v2787_v25, %v10693_v62  ;;  %v6731_v25 = vcombine.high %v10624_v27, %v10671_v51  ;;  %v5098_v27 = vcombine.low %v10688_v60, %v10856_v47  ;;  %17670 = vst [vmem:[#allocation36_spill] sm:$0xff] %v10923_v39 }
 0x24e   : > { %v5915_v24 = vcombine.high %v10582_v9, %v10814_v0  ;;  %v10862_v38 = vrot.slane %v3603_v59, %v10693_v62  ;;  %v10879_v13 = vrot.slane %v4419_v34, %v10693_v62  ;;  %v10883_v59 = vld [vmem:[#allocation2 + $0x120] sm:$0xff]  ;;  %17675 = vst [vmem:[#allocation41_spill] sm:$0xff] %v10943_v29  ;;  %17685 = vst [vmem:[#allocation51_spill] sm:$0xff] %v10980_v58 }
 0x24f   : > { %v1812_v3 = vpop.permute.xlu0 %1811  ;;  %17656 = vst [vmem:[#allocation22_spill] sm:$0xff] %v10848_v46  ;;  %v10909_v61 = vrot.slane %v6731_v25, %v10693_v62  ;;  %v10926_v25 = vrot.slane %v3467_v56, %v10693_v62  ;;  %v10937_v32 = vrot.slane %v5098_v27, %v10693_v62  ;;  %v11009_v46 = vrot.slane %v4299_v30, %v10693_v62  ;;  %v11025_v30 = vld [vmem:[#allocation2 + $0x90] sm:$0xff] }
 0x250   : > { %v1814_v7 = vpop.permute.xlu1 %1813  ;;  %1878 = vst.msk [vmem:[#allocation2 + $0x169] sm:$0xff] %vm1847_vm3, %v1812_v3  ;;  %2274 = vrot.lane.b32.xlu1 %v10605_v18, %s10250_s26  ;;  %2012 = vrot.lane.b32.xlu0 %v10650_v40, %s10250_s26  ;;  %17659 = vst [vmem:[#allocation25_spill] sm:$0xff] %v10862_v38  ;;  %v10899_v31 = vrot.slane %v5915_v24, %v10693_v62  ;;  %v10906_v3 = vld [vmem:[#allocation2 + $0x129] sm:$0xff]  ;;  %v3483_v24 = vcombine.high %v10654_v42, %v10660_v45  ;;  %v10934_v45 = vld [vmem:[#allocation2 + $0x20] sm:$0xff] }
 0x251   : > { %1879 = vst.msk [vmem:[#allocation2 + $0x171] sm:$0xff] %vm1847_vm3, %v1814_v7  ;;  %v5914_v7 = vcombine.low %v10582_v9, %v10814_v0  ;;  %v10876_v9 = vrot.slane %v4418_v19, %v10693_v62  ;;  %17663 = vst [vmem:[#allocation29_spill] sm:$0xff] %v10879_v13  ;;  %v2667_v19 = vcombine.high %v10650_v40, %v10656_v43  ;;  %v10913_v43 = vld [vmem:[#allocation2 + $0x159] sm:$0xff] }
 0x252   : > { %17666 = vst [vmem:[#allocation32_spill] sm:$0xff] %v10899_v31  ;;  %17668 = vst [vmem:[#allocation34_spill] sm:$0xff] %v10909_v61  ;;  %v6083_v27 = vcombine.high %v10906_v3, %v10913_v43  ;;  %v11047_v31 = vrot.slane %v3635_v48, %v10693_v62  ;;  %v2683_v48 = vcombine.high %v11011_v52, %v11025_v30  ;;  %v11091_v38 = vld [vmem:[#allocation2 + $0x98] sm:$0xff] }
 0x253   : > { %17662 = vst [vmem:[#allocation28_spill] sm:$0xff] %v10876_v9  ;;  %v10896_v34 = vrot.slane %v5914_v7, %v10693_v62  ;;  %17669 = vst [vmem:[#allocation35_spill] sm:$0xff] %v10913_v43  ;;  %v6747_v7 = vcombine.high %v10652_v41, %v10658_v44  ;;  %v2819_v44 = vcombine.high %v10883_v59, %v10893_v36 }
 0x254   : > { %2334 = vrot.lane.b32.xlu1 %v10773_v63, %s10251_s28  ;;  %2048 = vrot.lane.b32.xlu0 %v10612_v22, %s10250_s26  ;;  %17671 = vst [vmem:[#allocation37_spill] sm:$0xff] %v10926_v25  ;;  %17673 = vst [vmem:[#allocation39_spill] sm:$0xff] %v10937_v32  ;;  %v10946_v56 = vrot.slane %v2667_v19, %v10693_v62  ;;  %v10963_v19 = vld [vmem:[#allocation2 + $0x128] sm:$0xff]  ;;  %v3634_v32 = vcombine.low %v10948_v28, %v10957_v53 }
 0x255   : > { %17665 = vst [vmem:[#allocation31_spill] sm:$0xff] %v10896_v34  ;;  %17681 = vst [vmem:[#allocation47_spill] sm:$0xff] %v10963_v19  ;;  %v11034_v53 = vrot.slane %v6898_v16, %v10693_v62  ;;  %v11061_v34 = vld [vmem:[#allocation2 + $0x62] sm:$0xff] }
 0x256   : > { %17676 = vst [vmem:[#allocation42_spill] sm:$0xff] %v10946_v56  ;;  %17692 = vst [vmem:[#allocation58_spill] sm:$0xff] %v11009_v46  ;;  %v11233_v56 = vld [vmem:[#allocation2 + $0x139] sm:$0xff] }
 0x257   : > { %17695 = vst [vmem:[#allocation61_spill] sm:$0xff] %v11025_v30  ;;  %17699 = vst [vmem:[#allocation65_spill] sm:$0xff] %v11047_v31 }
 0x258   : > { %2370 = vrot.lane.b32.xlu1 %v10605_v18, %s10251_s28  ;;  %2108 = vrot.lane.b32.xlu0 %v10650_v40, %s10251_s28  ;;  %v5099_v18 = vcombine.high %v10688_v60, %v10856_v47  ;;  %v5930_v60 = vcombine.low %v10773_v63, %v10869_v37  ;;  %v5931_v40 = vcombine.high %v10773_v63, %v10869_v37 }
 0x259   : > { %v2818_v63 = vcombine.low %v10883_v59, %v10893_v36  ;;  %v6082_v37 = vcombine.low %v10906_v3, %v10913_v43  ;;  %v10974_v43 = vrot.slane %v3483_v24, %v10693_v62  ;;  %v6899_v47 = vcombine.high %v10923_v39, %v10932_v33  ;;  %v10992_v24 = vld [vmem:[#allocation2 + $0x152] sm:$0xff]  ;;  %17705 = vst [vmem:[#allocation71_spill] sm:$0xff] %v11061_v34 }
 0x25a   : > { %v10951_v36 = vrot.slane %v5930_v60, %v10693_v62  ;;  %v10966_v10 = vrot.slane %v5931_v40, %v10693_v62  ;;  %v10969_v60 = vrot.slane %v6747_v7, %v10693_v62  ;;  %v10986_v7 = vrot.slane %v2819_v44, %v10693_v62  ;;  %17689 = vst [vmem:[#allocation55_spill] sm:$0xff] %v10992_v24  ;;  %v11027_v39 = vld [vmem:[#allocation2 + $0x91] sm:$0xff] }
 0x25b   : > { %17684 = vst [vmem:[#allocation50_spill] sm:$0xff] %v10974_v43  ;;  %v10983_v40 = vrot.slane %v2818_v63, %v10693_v62  ;;  %v11006_v33 = vrot.slane %v6083_v27, %v10693_v62  ;;  %v4451_v27 = vcombine.high %v10980_v58, %v10992_v24  ;;  %17696 = vst [vmem:[#allocation62_spill] sm:$0xff] %v11027_v39 }
 0x25c   : > { %2462 = vrot.lane.b32.xlu1 %v10652_v41, %s10250_s26  ;;  %2144 = vrot.lane.b32.xlu0 %v10612_v22, %s10251_s28  ;;  %v10940_v22 = vrot.slane %v5099_v18, %v10693_v62  ;;  %17678 = vst [vmem:[#allocation44_spill] sm:$0xff] %v10951_v36  ;;  %v10959_v18 = vld [vmem:[#allocation2 + $0x50] sm:$0xff]  ;;  %17682 = vst [vmem:[#allocation48_spill] sm:$0xff] %v10966_v10 }
 0x25d   : > { %17680 = vst [vmem:[#allocation46_spill] sm:$0xff] %v10959_v18  ;;  %17683 = vst [vmem:[#allocation49_spill] sm:$0xff] %v10969_v60  ;;  %v5114_v63 = vcombine.low %v10934_v45, %v10959_v18  ;;  %v5115_v44 = vcombine.high %v10934_v45, %v10959_v18  ;;  %v11055_v10 = vld [vmem:[#allocation2 + $0x6a] sm:$0xff] }
 0x25e   : > { %17674 = vst [vmem:[#allocation40_spill] sm:$0xff] %v10940_v22  ;;  %17686 = vst [vmem:[#allocation52_spill] sm:$0xff] %v10983_v40  ;;  %v10990_v22 = vld [vmem:[#allocation2 + $0x158] sm:$0xff] }
 0x25f   : > { %17687 = vst [vmem:[#allocation53_spill] sm:$0xff] %v10986_v7  ;;  %17688 = vst [vmem:[#allocation54_spill] sm:$0xff] %v10990_v22  ;;  %v11003_v7 = vrot.slane %v6082_v37, %v10693_v62  ;;  %v5266_v28 = vcombine.low %v10963_v19, %v10990_v22  ;;  %v5267_v18 = vcombine.high %v10963_v19, %v10990_v22  ;;  %v11039_v19 = vld [vmem:[#allocation2 + $0x69] sm:$0xff] }
 0x260   : > { %2498 = vrot.lane.b32.xlu1 %v10781_v1, %s10250_s26  ;;  %2236 = vrot.lane.b32.xlu0 %v10654_v42, %s10250_s26  ;;  %17691 = vst [vmem:[#allocation57_spill] sm:$0xff] %v11006_v33  ;;  %v4450_v37 = vcombine.low %v10980_v58, %v10992_v24  ;;  %v11023_v33 = vld [vmem:[#allocation2 + $0x61] sm:$0xff]  ;;  %v11037_v22 = vrot.slane %v6899_v47, %v10693_v62  ;;  %17697 = vst [vmem:[#allocation63_spill] sm:$0xff] %v11039_v19  ;;  %v11063_v24 = vld [vmem:[#allocation2 + $0x78] sm:$0xff] }
 0x261   : > { %17690 = vst [vmem:[#allocation56_spill] sm:$0xff] %v11003_v7  ;;  %17694 = vst [vmem:[#allocation60_spill] sm:$0xff] %v11023_v33  ;;  %v11044_v58 = vrot.slane %v3634_v32, %v10693_v62  ;;  %v11053_v16 = vrot.slane %v5115_v44, %v10693_v62  ;;  %v11057_v47 = vld [vmem:[#allocation2 + $0x68] sm:$0xff]  ;;  %v2682_v32 = vcombine.low %v11011_v52, %v11025_v30  ;;  %v11089_v52 = vld [vmem:[#allocation2 + $0x79] sm:$0xff] }
 0x262   : > { %17702 = vst [vmem:[#allocation68_spill] sm:$0xff] %v11055_v10  ;;  %17703 = vst [vmem:[#allocation69_spill] sm:$0xff] %v11057_v47  ;;  %v3498_v44 = vcombine.low %v11023_v33, %v11027_v39  ;;  %v11079_v36 = vrot.slane %v5267_v18, %v10693_v62  ;;  %v11082_v51 = vrot.slane %v4450_v37, %v10693_v62  ;;  %v11087_v30 = vld [vmem:[#allocation2 + $0x82] sm:$0xff]  ;;  %v11099_v18 = vld [vmem:[#allocation2 + $0x92] sm:$0xff] }
 0x263   : > { %17698 = vst [vmem:[#allocation64_spill] sm:$0xff] %v11044_v58  ;;  %17701 = vst [vmem:[#allocation67_spill] sm:$0xff] %v11053_v16  ;;  %v11085_v7 = vrot.slane %v4451_v27, %v10693_v62  ;;  %v11101_v37 = vld [vmem:[#allocation2 + $0xa8] sm:$0xff]  ;;  %v11103_v27 = vld [vmem:[#allocation2 + $0xb2] sm:$0xff]  ;;  %v17717_v16 = vcombine.low %v10726_v14, %v10713_v5  ;;  %v5947_v31 = vcombine.high %v11039_v19, %v11059_v55 }
 0x264   : > { %2558 = vrot.lane.b32.xlu1 %v10652_v41, %s10251_s28  ;;  %2272 = vrot.lane.b32.xlu0 %v10788_v8, %s10250_s26  ;;  %v11050_v41 = vrot.slane %v5114_v63, %v10693_v62  ;;  %17706 = vst [vmem:[#allocation72_spill] sm:$0xff] %v11063_v24  ;;  %v11069_v63 = vld [vmem:[#allocation2 + $0x9a] sm:$0xff]  ;;  %17709 = vst [vmem:[#allocation75_spill] sm:$0xff] %v11079_v36  ;;  %v3499_v46 = vcombine.high %v11023_v33, %v11027_v39  ;;  %v11125_v5 = vld [vmem:[#allocation2 + $0xa9] sm:$0xff] }
 0x265   : > { %17707 = vst [vmem:[#allocation73_spill] sm:$0xff] %v11069_v63  ;;  %17710 = vst [vmem:[#allocation76_spill] sm:$0xff] %v11082_v51  ;;  %v11109_v36 = vrot.slane %v17717_v16, %v10800_v54  ;;  %v6762_v29 = vcombine.low %v11055_v10, %v11069_v63  ;;  %v11127_v16 = vld [vmem:[#allocation2 + $0xaa] sm:$0xff]  ;;  %v11139_v14 = vrot.slane %v2683_v48, %v10693_v62 }
 0x266   : > { %17700 = vst [vmem:[#allocation66_spill] sm:$0xff] %v11050_v41  ;;  %v11076_v41 = vrot.slane %v5266_v28, %v10693_v62  ;;  %17711 = vst [vmem:[#allocation77_spill] sm:$0xff] %v11085_v7  ;;  %v5946_v28 = vcombine.low %v11039_v19, %v11059_v55  ;;  %v11142_v63 = vrot.slane %v3498_v44, %v10693_v62  ;;  %v11146_v55 = vld [vmem:[#allocation2 + $0x81] sm:$0xff] }
 0x267   : > { %17712 = vst [vmem:[#allocation78_spill] sm:$0xff] %v11087_v30  ;;  %17713 = vst [vmem:[#allocation79_spill] sm:$0xff] %v11091_v38  ;;  %v5130_v39 = vcombine.low %v11057_v47, %v11091_v38  ;;  %v4314_v33 = vcombine.low %v11061_v34, %v11099_v18  ;;  %v6778_v48 = vcombine.low %v11087_v30, %v11103_v27  ;;  %v11169_v38 = vld [vmem:[#allocation2 + $0xd8] sm:$0xff]  ;;  %v11186_v10 = vld [vmem:[#allocation2 + $0x108] sm:$0xff] }
 0x268   : > { %17708 = vst [vmem:[#allocation74_spill] sm:$0xff] %v11076_v41  ;;  %2594 = vrot.lane.b32.xlu1 %v10781_v1, %s10251_s28  ;;  %2332 = vrot.lane.b32.xlu0 %v10654_v42, %s10251_s28  ;;  %17714 = vst [vmem:[#allocation80_spill] sm:$0xff] %v11099_v18  ;;  %v17719_v1 = vcombine.low %v10723_v12, %v10710_v4  ;;  %v11117_v41 = vld [vmem:[#allocation2 + $0x7a] sm:$0xff]  ;;  %v11136_v12 = vrot.slane %v2682_v32, %v10693_v62 }
 0x269   : > { %17715 = vst [vmem:[#allocation81_spill] sm:$0xff] %v11101_v37  ;;  %17716 = vst [vmem:[#allocation82_spill] sm:$0xff] %v11103_v27  ;;  %v2698_v32 = vcombine.low %v11063_v24, %v11101_v37  ;;  %v11163_v44 = vrot.slane %v5946_v28, %v10693_v62  ;;  %v11175_v27 = vrot.slane %v6762_v29, %v10693_v62  ;;  %v11182_v28 = vld [vmem:[#allocation2 + $0xe2] sm:$0xff]  ;;  %v11184_v47 = vld [vmem:[#allocation2 + $0xd9] sm:$0xff] }
 0x26a   : > { %17718 = vst [vmem:[#allocation83_spill] sm:$0xff] %v11109_v36  ;;  %v11115_v42 = vrot.slane %v17719_v1, %v10800_v54  ;;  %17721 = vst [vmem:[#allocation85_spill] sm:$0xff] %v11117_v41  ;;  %v17723_v1 = vcombine.low %v10729_v15, %v10716_v6  ;;  %v11152_v6 = vld [vmem:[#allocation2 + $0xb1] sm:$0xff]  ;;  %v3514_v15 = vcombine.low %v11089_v52, %v11125_v5  ;;  %v11211_v29 = vld [vmem:[#allocation2 + $0xda] sm:$0xff] }
 0x26b   : > { %17722 = vst [vmem:[#allocation86_spill] sm:$0xff] %v11127_v16  ;;  %17725 = vst [vmem:[#allocation88_spill] sm:$0xff] %v11136_v12  ;;  %v11178_v30 = vrot.slane %v3499_v46, %v10693_v62  ;;  %v11189_v19 = vrot.slane %v5130_v39, %v10693_v62  ;;  %v11195_v46 = vld [vmem:[#allocation2 + $0x112] sm:$0xff]  ;;  %v11206_v39 = vrot.slane %v2698_v32, %v10693_v62  ;;  %v11215_v24 = vld [vmem:[#allocation2 + $0x10a] sm:$0xff] }
 0x26c   : > { %17720 = vst [vmem:[#allocation84_spill] sm:$0xff] %v11115_v42  ;;  %v11133_v4 = vrot.slane %v17723_v1, %v10800_v54  ;;  %17726 = vst [vmem:[#allocation89_spill] sm:$0xff] %v11139_v14  ;;  %v4315_v1 = vcombine.high %v11061_v34, %v11099_v18  ;;  %2014 = vrot.lane.b32.xlu1 %v10934_v45, %s10250_s26  ;;  %2368 = vrot.lane.b32.xlu0 %v10788_v8, %s10251_s28  ;;  %v1975_v14 = vld [vmem:[#allocation2 + $0x172] sm:$0xff] }
 0x26d   : > { %17727 = vst [vmem:[#allocation90_spill] sm:$0xff] %v11142_v63  ;;  %17728 = vst [vmem:[#allocation91_spill] sm:$0xff] %v11146_v55  ;;  %v4330_v18 = vcombine.low %v11117_v41, %v11127_v16  ;;  %v11172_v34 = vrot.slane %v5947_v31, %v10693_v62  ;;  %v4331_v8 = vcombine.high %v11117_v41, %v11127_v16  ;;  %v11231_v16 = vld [vmem:[#allocation2 + $0x168] sm:$0xff]  ;;  %v17797_v60 = vld [vmem:[#allocation72_spill] sm:$0xff] }
 0x26e   : > { %17724 = vst [vmem:[#allocation87_spill] sm:$0xff] %v11133_v4  ;;  %17729 = vst [vmem:[#allocation92_spill] sm:$0xff] %v11152_v6  ;;  %v11200_v41 = vrot.slane %v4314_v33, %v10693_v62  ;;  %v11209_v31 = vrot.slane %v6778_v48, %v10693_v62  ;;  %v11229_v48 = vld [vmem:[#allocation2 + $0x138] sm:$0xff]  ;;  %v2802_v37 = vcombine.low %v11169_v38, %v11186_v10  ;;  %v11242_v6 = vld [vmem:[#allocation2 + $0x169] sm:$0xff] }
 0x26f   : > { %17730 = vst [vmem:[#allocation93_spill] sm:$0xff] %v11163_v44  ;;  %17731 = vst [vmem:[#allocation94_spill] sm:$0xff] %v11169_v38  ;;  %v11203_v44 = vrot.slane %v4315_v1, %v10693_v62  ;;  %v11224_v1 = vrot.slane %v3514_v15, %v10693_v62  ;;  %v11227_v32 = vrot.slane %v4330_v18, %v10693_v62  ;;  %v11244_v18 = vld [vmem:[#allocation2 + $0x13a] sm:$0xff]  ;;  %v11246_v55 = vld [vmem:[#allocation2 + $0x16a] sm:$0xff] }
 0x270   : > { %17732 = vst [vmem:[#allocation95_spill] sm:$0xff] %v11172_v34  ;;  %17733 = vst [vmem:[#allocation96_spill] sm:$0xff] %v11175_v27  ;;  %v1971_v34 = vld [vmem:[#allocation2 + $0x142] sm:$0xff]  ;;  %2050 = vrot.lane.b32.xlu1 %v10790_v21, %s10250_s26  ;;  %2460 = vrot.lane.b32.xlu0 %v10684_v57, %s10250_s26  ;;  %v11236_v26 = vrot.slane %v4331_v8, %v10693_v62  ;;  %v6882_v33 = vcombine.low %v11182_v28, %v11195_v46 }
 0x271   : > { %17734 = vst [vmem:[#allocation97_spill] sm:$0xff] %v11178_v30  ;;  %17735 = vst [vmem:[#allocation98_spill] sm:$0xff] %v11186_v10  ;;  %v6914_v15 = vcombine.low %v1971_v34, %v1975_v14  ;;  %v6883_v30 = vcombine.high %v11182_v28, %v11195_v46  ;;  %v4434_v10 = vcombine.low %v11211_v29, %v11215_v24 }
 0x272   : > { %17736 = vst [vmem:[#allocation99_spill] sm:$0xff] %v11189_v19  ;;  %17737 = vst [vmem:[#allocation100_spill] sm:$0xff] %v11195_v46  ;;  %v11213_v19 = vld [vmem:[#allocation2 + $0x109] sm:$0xff]  ;;  %v6826_v7 = vcombine.low %v11175_v27, %v11209_v31  ;;  %v2834_v13 = vcombine.low %v11229_v48, %v11231_v16  ;;  %v4466_v38 = vcombine.low %v11244_v18, %v11246_v55 }
 0x273   : > { %17738 = vst [vmem:[#allocation101_spill] sm:$0xff] %v11200_v41  ;;  %17739 = vst [vmem:[#allocation102_spill] sm:$0xff] %v11203_v44  ;;  %v3618_v8 = vcombine.low %v11184_v47, %v11213_v19  ;;  %v6915_v44 = vcombine.high %v1971_v34, %v1975_v14  ;;  %v2746_v14 = vcombine.low %v11136_v12, %v11206_v39 }
 0x274   : > { %17740 = vst [vmem:[#allocation103_spill] sm:$0xff] %v11206_v39  ;;  %17741 = vst [vmem:[#allocation104_spill] sm:$0xff] %v11209_v31  ;;  %2110 = vrot.lane.b32.xlu1 %v10934_v45, %s10251_s28  ;;  %2496 = vrot.lane.b32.xlu0 %v10797_v49, %s10250_s26  ;;  %v3650_v34 = vcombine.low %v11233_v56, %v11242_v6  ;;  %v3562_v45 = vcombine.low %v11142_v63, %v11224_v1 }
 0x275   : > { %17742 = vst [vmem:[#allocation105_spill] sm:$0xff] %v11211_v29  ;;  %17743 = vst [vmem:[#allocation106_spill] sm:$0xff] %v11215_v24  ;;  %v6922_v31 = vrot.slane %v6914_v15, %v10693_v62  ;;  %v6890_v46 = vrot.slane %v6882_v33, %v10693_v62  ;;  %v11282_v12 = vrot.slane %v6883_v30, %v10693_v62 }
 0x276   : > { %17744 = vst [vmem:[#allocation107_spill] sm:$0xff] %v11224_v1  ;;  %17745 = vst [vmem:[#allocation108_spill] sm:$0xff] %v11227_v32  ;;  %v11285_v39 = vrot.slane %v3618_v8, %v10693_v62  ;;  %v11297_v63 = vrot.slane %v6826_v7, %v10800_v54  ;;  %v11300_v33 = vrot.slane %v2834_v13, %v10693_v62 }
 0x277   : > { %17746 = vst [vmem:[#allocation109_spill] sm:$0xff] %v11236_v26  ;;  %v4435_v26 = vcombine.high %v11211_v29, %v11215_v24  ;;  %v11273_v24 = vrot.slane %v2802_v37, %v10693_v62  ;;  %v11288_v29 = vrot.slane %v6915_v44, %v10693_v62  ;;  %v11291_v37 = vrot.slane %v4434_v10, %v10693_v62 }
 0x278   : > { %17748 = vst [vmem:[#allocation111_spill] sm:$0xff] %v11285_v39  ;;  %17751 = vst [vmem:[#allocation114_spill] sm:$0xff] %v11297_v63  ;;  %2146 = vrot.lane.b32.xlu1 %v10790_v21, %s10251_s28  ;;  %2556 = vrot.lane.b32.xlu0 %v10684_v57, %s10251_s28  ;;  %v11307_v30 = vrot.slane %v2746_v14, %v10800_v54  ;;  %v11310_v10 = vrot.slane %v3650_v34, %v10693_v62 }
 0x279   : > { %17747 = vst [vmem:[#allocation110_spill] sm:$0xff] %v11273_v24  ;;  %17749 = vst [vmem:[#allocation112_spill] sm:$0xff] %v11291_v37  ;;  %v11294_v27 = vrot.slane %v4435_v26, %v10693_v62  ;;  %v11313_v26 = vrot.slane %v4466_v38, %v10693_v62  ;;  %v11316_v7 = vrot.slane %v3562_v45, %v10800_v54 }
 0x27a   : > { %17752 = vst [vmem:[#allocation115_spill] sm:$0xff] %v11300_v33  ;;  %17753 = vst [vmem:[#allocation116_spill] sm:$0xff] %v11307_v30  ;;  %v17757_v13 = vcombine.low %v10740_v23, %v10732_v17  ;;  %v4378_v57 = vcombine.low %v11200_v41, %v11227_v32  ;;  %v6963_v15 = vcombine.high %v11034_v53, %v6922_v31  ;;  %v17814_v32 = vld [vmem:[#allocation32_spill] sm:$0xff] }
 0x27b   : > { %17750 = vst [vmem:[#allocation113_spill] sm:$0xff] %v11294_v27  ;;  %17754 = vst [vmem:[#allocation117_spill] sm:$0xff] %v11310_v10  ;;  %v6930_v8 = vcombine.low %v10837_v11, %v6890_v46  ;;  %v6962_v14 = vcombine.low %v11034_v53, %v6922_v31  ;;  %v6931_v38 = vcombine.high %v10837_v11, %v6890_v46 }
 0x27c   : > { %17755 = vst [vmem:[#allocation118_spill] sm:$0xff] %v11313_v26  ;;  %17756 = vst [vmem:[#allocation119_spill] sm:$0xff] %v11316_v7  ;;  %v11322_v44 = vrot.slane %v17757_v13, %v10800_v54  ;;  %v6978_v34 = vcombine.low %v11037_v22, %v11288_v29  ;;  %v6946_v45 = vcombine.low %v10840_v20, %v11282_v12  ;;  %2242 = vrot.lane.b32.xlu1 %v10814_v0, %s10250_s26 }
 0x27d   : > { %v2850_v13 = vcombine.low %v10834_v2, %v11273_v24  ;;  %v2882_v17 = vcombine.low %v10983_v40, %v11300_v33  ;;  %2592 = vrot.lane.b32.xlu0 %v10797_v49, %s10251_s28  ;;  %v3666_v53 = vcombine.low %v10859_v35, %v11285_v39  ;;  %v3698_v11 = vcombine.low %v11044_v58, %v11310_v10  ;;  %v11517_v10 = vld [vmem:[#allocation2 + $0xb0] sm:$0xff]  ;;  %v17802_v24 = vld [vmem:[#allocation31_spill] sm:$0xff] }
 0x27e   : > { %17758 = vst [vmem:[#allocation120_spill] sm:$0xff] %v11322_v44  ;;  %v4514_v31 = vcombine.low %v11082_v51, %v11313_v26  ;;  %v11351_v46 = vrot.slane %v6963_v15, %v10800_v54  ;;  %v4482_v23 = vcombine.low %v10876_v9, %v11291_v37  ;;  %v4467_v2 = vcombine.high %v11244_v18, %v11246_v55  ;;  %v11371_v26 = vld [vmem:[#allocation2 + $0xe1] sm:$0xff]  ;;  %v17815_v44 = vld [vmem:[#allocation36_spill] sm:$0xff] }
 0x27f   : > { %v11360_v35 = vrot.slane %v4378_v57, %v10800_v54  ;;  %v11363_v39 = vrot.slane %v6930_v8, %v10800_v54  ;;  %v11366_v51 = vrot.slane %v6962_v14, %v10800_v54  ;;  %v11369_v15 = vrot.slane %v6978_v34, %v10800_v54  ;;  %v11389_v8 = vld [vmem:[#allocation2 + $0x111] sm:$0xff]  ;;  %v11391_v14 = vld [vmem:[#allocation2 + $0x141] sm:$0xff] }
 0x280   : > { %17759 = vst [vmem:[#allocation121_spill] sm:$0xff] %v11351_v46  ;;  %v11374_v9 = vrot.slane %v6931_v38, %v10800_v54  ;;  %v11377_v55 = vrot.slane %v6946_v45, %v10800_v54  ;;  %v11380_v18 = vrot.slane %v2850_v13, %v10800_v54  ;;  %v11383_v57 = vrot.slane %v2882_v17, %v10800_v54  ;;  %v11393_v38 = vld [vmem:[#allocation2 + $0x171] sm:$0xff]  ;;  %v17806_v33 = vld [vmem:[#allocation19_spill] sm:$0xff] }
 0x281   : > { %17760 = vst [vmem:[#allocation122_spill] sm:$0xff] %v11360_v35  ;;  %17761 = vst [vmem:[#allocation123_spill] sm:$0xff] %v11363_v39  ;;  %2282 = vrot.lane.b32.xlu1 %v10906_v3, %s10250_s26  ;;  %2016 = vrot.lane.b32.xlu0 %v10669_v50, %s10250_s26  ;;  %v11396_v34 = vrot.slane %v3666_v53, %v10800_v54  ;;  %v11399_v45 = vrot.slane %v3698_v11, %v10800_v54 }
 0x282   : > { %17762 = vst [vmem:[#allocation124_spill] sm:$0xff] %v11366_v51  ;;  %17763 = vst [vmem:[#allocation125_spill] sm:$0xff] %v11369_v15  ;;  %v11402_v17 = vrot.slane %v4514_v31, %v10800_v54  ;;  %v11405_v13 = vrot.slane %v4482_v23, %v10800_v54  ;;  %v3651_v49 = vcombine.high %v11233_v56, %v11242_v6  ;;  %v11537_v51 = vld [vmem:[#allocation2 + $0x110] sm:$0xff] }
 0x283   : > { %17764 = vst [vmem:[#allocation126_spill] sm:$0xff] %v11374_v9  ;;  %17765 = vst [vmem:[#allocation127_spill] sm:$0xff] %v11377_v55  ;;  %v11410_v37 = vrot.slane %v4467_v2, %v10693_v62  ;;  %v17774_v6 = vcombine.high %v11089_v52, %v11125_v5  ;;  %v6066_v56 = vcombine.low %v11371_v26, %v11389_v8  ;;  %v11507_v55 = vld [vmem:[#allocation2 + $0x80] sm:$0xff] }
 0x284   : > { %17766 = vst [vmem:[#allocation128_spill] sm:$0xff] %v11380_v18  ;;  %17767 = vst [vmem:[#allocation129_spill] sm:$0xff] %v11383_v57  ;;  %v6098_v53 = vcombine.low %v11391_v14, %v11393_v38  ;;  %v6947_v23 = vcombine.high %v10840_v20, %v11282_v12  ;;  %v11445_v58 = vrot.slane %v3651_v49, %v10693_v62  ;;  %v17777_v18 = vld [vmem:[#allocation29_spill] sm:$0xff]  ;;  %v17781_v49 = vld [vmem:[#allocation58_spill] sm:$0xff] }
 0x285   : > { %17768 = vst [vmem:[#allocation130_spill] sm:$0xff] %v11393_v38  ;;  %17769 = vst [vmem:[#allocation131_spill] sm:$0xff] %v11396_v34  ;;  %v11426_v2 = vrot.slane %v17774_v6, %v10693_v62  ;;  %2338 = vrot.lane.b32.xlu1 %v10814_v0, %s10251_s28  ;;  %2056 = vrot.lane.b32.xlu0 %v10883_v59, %s10250_s26  ;;  %v6979_v11 = vcombine.high %v11037_v22, %v11288_v29  ;;  %v17780_v12 = vld [vmem:[#allocation77_spill] sm:$0xff]  ;;  %v17784_v22 = vld [vmem:[#allocation102_spill] sm:$0xff] }
 0x286   : > { %17770 = vst [vmem:[#allocation132_spill] sm:$0xff] %v11399_v45  ;;  %17771 = vst [vmem:[#allocation133_spill] sm:$0xff] %v11402_v17  ;;  %v4499_v57 = vcombine.high %v17777_v18, %v11294_v27  ;;  %v17778_v31 = vcombine.high %v11184_v47, %v11213_v19  ;;  %v4531_v20 = vcombine.high %v17780_v12, %v11410_v37  ;;  %v17783_v34 = vld [vmem:[#allocation109_spill] sm:$0xff] }
 0x287   : > { %17772 = vst [vmem:[#allocation134_spill] sm:$0xff] %v11405_v13  ;;  %17773 = vst [vmem:[#allocation135_spill] sm:$0xff] %v11410_v37  ;;  %v17782_v13 = vld [vmem:[#allocation41_spill] sm:$0xff]  ;;  %v4395_v29 = vcombine.high %v17784_v22, %v17783_v34  ;;  %v11466_v0 = vrot.slane %v6098_v53, %v10693_v62  ;;  %v11469_v18 = vrot.slane %v6947_v23, %v10800_v54 }
 0x288   : > { %17775 = vst [vmem:[#allocation136_spill] sm:$0xff] %v11426_v2  ;;  %17776 = vst [vmem:[#allocation137_spill] sm:$0xff] %v11445_v58  ;;  %v11457_v6 = vrot.slane %v17778_v31, %v10693_v62  ;;  %v4363_v17 = vcombine.high %v17782_v13, %v17781_v49  ;;  %v11472_v27 = vrot.slane %v6979_v11, %v10800_v54  ;;  %v11533_v13 = vld [vmem:[#allocation2 + $0xe0] sm:$0xff] }
 0x289   : > { %17785 = vst [vmem:[#allocation139_spill] sm:$0xff] %v11469_v18  ;;  %v11475_v31 = vrot.slane %v4499_v57, %v10800_v54  ;;  %2378 = vrot.lane.b32.xlu1 %v10906_v3, %s10251_s28  ;;  %2112 = vrot.lane.b32.xlu0 %v10669_v50, %s10251_s28  ;;  %v11482_v12 = vrot.slane %v4531_v20, %v10800_v54  ;;  %v17791_v57 = vld [vmem:[#allocation65_spill] sm:$0xff]  ;;  %v17794_v3 = vld [vmem:[#allocation92_spill] sm:$0xff] }
 0x28a   : > { %17779 = vst [vmem:[#allocation138_spill] sm:$0xff] %v11457_v6  ;;  %17786 = vst [vmem:[#allocation140_spill] sm:$0xff] %v11472_v27  ;;  %v11485_v53 = vrot.slane %v4363_v17, %v10800_v54  ;;  %v11488_v23 = vrot.slane %v4395_v29, %v10800_v54  ;;  %v11491_v11 = vrot.slane %v6066_v56, %v10693_v62  ;;  %v17792_v20 = vld [vmem:[#allocation97_spill] sm:$0xff]  ;;  %v17799_v29 = vld [vmem:[#allocation56_spill] sm:$0xff] }
 0x28b   : > { %17787 = vst [vmem:[#allocation141_spill] sm:$0xff] %v11475_v31  ;;  %17788 = vst [vmem:[#allocation142_spill] sm:$0xff] %v11482_v12  ;;  %v3715_v37 = vcombine.high %v17791_v57, %v11445_v58  ;;  %v3579_v45 = vcombine.high %v17792_v20, %v11426_v2  ;;  %v17793_v57 = vld [vmem:[#allocation91_spill] sm:$0xff]  ;;  %v17796_v50 = vld [vmem:[#allocation81_spill] sm:$0xff]  ;;  %v6147_v46 = vcombine.high %v17799_v29, %v11466_v0 }
 0x28c   : > { %17789 = vst [vmem:[#allocation143_spill] sm:$0xff] %v11485_v53  ;;  %17790 = vst [vmem:[#allocation144_spill] sm:$0xff] %v11488_v23  ;;  %v17795_v58 = vcombine.low %v17793_v57, %v17794_v3  ;;  %v2699_v61 = vcombine.high %v17797_v60, %v17796_v50  ;;  %v17798_v17 = vld [vmem:[#allocation25_spill] sm:$0xff]  ;;  %v17800_v56 = vld [vmem:[#allocation6_spill] sm:$0xff]  ;;  %v6099_v40 = vcombine.high %v11391_v14, %v11393_v38 }
 0x28d   : > { %v3683_v9 = vcombine.high %v17798_v17, %v11457_v6  ;;  %2466 = vrot.lane.b32.xlu1 %v17800_v56, %s10250_s26  ;;  %2152 = vrot.lane.b32.xlu0 %v10883_v59, %s10251_s28  ;;  %v17801_v31 = vld [vmem:[#allocation44_spill] sm:$0xff]  ;;  %v17803_v17 = vld [vmem:[#allocation98_spill] sm:$0xff]  ;;  %v11542_v59 = vrot.slane %v3715_v37, %v10800_v54  ;;  %v6115_v22 = vcombine.high %v17806_v33, %v11491_v11 }
 0x28e   : > { %v11513_v15 = vrot.slane %v17795_v58, %v10693_v62  ;;  %v6067_v58 = vcombine.high %v11371_v26, %v11389_v8  ;;  %v5978_v49 = vcombine.low %v17802_v24, %v17801_v31  ;;  %v17804_v6 = vld [vmem:[#allocation94_spill] sm:$0xff]  ;;  %v11546_v12 = vpop.permute.xlu1 %2234  ;;  %v17808_v27 = vcombine.high %v17793_v57, %v17794_v3 }
 0x28f   : > { %v2803_v39 = vcombine.high %v17804_v6, %v17803_v17  ;;  %17805 = vst [vmem:[#allocation91_spill] sm:$0xff] %v11542_v59  ;;  %17807 = vst [vmem:[#allocation92_spill] sm:$0xff] %v11546_v12  ;;  %v5146_v34 = vcombine.low %v11507_v55, %v11517_v10  ;;  %v11557_v20 = vrot.slane %v3579_v45, %v10800_v54  ;;  %v17816_v45 = vld [vmem:[#allocation7_spill] sm:$0xff] }
 0x290   : > { %v11552_v18 = vrot.slane %v17808_v27, %v10693_v62  ;;  %v2835_v37 = vcombine.high %v11229_v48, %v11231_v16  ;;  %v11562_v38 = vrot.slane %v3683_v9, %v10800_v54  ;;  %v11565_v2 = vrot.slane %v6147_v46, %v10800_v54  ;;  %v17813_v27 = vld [vmem:[#allocation48_spill] sm:$0xff]  ;;  %v11580_v48 = vld [vmem:[#allocation2 + $0x140] sm:$0xff] }
 0x291   : > { %17810 = vst [vmem:[#allocation72_spill] sm:$0xff] %v11557_v20  ;;  %2506 = vrot.lane.b32.xlu1 %v17815_v44, %s10250_s26  ;;  %2240 = vrot.lane.b32.xlu0 %v17816_v45, %s10250_s26  ;;  %v11576_v16 = vrot.slane %v6067_v58, %v10693_v62  ;;  %v5250_v9 = vcombine.low %v11533_v13, %v11537_v51  ;;  %v11582_v46 = vld [vmem:[#allocation2 + $0x170] sm:$0xff] }
 0x292   : > { %17809 = vst [vmem:[#allocation81_spill] sm:$0xff] %v11552_v18  ;;  %17811 = vst [vmem:[#allocation56_spill] sm:$0xff] %v11562_v38  ;;  %v17819_v1 = vcombine.high %v10926_v25, %v10974_v43  ;;  %v11591_v23 = vrot.slane %v2803_v39, %v10693_v62  ;;  %v11594_v53 = vrot.slane %v6099_v40, %v10693_v62  ;;  %v11601_v4 = vpop.permute.xlu1 %2266  ;;  %v11603_v7 = vpop.permute.xlu0 %2008  ;;  %v17826_v38 = vld [vmem:[#allocation93_spill] sm:$0xff] }
 0x293   : > { %17812 = vst [vmem:[#allocation6_spill] sm:$0xff] %v11565_v2  ;;  %17817 = vst [vmem:[#allocation44_spill] sm:$0xff] %v11576_v16  ;;  %v11597_v58 = vrot.slane %v6115_v22, %v10800_v54  ;;  %v11606_v43 = vrot.slane %v2699_v61, %v10693_v62  ;;  %v11612_v39 = vrot.slane %v2835_v37, %v10693_v62  ;;  %v17828_v61 = vld [vmem:[#allocation22_spill] sm:$0xff] }
 0x294   : > { %17818 = vst [vmem:[#allocation31_spill] sm:$0xff] %v11582_v46  ;;  %v11588_v41 = vrot.slane %v17819_v1, %v10800_v54  ;;  %17821 = vst [vmem:[#allocation94_spill] sm:$0xff] %v11591_v23  ;;  %v11609_v1 = vrot.slane %v5146_v34, %v10693_v62  ;;  %v5251_v22 = vcombine.high %v11533_v13, %v11537_v51  ;;  %v17827_v34 = vld [vmem:[#allocation43_spill] sm:$0xff] }
 0x295   : > { %17822 = vst [vmem:[#allocation19_spill] sm:$0xff] %v11594_v53  ;;  %17823 = vst [vmem:[#allocation36_spill] sm:$0xff] %v11597_v58  ;;  %v5282_v35 = vcombine.low %v11580_v48, %v11582_v46  ;;  %v6010_v59 = vcombine.low %v17826_v38, %v11513_v15  ;;  %2562 = vrot.lane.b32.xlu1 %v17800_v56, %s10251_s28  ;;  %2280 = vrot.lane.b32.xlu0 %v17827_v34, %s10250_s26  ;;  %v17829_v56 = vld [vmem:[#allocation20_spill] sm:$0xff] }
 0x296   : > { %17820 = vst [vmem:[#allocation98_spill] sm:$0xff] %v11588_v41  ;;  %17824 = vst [vmem:[#allocation7_spill] sm:$0xff] %v11601_v4  ;;  %v11629_v37 = vrot.slane %v5250_v9, %v10693_v62  ;;  %v5979_v40 = vcombine.high %v17802_v24, %v17801_v31  ;;  %v5283_v4 = vcombine.high %v11580_v48, %v11582_v46  ;;  %v17830_v41 = vld [vmem:[#allocation57_spill] sm:$0xff]  ;;  %v11643_v9 = vpop.permute.xlu1 %2330  ;;  %v11645_v25 = vpop.permute.xlu0 %2040  ;;  %v17836_v46 = vld [vmem:[#allocation66_spill] sm:$0xff] }
 0x297   : > { %17825 = vst [vmem:[#allocation145_spill] sm:$0xff] %v11603_v7  ;;  %v6011_v7 = vcombine.high %v17826_v38, %v11513_v15  ;;  %v2867_v58 = vcombine.high %v17828_v61, %v11591_v23  ;;  %v6131_v2 = vcombine.high %v17829_v56, %v11576_v16  ;;  %v6163_v20 = vcombine.high %v17830_v41, %v11594_v53  ;;  %v17833_v24 = vld [vmem:[#allocation53_spill] sm:$0xff]  ;;  %v17837_v61 = vld [vmem:[#allocation39_spill] sm:$0xff] }
 0x298   : > { %17831 = vst [vmem:[#allocation93_spill] sm:$0xff] %v11643_v9  ;;  %17832 = vst [vmem:[#allocation43_spill] sm:$0xff] %v11645_v25  ;;  %v2899_v31 = vcombine.high %v17833_v24, %v11612_v39  ;;  %v11650_v15 = vrot.slane %v5979_v40, %v10800_v54  ;;  %v5290_v56 = vrot.slane %v5282_v35, %v10693_v62 }
 0x299   : > { %v11653_v38 = vrot.slane %v6011_v7, %v10800_v54  ;;  %v11659_v16 = vrot.slane %v6010_v59, %v10800_v54  ;;  %v11662_v41 = vrot.slane %v6131_v2, %v10800_v54  ;;  %v11665_v53 = vrot.slane %v6163_v20, %v10800_v54  ;;  %2602 = vrot.lane.b32.xlu1 %v17815_v44, %s10251_s28  ;;  %v17841_v7 = vld [vmem:[#allocation89_spill] sm:$0xff] }
 0x29a   : > { %17834 = vst [vmem:[#allocation53_spill] sm:$0xff] %v11650_v15  ;;  %2336 = vrot.lane.b32.xlu0 %v17816_v45, %s10251_s28  ;;  %v2763_v40 = vcombine.high %v17841_v7, %v11606_v43  ;;  %v11678_v2 = vrot.slane %v5978_v49, %v10800_v54  ;;  %v6146_v20 = vcombine.low %v17799_v29, %v11466_v0  ;;  %v11686_v23 = vpop.permute.xlu1 %2362  ;;  %v11688_v25 = vpop.permute.xlu0 %2104  ;;  %v17847_v0 = vld [vmem:[#allocation95_spill] sm:$0xff]  ;;  %v17848_v45 = vld [vmem:[#allocation74_spill] sm:$0xff] }
 0x29b   : > { %17835 = vst [vmem:[#allocation146_spill] sm:$0xff] %v11653_v38  ;;  %17838 = vst [vmem:[#allocation66_spill] sm:$0xff] %v11659_v16  ;;  %v11691_v35 = vrot.slane %v2867_v58, %v10800_v54  ;;  %v11694_v59 = vrot.slane %v2899_v31, %v10800_v54  ;;  %v5995_v49 = vcombine.high %v17814_v32, %v17813_v27  ;;  %v17851_v31 = vld [vmem:[#allocation23_spill] sm:$0xff]  ;;  %v17852_v27 = vld [vmem:[#allocation26_spill] sm:$0xff] }
 0x29c   : > { %17839 = vst [vmem:[#allocation39_spill] sm:$0xff] %v11662_v41  ;;  %17840 = vst [vmem:[#allocation147_spill] sm:$0xff] %v11665_v53  ;;  %v6027_v29 = vcombine.high %v17847_v0, %v11552_v18  ;;  %v6114_v44 = vcombine.low %v17806_v33, %v11491_v11  ;;  %v5330_v53 = vcombine.low %v17848_v45, %v5290_v56  ;;  %v17871_v38 = vld [vmem:[#allocation8_spill] sm:$0xff] }
 0x29d   : > { %17842 = vst [vmem:[#allocation89_spill] sm:$0xff] %v11678_v2  ;;  %17843 = vst [vmem:[#allocation148_spill] sm:$0xff] %v11686_v23  ;;  %2018 = vrot.lane.b32.xlu1 %v17851_v31, %s10250_s26  ;;  %v5298_v32 = vcombine.low %v17852_v27, %v11629_v37  ;;  %v11714_v0 = vrot.slane %v5995_v49, %v10800_v54  ;;  %v11720_v11 = vrot.slane %v5251_v22, %v10693_v62 }
 0x29e   : > { %17844 = vst [vmem:[#allocation149_spill] sm:$0xff] %v11688_v25  ;;  %17845 = vst [vmem:[#allocation150_spill] sm:$0xff] %v11691_v35  ;;  %2376 = vrot.lane.b32.xlu0 %v17827_v34, %s10251_s28  ;;  %v11717_v33 = vrot.slane %v6027_v29, %v10800_v54  ;;  %v11723_v41 = vrot.slane %v5283_v4, %v10693_v62  ;;  %v11726_v15 = vrot.slane %v6146_v20, %v10800_v54  ;;  %v17858_v34 = vld [vmem:[#allocation99_spill] sm:$0xff]  ;;  %v11730_v2 = vpop.permute.xlu1 %2458  ;;  %v11732_v16 = vpop.permute.xlu0 %2136  ;;  %v17861_v29 = vld [vmem:[#allocation13_spill] sm:$0xff] }
 0x29f   : > { %17846 = vst [vmem:[#allocation151_spill] sm:$0xff] %v11694_v59  ;;  %17853 = vst [vmem:[#allocation74_spill] sm:$0xff] %v11714_v0  ;;  %v5194_v18 = vcombine.low %v17858_v34, %v11609_v1  ;;  %v17862_v9 = vcombine.high %v17861_v29, %v10790_v21  ;;  %v11755_v22 = vrot.slane %v6114_v44, %v10800_v54  ;;  %v17870_v20 = vld [vmem:[#allocation47_spill] sm:$0xff] }
 0x2a0   : > { %17854 = vst [vmem:[#allocation23_spill] sm:$0xff] %v11717_v33  ;;  %17855 = vst [vmem:[#allocation26_spill] sm:$0xff] %v11720_v11  ;;  %v11758_v4 = vrot.slane %v5330_v53, %v10800_v54  ;;  %v11765_v21 = vrot.slane %v2763_v40, %v10800_v54  ;;  %v5331_v44 = vcombine.high %v17848_v45, %v5290_v56  ;;  %v17878_v56 = vld [vmem:[#allocation75_spill] sm:$0xff] }
 0x2a1   : > { %17856 = vst [vmem:[#allocation152_spill] sm:$0xff] %v11723_v41  ;;  %17857 = vst [vmem:[#allocation153_spill] sm:$0xff] %v11726_v15  ;;  %v11746_v25 = vrot.slane %v17862_v9, %v10693_v62  ;;  %2058 = vrot.lane.b32.xlu1 %v17870_v20, %s10250_s26  ;;  %v11768_v9 = vrot.slane %v5298_v32, %v10800_v54  ;;  %v5163_v29 = vcombine.high %v17837_v61, %v17836_v46 }
 0x2a2   : > { %17859 = vst [vmem:[#allocation99_spill] sm:$0xff] %v11730_v2  ;;  %17860 = vst [vmem:[#allocation154_spill] sm:$0xff] %v11732_v16  ;;  %v17864_v16 = vld [vmem:[#allocation33_spill] sm:$0xff]  ;;  %v17865_v2 = vld [vmem:[#allocation42_spill] sm:$0xff]  ;;  %2464 = vrot.lane.b32.xlu0 %v17871_v38, %s10250_s26  ;;  %v5195_v38 = vcombine.high %v17858_v34, %v11609_v1  ;;  %v11779_v58 = vpop.permute.xlu1 %2490  ;;  %v11781_v40 = vpop.permute.xlu0 %2232  ;;  %v11784_v32 = vrot.slane %v5194_v18, %v10800_v54  ;;  %v5347_v45 = vcombine.high %v17878_v56, %v11723_v41 }
 0x2a3   : > { %17863 = vst [vmem:[#allocation13_spill] sm:$0xff] %v11746_v25  ;;  %v17866_v23 = vcombine.high %v17864_v16, %v17865_v2  ;;  %17868 = vst [vmem:[#allocation42_spill] sm:$0xff] %v11755_v22  ;;  %v11794_v53 = vrot.slane %v5331_v44, %v10800_v54  ;;  %v11797_v1 = vrot.slane %v5163_v29, %v10800_v54  ;;  %v17900_v56 = vld [vmem:[#allocation38_spill] sm:$0xff] }
 0x2a4   : > { %17869 = vst [vmem:[#allocation155_spill] sm:$0xff] %v11758_v4  ;;  %17872 = vst [vmem:[#allocation47_spill] sm:$0xff] %v11765_v21  ;;  %v11800_v34 = vrot.slane %v5195_v38, %v10800_v54  ;;  %v17883_v44 = vcombine.low %v17837_v61, %v17836_v46  ;;  %v11818_v38 = vrot.slane %v5347_v45, %v10800_v54  ;;  %v10165_v46 = vld [vmem:[#allocation2 + $0x32] sm:$0xff]  ;;  %v17906_v22 = vld [vmem:[#allocation46_spill] sm:$0xff] }
 0x2a5   : > { %v11752_v49 = vrot.slane %v17866_v23, %v10800_v54  ;;  %17873 = vst [vmem:[#allocation8_spill] sm:$0xff] %v11768_v9  ;;  %v5299_v23 = vcombine.high %v17852_v27, %v11629_v37  ;;  %17874 = vst [vmem:[#allocation156_spill] sm:$0xff] %v11779_v58  ;;  %v5315_v37 = vcombine.high %v11746_v25, %v11720_v11  ;;  %2114 = vrot.lane.b32.xlu1 %v17851_v31, %s10251_s28  ;;  %v17892_v31 = vld [vmem:[#allocation35_spill] sm:$0xff]  ;;  %v10167_v25 = vld [vmem:[#allocation2 + $0x52] sm:$0xff] }
 0x2a6   : > { %17875 = vst [vmem:[#allocation157_spill] sm:$0xff] %v11781_v40  ;;  %17876 = vst [vmem:[#allocation158_spill] sm:$0xff] %v11784_v32  ;;  %v11812_v33 = vrot.slane %v17883_v44, %v10800_v54  ;;  %v11828_v61 = vpop.permute.xlu1 %2554  ;;  %v11830_v44 = vpop.permute.xlu0 %2264 }
 0x2a7   : > { %17867 = vst [vmem:[#allocation33_spill] sm:$0xff] %v11752_v49  ;;  %v11787_v27 = vrot.slane %v5299_v23, %v10800_v54  ;;  %17879 = vst [vmem:[#allocation160_spill] sm:$0xff] %v11794_v53  ;;  %v17882_v23 = vld [vmem:[#allocation51_spill] sm:$0xff]  ;;  %v11815_v29 = vrot.slane %v5315_v37, %v10800_v54 }
 0x2a8   : > { %17880 = vst [vmem:[#allocation161_spill] sm:$0xff] %v11797_v1  ;;  %17881 = vst [vmem:[#allocation162_spill] sm:$0xff] %v11800_v34  ;;  %2504 = vrot.lane.b32.xlu0 %v17882_v23, %s10250_s26  ;;  %v17890_v37 = vld [vmem:[#allocation27_spill] sm:$0xff] }
 0x2a9   : > { %17877 = vst [vmem:[#allocation159_spill] sm:$0xff] %v11787_v27  ;;  %17884 = vst [vmem:[#allocation51_spill] sm:$0xff] %v11812_v33  ;;  %2154 = vrot.lane.b32.xlu1 %v17870_v20, %s10251_s28  ;;  %v10166_v20 = vld [vmem:[#allocation2 + $0x48] sm:$0xff]  ;;  %v17902_v33 = vld [vmem:[#allocation45_spill] sm:$0xff] }
 0x2aa   : > { %17885 = vst [vmem:[#allocation163_spill] sm:$0xff] %v11815_v29  ;;  %17886 = vst [vmem:[#allocation164_spill] sm:$0xff] %v11818_v38  ;;  %v11843_v0 = vpop.permute.xlu1 %2586  ;;  %v11845_v34 = vpop.permute.xlu0 %2328  ;;  %v17895_v29 = vld [vmem:[#allocation30_spill] sm:$0xff] }
 0x2ab   : > { %17887 = vst [vmem:[#allocation165_spill] sm:$0xff] %v11828_v61  ;;  %17888 = vst [vmem:[#allocation166_spill] sm:$0xff] %v11830_v44 }
 0x2ac   : > { %2560 = vrot.lane.b32.xlu0 %v10165_v46, %s10251_s28  ;;  %17889 = vst [vmem:[#allocation167_spill] sm:$0xff] %v11843_v0 }
 0x2ad   : > { %2246 = vrot.lane.b32.xlu1 %v17890_v37, %s10250_s26 }
 0x2ae   : > { %v11851_v18 = vpop.permute.xlu1 %2010  ;;  %v11853_v45 = vpop.permute.xlu0 %2360 }
 0x2af   : > { %17891 = vst [vmem:[#allocation27_spill] sm:$0xff] %v11853_v45 }
 0x2b0   : > { %2600 = vrot.lane.b32.xlu0 %v17882_v23, %s10251_s28 }
 0x2b1   : > { %2290 = vrot.lane.b32.xlu1 %v17892_v31, %s10250_s26 }
 0x2b2   : > { %v11858_v46 = vpop.permute.xlu1 %2042  ;;  %v11860_v38 = vpop.permute.xlu0 %2456 }
 0x2b3   : > { %17893 = vst [vmem:[#allocation35_spill] sm:$0xff] %v11858_v46  ;;  %17894 = vst [vmem:[#allocation168_spill] sm:$0xff] %v11860_v38  ;;  %v17921_v46 = vld [vmem:[#allocation68_spill] sm:$0xff]  ;;  %v17949_v38 = vld [vmem:[#allocation73_spill] sm:$0xff] }
 0x2b4   : > { %2020 = vrot.lane.b32.xlu0 %v10166_v20, %s10250_s26 }
 0x2b5   : > { %2342 = vrot.lane.b32.xlu1 %v17890_v37, %s10251_s28 }
 0x2b6   : > { %v11866_v23 = vpop.permute.xlu1 %2106  ;;  %v11868_v1 = vpop.permute.xlu0 %2488 }
 0x2b7   : > { %17896 = vst [vmem:[#allocation30_spill] sm:$0xff] %v11868_v1  ;;  %v17908_v1 = vld [vmem:[#allocation54_spill] sm:$0xff] }
 0x2b8   : > { %2064 = vrot.lane.b32.xlu0 %v17895_v29, %s10250_s26 }
 0x2b9   : > { %2386 = vrot.lane.b32.xlu1 %v17892_v31, %s10251_s28  ;;  %v10168_v31 = vld [vmem:[#allocation2 + $0x49] sm:$0xff] }
 0x2ba   : > { %v11873_v53 = vpop.permute.xlu1 %2138  ;;  %v11875_v27 = vpop.permute.xlu0 %2552 }
 0x2bb   : > { %17897 = vst [vmem:[#allocation169_spill] sm:$0xff] %v11873_v53 }
 0x2bc   : > { %2116 = vrot.lane.b32.xlu0 %v10166_v20, %s10251_s28 }
 0x2bd   : > { %2470 = vrot.lane.b32.xlu1 %v10167_v25, %s10250_s26 }
 0x2be   : > { %v11880_v37 = vpop.permute.xlu1 %2238  ;;  %v11882_v11 = vpop.permute.xlu0 %2584 }
 0x2bf   : > { %17898 = vst [vmem:[#allocation170_spill] sm:$0xff] %v11880_v37  ;;  %17899 = vst [vmem:[#allocation171_spill] sm:$0xff] %v11882_v11  ;;  %v17916_v11 = vld [vmem:[#allocation63_spill] sm:$0xff] }
 0x2c0   : > { %2160 = vrot.lane.b32.xlu0 %v17895_v29, %s10251_s28 }
 0x2c1   : > { %2514 = vrot.lane.b32.xlu1 %v17900_v56, %s10250_s26 }
 0x2c2   : > { %v11887_v20 = vpop.permute.xlu1 %2274  ;;  %v11889_v41 = vpop.permute.xlu0 %2012 }
 0x2c3   : > { %17901 = vst [vmem:[#allocation38_spill] sm:$0xff] %v11889_v41 }
 0x2c4   : > { %2244 = vrot.lane.b32.xlu0 %v10168_v31, %s10250_s26 }
 0x2c5   : > { %2566 = vrot.lane.b32.xlu1 %v10167_v25, %s10251_s28 }
 0x2c6   : > { %v11894_v29 = vpop.permute.xlu1 %2334  ;;  %v11896_v32 = vpop.permute.xlu0 %2048 }
 0x2c7   : > { %17903 = vst [vmem:[#allocation45_spill] sm:$0xff] %v11894_v29  ;;  %17904 = vst [vmem:[#allocation172_spill] sm:$0xff] %v11896_v32  ;;  %v17911_v32 = vld [vmem:[#allocation55_spill] sm:$0xff] }
 0x2c8   : > { %2288 = vrot.lane.b32.xlu0 %v17902_v33, %s10250_s26 }
 0x2c9   : > { %2610 = vrot.lane.b32.xlu1 %v17900_v56, %s10251_s28  ;;  %v10169_v56 = vld [vmem:[#allocation2 + $0x4a] sm:$0xff] }
 0x2ca   : > { %v11901_v9 = vpop.permute.xlu1 %2370  ;;  %v11903_v4 = vpop.permute.xlu0 %2108 }
 0x2cb   : > { %17905 = vst [vmem:[#allocation173_spill] sm:$0xff] %v11903_v4 }
 0x2cc   : > { %2340 = vrot.lane.b32.xlu0 %v10168_v31, %s10251_s28 }
 0x2cd   : > { %2022 = vrot.lane.b32.xlu1 %v17906_v22, %s10250_s26 }
 0x2ce   : > { %v11909_v25 = vpop.permute.xlu1 %2462  ;;  %v11911_v15 = vpop.permute.xlu0 %2144 }
 0x2cf   : > { %17907 = vst [vmem:[#allocation46_spill] sm:$0xff] %v11911_v15 }
 0x2d0   : > { %2384 = vrot.lane.b32.xlu0 %v17902_v33, %s10251_s28 }
 0x2d1   : > { %2066 = vrot.lane.b32.xlu1 %v17908_v1, %s10250_s26 }
 0x2d2   : > { %v11916_v31 = vpop.permute.xlu1 %2498  ;;  %v11918_v45 = vpop.permute.xlu0 %2236 }
 0x2d3   : > { %17909 = vst [vmem:[#allocation54_spill] sm:$0xff] %v11916_v31  ;;  %17910 = vst [vmem:[#allocation174_spill] sm:$0xff] %v11918_v45 }
 0x2d4   : > { %2468 = vrot.lane.b32.xlu0 %v10169_v56, %s10250_s26 }
 0x2d5   : > { %2118 = vrot.lane.b32.xlu1 %v17906_v22, %s10251_s28 }
 0x2d6   : > { %v11924_v33 = vpop.permute.xlu1 %2558  ;;  %v11926_v61 = vpop.permute.xlu0 %2272 }
 0x2d7   : > { %17912 = vst [vmem:[#allocation55_spill] sm:$0xff] %v11924_v33  ;;  %17913 = vst [vmem:[#allocation175_spill] sm:$0xff] %v11926_v61  ;;  %v17944_v61 = vld [vmem:[#allocation70_spill] sm:$0xff] }
 0x2d8   : > { %2512 = vrot.lane.b32.xlu0 %v17911_v32, %s10250_s26 }
 0x2d9   : > { %2162 = vrot.lane.b32.xlu1 %v17908_v1, %s10251_s28  ;;  %v17918_v1 = vld [vmem:[#allocation59_spill] sm:$0xff] }
 0x2da   : > { %v11931_v15 = vpop.permute.xlu1 %2594  ;;  %v11933_v29 = vpop.permute.xlu0 %2332 }
 0x2db   : > { %17914 = vst [vmem:[#allocation176_spill] sm:$0xff] %v11931_v15  ;;  %17915 = vst [vmem:[#allocation177_spill] sm:$0xff] %v11933_v29 }
 0x2dc   : > { %2564 = vrot.lane.b32.xlu0 %v10169_v56, %s10251_s28 }
 0x2dd   : > { %2250 = vrot.lane.b32.xlu1 %v17916_v11, %s10250_s26 }
 0x2de   : > { %v11939_v22 = vpop.permute.xlu1 %2014  ;;  %v11941_v33 = vpop.permute.xlu0 %2368 }
 0x2df   : > { %17917 = vst [vmem:[#allocation63_spill] sm:$0xff] %v11941_v33 }
 0x2e0   : > { %2608 = vrot.lane.b32.xlu0 %v17911_v32, %s10251_s28 }
 0x2e1   : > { %2346 = vrot.lane.b32.xlu1 %v17916_v11, %s10251_s28  ;;  %v17923_v11 = vld [vmem:[#allocation60_spill] sm:$0xff] }
 0x2e2   : > { %v11947_v56 = vpop.permute.xlu1 %2050  ;;  %v11949_v53 = vpop.permute.xlu0 %2460 }
 0x2e3   : > { %17919 = vst [vmem:[#allocation59_spill] sm:$0xff] %v11947_v56  ;;  %17920 = vst [vmem:[#allocation178_spill] sm:$0xff] %v11949_v53  ;;  %v17926_v53 = vld [vmem:[#allocation69_spill] sm:$0xff] }
 0x2e4   : > { %2024 = vrot.lane.b32.xlu0 %v17918_v1, %s10250_s26 }
 0x2e5   : > { %2474 = vrot.lane.b32.xlu1 %v17921_v46, %s10250_s26 }
 0x2e6   : > { %v11955_v32 = vpop.permute.xlu1 %2110  ;;  %v11957_v0 = vpop.permute.xlu0 %2496 }
 0x2e7   : > { %17922 = vst [vmem:[#allocation68_spill] sm:$0xff] %v11957_v0 }
 0x2e8   : > { %2120 = vrot.lane.b32.xlu0 %v17918_v1, %s10251_s28 }
 0x2e9   : > { %2570 = vrot.lane.b32.xlu1 %v17921_v46, %s10251_s28  ;;  %v17929_v46 = vld [vmem:[#allocation71_spill] sm:$0xff] }
 0x2ea   : > { %v11963_v33 = vpop.permute.xlu1 %2146  ;;  %v11965_v56 = vpop.permute.xlu0 %2556 }
 0x2eb   : > { %17924 = vst [vmem:[#allocation60_spill] sm:$0xff] %v11963_v33  ;;  %17925 = vst [vmem:[#allocation179_spill] sm:$0xff] %v11965_v56 }
 0x2ec   : > { %2248 = vrot.lane.b32.xlu0 %v17923_v11, %s10250_s26 }
 0x2ed   : > { %2026 = vrot.lane.b32.xlu1 %v17926_v53, %s10250_s26 }
 0x2ee   : > { %v11971_v1 = vpop.permute.xlu1 %2242 }
 0x2ef   : > { %17927 = vst [vmem:[#allocation69_spill] sm:$0xff] %v11971_v1  ;;  %v11973_v15 = vpop.permute.xlu0 %2592 }
 0x2f0   : > { %2344 = vrot.lane.b32.xlu0 %v17923_v11, %s10251_s28  ;;  %17928 = vst [vmem:[#allocation180_spill] sm:$0xff] %v11973_v15  ;;  %v17936_v15 = vld [vmem:[#allocation78_spill] sm:$0xff] }
 0x2f1   : > { %2122 = vrot.lane.b32.xlu1 %v17926_v53, %s10251_s28 }
 0x2f3   : > { %v11979_v0 = vpop.permute.xlu1 %2282  ;;  %v11981_v33 = vpop.permute.xlu0 %2016 }
 0x2f4   : > { %2472 = vrot.lane.b32.xlu0 %v17929_v46, %s10250_s26  ;;  %17930 = vst [vmem:[#allocation71_spill] sm:$0xff] %v11979_v0  ;;  %17931 = vst [vmem:[#allocation181_spill] sm:$0xff] %v11981_v33 }
 0x2f5   : > { %2254 = vrot.lane.b32.xlu1 %v17793_v57, %s10250_s26 }
 0x2f7   : > { %v11987_v11 = vpop.permute.xlu1 %2338  ;;  %v11989_v44 = vpop.permute.xlu0 %2056 }
 0x2f8   : > { %2568 = vrot.lane.b32.xlu0 %v17929_v46, %s10251_s28  ;;  %17932 = vst [vmem:[#allocation182_spill] sm:$0xff] %v11987_v11  ;;  %17933 = vst [vmem:[#allocation183_spill] sm:$0xff] %v11989_v44 }
 0x2f9   : > { %2350 = vrot.lane.b32.xlu1 %v17793_v57, %s10251_s28 }
 0x2fb   : > { %v11995_v53 = vpop.permute.xlu1 %2378  ;;  %v11997_v0 = vpop.permute.xlu0 %2112 }
 0x2fc   : > { %2028 = vrot.lane.b32.xlu0 %v17797_v60, %s10250_s26  ;;  %17934 = vst [vmem:[#allocation184_spill] sm:$0xff] %v11995_v53  ;;  %17935 = vst [vmem:[#allocation185_spill] sm:$0xff] %v11997_v0 }
 0x2fd   : > { %2478 = vrot.lane.b32.xlu1 %v17936_v15, %s10250_s26 }
 0x2ff   : > { %v12003_v46 = vpop.permute.xlu1 %2466  ;;  %v12005_v11 = vpop.permute.xlu0 %2152 }
 0x300   : > { %2124 = vrot.lane.b32.xlu0 %v17797_v60, %s10251_s28  ;;  %17937 = vst [vmem:[#allocation78_spill] sm:$0xff] %v12005_v11 }
 0x301   : > { %2574 = vrot.lane.b32.xlu1 %v17936_v15, %s10251_s28  ;;  %v17942_v15 = vld [vmem:[#allocation85_spill] sm:$0xff] }
 0x303   : > { %v12011_v57 = vpop.permute.xlu1 %2506  ;;  %v12013_v44 = vpop.permute.xlu0 %2240 }
 0x304   : > { %2252 = vrot.lane.b32.xlu0 %v11089_v52, %s10250_s26  ;;  %17938 = vst [vmem:[#allocation186_spill] sm:$0xff] %v12011_v57  ;;  %17939 = vst [vmem:[#allocation187_spill] sm:$0xff] %v12013_v44 }
 0x305   : > { %2030 = vrot.lane.b32.xlu1 %v11507_v55, %s10250_s26 }
 0x307   : > { %v12019_v60 = vpop.permute.xlu1 %2562  ;;  %v12021_v53 = vpop.permute.xlu0 %2280 }
 0x308   : > { %2348 = vrot.lane.b32.xlu0 %v11089_v52, %s10251_s28  ;;  %17940 = vst [vmem:[#allocation188_spill] sm:$0xff] %v12019_v60  ;;  %17941 = vst [vmem:[#allocation189_spill] sm:$0xff] %v12021_v53 }
 0x309   : > { %2126 = vrot.lane.b32.xlu1 %v11507_v55, %s10251_s28  ;;  %v17946_v55 = vld [vmem:[#allocation61_spill] sm:$0xff] }
 0x30b   : > { %v12027_v11 = vpop.permute.xlu1 %2602 }
 0x30c   : > { %2476 = vrot.lane.b32.xlu0 %v17942_v15, %s10250_s26  ;;  %17943 = vst [vmem:[#allocation85_spill] sm:$0xff] %v12027_v11  ;;  %v12029_v57 = vpop.permute.xlu0 %2336 }
 0x30d   : > { %2258 = vrot.lane.b32.xlu1 %v17944_v61, %s10250_s26 }
 0x30f   : > { %v12035_v52 = vpop.permute.xlu1 %2018 }
 0x310   : > { %2572 = vrot.lane.b32.xlu0 %v17942_v15, %s10251_s28  ;;  %v12037_v60 = vpop.permute.xlu0 %2376 }
 0x311   : > { %17945 = vst [vmem:[#allocation70_spill] sm:$0xff] %v12037_v60  ;;  %2354 = vrot.lane.b32.xlu1 %v17944_v61, %s10251_s28  ;;  %v17951_v61 = vld [vmem:[#allocation62_spill] sm:$0xff] }
 0x313   : > { %v12043_v53 = vpop.permute.xlu1 %2058 }
 0x314   : > { %2032 = vrot.lane.b32.xlu0 %v17946_v55, %s10250_s26  ;;  %17947 = vst [vmem:[#allocation61_spill] sm:$0xff] %v12043_v53  ;;  %v12045_v11 = vpop.permute.xlu0 %2464 }
 0x315   : > { %17948 = vst [vmem:[#allocation190_spill] sm:$0xff] %v12045_v11  ;;  %2482 = vrot.lane.b32.xlu1 %v17949_v38, %s10250_s26  ;;  %v17953_v11 = vld [vmem:[#allocation79_spill] sm:$0xff] }
 0x317   : > { %v12051_v15 = vpop.permute.xlu1 %2114 }
 0x318   : > { %2128 = vrot.lane.b32.xlu0 %v17946_v55, %s10251_s28  ;;  %v6187_v55 = vcombine.high %v11546_v12, %v11971_v1 }
 0x319   : > { %2578 = vrot.lane.b32.xlu1 %v17949_v38, %s10251_s28 }
 0x31a   : > { %v12053_v45 = vpop.permute.xlu0 %2504  ;;  %v12080_v44 = vrot.slane %v6187_v55, %v10693_v62 }
 0x31b   : > { %17950 = vst [vmem:[#allocation73_spill] sm:$0xff] %v12053_v45  ;;  %v12059_v60 = vpop.permute.xlu1 %2154 }
 0x31c   : > { %2256 = vrot.lane.b32.xlu0 %v17951_v61, %s10250_s26  ;;  %17952 = vst [vmem:[#allocation62_spill] sm:$0xff] %v12059_v60  ;;  %v17956_v60 = vld [vmem:[#allocation80_spill] sm:$0xff] }
 0x31d   : > { %2034 = vrot.lane.b32.xlu1 %v17953_v11, %s10250_s26  ;;  %17957 = vst [vmem:[#allocation80_spill] sm:$0xff] %v12080_v44 }
 0x31e   : > { %v12061_v53 = vpop.permute.xlu0 %2560 }
 0x31f   : > { %v12069_v45 = vpop.permute.xlu1 %2246 }
 0x320   : > { %2352 = vrot.lane.b32.xlu0 %v17951_v61, %s10251_s28  ;;  %17954 = vst [vmem:[#allocation79_spill] sm:$0xff] %v12069_v45  ;;  %v6203_v38 = vcombine.high %v11880_v37, %v12069_v45 }
 0x321   : > { %2130 = vrot.lane.b32.xlu1 %v17953_v11, %s10251_s28 }
 0x322   : > { %v12071_v40 = vpop.permute.xlu0 %2600  ;;  %v12083_v61 = vrot.slane %v6203_v38, %v10693_v62 }
 0x323   : > { %17955 = vst [vmem:[#allocation191_spill] sm:$0xff] %v12071_v40  ;;  %v12085_v12 = vpop.permute.xlu1 %2290  ;;  %v17965_v40 = vld [vmem:[#allocation82_spill] sm:$0xff] }
 0x324   : > { %2480 = vrot.lane.b32.xlu0 %v17956_v60, %s10250_s26  ;;  %17958 = vst [vmem:[#allocation192_spill] sm:$0xff] %v12083_v61  ;;  %17959 = vst [vmem:[#allocation193_spill] sm:$0xff] %v12085_v12 }
 0x325   : > { %2262 = vrot.lane.b32.xlu1 %v17794_v3, %s10250_s26 }
 0x326   : > { %v12087_v1 = vpop.permute.xlu0 %2020 }
 0x327   : > { %17960 = vst [vmem:[#allocation194_spill] sm:$0xff] %v12087_v1  ;;  %v12095_v11 = vpop.permute.xlu1 %2342 }
 0x328   : > { %2576 = vrot.lane.b32.xlu0 %v17956_v60, %s10251_s28  ;;  %17961 = vst [vmem:[#allocation195_spill] sm:$0xff] %v12095_v11 }
 0x329   : > { %2358 = vrot.lane.b32.xlu1 %v17794_v3, %s10251_s28 }
 0x32a   : > { %v12097_v55 = vpop.permute.xlu0 %2064 }
 0x32b   : > { %17962 = vst [vmem:[#allocation196_spill] sm:$0xff] %v12097_v55  ;;  %v12103_v38 = vpop.permute.xlu1 %2386 }
 0x32c   : > { %2036 = vrot.lane.b32.xlu0 %v17796_v50, %s10250_s26  ;;  %17963 = vst [vmem:[#allocation197_spill] sm:$0xff] %v12103_v38 }
 0x32d   : > { %2486 = vrot.lane.b32.xlu1 %v17965_v40, %s10250_s26 }
 0x32e   : > { %v12105_v37 = vpop.permute.xlu0 %2116 }
 0x32f   : > { %17964 = vst [vmem:[#allocation198_spill] sm:$0xff] %v12105_v37  ;;  %v12111_v60 = vpop.permute.xlu1 %2470 }
 0x330   : > { %2132 = vrot.lane.b32.xlu0 %v17796_v50, %s10251_s28 }
 0x331   : > { %2582 = vrot.lane.b32.xlu1 %v17965_v40, %s10251_s28  ;;  %v17970_v40 = vld [vmem:[#allocation86_spill] sm:$0xff] }
 0x332   : > { %v12113_v45 = vpop.permute.xlu0 %2160 }
 0x333   : > { %17966 = vst [vmem:[#allocation82_spill] sm:$0xff] %v12113_v45  ;;  %v12119_v3 = vpop.permute.xlu1 %2514  ;;  %v4011_v45 = vcombine.high %v11845_v34, %v12029_v57 }
 0x334   : > { %2260 = vrot.lane.b32.xlu0 %v11125_v5, %s10250_s26  ;;  %17967 = vst [vmem:[#allocation199_spill] sm:$0xff] %v12119_v3 }
 0x335   : > { %2038 = vrot.lane.b32.xlu1 %v11517_v10, %s10250_s26  ;;  %v12152_v38 = vrot.slane %v4011_v45, %v10693_v62 }
 0x336   : > { %v12121_v55 = vpop.permute.xlu0 %2244 }
 0x337   : > { %v12127_v50 = vpop.permute.xlu1 %2566  ;;  %17973 = vst [vmem:[#allocation203_spill] sm:$0xff] %v12152_v38  ;;  %v18029_v38 = vld [vmem:[#allocation122_spill] sm:$0xff] }
 0x338   : > { %2356 = vrot.lane.b32.xlu0 %v11125_v5, %s10251_s28  ;;  %17968 = vst [vmem:[#allocation200_spill] sm:$0xff] %v12127_v50 }
 0x339   : > { %2134 = vrot.lane.b32.xlu1 %v11517_v10, %s10251_s28  ;;  %v5371_v10 = vcombine.high %v11851_v18, %v12035_v52 }
 0x33a   : > { %v12129_v61 = vpop.permute.xlu0 %2288 }
 0x33b   : > { %17969 = vst [vmem:[#allocation201_spill] sm:$0xff] %v12129_v61  ;;  %v12137_v3 = vpop.permute.xlu1 %2610  ;;  %v5370_v61 = vcombine.low %v11851_v18, %v12035_v52  ;;  %v12169_v45 = vrot.slane %v5371_v10, %v10693_v62 }
 0x33c   : > { %2484 = vrot.lane.b32.xlu0 %v17970_v40, %s10250_s26  ;;  %17971 = vst [vmem:[#allocation86_spill] sm:$0xff] %v12137_v3 }
 0x33d   : > { %2270 = vrot.lane.b32.xlu1 %v11371_v26, %s10250_s26  ;;  %v12166_v18 = vrot.slane %v5370_v61, %v10693_v62  ;;  %17977 = vst [vmem:[#allocation207_spill] sm:$0xff] %v12169_v45  ;;  %v18010_v45 = vld [vmem:[#allocation11_spill] sm:$0xff] }
 0x33e   : > { %v12139_v44 = vpop.permute.xlu0 %2340 }
 0x33f   : > { %17972 = vst [vmem:[#allocation202_spill] sm:$0xff] %v12139_v44  ;;  %v4027_v5 = vcombine.high %v11933_v29, %v12139_v44  ;;  %v2023_v50 = vpop.permute.xlu1 %2022  ;;  %17976 = vst [vmem:[#allocation206_spill] sm:$0xff] %v12166_v18 }
 0x340   : > { %2580 = vrot.lane.b32.xlu0 %v17970_v40, %s10251_s28  ;;  %v5386_v11 = vcombine.low %v11939_v22, %v2023_v50  ;;  %v5387_v29 = vcombine.high %v11939_v22, %v2023_v50 }
 0x341   : > { %v12155_v3 = vrot.slane %v4027_v5, %v10693_v62  ;;  %2366 = vrot.lane.b32.xlu1 %v11371_v26, %s10251_s28 }
 0x342   : > { %v12157_v12 = vpop.permute.xlu0 %2384  ;;  %v12172_v52 = vrot.slane %v5386_v11, %v10693_v62  ;;  %v12175_v40 = vrot.slane %v5387_v29, %v10693_v62  ;;  %v5642_v29 = vcombine.low %v11866_v23, %v12051_v15  ;;  %v5643_v11 = vcombine.high %v11866_v23, %v12051_v15 }
 0x343   : > { %17974 = vst [vmem:[#allocation204_spill] sm:$0xff] %v12155_v3  ;;  %17975 = vst [vmem:[#allocation205_spill] sm:$0xff] %v12157_v12  ;;  %v12179_v22 = vpop.permute.xlu1 %2066 }
 0x344   : > { %17978 = vst [vmem:[#allocation208_spill] sm:$0xff] %v12172_v52  ;;  %17979 = vst [vmem:[#allocation209_spill] sm:$0xff] %v12175_v40  ;;  %2044 = vrot.lane.b32.xlu0 %v17804_v6, %s10250_s26  ;;  %v12202_v61 = vrot.slane %v5642_v29, %v10693_v62  ;;  %v12205_v12 = vrot.slane %v5643_v11, %v10693_v62  ;;  %v18009_v40 = vld [vmem:[#allocation15_spill] sm:$0xff]  ;;  %v18026_v52 = vld [vmem:[#allocation88_spill] sm:$0xff] }
 0x345   : > { %17980 = vst [vmem:[#allocation210_spill] sm:$0xff] %v12179_v22  ;;  %2494 = vrot.lane.b32.xlu1 %v11182_v28, %s10250_s26 }
 0x346   : > { %v12181_v50 = vpop.permute.xlu0 %2468  ;;  %17983 = vst [vmem:[#allocation213_spill] sm:$0xff] %v12202_v61  ;;  %17984 = vst [vmem:[#allocation214_spill] sm:$0xff] %v12205_v12 }
 0x347   : > { %17981 = vst [vmem:[#allocation211_spill] sm:$0xff] %v12181_v50  ;;  %v2119_v5 = vpop.permute.xlu1 %2118  ;;  %v18078_v50 = vld [vmem:[#allocation118_spill] sm:$0xff] }
 0x348   : > { %2140 = vrot.lane.b32.xlu0 %v17804_v6, %s10251_s28  ;;  %v5658_v26 = vcombine.low %v11955_v32, %v2119_v5  ;;  %v5659_v44 = vcombine.high %v11955_v32, %v2119_v5  ;;  %v4827_v32 = vcombine.high %v11875_v27, %v12061_v53 }
 0x349   : > { %2590 = vrot.lane.b32.xlu1 %v11182_v28, %s10251_s28 }
 0x34a   : > { %v12195_v10 = vpop.permute.xlu0 %2512  ;;  %v12208_v23 = vrot.slane %v5658_v26, %v10693_v62  ;;  %v12211_v6 = vrot.slane %v5659_v44, %v10693_v62  ;;  %v12232_v11 = vrot.slane %v4827_v32, %v10693_v62 }
 0x34b   : > { %17982 = vst [vmem:[#allocation212_spill] sm:$0xff] %v12195_v10  ;;  %v12217_v15 = vpop.permute.xlu1 %2162 }
 0x34c   : > { %17985 = vst [vmem:[#allocation215_spill] sm:$0xff] %v12208_v23  ;;  %17986 = vst [vmem:[#allocation216_spill] sm:$0xff] %v12211_v6  ;;  %2268 = vrot.lane.b32.xlu0 %v11184_v47, %s10250_s26  ;;  %v17993_v6 = vld [vmem:[#allocation105_spill] sm:$0xff] }
 0x34d   : > { %17987 = vst [vmem:[#allocation217_spill] sm:$0xff] %v12217_v15  ;;  %2046 = vrot.lane.b32.xlu1 %v11533_v13, %s10250_s26  ;;  %17989 = vst [vmem:[#allocation219_spill] sm:$0xff] %v12232_v11  ;;  %v18006_v15 = vld [vmem:[#allocation96_spill] sm:$0xff] }
 0x34e   : > { %v12219_v28 = vpop.permute.xlu0 %2564 }
 0x34f   : > { %17988 = vst [vmem:[#allocation218_spill] sm:$0xff] %v12219_v28  ;;  %v4843_v44 = vcombine.high %v11965_v56, %v12219_v28  ;;  %v12237_v10 = vpop.permute.xlu1 %2250  ;;  %v18077_v56 = vld [vmem:[#allocation24_spill] sm:$0xff] }
 0x350   : > { %2364 = vrot.lane.b32.xlu0 %v11184_v47, %s10251_s28  ;;  %17991 = vst [vmem:[#allocation221_spill] sm:$0xff] %v12237_v10 }
 0x351   : > { %v12235_v5 = vrot.slane %v4843_v44, %v10693_v62  ;;  %2142 = vrot.lane.b32.xlu1 %v11533_v13, %s10251_s28 }
 0x352   : > { %v12239_v29 = vpop.permute.xlu0 %2608 }
 0x353   : > { %17990 = vst [vmem:[#allocation220_spill] sm:$0xff] %v12235_v5  ;;  %17992 = vst [vmem:[#allocation222_spill] sm:$0xff] %v12239_v29  ;;  %v12247_v47 = vpop.permute.xlu1 %2346  ;;  %v18000_v5 = vld [vmem:[#allocation100_spill] sm:$0xff] }
 0x354   : > { %2492 = vrot.lane.b32.xlu0 %v17993_v6, %s10250_s26  ;;  %17994 = vst [vmem:[#allocation105_spill] sm:$0xff] %v12247_v47  ;;  %v18011_v47 = vcombine.high %v18009_v40, %v18010_v45  ;;  %v6859_v45 = vcombine.high %v11109_v36, %v11297_v63  ;;  %v2779_v36 = vcombine.high %v11115_v42, %v11307_v30 }
 0x355   : > { %2278 = vrot.lane.b32.xlu1 %v11389_v8, %s10250_s26 }
 0x356   : > { %v12249_v32 = vpop.permute.xlu0 %2024 }
 0x357   : > { %17995 = vst [vmem:[#allocation223_spill] sm:$0xff] %v12249_v32  ;;  %v12255_v44 = vpop.permute.xlu1 %2474  ;;  %v18072_v32 = vld [vmem:[#allocation117_spill] sm:$0xff] }
 0x358   : > { %2588 = vrot.lane.b32.xlu0 %v17993_v6, %s10251_s28  ;;  %17996 = vst [vmem:[#allocation224_spill] sm:$0xff] %v12255_v44 }
 0x359   : > { %2374 = vrot.lane.b32.xlu1 %v11389_v8, %s10251_s28 }
 0x35a   : > { %v12257_v29 = vpop.permute.xlu0 %2120 }
 0x35b   : > { %17997 = vst [vmem:[#allocation225_spill] sm:$0xff] %v12257_v29  ;;  %v12263_v13 = vpop.permute.xlu1 %2570 }
 0x35c   : > { %2052 = vrot.lane.b32.xlu0 %v17803_v17, %s10250_s26  ;;  %17998 = vst [vmem:[#allocation226_spill] sm:$0xff] %v12263_v13  ;;  %v18005_v13 = vld [vmem:[#allocation104_spill] sm:$0xff] }
 0x35d   : > { %2502 = vrot.lane.b32.xlu1 %v18000_v5, %s10250_s26  ;;  %v6827_v61 = vcombine.high %v18006_v15, %v18005_v13  ;;  %v6809_v15 = vrot.slane %v18011_v47, %v10800_v54  ;;  %v18012_v13 = vld [vmem:[#allocation106_spill] sm:$0xff] }
 0x35e   : > { %v12265_v26 = vpop.permute.xlu0 %2248 }
 0x35f   : > { %17999 = vst [vmem:[#allocation227_spill] sm:$0xff] %v12265_v26  ;;  %v12271_v6 = vpop.permute.xlu1 %2026  ;;  %v18032_v26 = vld [vmem:[#allocation90_spill] sm:$0xff] }
 0x360   : > { %2148 = vrot.lane.b32.xlu0 %v17803_v17, %s10251_s28  ;;  %18001 = vst [vmem:[#allocation100_spill] sm:$0xff] %v12271_v6 }
 0x361   : > { %2598 = vrot.lane.b32.xlu1 %v18000_v5, %s10251_s28  ;;  %v6841_v5 = vrot.slane %v6827_v61, %v10800_v54 }
 0x362   : > { %v12273_v11 = vpop.permute.xlu0 %2344 }
 0x363   : > { %18002 = vst [vmem:[#allocation228_spill] sm:$0xff] %v12273_v11  ;;  %v12279_v8 = vpop.permute.xlu1 %2122  ;;  %v6860_v18 = vcombine.low %v6809_v15, %v6841_v5  ;;  %v10171_v11 = vld [vmem:[#allocation2 + $0x172] sm:$0xff] }
 0x364   : > { %2276 = vrot.lane.b32.xlu0 %v11213_v19, %s10250_s26  ;;  %18003 = vst [vmem:[#allocation229_spill] sm:$0xff] %v12279_v8  ;;  %v18079_v8 = vld [vmem:[#allocation76_spill] sm:$0xff] }
 0x365   : > { %2054 = vrot.lane.b32.xlu1 %v11537_v51, %s10250_s26 }
 0x366   : > { %v12281_v12 = vpop.permute.xlu0 %2472 }
 0x367   : > { %18004 = vst [vmem:[#allocation230_spill] sm:$0xff] %v12281_v12  ;;  %v12289_v17 = vpop.permute.xlu1 %2254 }
 0x368   : > { %2372 = vrot.lane.b32.xlu0 %v11213_v19, %s10251_s28  ;;  %18007 = vst [vmem:[#allocation104_spill] sm:$0xff] %v12289_v17 }
 0x369   : > { %2150 = vrot.lane.b32.xlu1 %v11537_v51, %s10251_s28 }
 0x36a   : > { %v12291_v23 = vpop.permute.xlu0 %2568 }
 0x36b   : > { %18008 = vst [vmem:[#allocation96_spill] sm:$0xff] %v12291_v23  ;;  %v12302_v22 = vpop.permute.xlu1 %2350 }
 0x36c   : > { %2500 = vrot.lane.b32.xlu0 %v18012_v13, %s10250_s26  ;;  %18013 = vst [vmem:[#allocation15_spill] sm:$0xff] %v12302_v22  ;;  %v10170_v22 = vld [vmem:[#allocation2 + $0x142] sm:$0xff] }
 0x36d   : > { %8164 = vrot.lane.b32.xlu1 %v6860_v18, %s10254_s29  ;;  %v6861_v18 = vcombine.high %v6809_v15, %v6841_v5  ;;  %v18024_v15 = vld [vmem:[#allocation87_spill] sm:$0xff] }
 0x36e   : > { %v12304_v19 = vpop.permute.xlu0 %2028 }
 0x36f   : > { %18014 = vst [vmem:[#allocation11_spill] sm:$0xff] %v12304_v19  ;;  %v12309_v51 = vpop.permute.xlu1 %2478  ;;  %v18043_v19 = vld [vmem:[#allocation136_spill] sm:$0xff] }
 0x370   : > { %2596 = vrot.lane.b32.xlu0 %v18012_v13, %s10251_s28  ;;  %18015 = vst [vmem:[#allocation106_spill] sm:$0xff] %v12309_v51  ;;  %v18067_v51 = vld [vmem:[#allocation21_spill] sm:$0xff] }
 0x371   : > { %2286 = vrot.lane.b32.xlu1 %v11391_v14, %s10250_s26 }
 0x372   : > { %v12311_v61 = vpop.permute.xlu0 %2124 }
 0x373   : > { %18016 = vst [vmem:[#allocation231_spill] sm:$0xff] %v12311_v61  ;;  %v12318_v40 = vpop.permute.xlu1 %2574 }
 0x374   : > { %8092 = vrot.lane.b32.xlu0 %v6859_v45, %s10255_s9  ;;  %18017 = vst [vmem:[#allocation232_spill] sm:$0xff] %v12318_v40 }
 0x375   : > { %2382 = vrot.lane.b32.xlu1 %v11391_v14, %s10251_s28  ;;  %v18023_v14 = vld [vmem:[#allocation119_spill] sm:$0xff] }
 0x376   : > { %v12320_v47 = vpop.permute.xlu0 %2252  ;;  %v3595_v40 = vcombine.high %v18024_v15, %v18023_v14 }
 0x377   : > { %18018 = vst [vmem:[#allocation233_spill] sm:$0xff] %v12320_v47  ;;  %v12325_v13 = vpop.permute.xlu1 %2030 }
 0x378   : > { %8236 = vrot.lane.b32.xlu0 %v6861_v18, %s10256_s10  ;;  %18019 = vst [vmem:[#allocation234_spill] sm:$0xff] %v12325_v13  ;;  %v18025_v18 = vld [vmem:[#allocation103_spill] sm:$0xff]  ;;  %v4515_v13 = vcombine.high %v18079_v8, %v18078_v50  ;;  %v18092_v8 = vld [vmem:[#allocation25_spill] sm:$0xff] }
 0x379   : > { %2510 = vrot.lane.b32.xlu1 %v10170_v22, %s10250_s26  ;;  %v2747_v3 = vcombine.high %v18026_v52, %v18025_v18  ;;  %v18033_v52 = vld [vmem:[#allocation14_spill] sm:$0xff] }
 0x37a   : > { %v12327_v63 = vpop.permute.xlu0 %2348 }
 0x37b   : > { %18020 = vst [vmem:[#allocation235_spill] sm:$0xff] %v12327_v63  ;;  %v12333_v45 = vpop.permute.xlu1 %2126  ;;  %v2761_v47 = vrot.slane %v2747_v3, %v10800_v54  ;;  %v18076_v63 = vld [vmem:[#allocation111_spill] sm:$0xff] }
 0x37c   : > { %7564 = vrot.lane.b32.xlu0 %v2779_v36, %s10255_s9  ;;  %18021 = vst [vmem:[#allocation236_spill] sm:$0xff] %v12333_v45  ;;  %v18030_v36 = vld [vmem:[#allocation120_spill] sm:$0xff]  ;;  %v3667_v28 = vcombine.high %v18077_v56, %v18076_v63  ;;  %v18094_v63 = vld [vmem:[#allocation134_spill] sm:$0xff] }
 0x37d   : > { %2606 = vrot.lane.b32.xlu1 %v10170_v22, %s10251_s28  ;;  %v4411_v12 = vcombine.high %v18030_v36, %v18029_v38  ;;  %v18034_v22 = vld [vmem:[#allocation10_spill] sm:$0xff]  ;;  %v18038_v36 = vld [vmem:[#allocation108_spill] sm:$0xff] }
 0x37e   : > { %v12335_v5 = vpop.permute.xlu0 %2476 }
 0x37f   : > { %18022 = vst [vmem:[#allocation237_spill] sm:$0xff] %v12335_v5  ;;  %v12343_v30 = vpop.permute.xlu1 %2258  ;;  %v18031_v5 = vld [vmem:[#allocation107_spill] sm:$0xff] }
 0x380   : > { %7576 = vrot.lane.b32.xlu0 %v3595_v40, %s10255_s9  ;;  %18027 = vst [vmem:[#allocation103_spill] sm:$0xff] %v12343_v30  ;;  %v3563_v61 = vcombine.high %v18032_v26, %v18031_v5  ;;  %v18035_v40 = vcombine.high %v18033_v52, %v18034_v22  ;;  %v18039_v26 = vld [vmem:[#allocation101_spill] sm:$0xff]  ;;  %v18040_v52 = vld [vmem:[#allocation16_spill] sm:$0xff] }
 0x381   : > { %2062 = vrot.lane.b32.xlu1 %v11580_v48, %s10250_s26  ;;  %v4379_v5 = vcombine.high %v18039_v26, %v18038_v36  ;;  %v18041_v22 = vld [vmem:[#allocation12_spill] sm:$0xff] }
 0x382   : > { %v12345_v42 = vpop.permute.xlu0 %2572  ;;  %v2729_v18 = vrot.slane %v18035_v40, %v10800_v54  ;;  %v12364_v3 = vrot.slane %v3563_v61, %v10800_v54  ;;  %v18042_v40 = vcombine.high %v18040_v52, %v18041_v22  ;;  %v18044_v61 = vld [vmem:[#allocation97_spill] sm:$0xff]  ;;  %v18049_v52 = vld [vmem:[#allocation130_spill] sm:$0xff] }
 0x383   : > { %18028 = vst [vmem:[#allocation88_spill] sm:$0xff] %v12345_v42  ;;  %v12359_v14 = vpop.permute.xlu1 %2354  ;;  %v3578_v42 = vcombine.low %v18044_v61, %v18043_v19  ;;  %v18050_v19 = vld [vmem:[#allocation18_spill] sm:$0xff] }
 0x384   : > { %7588 = vrot.lane.b32.xlu0 %v4411_v12, %s10255_s9  ;;  %18036 = vst [vmem:[#allocation107_spill] sm:$0xff] %v12359_v14  ;;  %v2780_v38 = vcombine.low %v2729_v18, %v2761_v47  ;;  %v2762_v12 = vcombine.low %v17841_v7, %v11606_v43  ;;  %v12377_v14 = vrot.slane %v18042_v40, %v10800_v54  ;;  %v18047_v7 = vld [vmem:[#allocation109_spill] sm:$0xff] }
 0x385   : > { %2158 = vrot.lane.b32.xlu1 %v11580_v48, %s10251_s28  ;;  %v12388_v43 = vrot.slane %v4379_v5, %v10800_v54  ;;  %v18051_v40 = vld [vmem:[#allocation17_spill] sm:$0xff]  ;;  %v12405_v5 = vrot.slane %v3578_v42, %v10800_v54 }
 0x386   : > { %v12361_v15 = vpop.permute.xlu0 %2032  ;;  %v3596_v48 = vcombine.low %v12377_v14, %v12364_v3  ;;  %v12395_v22 = vrot.slane %v2762_v12, %v10800_v54  ;;  %v18052_v61 = vcombine.high %v18050_v19, %v18051_v40  ;;  %v18055_v12 = vcombine.low %v17864_v16, %v17865_v2  ;;  %v18056_v19 = vld [vmem:[#allocation37_spill] sm:$0xff]  ;;  %v18057_v40 = vld [vmem:[#allocation50_spill] sm:$0xff] }
 0x387   : > { %18037 = vst [vmem:[#allocation90_spill] sm:$0xff] %v12361_v15  ;;  %v12381_v29 = vpop.permute.xlu1 %2482  ;;  %v3597_v16 = vcombine.high %v12377_v14, %v12364_v3  ;;  %v18064_v14 = vld [vmem:[#allocation58_spill] sm:$0xff]  ;;  %v18081_v15 = vld [vmem:[#allocation65_spill] sm:$0xff] }
 0x388   : > { %7636 = vrot.lane.b32.xlu0 %v2780_v38, %s10254_s29  ;;  %18045 = vst [vmem:[#allocation14_spill] sm:$0xff] %v12381_v29  ;;  %v18048_v38 = vld [vmem:[#allocation102_spill] sm:$0xff]  ;;  %v2781_v29 = vcombine.high %v2729_v18, %v2761_v47  ;;  %v18059_v18 = vld [vmem:[#allocation115_spill] sm:$0xff] }
 0x389   : > { %v4394_v26 = vcombine.low %v18048_v38, %v18047_v7  ;;  %2294 = vrot.lane.b32.xlu1 %v18049_v52, %s10250_s26  ;;  %v12415_v38 = vrot.slane %v18055_v12, %v10800_v54  ;;  %v18060_v12 = vld [vmem:[#allocation52_spill] sm:$0xff]  ;;  %v18066_v2 = vld [vmem:[#allocation110_spill] sm:$0xff] }
 0x38a   : > { %v12383_v36 = vpop.permute.xlu0 %2128  ;;  %v2851_v47 = vcombine.high %v18067_v51, %v18066_v2  ;;  %v18091_v51 = vld [vmem:[#allocation138_spill] sm:$0xff] }
 0x38b   : > { %18046 = vst [vmem:[#allocation10_spill] sm:$0xff] %v12383_v36  ;;  %v12402_v36 = vrot.slane %v18052_v61, %v10800_v54  ;;  %v12407_v44 = vpop.permute.xlu1 %2578  ;;  %v18058_v61 = vcombine.low %v18056_v19, %v18057_v40  ;;  %v2883_v19 = vcombine.high %v18060_v12, %v18059_v18  ;;  %v18061_v40 = vld [vmem:[#allocation124_spill] sm:$0xff]  ;;  %v18071_v12 = vld [vmem:[#allocation126_spill] sm:$0xff] }
 0x38c   : > { %7648 = vrot.lane.b32.xlu0 %v3596_v48, %s10254_s29  ;;  %18053 = vst [vmem:[#allocation108_spill] sm:$0xff] %v12407_v44  ;;  %v12426_v44 = vrot.slane %v4394_v26, %v10800_v54  ;;  %v18062_v26 = vld [vmem:[#allocation123_spill] sm:$0xff]  ;;  %v12487_v2 = vrot.slane %v2851_v47, %v10800_v54  ;;  %v3682_v47 = vcombine.low %v18092_v8, %v18091_v51 }
 0x38d   : > { %v4412_v48 = vcombine.low %v12402_v36, %v12388_v43  ;;  %v12423_v42 = vrot.slane %v18058_v61, %v10800_v54  ;;  %2390 = vrot.lane.b32.xlu1 %v18049_v52, %s10251_s28  ;;  %v18080_v61 = vld [vmem:[#allocation137_spill] sm:$0xff]  ;;  %v18086_v52 = vld [vmem:[#allocation112_spill] sm:$0xff]  ;;  %v18099_v8 = vld [vmem:[#allocation135_spill] sm:$0xff] }
 0x38e   : > { %v12409_v7 = vpop.permute.xlu0 %2256 }
 0x38f   : > { %18054 = vst [vmem:[#allocation101_spill] sm:$0xff] %v12409_v7  ;;  %v18063_v7 = vld [vmem:[#allocation41_spill] sm:$0xff]  ;;  %v12451_v45 = vpop.permute.xlu1 %2034 }
 0x390   : > { %7660 = vrot.lane.b32.xlu0 %v4412_v48, %s10254_s29  ;;  %v18065_v3 = vcombine.low %v18063_v7, %v18064_v14  ;;  %18068 = vst [vmem:[#allocation16_spill] sm:$0xff] %v12451_v45  ;;  %v18070_v48 = vld [vmem:[#allocation121_spill] sm:$0xff]  ;;  %v18073_v7 = vld [vmem:[#allocation64_spill] sm:$0xff] }
 0x391   : > { %v3699_v14 = vcombine.high %v18073_v7, %v18072_v32  ;;  %2518 = vrot.lane.b32.xlu1 %v10171_v11, %s10250_s26  ;;  %v12475_v32 = vrot.slane %v2883_v19, %v10800_v54  ;;  %v2898_v7 = vcombine.low %v17833_v24, %v11612_v39  ;;  %v18087_v19 = vld [vmem:[#allocation28_spill] sm:$0xff]  ;;  %v18096_v24 = vld [vmem:[#allocation29_spill] sm:$0xff] }
 0x392   : > { %v12447_v23 = vrot.slane %v18065_v3, %v10800_v54  ;;  %v12453_v18 = vpop.permute.xlu0 %2352  ;;  %v3714_v3 = vcombine.low %v18081_v15, %v18080_v61  ;;  %v4483_v6 = vcombine.high %v18087_v19, %v18086_v52  ;;  %v18089_v15 = vld [vmem:[#allocation94_spill] sm:$0xff]  ;;  %v12507_v52 = vrot.slane %v3667_v28, %v10800_v54  ;;  %v18100_v28 = vld [vmem:[#allocation77_spill] sm:$0xff] }
 0x393   : > { %18069 = vst [vmem:[#allocation12_spill] sm:$0xff] %v12453_v18  ;;  %v12491_v45 = vpop.permute.xlu1 %2130  ;;  %v18090_v61 = vld [vmem:[#allocation22_spill] sm:$0xff]  ;;  %v18093_v18 = vld [vmem:[#allocation133_spill] sm:$0xff]  ;;  %v12510_v19 = vrot.slane %v4515_v13, %v10800_v54  ;;  %v6219_v13 = vcombine.high %v12237_v10, %v12343_v30 }
 0x394   : > { %7708 = vrot.lane.b32.xlu0 %v2781_v29, %s10256_s10  ;;  %v12498_v29 = vrot.slane %v3699_v14, %v10800_v54  ;;  %v2866_v50 = vcombine.low %v18090_v61, %v18089_v15  ;;  %v12518_v15 = vrot.slane %v2898_v7, %v10800_v54  ;;  %v12521_v51 = vrot.slane %v3714_v3, %v10800_v54  ;;  %v18109_v3 = vld [vmem:[#allocation7_spill] sm:$0xff] }
 0x395   : > { %2614 = vrot.lane.b32.xlu1 %v10171_v11, %s10251_s28  ;;  %v4530_v61 = vcombine.low %v18100_v28, %v18099_v8  ;;  %v12531_v56 = vrot.slane %v4483_v6, %v10800_v54  ;;  %v6323_v7 = vcombine.high %v18109_v3, %v11887_v20  ;;  %v18113_v8 = vld [vmem:[#allocation148_spill] sm:$0xff] }
 0x396   : > { %v12493_v39 = vpop.permute.xlu0 %2480  ;;  %18097 = vst [vmem:[#allocation97_spill] sm:$0xff] %v12518_v15  ;;  %18098 = vst [vmem:[#allocation109_spill] sm:$0xff] %v12521_v51  ;;  %v12542_v28 = vrot.slane %v2866_v50, %v10800_v54  ;;  %v18107_v50 = vld [vmem:[#allocation31_spill] sm:$0xff]  ;;  %v6594_v15 = vcombine.low %v18113_v8, %v11901_v9 }
 0x397   : > { %18088 = vst [vmem:[#allocation136_spill] sm:$0xff] %v12493_v39  ;;  %v18095_v39 = vld [vmem:[#allocation113_spill] sm:$0xff]  ;;  %v12535_v14 = vpop.permute.xlu1 %2262  ;;  %v12565_v30 = vrot.slane %v4530_v61, %v10800_v54 }
 0x398   : > { %v4498_v21 = vcombine.low %v18096_v24, %v18095_v39  ;;  %7720 = vrot.lane.b32.xlu0 %v3597_v16, %s10256_s10  ;;  %v18101_v39 = vld [vmem:[#allocation72_spill] sm:$0xff]  ;;  %v18102_v24 = vld [vmem:[#allocation98_spill] sm:$0xff]  ;;  %18103 = vst [vmem:[#allocation102_spill] sm:$0xff] %v12535_v14  ;;  %18104 = vst [vmem:[#allocation130_spill] sm:$0xff] %v12542_v28  ;;  %v12545_v16 = vrot.slane %v3682_v47, %v10800_v54  ;;  %v6235_v6 = vcombine.high %v12289_v17, %v12535_v14 }
 0x399   : > { %2070 = vrot.lane.b32.xlu1 %v18107_v50, %s10250_s26  ;;  %18108 = vst [vmem:[#allocation37_spill] sm:$0xff] %v12565_v30  ;;  %v6322_v17 = vcombine.low %v18109_v3, %v11887_v20  ;;  %v18112_v47 = vcombine.high %v12402_v36, %v12388_v43  ;;  %v18115_v36 = vld [vmem:[#allocation145_spill] sm:$0xff]  ;;  %v2938_v20 = vcombine.low %v11889_v41, %v12087_v1  ;;  %v18119_v3 = vld [vmem:[#allocation99_spill] sm:$0xff]  ;;  %v18170_v1 = vld [vmem:[#allocation218_spill] sm:$0xff] }
 0x39a   : > { %18105 = vst [vmem:[#allocation18_spill] sm:$0xff] %v12545_v16  ;;  %v12549_v11 = vpop.permute.xlu0 %2576  ;;  %v12556_v10 = vrot.slane %v4498_v21, %v10800_v54  ;;  %v12572_v21 = vrot.slane %v6219_v13, %v10693_v62  ;;  %v12575_v14 = vrot.slane %v6235_v6, %v10693_v62  ;;  %v6595_v13 = vcombine.high %v18113_v8, %v11901_v9 }
 0x39b   : > { %v7138_v6 = vcombine.low %v11779_v58, %v11916_v31  ;;  %v12591_v28 = vpop.permute.xlu1 %2358  ;;  %v2922_v43 = vcombine.low %v18115_v36, %v11981_v33  ;;  %v3210_v9 = vcombine.low %v11903_v4, %v12105_v37  ;;  %v7018_v8 = vcombine.low %v11909_v25, %v12111_v60  ;;  %v18140_v4 = vld [vmem:[#allocation202_spill] sm:$0xff]  ;;  %v18172_v33 = vld [vmem:[#allocation235_spill] sm:$0xff] }
 0x39c   : > { %18106 = vst [vmem:[#allocation17_spill] sm:$0xff] %v12556_v10  ;;  %18110 = vst [vmem:[#allocation50_spill] sm:$0xff] %v12572_v21  ;;  %7732 = vrot.lane.b32.xlu0 %v18112_v47, %s10256_s10  ;;  %v18116_v47 = vld [vmem:[#allocation149_spill] sm:$0xff]  ;;  %v18120_v21 = vcombine.low %v12415_v38, %v12395_v22  ;;  %v12627_v16 = vrot.slane %v6323_v7, %v10693_v62  ;;  %v18173_v31 = vld [vmem:[#allocation90_spill] sm:$0xff] }
 0x39d   : > { %18111 = vst [vmem:[#allocation115_spill] sm:$0xff] %v12575_v14  ;;  %18114 = vst [vmem:[#allocation52_spill] sm:$0xff] %v12591_v28  ;;  %v3194_v61 = vcombine.low %v18116_v47, %v11997_v0  ;;  %2166 = vrot.lane.b32.xlu1 %v18107_v50, %s10251_s28  ;;  %v12614_v47 = vrot.slane %v6322_v17, %v10693_v62  ;;  %v7002_v14 = vcombine.low %v18119_v3, %v12003_v46  ;;  %v18141_v28 = vld [vmem:[#allocation177_spill] sm:$0xff]  ;;  %v18205_v0 = vld [vmem:[#allocation11_spill] sm:$0xff] }
 0x39e   : > { %v12601_v51 = vpop.permute.xlu0 %2036  ;;  %18123 = vst [vmem:[#allocation110_spill] sm:$0xff] %v12627_v16  ;;  %v12630_v17 = vrot.slane %v6594_v15, %v10693_v62  ;;  %v12643_v50 = vrot.slane %v2922_v43, %v10693_v62  ;;  %v12649_v15 = vrot.slane %v2938_v20, %v10693_v62  ;;  %v12656_v59 = vrot.slane %v3210_v9, %v10693_v62  ;;  %v18135_v16 = vld [vmem:[#allocation157_spill] sm:$0xff]  ;;  %v18136_v9 = vld [vmem:[#allocation174_spill] sm:$0xff] }
 0x39f   : > { %18117 = vst [vmem:[#allocation41_spill] sm:$0xff] %v12601_v51  ;;  %18118 = vst [vmem:[#allocation58_spill] sm:$0xff] %v12614_v47  ;;  %v12633_v47 = vrot.slane %v6595_v13, %v10693_v62  ;;  %v12637_v35 = vpop.permute.xlu1 %2486  ;;  %v12646_v7 = vrot.slane %v3194_v61, %v10693_v62  ;;  %v7003_v13 = vcombine.high %v18119_v3, %v12003_v46 }
 0x3a0   : > { %7780 = vrot.lane.b32.xlu0 %v18120_v21, %s10257_s11  ;;  %18124 = vst [vmem:[#allocation21_spill] sm:$0xff] %v12630_v17  ;;  %v12640_v21 = vrot.slane %v7138_v6, %v10693_v62  ;;  %18127 = vst [vmem:[#allocation111_spill] sm:$0xff] %v12643_v50  ;;  %v7019_v6 = vcombine.high %v11909_v25, %v12111_v60  ;;  %v12661_v43 = vrot.slane %v7018_v8, %v10693_v62 }
 0x3a1   : > { %18125 = vst [vmem:[#allocation117_spill] sm:$0xff] %v12633_v47  ;;  %18128 = vst [vmem:[#allocation24_spill] sm:$0xff] %v12646_v7  ;;  %v18132_v61 = vcombine.high %v18062_v26, %v18061_v40  ;;  %v12668_v20 = vrot.slane %v7002_v14, %v10693_v62  ;;  %v18134_v47 = vld [vmem:[#allocation187_spill] sm:$0xff]  ;;  %v3754_v25 = vcombine.low %v18136_v9, %v12121_v55  ;;  %v18139_v14 = vld [vmem:[#allocation168_spill] sm:$0xff] }
 0x3a2   : > { %18126 = vst [vmem:[#allocation64_spill] sm:$0xff] %v12640_v21  ;;  %18129 = vst [vmem:[#allocation118_spill] sm:$0xff] %v12649_v15  ;;  %v12651_v37 = vpop.permute.xlu0 %2132  ;;  %v3738_v46 = vcombine.low %v18135_v16, %v18134_v47  ;;  %v3739_v3 = vcombine.high %v18135_v16, %v18134_v47  ;;  %v18137_v60 = vcombine.low %v12423_v42, %v12405_v5 }
 0x3a3   : > { %18130 = vst [vmem:[#allocation76_spill] sm:$0xff] %v12656_v59  ;;  %18131 = vst [vmem:[#allocation137_spill] sm:$0xff] %v12661_v43  ;;  %8094 = vrot.lane.b32.xlu1 %v18132_v61, %s10255_s9  ;;  %v4010_v8 = vcombine.low %v11845_v34, %v12029_v57  ;;  %v18138_v61 = vld [vmem:[#allocation190_spill] sm:$0xff]  ;;  %v4026_v16 = vcombine.low %v18141_v28, %v18140_v4  ;;  %v12688_v47 = vpop.permute.xlu1 %2582  ;;  %v4826_v34 = vcombine.low %v11875_v27, %v12061_v53 }
 0x3a4   : > { %18133 = vst [vmem:[#allocation65_spill] sm:$0xff] %v12668_v20  ;;  %7792 = vrot.lane.b32.xlu0 %v18137_v60, %s10257_s11  ;;  %v4554_v40 = vcombine.low %v18139_v14, %v18138_v61  ;;  %v4555_v26 = vcombine.high %v18139_v14, %v18138_v61  ;;  %18142 = vst [vmem:[#allocation112_spill] sm:$0xff] %v12688_v47  ;;  %v2986_v57 = vcombine.low %v12643_v50, %v12649_v15 }
 0x3a5   : > { %v3258_v61 = vcombine.low %v12646_v7, %v12656_v59  ;;  %v12703_v4 = vrot.slane %v7019_v6, %v10693_v62  ;;  %v7066_v28 = vcombine.low %v12668_v20, %v12661_v43  ;;  %v3755_v14 = vcombine.high %v18136_v9, %v12121_v55  ;;  %v18160_v20 = vld [vmem:[#allocation125_spill] sm:$0xff] }
 0x3a6   : > { %v12698_v41 = vpop.permute.xlu0 %2260  ;;  %v18148_v27 = vcombine.high %v18071_v12, %v18070_v48  ;;  %v12714_v53 = vrot.slane %v7003_v13, %v10693_v62  ;;  %v12717_v60 = vrot.slane %v3738_v46, %v10693_v62  ;;  %v12720_v6 = vrot.slane %v3739_v3, %v10693_v62  ;;  %v18155_v48 = vld [vmem:[#allocation16_spill] sm:$0xff] }
 0x3a7   : > { %18147 = vst [vmem:[#allocation28_spill] sm:$0xff] %v12703_v4  ;;  %v12723_v21 = vrot.slane %v3754_v25, %v10693_v62  ;;  %v18151_v55 = vcombine.low %v12447_v23, %v12426_v44  ;;  %v12730_v9 = vrot.slane %v4010_v8, %v10693_v62  ;;  %v12733_v13 = vrot.slane %v4554_v40, %v10693_v62  ;;  %v18156_v12 = vld [vmem:[#allocation100_spill] sm:$0xff] }
 0x3a8   : > { %8238 = vrot.lane.b32.xlu1 %v18148_v27, %s10256_s10  ;;  %18149 = vst [vmem:[#allocation94_spill] sm:$0xff] %v12714_v53  ;;  %18150 = vst [vmem:[#allocation22_spill] sm:$0xff] %v12720_v6  ;;  %v12736_v46 = vrot.slane %v4555_v26, %v10693_v62  ;;  %v12739_v3 = vrot.slane %v4026_v16, %v10693_v62  ;;  %v2039_v27 = vpop.permute.xlu1 %2038  ;;  %v12742_v25 = vrot.slane %v4826_v34, %v10693_v62  ;;  %v18159_v34 = vld [vmem:[#allocation127_spill] sm:$0xff]  ;;  %v18165_v26 = vld [vmem:[#allocation228_spill] sm:$0xff] }
 0x3a9   : > { %7804 = vrot.lane.b32.xlu0 %v18151_v55, %s10257_s11  ;;  %18152 = vst [vmem:[#allocation138_spill] sm:$0xff] %v12733_v13  ;;  %v5402_v47 = vcombine.low %v18156_v12, %v18155_v48  ;;  %v5403_v8 = vcombine.high %v18156_v12, %v18155_v48  ;;  %v12751_v40 = vrot.slane %v2986_v57, %v10800_v54  ;;  %v18164_v57 = vld [vmem:[#allocation12_spill] sm:$0xff]  ;;  %v18171_v12 = vld [vmem:[#allocation179_spill] sm:$0xff] }
 0x3aa   : > { %18153 = vst [vmem:[#allocation25_spill] sm:$0xff] %v12736_v46  ;;  %18154 = vst [vmem:[#allocation113_spill] sm:$0xff] %v12742_v25  ;;  %v12748_v55 = vpop.permute.xlu0 %2356  ;;  %v12756_v16 = vrot.slane %v3755_v14, %v10693_v62  ;;  %v18161_v43 = vcombine.high %v18159_v34, %v18160_v20  ;;  %v12763_v7 = vrot.slane %v7066_v28, %v10800_v54  ;;  %v18166_v14 = vld [vmem:[#allocation234_spill] sm:$0xff]  ;;  %v18203_v53 = vld [vmem:[#allocation88_spill] sm:$0xff] }
 0x3ab   : > { %18157 = vst [vmem:[#allocation29_spill] sm:$0xff] %v12751_v40  ;;  %v12766_v48 = vrot.slane %v3258_v61, %v10800_v54  ;;  %v4043_v59 = vcombine.high %v18165_v26, %v18164_v57  ;;  %v5418_v50 = vcombine.low %v18166_v14, %v2039_v27  ;;  %v5419_v15 = vcombine.high %v18166_v14, %v2039_v27  ;;  %v18168_v61 = vld [vmem:[#allocation211_spill] sm:$0xff]  ;;  %v18169_v20 = vld [vmem:[#allocation178_spill] sm:$0xff] }
 0x3ac   : > { %18158 = vst [vmem:[#allocation135_spill] sm:$0xff] %v12756_v16  ;;  %8382 = vrot.lane.b32.xlu1 %v18161_v43, %s10258_s12  ;;  %18162 = vst [vmem:[#allocation77_spill] sm:$0xff] %v12763_v7  ;;  %v18167_v43 = vcombine.high %v12415_v38, %v12395_v22  ;;  %v4570_v34 = vcombine.low %v18169_v20, %v18168_v61  ;;  %v4842_v36 = vcombine.low %v18171_v12, %v18170_v1  ;;  %v2135_v10 = vpop.permute.xlu1 %2134  ;;  %v18174_v27 = vld [vmem:[#allocation223_spill] sm:$0xff]  ;;  %v18177_v38 = vld [vmem:[#allocation229_spill] sm:$0xff] }
 0x3ad   : > { %18163 = vst [vmem:[#allocation31_spill] sm:$0xff] %v12766_v48  ;;  %v4059_v30 = vcombine.high %v18172_v33, %v12748_v55  ;;  %v2954_v14 = vcombine.low %v18174_v27, %v18173_v31  ;;  %v12789_v58 = vrot.slane %v5402_v47, %v10693_v62  ;;  %v12792_v22 = vrot.slane %v5403_v8, %v10693_v62  ;;  %v18181_v8 = vld [vmem:[#allocation128_spill] sm:$0xff]  ;;  %v18182_v27 = vld [vmem:[#allocation129_spill] sm:$0xff] }
 0x3ae   : > { %7852 = vrot.lane.b32.xlu0 %v18167_v43, %s10258_s12  ;;  %v5674_v43 = vcombine.low %v18177_v38, %v12491_v45  ;;  %v12796_v28 = vpop.permute.xlu0 %2484  ;;  %v5675_v1 = vcombine.high %v18177_v38, %v12491_v45  ;;  %v12801_v12 = vrot.slane %v5418_v50, %v10693_v62  ;;  %v12804_v6 = vrot.slane %v5419_v15, %v10693_v62  ;;  %v18185_v45 = vld [vmem:[#allocation236_spill] sm:$0xff] }
 0x3af   : > { %18175 = vst [vmem:[#allocation7_spill] sm:$0xff] %v12789_v58  ;;  %18176 = vst [vmem:[#allocation148_spill] sm:$0xff] %v12792_v22  ;;  %v12807_v47 = vrot.slane %v4059_v30, %v10693_v62  ;;  %v18183_v31 = vcombine.high %v18181_v8, %v18182_v27  ;;  %v12816_v4 = vrot.slane %v4043_v59, %v10693_v62  ;;  %v18193_v59 = vld [vmem:[#allocation96_spill] sm:$0xff] }
 0x3b0   : > { %18178 = vst [vmem:[#allocation99_spill] sm:$0xff] %v12801_v12  ;;  %18179 = vst [vmem:[#allocation187_spill] sm:$0xff] %v12804_v6  ;;  %v5690_v50 = vcombine.low %v18185_v45, %v2135_v10  ;;  %v5691_v38 = vcombine.high %v18185_v45, %v2135_v10  ;;  %v18186_v30 = vcombine.high %v12423_v42, %v12405_v5  ;;  %v12834_v27 = vpop.permute.xlu1 %2270  ;;  %v18191_v42 = vld [vmem:[#allocation106_spill] sm:$0xff]  ;;  %v18197_v6 = vld [vmem:[#allocation132_spill] sm:$0xff] }
 0x3b1   : > { %18180 = vst [vmem:[#allocation157_spill] sm:$0xff] %v12807_v47  ;;  %7566 = vrot.lane.b32.xlu1 %v18183_v31, %s10255_s9  ;;  %18184 = vst [vmem:[#allocation174_spill] sm:$0xff] %v12816_v4  ;;  %v12825_v15 = vrot.slane %v4570_v34, %v10693_v62  ;;  %v12828_v31 = vrot.slane %v4842_v36, %v10693_v62  ;;  %v12837_v10 = vrot.slane %v2954_v14, %v10693_v62  ;;  %v18200_v36 = vld [vmem:[#allocation224_spill] sm:$0xff]  ;;  %v18201_v12 = vld [vmem:[#allocation10_spill] sm:$0xff] }
 0x3b2   : > { %7864 = vrot.lane.b32.xlu0 %v18186_v30, %s10258_s12  ;;  %18189 = vst [vmem:[#allocation202_spill] sm:$0xff] %v12834_v27  ;;  %v12840_v5 = vrot.slane %v5674_v43, %v10693_v62  ;;  %v7050_v34 = vcombine.low %v18191_v42, %v12637_v35  ;;  %v2581_v45 = vpop.permute.xlu0 %2580  ;;  %v12847_v30 = vrot.slane %v5675_v1, %v10693_v62  ;;  %v18196_v43 = vld [vmem:[#allocation131_spill] sm:$0xff]  ;;  %v18199_v27 = vld [vmem:[#allocation14_spill] sm:$0xff]  ;;  %v18202_v47 = vld [vmem:[#allocation225_spill] sm:$0xff] }
 0x3b3   : > { %18187 = vst [vmem:[#allocation190_spill] sm:$0xff] %v12825_v15  ;;  %18188 = vst [vmem:[#allocation168_spill] sm:$0xff] %v12828_v31  ;;  %v4859_v16 = vcombine.high %v18193_v59, %v12549_v11  ;;  %v12852_v8 = vrot.slane %v5690_v50, %v10693_v62  ;;  %v12855_v14 = vrot.slane %v5691_v38, %v10693_v62  ;;  %v18265_v40 = vld [vmem:[#allocation135_spill] sm:$0xff] }
 0x3b4   : > { %18190 = vst [vmem:[#allocation177_spill] sm:$0xff] %v12840_v5  ;;  %18192 = vst [vmem:[#allocation16_spill] sm:$0xff] %v12847_v30  ;;  %v18198_v22 = vcombine.high %v18196_v43, %v18197_v6  ;;  %v7034_v58 = vcombine.low %v18200_v36, %v18199_v27  ;;  %v7035_v1 = vcombine.high %v18200_v36, %v18199_v27  ;;  %v12880_v36 = vpop.permute.xlu1 %2366  ;;  %v18213_v27 = vld [vmem:[#allocation237_spill] sm:$0xff] }
 0x3b5   : > { %18194 = vst [vmem:[#allocation100_spill] sm:$0xff] %v12852_v8  ;;  %18195 = vst [vmem:[#allocation12_spill] sm:$0xff] %v12855_v14  ;;  %v3226_v4 = vcombine.low %v18202_v47, %v18201_v12  ;;  %v4875_v50 = vcombine.high %v18203_v53, %v2581_v45  ;;  %v18204_v38 = vcombine.high %v12447_v23, %v12426_v44  ;;  %v18208_v47 = vld [vmem:[#allocation101_spill] sm:$0xff]  ;;  %v18209_v12 = vld [vmem:[#allocation227_spill] sm:$0xff] }
 0x3b6   : > { %7578 = vrot.lane.b32.xlu1 %v18198_v22, %s10255_s9  ;;  %v2970_v6 = vcombine.low %v18205_v0, %v12601_v51  ;;  %v18206_v22 = vld [vmem:[#allocation231_spill] sm:$0xff]  ;;  %18207 = vst [vmem:[#allocation228_spill] sm:$0xff] %v12880_v36  ;;  %v3770_v48 = vcombine.low %v18209_v12, %v18208_v47  ;;  %v12885_v23 = vrot.slane %v7050_v34, %v10693_v62  ;;  %v18210_v44 = vld [vmem:[#allocation233_spill] sm:$0xff]  ;;  %v12891_v51 = vpop.permute.xlu0 %2044 }
 0x3b7   : > { %7876 = vrot.lane.b32.xlu0 %v18204_v38, %s10258_s12  ;;  %v3242_v43 = vcombine.low %v18206_v22, %v12651_v37  ;;  %v3786_v38 = vcombine.low %v18210_v44, %v12698_v41  ;;  %v4058_v0 = vcombine.low %v18172_v33, %v12748_v55  ;;  %18211 = vst [vmem:[#allocation234_spill] sm:$0xff] %v12891_v51  ;;  %v18217_v51 = vld [vmem:[#allocation230_spill] sm:$0xff] }
 0x3b8   : > { %v12894_v17 = vrot.slane %v4859_v16, %v10693_v62  ;;  %v4602_v14 = vcombine.low %v18213_v27, %v12796_v28  ;;  %v4874_v30 = vcombine.low %v18203_v53, %v2581_v45  ;;  %v12900_v5 = vrot.slane %v4875_v50, %v10693_v62  ;;  %v18216_v16 = vld [vmem:[#allocation136_spill] sm:$0xff]  ;;  %v18218_v45 = vld [vmem:[#allocation47_spill] sm:$0xff] }
 0x3b9   : > { %v18215_v34 = vcombine.high %v18094_v63, %v18093_v18  ;;  %v12907_v33 = vrot.slane %v7034_v58, %v10693_v62  ;;  %v4042_v55 = vcombine.low %v18165_v26, %v18164_v57  ;;  %v4586_v8 = vcombine.low %v18217_v51, %v18216_v16  ;;  %v12929_v18 = vpop.permute.xlu1 %2494 }
 0x3ba   : > { %18212 = vst [vmem:[#allocation211_spill] sm:$0xff] %v12894_v17  ;;  %18214 = vst [vmem:[#allocation178_spill] sm:$0xff] %v12900_v5  ;;  %v7051_v53 = vcombine.high %v18191_v42, %v12637_v35  ;;  %v18219_v50 = vcombine.low %v11752_v49, %v18218_v45  ;;  %v12922_v58 = vrot.slane %v2970_v6, %v10693_v62  ;;  %v12942_v6 = vpop.permute.xlu0 %2140  ;;  %v18258_v17 = vld [vmem:[#allocation176_spill] sm:$0xff] }
 0x3bb   : > { %7590 = vrot.lane.b32.xlu1 %v18215_v34, %s10255_s9  ;;  %v4858_v34 = vcombine.low %v18193_v59, %v12549_v11  ;;  %v12925_v26 = vrot.slane %v3242_v43, %v10693_v62  ;;  %18220 = vst [vmem:[#allocation218_spill] sm:$0xff] %v12929_v18  ;;  %v12932_v35 = vrot.slane %v3226_v4, %v10693_v62  ;;  %18223 = vst [vmem:[#allocation229_spill] sm:$0xff] %v12942_v6 }
 0x3bc   : > { %7924 = vrot.lane.b32.xlu0 %v18219_v50, %s10259_s13  ;;  %v7098_v42 = vcombine.low %v12907_v33, %v12885_v23  ;;  %v12937_v50 = vrot.slane %v3786_v38, %v10693_v62  ;;  %v12940_v11 = vrot.slane %v4058_v0, %v10693_v62  ;;  %v12945_v59 = vrot.slane %v3770_v48, %v10693_v62 }
 0x3bd   : > { %v4603_v43 = vcombine.high %v18213_v27, %v12796_v28  ;;  %v12950_v4 = vrot.slane %v4602_v14, %v10693_v62  ;;  %v12953_v57 = vrot.slane %v4874_v30, %v10693_v62  ;;  %v18227_v38 = vcombine.low %v12487_v2, %v12475_v32 }
 0x3be   : > { %18221 = vst [vmem:[#allocation179_spill] sm:$0xff] %v12937_v50  ;;  %18222 = vst [vmem:[#allocation235_spill] sm:$0xff] %v12940_v11  ;;  %v12960_v0 = vrot.slane %v4042_v55, %v10693_v62  ;;  %v4587_v48 = vcombine.high %v18217_v51, %v18216_v16  ;;  %v12965_v45 = vrot.slane %v4586_v8, %v10693_v62  ;;  %v12983_v55 = vpop.permute.xlu1 %2590 }
 0x3bf   : > { %18224 = vst [vmem:[#allocation236_spill] sm:$0xff] %v12945_v59  ;;  %18225 = vst [vmem:[#allocation106_spill] sm:$0xff] %v12950_v4  ;;  %7638 = vrot.lane.b32.xlu1 %v18227_v38, %s10254_s29  ;;  %v12968_v28 = vrot.slane %v7051_v53, %v10693_v62  ;;  %v18230_v30 = vcombine.low %v18102_v24, %v18101_v39  ;;  %v12975_v14 = vrot.slane %v4858_v34, %v10693_v62  ;;  %v12992_v38 = vpop.permute.xlu0 %2268  ;;  %v10172_v24 = vld [vmem:[#allocation2 + $0x138] sm:$0xff] }
 0x3c0   : > { %18226 = vst [vmem:[#allocation96_spill] sm:$0xff] %v12953_v57  ;;  %18228 = vst [vmem:[#allocation14_spill] sm:$0xff] %v12960_v0  ;;  %v3018_v27 = vcombine.low %v12837_v10, %v12922_v58  ;;  %v3290_v51 = vcombine.low %v12932_v35, %v12925_v26  ;;  %v3787_v8 = vcombine.high %v18210_v44, %v12698_v41 }
 0x3c1   : > { %18229 = vst [vmem:[#allocation224_spill] sm:$0xff] %v12965_v45  ;;  %7936 = vrot.lane.b32.xlu0 %v18230_v30, %s10259_s13  ;;  %18231 = vst [vmem:[#allocation88_spill] sm:$0xff] %v12975_v14  ;;  %v12986_v16 = vrot.slane %v7035_v1, %v10693_v62  ;;  %v3834_v53 = vcombine.low %v12945_v59, %v12937_v50  ;;  %v4106_v34 = vcombine.low %v12960_v0, %v12940_v11  ;;  %v18340_v11 = vld [vmem:[#allocation97_spill] sm:$0xff] }
 0x3c2   : > { %18232 = vst [vmem:[#allocation231_spill] sm:$0xff] %v12983_v55  ;;  %18233 = vst [vmem:[#allocation101_spill] sm:$0xff] %v12992_v38  ;;  %v12995_v30 = vrot.slane %v7098_v42, %v10800_v54  ;;  %v3771_v49 = vcombine.high %v18209_v12, %v18208_v47  ;;  %v13000_v41 = vrot.slane %v4603_v43, %v10693_v62 }
 0x3c3   : > { %v4650_v1 = vcombine.low %v12965_v45, %v12950_v4  ;;  %v4922_v44 = vcombine.low %v12975_v14, %v12953_v57  ;;  %v18236_v63 = vcombine.low %v12507_v52, %v12498_v29  ;;  %v18237_v42 = vcombine.high %v18169_v20, %v18168_v61  ;;  %v13029_v20 = vpop.permute.xlu1 %2046  ;;  %v18262_v45 = vld [vmem:[#allocation28_spill] sm:$0xff]  ;;  %v18307_v4 = vld [vmem:[#allocation45_spill] sm:$0xff] }
 0x3c4   : > { %18234 = vst [vmem:[#allocation227_spill] sm:$0xff] %v12995_v30  ;;  %18235 = vst [vmem:[#allocation233_spill] sm:$0xff] %v13000_v41  ;;  %v4618_v12 = vcombine.low %v12733_v13, %v12825_v15  ;;  %v4890_v47 = vcombine.low %v12742_v25, %v12828_v31  ;;  %v7115_v43 = vcombine.high %v12986_v16, %v12968_v28  ;;  %v13037_v25 = vpop.permute.xlu0 %2364 }
 0x3c5   : > { %7650 = vrot.lane.b32.xlu1 %v18236_v63, %s10254_s29  ;;  %v13014_v39 = vrot.slane %v18237_v42, %v10693_v62  ;;  %2060 = vrot.lane.b32.xlu0 %v10172_v24, %s10250_s26  ;;  %v13024_v63 = vrot.slane %v4587_v48, %v10693_v62  ;;  %v13027_v6 = vrot.slane %v3787_v8, %v10693_v62 }
 0x3c6   : > { %v13032_v61 = vrot.slane %v3018_v27, %v10800_v54  ;;  %v13035_v42 = vrot.slane %v3290_v51, %v10800_v54  ;;  %18243 = vst [vmem:[#allocation240_spill] sm:$0xff] %v13037_v25  ;;  %v18244_v31 = vcombine.low %v12717_v60, %v12723_v21  ;;  %v13046_v48 = vrot.slane %v3834_v53, %v10800_v54 }
 0x3c7   : > { %18238 = vst [vmem:[#allocation237_spill] sm:$0xff] %v13014_v39  ;;  %18239 = vst [vmem:[#allocation136_spill] sm:$0xff] %v13024_v63  ;;  %v13049_v8 = vrot.slane %v4106_v34, %v10800_v54  ;;  %v13054_v51 = vrot.slane %v3771_v49, %v10693_v62  ;;  %v4667_v25 = vcombine.high %v13024_v63, %v13000_v41 }
 0x3c8   : > { %18240 = vst [vmem:[#allocation230_spill] sm:$0xff] %v13027_v6  ;;  %18241 = vst [vmem:[#allocation238_spill] sm:$0xff] %v13032_v61  ;;  %v13043_v5 = vrot.slane %v18244_v31, %v10800_v54  ;;  %v18249_v31 = vcombine.low %v12531_v56, %v12510_v19  ;;  %v13063_v53 = vrot.slane %v4650_v1, %v10800_v54  ;;  %v13096_v57 = vpop.permute.xlu0 %2492  ;;  %v18266_v61 = vld [vmem:[#allocation22_spill] sm:$0xff] }
 0x3c9   : > { %18242 = vst [vmem:[#allocation239_spill] sm:$0xff] %v13035_v42  ;;  %18246 = vst [vmem:[#allocation242_spill] sm:$0xff] %v13046_v48  ;;  %v13066_v34 = vrot.slane %v4922_v44, %v10800_v54  ;;  %v4635_v27 = vcombine.high %v12736_v46, %v13014_v39  ;;  %2156 = vrot.lane.b32.xlu0 %v10172_v24, %s10251_s28  ;;  %v13072_v49 = vrot.slane %v7115_v43, %v10800_v54  ;;  %v18270_v24 = vld [vmem:[#allocation54_spill] sm:$0xff] }
 0x3ca   : > { %18245 = vst [vmem:[#allocation241_spill] sm:$0xff] %v13043_v5  ;;  %18247 = vst [vmem:[#allocation243_spill] sm:$0xff] %v13049_v8  ;;  %7662 = vrot.lane.b32.xlu1 %v18249_v31, %s10254_s29  ;;  %v18253_v63 = vcombine.low %v12730_v9, %v12739_v3  ;;  %v13081_v1 = vrot.slane %v4618_v12, %v10800_v54  ;;  %v3851_v44 = vcombine.high %v13054_v51, %v13027_v6  ;;  %v13085_v31 = vpop.permute.xlu1 %2142  ;;  %v18261_v12 = vld [vmem:[#allocation94_spill] sm:$0xff]  ;;  %v18269_v5 = vld [vmem:[#allocation156_spill] sm:$0xff] }
 0x3cb   : > { %18248 = vst [vmem:[#allocation244_spill] sm:$0xff] %v13054_v51  ;;  %18250 = vst [vmem:[#allocation245_spill] sm:$0xff] %v13063_v53  ;;  %v13088_v46 = vrot.slane %v4890_v47, %v10800_v54  ;;  %v18263_v51 = vcombine.high %v18261_v12, %v18262_v45  ;;  %v3819_v39 = vcombine.high %v18266_v61, %v18265_v40  ;;  %v18273_v61 = vld [vmem:[#allocation166_spill] sm:$0xff]  ;;  %v18274_v40 = vld [vmem:[#allocation175_spill] sm:$0xff] }
 0x3cc   : > { %18251 = vst [vmem:[#allocation246_spill] sm:$0xff] %v13066_v34  ;;  %18252 = vst [vmem:[#allocation247_spill] sm:$0xff] %v13072_v49  ;;  %v13078_v41 = vrot.slane %v18253_v63, %v10800_v54  ;;  %v18259_v63 = vld [vmem:[#allocation167_spill] sm:$0xff]  ;;  %v18267_v43 = vcombine.high %v12487_v2, %v12475_v32  ;;  %v18275_v2 = vcombine.high %v18273_v61, %v18274_v40  ;;  %v18285_v47 = vld [vmem:[#allocation60_spill] sm:$0xff] }
 0x3cd   : > { %18255 = vst [vmem:[#allocation249_spill] sm:$0xff] %v13081_v1  ;;  %18256 = vst [vmem:[#allocation250_spill] sm:$0xff] %v13088_v46  ;;  %v7411_v14 = vcombine.high %v18259_v63, %v18258_v17  ;;  %v13102_v6 = vrot.slane %v18263_v51, %v10800_v54  ;;  %v13117_v51 = vrot.slane %v4667_v25, %v10800_v54  ;;  %v18286_v46 = vld [vmem:[#allocation169_spill] sm:$0xff]  ;;  %v18293_v53 = vld [vmem:[#allocation204_spill] sm:$0xff] }
 0x3ce   : > { %18254 = vst [vmem:[#allocation248_spill] sm:$0xff] %v13078_v41  ;;  %18260 = vst [vmem:[#allocation176_spill] sm:$0xff] %v13096_v57  ;;  %7710 = vrot.lane.b32.xlu1 %v18267_v43, %s10256_s10  ;;  %v18271_v41 = vcombine.high %v18269_v5, %v18270_v24  ;;  %v13131_v32 = vrot.slane %v18275_v2, %v10693_v62  ;;  %v10173_v43 = vld [vmem:[#allocation2 + $0x139] sm:$0xff]  ;;  %v13135_v25 = vrot.slane %v4635_v27, %v10800_v54  ;;  %v18280_v24 = vld [vmem:[#allocation59_spill] sm:$0xff]  ;;  %v13149_v40 = vpop.permute.xlu1 %2278 }
 0x3cf   : > { %18264 = vst [vmem:[#allocation167_spill] sm:$0xff] %v13102_v6  ;;  %18268 = vst [vmem:[#allocation94_spill] sm:$0xff] %v13117_v51  ;;  %2284 = vrot.lane.b32.xlu0 %v10173_v43, %s10250_s26  ;;  %v18278_v5 = vcombine.low %v18259_v63, %v18258_v17  ;;  %v18281_v57 = vld [vmem:[#allocation35_spill] sm:$0xff]  ;;  %v13152_v27 = vrot.slane %v3851_v44, %v10800_v54  ;;  %v5778_v34 = vcombine.low %v18286_v46, %v18285_v47  ;;  %v13161_v63 = vpop.permute.xlu0 %2588  ;;  %v18296_v48 = vld [vmem:[#allocation174_spill] sm:$0xff] }
 0x3d0   : > { %v13125_v8 = vrot.slane %v18271_v41, %v10693_v62  ;;  %18276 = vst [vmem:[#allocation156_spill] sm:$0xff] %v13131_v32  ;;  %18277 = vst [vmem:[#allocation54_spill] sm:$0xff] %v13135_v25  ;;  %v5506_v61 = vcombine.low %v18281_v57, %v18280_v24  ;;  %v5507_v2 = vcombine.high %v18281_v57, %v18280_v24  ;;  %v18288_v57 = vld [vmem:[#allocation180_spill] sm:$0xff]  ;;  %v18289_v24 = vld [vmem:[#allocation171_spill] sm:$0xff] }
 0x3d1   : > { %v13143_v41 = vrot.slane %v18278_v5, %v10693_v62  ;;  %18282 = vst [vmem:[#allocation59_spill] sm:$0xff] %v13149_v40  ;;  %18283 = vst [vmem:[#allocation35_spill] sm:$0xff] %v13152_v27  ;;  %v5779_v17 = vcombine.high %v18286_v46, %v18285_v47  ;;  %v4963_v1 = vcombine.high %v18289_v24, %v18288_v57  ;;  %v18297_v5 = vld [vmem:[#allocation157_spill] sm:$0xff]  ;;  %v18305_v6 = vld [vmem:[#allocation38_spill] sm:$0xff] }
 0x3d2   : > { %18272 = vst [vmem:[#allocation28_spill] sm:$0xff] %v13125_v8  ;;  %v13155_v8 = vrot.slane %v7411_v14, %v10693_v62  ;;  %18287 = vst [vmem:[#allocation60_spill] sm:$0xff] %v13161_v63  ;;  %v18290_v44 = vcombine.high %v12507_v52, %v12498_v29  ;;  %v13172_v14 = vrot.slane %v3819_v39, %v10800_v54  ;;  %v18300_v24 = vld [vmem:[#allocation181_spill] sm:$0xff]  ;;  %v18302_v29 = vld [vmem:[#allocation182_spill] sm:$0xff] }
 0x3d3   : > { %18279 = vst [vmem:[#allocation251_spill] sm:$0xff] %v13143_v41  ;;  %v18298_v25 = vcombine.high %v18296_v48, %v18297_v5  ;;  %v18301_v57 = vld [vmem:[#allocation145_spill] sm:$0xff]  ;;  %v18304_v39 = vld [vmem:[#allocation194_spill] sm:$0xff]  ;;  %v18306_v40 = vld [vmem:[#allocation195_spill] sm:$0xff]  ;;  %2380 = vrot.lane.b32.xlu0 %v10173_v43, %s10251_s28  ;;  %v13216_v5 = vpop.permute.xlu0 %2052  ;;  %v13219_v0 = vrot.slane %v5779_v17, %v10693_v62 }
 0x3d4   : > { %18284 = vst [vmem:[#allocation252_spill] sm:$0xff] %v13155_v8  ;;  %7722 = vrot.lane.b32.xlu1 %v18290_v44, %s10256_s10  ;;  %18291 = vst [vmem:[#allocation169_spill] sm:$0xff] %v13172_v14  ;;  %v18292_v8 = vld [vmem:[#allocation203_spill] sm:$0xff]  ;;  %v2923_v42 = vcombine.high %v18301_v57, %v18300_v24  ;;  %v18303_v52 = vld [vmem:[#allocation93_spill] sm:$0xff]  ;;  %v2939_v49 = vcombine.high %v18305_v6, %v18304_v39  ;;  %v13208_v6 = vrot.slane %v5778_v34, %v10693_v62 }
 0x3d5   : > { %v18294_v46 = vcombine.high %v18292_v8, %v18293_v53  ;;  %v13184_v51 = vrot.slane %v18298_v25, %v10800_v54  ;;  %v6458_v44 = vcombine.low %v18303_v52, %v18302_v29  ;;  %v6474_v8 = vcombine.low %v18307_v4, %v18306_v40  ;;  %v13201_v53 = vpop.permute.xlu1 %2374  ;;  %v18311_v39 = vld [vmem:[#allocation185_spill] sm:$0xff]  ;;  %v18313_v29 = vld [vmem:[#allocation188_spill] sm:$0xff]  ;;  %v18315_v40 = vld [vmem:[#allocation198_spill] sm:$0xff]  ;;  %18317 = vst [vmem:[#allocation38_spill] sm:$0xff] %v13216_v5 }
 0x3d6   : > { %v13199_v25 = vrot.slane %v5507_v2, %v10693_v62  ;;  %18310 = vst [vmem:[#allocation194_spill] sm:$0xff] %v13201_v53  ;;  %v18312_v52 = vld [vmem:[#allocation149_spill] sm:$0xff]  ;;  %18318 = vst [vmem:[#allocation185_spill] sm:$0xff] %v13219_v0  ;;  %v13222_v57 = vrot.slane %v4963_v1, %v10693_v62  ;;  %v13239_v1 = vrot.slane %v2939_v49, %v10693_v62  ;;  %v18326_v24 = vld [vmem:[#allocation71_spill] sm:$0xff] }
 0x3d7   : > { %v13178_v47 = vrot.slane %v18294_v46, %v10800_v54  ;;  %18299 = vst [vmem:[#allocation254_spill] sm:$0xff] %v13184_v51  ;;  %v13196_v46 = vrot.slane %v5506_v61, %v10693_v62  ;;  %v3195_v43 = vcombine.high %v18312_v52, %v18311_v39  ;;  %v18314_v61 = vld [vmem:[#allocation165_spill] sm:$0xff]  ;;  %v6610_v52 = vcombine.low %v12880_v36, %v13201_v53  ;;  %v18378_v41 = vld [vmem:[#allocation208_spill] sm:$0xff] }
 0x3d8   : > { %18309 = vst [vmem:[#allocation145_spill] sm:$0xff] %v13199_v25  ;;  %v7274_v4 = vcombine.low %v18314_v61, %v18313_v29  ;;  %v18316_v2 = vld [vmem:[#allocation173_spill] sm:$0xff]  ;;  %18319 = vst [vmem:[#allocation149_spill] sm:$0xff] %v13222_v57  ;;  %v7275_v34 = vcombine.high %v18314_v61, %v18313_v29  ;;  %v18320_v39 = vcombine.high %v12531_v56, %v12510_v19  ;;  %v18327_v19 = vld [vmem:[#allocation118_spill] sm:$0xff] }
 0x3d9   : > { %18295 = vst [vmem:[#allocation253_spill] sm:$0xff] %v13178_v47  ;;  %18308 = vst [vmem:[#allocation181_spill] sm:$0xff] %v13196_v46  ;;  %v3211_v48 = vcombine.high %v18316_v2, %v18315_v40  ;;  %v13233_v40 = vrot.slane %v2923_v42, %v10693_v62  ;;  %v13236_v17 = vrot.slane %v6458_v44, %v10693_v62  ;;  %v10174_v29 = vld [vmem:[#allocation2 + $0x13a] sm:$0xff]  ;;  %v18328_v42 = vld [vmem:[#allocation111_spill] sm:$0xff]  ;;  %v13254_v49 = vpop.permute.xlu1 %2502 }
 0x3da   : > { %7734 = vrot.lane.b32.xlu1 %v18320_v39, %s10256_s10  ;;  %18323 = vst [vmem:[#allocation198_spill] sm:$0xff] %v13239_v1  ;;  %v13242_v2 = vrot.slane %v6474_v8, %v10693_v62  ;;  %2508 = vrot.lane.b32.xlu0 %v10174_v29, %s10250_s26  ;;  %v18325_v61 = vld [vmem:[#allocation193_spill] sm:$0xff]  ;;  %v2987_v39 = vcombine.high %v18328_v42, %v18327_v19  ;;  %18330 = vst [vmem:[#allocation71_spill] sm:$0xff] %v13254_v49  ;;  %v18337_v42 = vld [vmem:[#allocation55_spill] sm:$0xff] }
 0x3db   : > { %18321 = vst [vmem:[#allocation188_spill] sm:$0xff] %v13233_v40  ;;  %18322 = vst [vmem:[#allocation165_spill] sm:$0xff] %v13236_v17  ;;  %v6354_v14 = vcombine.low %v18326_v24, %v18325_v61  ;;  %v6355_v56 = vcombine.high %v18326_v24, %v18325_v61  ;;  %v13252_v44 = vrot.slane %v6610_v52, %v10693_v62  ;;  %v13267_v61 = vpop.permute.xlu0 %2148  ;;  %v18336_v52 = vld [vmem:[#allocation200_spill] sm:$0xff]  ;;  %v18419_v25 = vld [vmem:[#allocation223_spill] sm:$0xff] }
 0x3dc   : > { %18324 = vst [vmem:[#allocation173_spill] sm:$0xff] %v13242_v2  ;;  %v13257_v8 = vrot.slane %v3195_v43, %v10693_v62  ;;  %v13260_v27 = vrot.slane %v7274_v4, %v10693_v62  ;;  %v13263_v5 = vrot.slane %v3211_v48, %v10693_v62  ;;  %v7154_v24 = vcombine.low %v12929_v18, %v13254_v49  ;;  %v18339_v48 = vld [vmem:[#allocation130_spill] sm:$0xff]  ;;  %v18342_v18 = vld [vmem:[#allocation197_spill] sm:$0xff]  ;;  %v18343_v49 = vld [vmem:[#allocation184_spill] sm:$0xff] }
 0x3dd   : > { %18329 = vst [vmem:[#allocation193_spill] sm:$0xff] %v13252_v44  ;;  %18334 = vst [vmem:[#allocation256_spill] sm:$0xff] %v13267_v61  ;;  %v13270_v19 = vrot.slane %v7275_v34, %v10693_v62  ;;  %v7290_v36 = vcombine.low %v18337_v42, %v18336_v52  ;;  %v7291_v43 = vcombine.high %v18337_v42, %v18336_v52  ;;  %v18344_v52 = vld [vmem:[#allocation80_spill] sm:$0xff] }
 0x3de   : > { %18331 = vst [vmem:[#allocation118_spill] sm:$0xff] %v13257_v8  ;;  %18332 = vst [vmem:[#allocation111_spill] sm:$0xff] %v13260_v27  ;;  %v18341_v59 = vcombine.low %v18339_v48, %v18340_v11  ;;  %v3003_v61 = vcombine.high %v13233_v40, %v13239_v1  ;;  %v6522_v34 = vcombine.low %v13236_v17, %v13242_v2  ;;  %2604 = vrot.lane.b32.xlu0 %v10174_v29, %s10251_s28  ;;  %v18345_v42 = vld [vmem:[#allocation192_spill] sm:$0xff]  ;;  %v13304_v17 = vpop.permute.xlu1 %2598 }
 0x3df   : > { %18333 = vst [vmem:[#allocation255_spill] sm:$0xff] %v13263_v5  ;;  %18335 = vst [vmem:[#allocation257_spill] sm:$0xff] %v13270_v19  ;;  %v6626_v50 = vcombine.low %v18343_v49, %v18342_v18  ;;  %v18346_v53 = vcombine.high %v18344_v52, %v18345_v42  ;;  %v13296_v44 = vrot.slane %v6354_v14, %v10693_v62  ;;  %v18352_v52 = vld [vmem:[#allocation76_spill] sm:$0xff]  ;;  %v13317_v1 = vpop.permute.xlu0 %2276 }
 0x3e0   : > { %7782 = vrot.lane.b32.xlu1 %v18341_v59, %s10257_s11  ;;  %v13299_v59 = vrot.slane %v6355_v56, %v10693_v62  ;;  %v13302_v40 = vrot.slane %v7154_v24, %v10693_v62  ;;  %18350 = vst [vmem:[#allocation97_spill] sm:$0xff] %v13304_v17  ;;  %v13307_v2 = vrot.slane %v2987_v39, %v10800_v54  ;;  %18354 = vst [vmem:[#allocation184_spill] sm:$0xff] %v13317_v1  ;;  %v18355_v24 = vld [vmem:[#allocation137_spill] sm:$0xff]  ;;  %v18420_v0 = vld [vmem:[#allocation112_spill] sm:$0xff] }
 0x3e1   : > { %v13293_v4 = vrot.slane %v18346_v53, %v10800_v54  ;;  %18348 = vst [vmem:[#allocation55_spill] sm:$0xff] %v13296_v44  ;;  %v6627_v29 = vcombine.high %v18343_v49, %v18342_v18  ;;  %v18353_v53 = vld [vmem:[#allocation24_spill] sm:$0xff]  ;;  %v3275_v14 = vcombine.high %v13257_v8, %v13263_v5  ;;  %v7426_v56 = vcombine.low %v12983_v55, %v13304_v17  ;;  %v18366_v49 = vld [vmem:[#allocation199_spill] sm:$0xff] }
 0x3e2   : > { %18349 = vst [vmem:[#allocation130_spill] sm:$0xff] %v13299_v59  ;;  %18351 = vst [vmem:[#allocation197_spill] sm:$0xff] %v13307_v2  ;;  %v3259_v42 = vcombine.high %v18353_v53, %v18352_v52  ;;  %v18356_v59 = vld [vmem:[#allocation65_spill] sm:$0xff]  ;;  %v13322_v39 = vrot.slane %v7290_v36, %v10693_v62  ;;  %v13325_v2 = vrot.slane %v7291_v43, %v10693_v62  ;;  %v18360_v52 = vld [vmem:[#allocation18_spill] sm:$0xff] }
 0x3e3   : > { %18347 = vst [vmem:[#allocation200_spill] sm:$0xff] %v13293_v4  ;;  %v7067_v44 = vcombine.high %v18356_v59, %v18355_v24  ;;  %v18361_v53 = vld [vmem:[#allocation109_spill] sm:$0xff]  ;;  %v13334_v5 = vrot.slane %v6626_v50, %v10693_v62  ;;  %v13337_v55 = vrot.slane %v7426_v56, %v10693_v62  ;;  %v10175_v59 = vld [vmem:[#allocation2 + $0x168] sm:$0xff]  ;;  %v13341_v36 = vrot.slane %v3003_v61, %v10800_v54  ;;  %v18459_v57 = vld [vmem:[#allocation100_spill] sm:$0xff] }
 0x3e4   : > { %18357 = vst [vmem:[#allocation76_spill] sm:$0xff] %v13322_v39  ;;  %18358 = vst [vmem:[#allocation24_spill] sm:$0xff] %v13325_v2  ;;  %v18362_v8 = vcombine.low %v18360_v52, %v18361_v53  ;;  %2068 = vrot.lane.b32.xlu0 %v10175_v59, %s10250_s26  ;;  %v13344_v43 = vrot.slane %v6522_v34, %v10800_v54  ;;  %v7082_v24 = vcombine.low %v18261_v12, %v18262_v45  ;;  %v13359_v34 = vpop.permute.xlu0 %2372 }
 0x3e5   : > { %18363 = vst [vmem:[#allocation137_spill] sm:$0xff] %v13334_v5  ;;  %18364 = vst [vmem:[#allocation65_spill] sm:$0xff] %v13341_v36  ;;  %v3891_v56 = vcombine.high %v12992_v38, %v13317_v1  ;;  %v2055_v5 = vpop.permute.xlu1 %2054  ;;  %v13355_v18 = vrot.slane %v6627_v29, %v10693_v62  ;;  %v3803_v61 = vcombine.high %v12717_v60, %v12723_v21  ;;  %v18371_v38 = vld [vmem:[#allocation17_spill] sm:$0xff] }
 0x3e6   : > { %7794 = vrot.lane.b32.xlu1 %v18362_v8, %s10257_s11  ;;  %18365 = vst [vmem:[#allocation18_spill] sm:$0xff] %v13344_v43  ;;  %v18367_v8 = vld [vmem:[#allocation186_spill] sm:$0xff]  ;;  %18369 = vst [vmem:[#allocation199_spill] sm:$0xff] %v13359_v34  ;;  %v13362_v45 = vrot.slane %v3259_v42, %v10800_v54  ;;  %v13365_v12 = vrot.slane %v3275_v14, %v10800_v54  ;;  %v18372_v21 = vld [vmem:[#allocation37_spill] sm:$0xff]  ;;  %v13378_v42 = vrot.slane %v7067_v44, %v10800_v54 }
 0x3e7   : > { %v7170_v17 = vcombine.low %v18367_v8, %v18366_v49  ;;  %v7171_v50 = vcombine.high %v18367_v8, %v18366_v49  ;;  %18368 = vst [vmem:[#allocation109_spill] sm:$0xff] %v13355_v18  ;;  %v7338_v49 = vcombine.low %v13260_v27, %v13322_v39  ;;  %v7354_v8 = vcombine.low %v13270_v19, %v13325_v2  ;;  %v18374_v34 = vld [vmem:[#allocation86_spill] sm:$0xff]  ;;  %v18375_v14 = vld [vmem:[#allocation85_spill] sm:$0xff]  ;;  %v18469_v43 = vld [vmem:[#allocation7_spill] sm:$0xff] }
 0x3e8   : > { %18370 = vst [vmem:[#allocation186_spill] sm:$0xff] %v13365_v12  ;;  %v18373_v60 = vcombine.low %v18371_v38, %v18372_v21  ;;  %v7442_v1 = vcombine.low %v18375_v14, %v18374_v34  ;;  %v13383_v18 = vrot.slane %v3891_v56, %v10693_v62  ;;  %v5522_v27 = vcombine.low %v13029_v20, %v2055_v5  ;;  %v18527_v36 = vld [vmem:[#allocation21_spill] sm:$0xff] }
 0x3e9   : > { %v5523_v19 = vcombine.high %v13029_v20, %v2055_v5  ;;  %2164 = vrot.lane.b32.xlu0 %v10175_v59, %s10251_s28  ;;  %v13389_v29 = vrot.slane %v7170_v17, %v10693_v62  ;;  %v7443_v44 = vcombine.high %v18375_v14, %v18374_v34  ;;  %v2151_v2 = vpop.permute.xlu1 %2150  ;;  %v13397_v39 = vrot.slane %v7082_v24, %v10800_v54  ;;  %v18379_v20 = vld [vmem:[#allocation206_spill] sm:$0xff]  ;;  %v13405_v59 = vpop.permute.xlu0 %2500  ;;  %v18387_v17 = vld [vmem:[#allocation52_spill] sm:$0xff] }
 0x3ea   : > { %7806 = vrot.lane.b32.xlu1 %v18373_v60, %s10257_s11  ;;  %18376 = vst [vmem:[#allocation17_spill] sm:$0xff] %v13383_v18  ;;  %v13392_v60 = vrot.slane %v7171_v50, %v10693_v62  ;;  %v4075_v56 = vcombine.high %v12730_v9, %v12739_v3  ;;  %v5434_v5 = vcombine.low %v18379_v20, %v18378_v41  ;;  %18380 = vst [vmem:[#allocation86_spill] sm:$0xff] %v13405_v59  ;;  %v10176_v59 = vld [vmem:[#allocation2 + $0x169] sm:$0xff] }
 0x3eb   : > { %v13408_v50 = vrot.slane %v3803_v61, %v10800_v54  ;;  %v13411_v34 = vrot.slane %v5522_v27, %v10693_v62  ;;  %v13414_v24 = vrot.slane %v5523_v19, %v10693_v62  ;;  %v18383_v9 = vcombine.high %v18339_v48, %v18340_v11  ;;  %v18388_v27 = vld [vmem:[#allocation15_spill] sm:$0xff]  ;;  %v18390_v48 = vld [vmem:[#allocation210_spill] sm:$0xff] }
 0x3ec   : > { %18377 = vst [vmem:[#allocation37_spill] sm:$0xff] %v13392_v60  ;;  %v13421_v3 = vrot.slane %v7338_v49, %v10800_v54  ;;  %v13424_v14 = vrot.slane %v7354_v8, %v10800_v54  ;;  %v13427_v61 = vrot.slane %v7442_v1, %v10693_v62  ;;  %v6506_v18 = vcombine.low %v18388_v27, %v18387_v17  ;;  %v18391_v49 = vld [vmem:[#allocation61_spill] sm:$0xff] }
 0x3ed   : > { %18381 = vst [vmem:[#allocation85_spill] sm:$0xff] %v13411_v34  ;;  %18382 = vst [vmem:[#allocation208_spill] sm:$0xff] %v13414_v24  ;;  %v5794_v19 = vcombine.low %v13085_v31, %v2151_v2  ;;  %v5795_v32 = vcombine.high %v13085_v31, %v2151_v2  ;;  %2292 = vrot.lane.b32.xlu0 %v10176_v59, %s10250_s26  ;;  %v13435_v11 = vrot.slane %v7443_v44, %v10693_v62  ;;  %v13443_v27 = vpop.permute.xlu1 %8164  ;;  %v18393_v2 = vld [vmem:[#allocation107_spill] sm:$0xff]  ;;  %v18394_v17 = vld [vmem:[#allocation105_spill] sm:$0xff]  ;;  %v13449_v60 = vpop.permute.xlu0 %2596 }
 0x3ee   : > { %7854 = vrot.lane.b32.xlu1 %v18383_v9, %s10258_s12  ;;  %18384 = vst [vmem:[#allocation206_spill] sm:$0xff] %v13421_v3  ;;  %18385 = vst [vmem:[#allocation258_spill] sm:$0xff] %v13424_v14  ;;  %v5538_v8 = vcombine.low %v18391_v49, %v18390_v48  ;;  %v5539_v31 = vcombine.high %v18391_v49, %v18390_v48  ;;  %v13452_v44 = vrot.slane %v4075_v56, %v10800_v54  ;;  %v18519_v14 = vld [vmem:[#allocation178_spill] sm:$0xff]  ;;  %v18530_v3 = vld [vmem:[#allocation97_spill] sm:$0xff] }
 0x3ef   : > { %18386 = vst [vmem:[#allocation259_spill] sm:$0xff] %v13427_v61  ;;  %18389 = vst [vmem:[#allocation260_spill] sm:$0xff] %v13435_v11  ;;  %v6490_v61 = vcombine.low %v18394_v17, %v18393_v2  ;;  %v13455_v11 = vrot.slane %v5434_v5, %v10800_v54  ;;  %v13458_v1 = vrot.slane %v5794_v19, %v10693_v62  ;;  %v18402_v5 = vld [vmem:[#allocation207_spill] sm:$0xff] }
 0x3f0   : > { %18392 = vst [vmem:[#allocation210_spill] sm:$0xff] %v13443_v27  ;;  %18395 = vst [vmem:[#allocation61_spill] sm:$0xff] %v13449_v60  ;;  %v13461_v9 = vrot.slane %v5795_v32, %v10693_v62  ;;  %v18399_v48 = vcombine.high %v18360_v52, %v18361_v53  ;;  %v18400_v49 = vcombine.high %v18379_v20, %v18378_v41  ;;  %v18403_v27 = vld [vmem:[#allocation209_spill] sm:$0xff]  ;;  %v18406_v2 = vld [vmem:[#allocation215_spill] sm:$0xff] }
 0x3f1   : > { %18396 = vst [vmem:[#allocation261_spill] sm:$0xff] %v13452_v44  ;;  %18397 = vst [vmem:[#allocation262_spill] sm:$0xff] %v13455_v11  ;;  %v18404_v17 = vcombine.high %v18402_v5, %v18403_v27  ;;  %v18407_v32 = vld [vmem:[#allocation213_spill] sm:$0xff]  ;;  %v13482_v24 = vrot.slane %v6506_v18, %v10693_v62  ;;  %v3243_v52 = vcombine.high %v18206_v22, %v12651_v37  ;;  %2388 = vrot.lane.b32.xlu0 %v10176_v59, %s10251_s28  ;;  %v13498_v5 = vpop.permute.xlu1 %2286  ;;  %v18418_v18 = vld [vmem:[#allocation90_spill] sm:$0xff] }
 0x3f2   : > { %18398 = vst [vmem:[#allocation263_spill] sm:$0xff] %v13461_v9  ;;  %7866 = vrot.lane.b32.xlu1 %v18399_v48, %s10258_s12  ;;  %v13471_v56 = vrot.slane %v18400_v49, %v10800_v54  ;;  %v5706_v44 = vcombine.low %v18407_v32, %v18406_v2  ;;  %v4979_v41 = vcombine.high %v13161_v63, %v13449_v60  ;;  %v18409_v20 = vld [vmem:[#allocation41_spill] sm:$0xff]  ;;  %v18417_v63 = vld [vmem:[#allocation62_spill] sm:$0xff] }
 0x3f3   : > { %v13477_v19 = vrot.slane %v18404_v17, %v10800_v54  ;;  %18408 = vst [vmem:[#allocation215_spill] sm:$0xff] %v13482_v24  ;;  %v13490_v53 = vrot.slane %v5538_v8, %v10693_v62  ;;  %v18410_v17 = vld [vmem:[#allocation11_spill] sm:$0xff]  ;;  %v13501_v37 = vrot.slane %v5539_v31, %v10693_v62  ;;  %v13506_v59 = vrot.slane %v6490_v61, %v10693_v62  ;;  %v18413_v8 = vld [vmem:[#allocation10_spill] sm:$0xff]  ;;  %v18414_v27 = vld [vmem:[#allocation225_spill] sm:$0xff] }
 0x3f4   : > { %18401 = vst [vmem:[#allocation264_spill] sm:$0xff] %v13471_v56  ;;  %v2971_v48 = vcombine.high %v18410_v17, %v18409_v20  ;;  %v3227_v20 = vcombine.high %v18414_v27, %v18413_v8  ;;  %v13510_v17 = vpop.permute.xlu0 %8092  ;;  %v18416_v49 = vld [vmem:[#allocation217_spill] sm:$0xff]  ;;  %v2955_v9 = vcombine.high %v18419_v25, %v18418_v18  ;;  %v18421_v31 = vld [vmem:[#allocation232_spill] sm:$0xff]  ;;  %v13519_v34 = vrot.slane %v4979_v41, %v10693_v62 }
 0x3f5   : > { %18405 = vst [vmem:[#allocation265_spill] sm:$0xff] %v13477_v19  ;;  %18411 = vst [vmem:[#allocation213_spill] sm:$0xff] %v13501_v37  ;;  %v5810_v60 = vcombine.low %v18417_v63, %v18416_v49  ;;  %v7322_v46 = vcombine.low %v18421_v31, %v18420_v0  ;;  %v18423_v61 = vcombine.high %v18371_v38, %v18372_v21  ;;  %v10177_v25 = vld [vmem:[#allocation2 + $0x16a] sm:$0xff] }
 0x3f6   : > { %18412 = vst [vmem:[#allocation41_spill] sm:$0xff] %v13506_v59  ;;  %18415 = vst [vmem:[#allocation11_spill] sm:$0xff] %v13510_v17  ;;  %v5811_v27 = vcombine.high %v18417_v63, %v18416_v49  ;;  %v6554_v8 = vcombine.low %v13506_v59, %v13482_v24  ;;  %v13530_v22 = vrot.slane %v3243_v52, %v10693_v62  ;;  %2516 = vrot.lane.b32.xlu0 %v10177_v25, %s10250_s26  ;;  %v18426_v18 = vld [vmem:[#allocation108_spill] sm:$0xff]  ;;  %v18427_v17 = vld [vmem:[#allocation226_spill] sm:$0xff]  ;;  %v13545_v52 = vpop.permute.xlu1 %2382 }
 0x3f7   : > { %18422 = vst [vmem:[#allocation10_spill] sm:$0xff] %v13519_v34  ;;  %7878 = vrot.lane.b32.xlu1 %v18423_v61, %s10258_s12  ;;  %v13534_v41 = vrot.slane %v5706_v44, %v10800_v54  ;;  %v7306_v15 = vcombine.low %v18427_v17, %v18426_v18  ;;  %v13539_v38 = vrot.slane %v2971_v48, %v10693_v62 }
 0x3f8   : > { %18424 = vst [vmem:[#allocation225_spill] sm:$0xff] %v13530_v22  ;;  %v7323_v63 = vcombine.high %v18421_v31, %v18420_v0  ;;  %v13548_v49 = vrot.slane %v3227_v20, %v10693_v62  ;;  %v7307_v44 = vcombine.high %v18427_v17, %v18426_v18  ;;  %v7099_v61 = vcombine.high %v12907_v33, %v12885_v23  ;;  %v13554_v59 = vpop.permute.xlu0 %8236  ;;  %v18435_v23 = vld [vmem:[#allocation150_spill] sm:$0xff]  ;;  %v18436_v33 = vld [vmem:[#allocation151_spill] sm:$0xff] }
 0x3f9   : > { %18425 = vst [vmem:[#allocation217_spill] sm:$0xff] %v13534_v41  ;;  %18428 = vst [vmem:[#allocation62_spill] sm:$0xff] %v13539_v38  ;;  %v18431_v0 = vcombine.high %v18407_v32, %v18406_v2  ;;  %v13563_v31 = vrot.slane %v2955_v9, %v10693_v62  ;;  %v3019_v20 = vcombine.high %v12837_v10, %v12922_v58  ;;  %v18439_v58 = vld [vmem:[#allocation214_spill] sm:$0xff] }
 0x3fa   : > { %18429 = vst [vmem:[#allocation90_spill] sm:$0xff] %v13548_v49  ;;  %18430 = vst [vmem:[#allocation223_spill] sm:$0xff] %v13554_v59  ;;  %v7114_v17 = vcombine.low %v12986_v16, %v12968_v28  ;;  %v13570_v18 = vrot.slane %v7322_v46, %v10693_v62  ;;  %v18437_v21 = vcombine.low %v18435_v23, %v18436_v33  ;;  %2612 = vrot.lane.b32.xlu0 %v10177_v25, %s10251_s28  ;;  %v18440_v28 = vld [vmem:[#allocation216_spill] sm:$0xff]  ;;  %v18446_v25 = vld [vmem:[#allocation115_spill] sm:$0xff] }
 0x3fb   : > { %v13560_v48 = vrot.slane %v18431_v0, %v10800_v54  ;;  %18433 = vst [vmem:[#allocation232_spill] sm:$0xff] %v13563_v31  ;;  %v13577_v2 = vrot.slane %v5810_v60, %v10693_v62  ;;  %v3307_v9 = vcombine.high %v13548_v49, %v13530_v22  ;;  %v13583_v10 = vrot.slane %v6554_v8, %v10800_v54  ;;  %v13599_v0 = vpop.permute.xlu1 %2510  ;;  %v18445_v8 = vld [vmem:[#allocation50_spill] sm:$0xff] }
 0x3fc   : > { %18434 = vst [vmem:[#allocation108_spill] sm:$0xff] %v13570_v18  ;;  %7926 = vrot.lane.b32.xlu1 %v18437_v21, %s10259_s13  ;;  %v18441_v16 = vcombine.high %v18439_v58, %v18440_v28  ;;  %v13592_v32 = vrot.slane %v7306_v15, %v10693_v62  ;;  %v3035_v60 = vcombine.high %v13563_v31, %v13539_v38  ;;  %v13613_v59 = vpop.permute.xlu0 %7564  ;;  %v18453_v28 = vld [vmem:[#allocation220_spill] sm:$0xff]  ;;  %v18476_v22 = vld [vmem:[#allocation202_spill] sm:$0xff] }
 0x3fd   : > { %18432 = vst [vmem:[#allocation112_spill] sm:$0xff] %v13560_v48  ;;  %18438 = vst [vmem:[#allocation226_spill] sm:$0xff] %v13583_v10  ;;  %v13597_v21 = vrot.slane %v7323_v63, %v10693_v62  ;;  %v18447_v33 = vcombine.high %v18445_v8, %v18446_v25  ;;  %v13611_v15 = vrot.slane %v7307_v44, %v10693_v62  ;;  %v18452_v63 = vld [vmem:[#allocation219_spill] sm:$0xff]  ;;  %v18456_v8 = vld [vmem:[#allocation56_spill] sm:$0xff] }
 0x3fe   : > { %v13589_v46 = vrot.slane %v18441_v16, %v10800_v54  ;;  %18443 = vst [vmem:[#allocation267_spill] sm:$0xff] %v13592_v32  ;;  %v13608_v16 = vrot.slane %v5811_v27, %v10693_v62  ;;  %18451 = vst [vmem:[#allocation272_spill] sm:$0xff] %v13613_v59  ;;  %v7113_v58 = vrot.slane %v7099_v61, %v10800_v54  ;;  %v18457_v44 = vld [vmem:[#allocation91_spill] sm:$0xff] }
 0x3ff   : > { %18444 = vst [vmem:[#allocation268_spill] sm:$0xff] %v13597_v21  ;;  %v13605_v23 = vrot.slane %v18447_v33, %v10800_v54  ;;  %18450 = vst [vmem:[#allocation271_spill] sm:$0xff] %v13611_v15  ;;  %v18454_v24 = vcombine.high %v18452_v63, %v18453_v28  ;;  %v3291_v33 = vcombine.high %v12932_v35, %v12925_v26  ;;  %v18461_v28 = vld [vmem:[#allocation126_spill] sm:$0xff]  ;;  %v18462_v26 = vld [vmem:[#allocation121_spill] sm:$0xff] }
 0x400   : > { %18442 = vst [vmem:[#allocation266_spill] sm:$0xff] %v13589_v46  ;;  %18449 = vst [vmem:[#allocation270_spill] sm:$0xff] %v13608_v16  ;;  %v7370_v27 = vcombine.low %v13592_v32, %v13570_v18  ;;  %v18458_v25 = vcombine.low %v18456_v8, %v18457_v44  ;;  %v13631_v59 = vrot.slane %v7114_v17, %v10800_v54  ;;  %v13651_v18 = vpop.permute.xlu1 %2606  ;;  %v18468_v8 = vld [vmem:[#allocation99_spill] sm:$0xff]  ;;  %v13664_v51 = vpop.permute.xlu0 %7576 }
 0x401   : > { %18448 = vst [vmem:[#allocation269_spill] sm:$0xff] %v13605_v23  ;;  %v13620_v34 = vrot.slane %v18454_v24, %v10800_v54  ;;  %v13634_v61 = vrot.slane %v3019_v20, %v10800_v54  ;;  %v18460_v24 = vld [vmem:[#allocation177_spill] sm:$0xff]  ;;  %v18463_v35 = vcombine.low %v18461_v28, %v18462_v26  ;;  %v13643_v32 = vrot.slane %v3307_v9, %v10800_v54  ;;  %v18466_v26 = vld [vmem:[#allocation179_spill] sm:$0xff]  ;;  %v18495_v23 = vld [vmem:[#allocation12_spill] sm:$0xff] }
 0x402   : > { %7938 = vrot.lane.b32.xlu1 %v18458_v25, %s10259_s13  ;;  %v5738_v63 = vcombine.low %v18460_v24, %v18459_v57  ;;  %v7386_v20 = vcombine.low %v13611_v15, %v13597_v21  ;;  %v7131_v44 = vcombine.high %v12763_v7, %v12995_v30  ;;  %v13656_v28 = vrot.slane %v3035_v60, %v10800_v54  ;;  %v18471_v30 = vld [vmem:[#allocation235_spill] sm:$0xff]  ;;  %v18472_v7 = vld [vmem:[#allocation14_spill] sm:$0xff] }
 0x403   : > { %18455 = vst [vmem:[#allocation273_spill] sm:$0xff] %v13620_v34  ;;  %8166 = vrot.lane.b32.xlu0 %v18463_v35, %s10254_s29  ;;  %18464 = vst [vmem:[#allocation100_spill] sm:$0xff] %v13643_v32  ;;  %v18467_v35 = vld [vmem:[#allocation236_spill] sm:$0xff]  ;;  %v5466_v17 = vcombine.low %v18469_v43, %v18468_v8  ;;  %v7132_v15 = vcombine.low %v13378_v42, %v7113_v58  ;;  %v4107_v60 = vcombine.high %v18472_v7, %v18471_v30  ;;  %v18475_v9 = vld [vmem:[#allocation59_spill] sm:$0xff] }
 0x404   : > { %18465 = vst [vmem:[#allocation177_spill] sm:$0xff] %v13656_v28  ;;  %v3835_v25 = vcombine.high %v18467_v35, %v18466_v26  ;;  %18470 = vst [vmem:[#allocation126_spill] sm:$0xff] %v13664_v51  ;;  %v6338_v31 = vcombine.low %v18476_v22, %v18475_v9  ;;  %v7133_v26 = vcombine.high %v13378_v42, %v7113_v58  ;;  %v18477_v35 = vld [vmem:[#allocation127_spill] sm:$0xff]  ;;  %v18478_v51 = vld [vmem:[#allocation125_spill] sm:$0xff] }
 0x405   : > { %v18479_v38 = vcombine.low %v18477_v35, %v18478_v51  ;;  %v7134_v21 = vcombine.low %v13397_v39, %v13631_v59  ;;  %v13684_v7 = vrot.slane %v5738_v63, %v10800_v54  ;;  %v13696_v51 = vpop.permute.xlu1 %2062  ;;  %v18485_v35 = vld [vmem:[#allocation238_spill] sm:$0xff]  ;;  %v18486_v63 = vld [vmem:[#allocation29_spill] sm:$0xff]  ;;  %v6339_v12 = vcombine.high %v18476_v22, %v18475_v9  ;;  %v18490_v30 = vld [vmem:[#allocation239_spill] sm:$0xff] }
 0x406   : > { %8096 = vrot.lane.b32.xlu1 %v7131_v44, %s10255_s9  ;;  %v18481_v44 = vcombine.high %v18460_v24, %v18459_v57  ;;  %v3051_v4 = vcombine.high %v18486_v63, %v18485_v35  ;;  %v13706_v57 = vpop.permute.xlu0 %7588  ;;  %v18488_v24 = vld [vmem:[#allocation247_spill] sm:$0xff]  ;;  %v18492_v22 = vcombine.high %v18469_v43, %v18468_v8  ;;  %v13741_v43 = vrot.slane %v7386_v20, %v10800_v54  ;;  %v18503_v20 = vld [vmem:[#allocation242_spill] sm:$0xff]  ;;  %v18504_v63 = vld [vmem:[#allocation241_spill] sm:$0xff] }
 0x407   : > { %8310 = vrot.lane.b32.xlu0 %v18479_v38, %s10257_s11  ;;  %18480 = vst [vmem:[#allocation121_spill] sm:$0xff] %v13684_v7  ;;  %v7135_v38 = vcombine.high %v13397_v39, %v13631_v59  ;;  %18487 = vst [vmem:[#allocation236_spill] sm:$0xff] %v13706_v57  ;;  %v13715_v59 = vrot.slane %v6338_v31, %v10693_v62  ;;  %v18491_v35 = vld [vmem:[#allocation31_spill] sm:$0xff]  ;;  %v18494_v57 = vld [vmem:[#allocation16_spill] sm:$0xff] }
 0x408   : > { %v13692_v49 = vrot.slane %v18481_v44, %v10800_v54  ;;  %v18489_v44 = vld [vmem:[#allocation167_spill] sm:$0xff]  ;;  %v13724_v9 = vrot.slane %v18492_v22, %v10800_v54  ;;  %v18499_v31 = vld [vmem:[#allocation218_spill] sm:$0xff]  ;;  %18501 = vst [vmem:[#allocation14_spill] sm:$0xff] %v13741_v43  ;;  %v18526_v7 = vld [vmem:[#allocation193_spill] sm:$0xff] }
 0x409   : > { %v7136_v32 = vcombine.low %v18489_v44, %v18488_v24  ;;  %v18496_v24 = vcombine.high %v18494_v57, %v18495_v23  ;;  %v18498_v39 = vld [vmem:[#allocation71_spill] sm:$0xff]  ;;  %v13743_v8 = vpop.permute.xlu1 %2158  ;;  %v18505_v57 = vld [vmem:[#allocation197_spill] sm:$0xff]  ;;  %v18513_v23 = vld [vmem:[#allocation194_spill] sm:$0xff]  ;;  %v6658_v28 = vcombine.low %v18527_v36, %v18526_v7 }
 0x40a   : > { %18482 = vst [vmem:[#allocation179_spill] sm:$0xff] %v13692_v49  ;;  %8168 = vrot.lane.b32.xlu1 %v7132_v15, %s10254_s29  ;;  %18493 = vst [vmem:[#allocation99_spill] sm:$0xff] %v13724_v9  ;;  %v7155_v49 = vcombine.high %v18499_v31, %v18498_v39  ;;  %v13736_v15 = vrot.slane %v5466_v17, %v10800_v54  ;;  %v6353_v39 = vrot.slane %v6339_v12, %v10693_v62  ;;  %v13754_v31 = vpop.permute.xlu0 %7636  ;;  %v18507_v22 = vld [vmem:[#allocation243_spill] sm:$0xff]  ;;  %v18515_v9 = vld [vmem:[#allocation58_spill] sm:$0xff] }
 0x40b   : > { %v13730_v44 = vrot.slane %v18496_v24, %v10800_v54  ;;  %8240 = vrot.lane.b32.xlu0 %v7133_v26, %s10256_s10  ;;  %18502 = vst [vmem:[#allocation59_spill] sm:$0xff] %v13754_v31  ;;  %v13761_v24 = vrot.slane %v7370_v27, %v10800_v54  ;;  %v18508_v26 = vld [vmem:[#allocation248_spill] sm:$0xff]  ;;  %v13767_v17 = vrot.slane %v3291_v33, %v10800_v54  ;;  %v18510_v48 = vld [vmem:[#allocation187_spill] sm:$0xff] }
 0x40c   : > { %18500 = vst [vmem:[#allocation235_spill] sm:$0xff] %v13736_v15  ;;  %v13770_v12 = vrot.slane %v3835_v25, %v10800_v54  ;;  %v18509_v31 = vld [vmem:[#allocation148_spill] sm:$0xff]  ;;  %v6387_v41 = vcombine.high %v18515_v9, %v13715_v59  ;;  %v18518_v25 = vld [vmem:[#allocation211_spill] sm:$0xff] }
 0x40d   : > { %18497 = vst [vmem:[#allocation7_spill] sm:$0xff] %v13730_v44  ;;  %18506 = vst [vmem:[#allocation202_spill] sm:$0xff] %v13761_v24  ;;  %v18511_v44 = vcombine.high %v18509_v31, %v18510_v48  ;;  %v18514_v27 = vld [vmem:[#allocation228_spill] sm:$0xff]  ;;  %v2295_v31 = vpop.permute.xlu1 %2294  ;;  %v18520_v43 = vcombine.high %v18518_v25, %v18519_v14  ;;  %v18531_v15 = vld [vmem:[#allocation231_spill] sm:$0xff] }
 0x40e   : > { %8312 = vrot.lane.b32.xlu1 %v7134_v21, %s10257_s11  ;;  %v6611_v56 = vcombine.high %v18514_v27, %v18513_v23  ;;  %v13782_v21 = vrot.slane %v4107_v60, %v10800_v54  ;;  %v18516_v60 = vld [vmem:[#allocation110_spill] sm:$0xff]  ;;  %v13797_v33 = vpop.permute.xlu0 %7648  ;;  %v6386_v23 = vcombine.low %v18515_v9, %v13715_v59  ;;  %v18528_v9 = vld [vmem:[#allocation64_spill] sm:$0xff]  ;;  %v7427_v24 = vcombine.high %v18531_v15, %v18530_v3 }
 0x40f   : > { %v13776_v46 = vrot.slane %v18511_v44, %v10800_v54  ;;  %8384 = vrot.lane.b32.xlu0 %v7135_v38, %s10258_s12  ;;  %v7169_v44 = vrot.slane %v7155_v49, %v10693_v62  ;;  %v6402_v27 = vcombine.low %v18516_v60, %v6353_v39  ;;  %v6403_v48 = vcombine.high %v18516_v60, %v6353_v39  ;;  %v18522_v38 = vld [vmem:[#allocation245_spill] sm:$0xff]  ;;  %v18524_v39 = vld [vmem:[#allocation246_spill] sm:$0xff] }
 0x410   : > { %18517 = vst [vmem:[#allocation125_spill] sm:$0xff] %v13797_v33  ;;  %v13803_v11 = vrot.slane %v18520_v43, %v10800_v54  ;;  %v18525_v60 = vld [vmem:[#allocation250_spill] sm:$0xff]  ;;  %v6625_v43 = vrot.slane %v6611_v56, %v10693_v62  ;;  %v7202_v49 = vcombine.low %v18528_v9, %v13302_v40  ;;  %v18529_v33 = vld [vmem:[#allocation28_spill] sm:$0xff]  ;;  %v13835_v59 = vrot.slane %v6387_v41, %v10800_v54 }
 0x411   : > { %18512 = vst [vmem:[#allocation127_spill] sm:$0xff] %v13776_v46  ;;  %v18523_v46 = vld [vmem:[#allocation249_spill] sm:$0xff]  ;;  %v7218_v19 = vcombine.low %v18529_v33, %v7169_v44  ;;  %v2391_v56 = vpop.permute.xlu1 %2390  ;;  %v6370_v34 = vcombine.low %v13498_v5, %v2295_v31  ;;  %v13847_v25 = vrot.slane %v6386_v23, %v10800_v54  ;;  %v13860_v42 = vrot.slane %v7427_v24, %v10693_v62 }
 0x412   : > { %18521 = vst [vmem:[#allocation71_spill] sm:$0xff] %v13803_v11  ;;  %8456 = vrot.lane.b32.xlu1 %v7136_v32, %s10259_s13  ;;  %v13832_v14 = vpop.permute.xlu0 %7660  ;;  %18533 = vst [vmem:[#allocation197_spill] sm:$0xff] %v13835_v59  ;;  %v13838_v32 = vrot.slane %v6402_v27, %v10800_v54  ;;  %v13841_v11 = vrot.slane %v6403_v48, %v10800_v54  ;;  %v6642_v3 = vcombine.low %v13545_v52, %v2391_v56  ;;  %v18684_v59 = vld [vmem:[#allocation233_spill] sm:$0xff] }
 0x413   : > { %7568 = vrot.lane.b32.xlu0 %v3051_v4, %s10255_s9  ;;  %v7219_v4 = vcombine.high %v18529_v33, %v7169_v44  ;;  %18532 = vst [vmem:[#allocation218_spill] sm:$0xff] %v13832_v14  ;;  %v6643_v15 = vcombine.high %v13545_v52, %v2391_v56  ;;  %18536 = vst [vmem:[#allocation58_spill] sm:$0xff] %v13847_v25  ;;  %v18537_v33 = vld [vmem:[#allocation117_spill] sm:$0xff]  ;;  %v6371_v14 = vcombine.high %v13498_v5, %v2295_v31  ;;  %v18543_v5 = vld [vmem:[#allocation251_spill] sm:$0xff] }
 0x414   : > { %18534 = vst [vmem:[#allocation194_spill] sm:$0xff] %v13838_v32  ;;  %18535 = vst [vmem:[#allocation228_spill] sm:$0xff] %v13841_v11  ;;  %v6674_v44 = vcombine.low %v18537_v33, %v6625_v43  ;;  %v6675_v41 = vcombine.high %v18537_v33, %v6625_v43  ;;  %v18538_v48 = vcombine.high %v18491_v35, %v18490_v30  ;;  %v18546_v30 = vld [vmem:[#allocation137_spill] sm:$0xff]  ;;  %v18681_v11 = vld [vmem:[#allocation30_spill] sm:$0xff] }
 0x415   : > { %v13857_v27 = vrot.slane %v6658_v28, %v10800_v54  ;;  %18540 = vst [vmem:[#allocation193_spill] sm:$0xff] %v13860_v42  ;;  %v6650_v52 = vrot.slane %v6642_v3, %v10693_v62  ;;  %v2519_v23 = vpop.permute.xlu1 %2518  ;;  %v13864_v56 = vrot.slane %v7202_v49, %v10800_v54  ;;  %v13867_v43 = vrot.slane %v7218_v19, %v10800_v54  ;;  %v18554_v31 = vld [vmem:[#allocation37_spill] sm:$0xff] }
 0x416   : > { %v7186_v33 = vcombine.low %v13599_v0, %v2519_v23  ;;  %v7187_v28 = vcombine.high %v13599_v0, %v2519_v23  ;;  %v13876_v24 = vrot.slane %v7219_v4, %v10800_v54  ;;  %v13879_v3 = vrot.slane %v6370_v34, %v10693_v62 }
 0x417   : > { %7572 = vrot.lane.b32.xlu0 %v18538_v48, %s10255_s9  ;;  %18539 = vst [vmem:[#allocation110_spill] sm:$0xff] %v13857_v27  ;;  %18541 = vst [vmem:[#allocation21_spill] sm:$0xff] %v13864_v56  ;;  %v13873_v48 = vpop.permute.xlu0 %7708  ;;  %v6657_v49 = vrot.slane %v6643_v15, %v10693_v62  ;;  %v6690_v19 = vcombine.low %v18546_v30, %v6650_v52  ;;  %v6691_v35 = vcombine.high %v18546_v30, %v6650_v52 }
 0x418   : > { %18542 = vst [vmem:[#allocation64_spill] sm:$0xff] %v13867_v43  ;;  %18544 = vst [vmem:[#allocation28_spill] sm:$0xff] %v13873_v48  ;;  %v6385_v58 = vrot.slane %v6371_v14, %v10693_v62  ;;  %v7194_v0 = vrot.slane %v7186_v33, %v10693_v62  ;;  %v7201_v23 = vrot.slane %v7187_v28, %v10693_v62 }
 0x419   : > { %18545 = vst [vmem:[#allocation97_spill] sm:$0xff] %v13876_v24  ;;  %v18547_v34 = vcombine.high %v18504_v63, %v18503_v20  ;;  %v2615_v4 = vpop.permute.xlu1 %2614  ;;  %v13894_v15 = vrot.slane %v6690_v19, %v10800_v54  ;;  %v18549_v30 = vcombine.high %v18528_v9, %v13302_v40  ;;  %v18551_v14 = vcombine.high %v18527_v36, %v18526_v7  ;;  %v18557_v9 = vld [vmem:[#allocation55_spill] sm:$0xff]  ;;  %v18558_v36 = vld [vmem:[#allocation109_spill] sm:$0xff]  ;;  %v18560_v63 = vld [vmem:[#allocation130_spill] sm:$0xff] }
 0x41a   : > { %v13909_v28 = vrot.slane %v6691_v35, %v10800_v54  ;;  %v7235_v19 = vcombine.high %v13389_v29, %v7194_v0  ;;  %v7250_v48 = vcombine.low %v18554_v31, %v7201_v23  ;;  %v13917_v40 = vrot.slane %v6674_v44, %v10800_v54 }
 0x41b   : > { %7580 = vrot.lane.b32.xlu0 %v18547_v34, %s10255_s9  ;;  %18548 = vst [vmem:[#allocation231_spill] sm:$0xff] %v13894_v15  ;;  %v13900_v52 = vrot.slane %v18549_v30, %v10800_v54  ;;  %v13906_v33 = vrot.slane %v18551_v14, %v10800_v54  ;;  %v7234_v34 = vcombine.low %v13389_v29, %v7194_v0  ;;  %v13914_v20 = vpop.permute.xlu0 %7720 }
 0x41c   : > { %18553 = vst [vmem:[#allocation137_spill] sm:$0xff] %v13909_v28  ;;  %18555 = vst [vmem:[#allocation37_spill] sm:$0xff] %v13914_v20  ;;  %v6419_v30 = vcombine.high %v18557_v9, %v13879_v3  ;;  %v6706_v7 = vcombine.low %v18558_v36, %v6657_v49  ;;  %v7458_v14 = vcombine.low %v13651_v18, %v2615_v4 }
 0x41d   : > { %18550 = vst [vmem:[#allocation117_spill] sm:$0xff] %v13900_v52  ;;  %18552 = vst [vmem:[#allocation251_spill] sm:$0xff] %v13906_v33  ;;  %v13924_v35 = vrot.slane %v6675_v41, %v10800_v54  ;;  %v6434_v13 = vcombine.low %v18560_v63, %v6385_v58  ;;  %v6707_v29 = vcombine.high %v18558_v36, %v6657_v49  ;;  %v2071_v10 = vpop.permute.xlu1 %2070 }
 0x41e   : > { %18556 = vst [vmem:[#allocation274_spill] sm:$0xff] %v13917_v40  ;;  %v7251_v0 = vcombine.high %v18554_v31, %v7201_v23  ;;  %v18561_v44 = vcombine.high %v18508_v26, %v18507_v22  ;;  %v13934_v20 = vrot.slane %v7234_v34, %v10800_v54  ;;  %v13937_v47 = vrot.slane %v7458_v14, %v10693_v62  ;;  %v18566_v22 = vld [vmem:[#allocation259_spill] sm:$0xff]  ;;  %v18686_v40 = vld [vmem:[#allocation184_spill] sm:$0xff] }
 0x41f   : > { %18559 = vst [vmem:[#allocation55_spill] sm:$0xff] %v13924_v35  ;;  %v13940_v41 = vrot.slane %v7235_v19, %v10800_v54  ;;  %v5554_v23 = vcombine.low %v13696_v51, %v2071_v10  ;;  %v5555_v36 = vcombine.high %v13696_v51, %v2071_v10  ;;  %v13953_v14 = vrot.slane %v7250_v48, %v10800_v54 }
 0x420   : > { %7584 = vrot.lane.b32.xlu0 %v18561_v44, %s10255_s9  ;;  %18562 = vst [vmem:[#allocation109_spill] sm:$0xff] %v13934_v20  ;;  %v13948_v44 = vpop.permute.xlu0 %7732  ;;  %v7267_v34 = vcombine.high %v13864_v56, %v13934_v20  ;;  %v6435_v19 = vcombine.high %v18560_v63, %v6385_v58  ;;  %v13959_v26 = vrot.slane %v6706_v7, %v10800_v54  ;;  %v18676_v56 = vld [vmem:[#allocation82_spill] sm:$0xff] }
 0x421   : > { %18563 = vst [vmem:[#allocation130_spill] sm:$0xff] %v13940_v41  ;;  %18564 = vst [vmem:[#allocation275_spill] sm:$0xff] %v13948_v44  ;;  %v13962_v31 = vrot.slane %v6419_v30, %v10800_v54  ;;  %v5562_v10 = vrot.slane %v5554_v23, %v10693_v62  ;;  %v13966_v51 = vrot.slane %v5555_v36, %v10693_v62  ;;  %v2167_v7 = vpop.permute.xlu1 %2166 }
 0x422   : > { %18565 = vst [vmem:[#allocation276_spill] sm:$0xff] %v13953_v14  ;;  %18567 = vst [vmem:[#allocation259_spill] sm:$0xff] %v13959_v26  ;;  %v18570_v48 = vcombine.high %v18523_v46, %v18522_v38  ;;  %8098 = vrot.lane.b32.xlu1 %v7267_v34, %s10255_s9  ;;  %v13974_v58 = vrot.slane %v7251_v0, %v10800_v54  ;;  %v7459_v63 = vcombine.high %v13651_v18, %v2615_v4  ;;  %v18687_v26 = vld [vmem:[#allocation101_spill] sm:$0xff] }
 0x423   : > { %18568 = vst [vmem:[#allocation277_spill] sm:$0xff] %v13962_v31  ;;  %18569 = vst [vmem:[#allocation278_spill] sm:$0xff] %v13966_v51  ;;  %v5603_v49 = vcombine.high %v13490_v53, %v5562_v10  ;;  %v5619_v34 = vcombine.high %v13501_v37, %v13966_v51  ;;  %v7271_v18 = vcombine.high %v13867_v43, %v13953_v14  ;;  %v18685_v31 = vld [vmem:[#allocation136_spill] sm:$0xff]  ;;  %v18702_v43 = vld [vmem:[#allocation205_spill] sm:$0xff] }
 0x424   : > { %7592 = vrot.lane.b32.xlu0 %v18570_v48, %s10255_s9  ;;  %18571 = vst [vmem:[#allocation279_spill] sm:$0xff] %v13974_v58  ;;  %v13986_v48 = vpop.permute.xlu0 %7780  ;;  %v13991_v4 = vrot.slane %v6707_v29, %v10800_v54  ;;  %v6418_v0 = vcombine.low %v18557_v9, %v13879_v3  ;;  %v5826_v30 = vcombine.low %v13743_v8, %v2167_v7 }
 0x425   : > { %18572 = vst [vmem:[#allocation280_spill] sm:$0xff] %v13986_v48  ;;  %v5827_v36 = vcombine.high %v13743_v8, %v2167_v7  ;;  %v18574_v48 = vcombine.high %v18525_v60, %v18524_v39  ;;  %v14007_v44 = vrot.slane %v6434_v13, %v10800_v54  ;;  %v14010_v3 = vrot.slane %v6435_v19, %v10800_v54  ;;  %v18580_v39 = vld [vmem:[#allocation252_spill] sm:$0xff]  ;;  %v18582_v19 = vld [vmem:[#allocation181_spill] sm:$0xff] }
 0x426   : > { %18573 = vst [vmem:[#allocation281_spill] sm:$0xff] %v13991_v4  ;;  %8386 = vrot.lane.b32.xlu1 %v7271_v18, %s10258_s12  ;;  %v14013_v8 = vrot.slane %v7459_v63, %v10693_v62  ;;  %v5834_v9 = vrot.slane %v5826_v30, %v10693_v62  ;;  %v7273_v13 = vcombine.high %v13876_v24, %v13974_v58  ;;  %v18695_v58 = vld [vmem:[#allocation211_spill] sm:$0xff] }
 0x427   : > { %18575 = vst [vmem:[#allocation282_spill] sm:$0xff] %v14007_v44  ;;  %18576 = vst [vmem:[#allocation283_spill] sm:$0xff] %v14010_v3  ;;  %v14017_v7 = vrot.slane %v5827_v36, %v10693_v62  ;;  %v5602_v36 = vcombine.low %v13490_v53, %v5562_v10  ;;  %v7490_v60 = vcombine.low %v18580_v39, %v13860_v42  ;;  %v18683_v44 = vld [vmem:[#allocation203_spill] sm:$0xff] }
 0x428   : > { %7596 = vrot.lane.b32.xlu0 %v18574_v48, %s10255_s9  ;;  %18577 = vst [vmem:[#allocation284_spill] sm:$0xff] %v14013_v8  ;;  %v14021_v18 = vpop.permute.xlu0 %7792  ;;  %v5874_v29 = vcombine.low %v13577_v2, %v5834_v9  ;;  %v5875_v48 = vcombine.high %v13577_v2, %v5834_v9  ;;  %v18583_v63 = vcombine.low %v18505_v57, %v13634_v61 }
 0x429   : > { %18578 = vst [vmem:[#allocation285_spill] sm:$0xff] %v14017_v7  ;;  %18579 = vst [vmem:[#allocation286_spill] sm:$0xff] %v14021_v18  ;;  %v5891_v23 = vcombine.high %v13608_v16, %v14017_v7  ;;  %v18581_v18 = vld [vmem:[#allocation85_spill] sm:$0xff]  ;;  %v6723_v2 = vcombine.high %v13857_v27, %v13894_v15  ;;  %v14050_v10 = vrot.slane %v6418_v0, %v10800_v54  ;;  %v18673_v7 = vld [vmem:[#allocation174_spill] sm:$0xff] }
 0x42a   : > { %v5570_v38 = vcombine.low %v18582_v19, %v18581_v18  ;;  %8530 = vrot.lane.b32.xlu1 %v7273_v13, %s10260_s14  ;;  %v18585_v30 = vcombine.high %v13208_v6, %v13458_v1  ;;  %v18587_v13 = vld [vmem:[#allocation260_spill] sm:$0xff]  ;;  %v14065_v53 = vrot.slane %v5874_v29, %v10800_v54  ;;  %v14068_v0 = vrot.slane %v5875_v48, %v10800_v54  ;;  %v18672_v16 = vld [vmem:[#allocation157_spill] sm:$0xff] }
 0x42b   : > { %18584 = vst [vmem:[#allocation85_spill] sm:$0xff] %v14050_v10  ;;  %v7522_v39 = vcombine.low %v18587_v13, %v14013_v8  ;;  %v14071_v15 = vrot.slane %v5603_v49, %v10800_v54  ;;  %v7506_v9 = vcombine.low %v18566_v22, %v13937_v47  ;;  %v14082_v13 = vrot.slane %v5602_v36, %v10800_v54  ;;  %v18599_v36 = vld [vmem:[#allocation185_spill] sm:$0xff]  ;;  %v18680_v10 = vld [vmem:[#allocation68_spill] sm:$0xff] }
 0x42c   : > { %7640 = vrot.lane.b32.xlu0 %v18583_v63, %s10254_s29  ;;  %v14058_v63 = vrot.slane %v18585_v30, %v10800_v54  ;;  %v14062_v42 = vpop.permute.xlu0 %7804  ;;  %18589 = vst [vmem:[#allocation288_spill] sm:$0xff] %v14065_v53  ;;  %18590 = vst [vmem:[#allocation289_spill] sm:$0xff] %v14068_v0  ;;  %v18592_v30 = vcombine.low %v13208_v6, %v13458_v1  ;;  %v18595_v29 = vcombine.high %v18582_v19, %v18581_v18  ;;  %v18632_v19 = vld [vmem:[#allocation88_spill] sm:$0xff]  ;;  %v18661_v0 = vld [vmem:[#allocation234_spill] sm:$0xff] }
 0x42d   : > { %18588 = vst [vmem:[#allocation287_spill] sm:$0xff] %v14062_v42  ;;  %18591 = vst [vmem:[#allocation290_spill] sm:$0xff] %v14071_v15  ;;  %v18597_v49 = vcombine.low %v13362_v45, %v13767_v17  ;;  %v14096_v6 = vrot.slane %v5570_v38, %v10800_v54  ;;  %v14113_v38 = vrot.slane %v7490_v60, %v10800_v54  ;;  %v18608_v60 = vld [vmem:[#allocation145_spill] sm:$0xff] }
 0x42e   : > { %18586 = vst [vmem:[#allocation181_spill] sm:$0xff] %v14058_v63  ;;  %v14079_v27 = vrot.slane %v18592_v30, %v10800_v54  ;;  %18594 = vst [vmem:[#allocation292_spill] sm:$0xff] %v14082_v13  ;;  %v14088_v48 = vrot.slane %v18595_v29, %v10800_v54  ;;  %8090 = vrot.lane.b32.xlu1 %v6723_v2, %s10255_s9  ;;  %v18600_v30 = vld [vmem:[#allocation263_spill] sm:$0xff]  ;;  %v14118_v1 = vrot.slane %v5891_v23, %v10800_v54  ;;  %v18609_v2 = vld [vmem:[#allocation208_spill] sm:$0xff] }
 0x42f   : > { %18598 = vst [vmem:[#allocation294_spill] sm:$0xff] %v14096_v6  ;;  %v18601_v8 = vcombine.high %v18599_v36, %v18600_v30  ;;  %18603 = vst [vmem:[#allocation296_spill] sm:$0xff] %v14113_v38  ;;  %v14125_v42 = vrot.slane %v7522_v39, %v10800_v54  ;;  %v14128_v29 = vrot.slane %v7506_v9, %v10800_v54  ;;  %v18628_v38 = vld [vmem:[#allocation138_spill] sm:$0xff]  ;;  %v18667_v13 = vld [vmem:[#allocation135_spill] sm:$0xff] }
 0x430   : > { %18593 = vst [vmem:[#allocation291_spill] sm:$0xff] %v14079_v27  ;;  %18596 = vst [vmem:[#allocation293_spill] sm:$0xff] %v14088_v48  ;;  %7644 = vrot.lane.b32.xlu0 %v18597_v49, %s10254_s29  ;;  %v14115_v49 = vpop.permute.xlu0 %7852  ;;  %v18610_v46 = vcombine.high %v18608_v60, %v18609_v2  ;;  %v14137_v23 = vrot.slane %v5619_v34, %v10800_v54  ;;  %v18613_v39 = vcombine.low %v13408_v50, %v13770_v12  ;;  %v18623_v48 = vld [vmem:[#allocation106_spill] sm:$0xff]  ;;  %v18663_v2 = vld [vmem:[#allocation244_spill] sm:$0xff] }
 0x431   : > { %v14104_v18 = vrot.slane %v18601_v8, %v10800_v54  ;;  %18604 = vst [vmem:[#allocation297_spill] sm:$0xff] %v14115_v49  ;;  %18605 = vst [vmem:[#allocation298_spill] sm:$0xff] %v14118_v1  ;;  %v18616_v8 = vcombine.high %v18566_v22, %v13937_v47  ;;  %v18621_v47 = vld [vmem:[#allocation261_spill] sm:$0xff]  ;;  %v14185_v1 = vpop.permute.xlu1 %8094  ;;  %v18662_v60 = vld [vmem:[#allocation230_spill] sm:$0xff]  ;;  %v4690_v3 = vcombine.low %v18681_v11, %v18680_v10 }
 0x432   : > { %18606 = vst [vmem:[#allocation299_spill] sm:$0xff] %v14125_v42  ;;  %18607 = vst [vmem:[#allocation300_spill] sm:$0xff] %v14128_v29  ;;  %v14134_v49 = vrot.slane %v18610_v46, %v10800_v54  ;;  %v18614_v46 = vcombine.high %v18543_v5, %v13337_v55  ;;  %v4140_v22 = vcombine.low %v18621_v47, %v13782_v21  ;;  %v18668_v36 = vld [vmem:[#allocation22_spill] sm:$0xff]  ;;  %v18678_v53 = vld [vmem:[#allocation201_spill] sm:$0xff] }
 0x433   : > { %18602 = vst [vmem:[#allocation295_spill] sm:$0xff] %v14104_v18  ;;  %18612 = vst [vmem:[#allocation302_spill] sm:$0xff] %v14137_v23  ;;  %v14159_v15 = vrot.slane %v18616_v8, %v10800_v54  ;;  %v18622_v8 = vld [vmem:[#allocation224_spill] sm:$0xff]  ;;  %v18627_v23 = vld [vmem:[#allocation113_spill] sm:$0xff]  ;;  %v3818_v30 = vcombine.low %v18668_v36, %v18667_v13  ;;  %v4122_v13 = vcombine.low %v18673_v7, %v18672_v16 }
 0x434   : > { %18611 = vst [vmem:[#allocation301_spill] sm:$0xff] %v14134_v49  ;;  %7652 = vrot.lane.b32.xlu0 %v18613_v39, %s10254_s29  ;;  %v14153_v34 = vrot.slane %v18614_v46, %v10800_v54  ;;  %v18618_v39 = vcombine.low %v18543_v5, %v13337_v55  ;;  %v14173_v18 = vpop.permute.xlu0 %7864  ;;  %v18624_v55 = vcombine.high %v18622_v8, %v18623_v48  ;;  %18625 = vst [vmem:[#allocation261_spill] sm:$0xff] %v14185_v1  ;;  %v18629_v48 = vld [vmem:[#allocation190_spill] sm:$0xff]  ;;  %v18674_v36 = vld [vmem:[#allocation256_spill] sm:$0xff] }
 0x435   : > { %18617 = vst [vmem:[#allocation304_spill] sm:$0xff] %v14159_v15  ;;  %18620 = vst [vmem:[#allocation306_spill] sm:$0xff] %v14173_v18  ;;  %v18626_v18 = vld [vmem:[#allocation168_spill] sm:$0xff]  ;;  %v18630_v8 = vcombine.high %v18628_v38, %v18629_v48  ;;  %v3053_v48 = vcombine.high %v18505_v57, %v13634_v61  ;;  %v4141_v57 = vcombine.high %v18621_v47, %v13782_v21  ;;  %v18703_v11 = vld [vmem:[#allocation70_spill] sm:$0xff] }
 0x436   : > { %18615 = vst [vmem:[#allocation303_spill] sm:$0xff] %v14153_v34  ;;  %v14165_v9 = vrot.slane %v18618_v39, %v10800_v54  ;;  %v4665_v5 = vrot.slane %v18624_v55, %v10800_v54  ;;  %v4891_v49 = vcombine.high %v18627_v23, %v18626_v18  ;;  %v18633_v15 = vld [vmem:[#allocation96_spill] sm:$0xff]  ;;  %v14204_v18 = vpop.permute.xlu1 %8238  ;;  %v14333_v4 = vrot.slane %v3818_v30, %v10800_v54 }
 0x437   : > { %v4633_v55 = vrot.slane %v18630_v8, %v10800_v54  ;;  %v18634_v34 = vcombine.high %v18632_v19, %v18633_v15  ;;  %18635 = vst [vmem:[#allocation106_spill] sm:$0xff] %v14204_v18  ;;  %v3325_v19 = vcombine.high %v13362_v45, %v13767_v17  ;;  %v18641_v45 = vld [vmem:[#allocation62_spill] sm:$0xff]  ;;  %v18642_v17 = vld [vmem:[#allocation232_spill] sm:$0xff]  ;;  %v3890_v28 = vcombine.low %v18687_v26, %v18686_v40 }
 0x438   : > { %18619 = vst [vmem:[#allocation305_spill] sm:$0xff] %v14165_v9  ;;  %7656 = vrot.lane.b32.xlu0 %v4140_v22, %s10254_s29  ;;  %v14196_v42 = vpop.permute.xlu0 %7876  ;;  %v4905_v46 = vrot.slane %v4891_v49, %v10800_v54 }
 0x439   : > { %18631 = vst [vmem:[#allocation224_spill] sm:$0xff] %v14196_v42  ;;  %v4684_v39 = vcombine.low %v4633_v55, %v4665_v5  ;;  %v4937_v1 = vrot.slane %v18634_v34, %v10800_v54  ;;  %v18648_v42 = vld [vmem:[#allocation90_spill] sm:$0xff] }
 0x43a   : > { %v14213_v8 = vpop.permute.xlu1 %8382 }
 0x43b   : > { %v4956_v22 = vcombine.low %v4905_v46, %v4937_v1  ;;  %18638 = vst [vmem:[#allocation138_spill] sm:$0xff] %v14213_v8  ;;  %v18657_v8 = vld [vmem:[#allocation166_spill] sm:$0xff] }
 0x43c   : > { %7664 = vrot.lane.b32.xlu0 %v4684_v39, %s10254_s29  ;;  %v14206_v23 = vpop.permute.xlu0 %7924  ;;  %v3869_v39 = vcombine.high %v13408_v50, %v13770_v12 }
 0x43d   : > { %18636 = vst [vmem:[#allocation168_spill] sm:$0xff] %v14206_v23  ;;  %v4685_v23 = vcombine.high %v4633_v55, %v4665_v5  ;;  %v18652_v5 = vld [vmem:[#allocation255_spill] sm:$0xff]  ;;  %v18653_v55 = vld [vmem:[#allocation118_spill] sm:$0xff] }
 0x43e   : > { %v14221_v49 = vpop.permute.xlu1 %7566  ;;  %v3274_v29 = vcombine.low %v18653_v55, %v18652_v5  ;;  %v3850_v5 = vcombine.low %v18663_v2, %v18662_v60  ;;  %v18665_v2 = vld [vmem:[#allocation196_spill] sm:$0xff]  ;;  %v18666_v60 = vld [vmem:[#allocation183_spill] sm:$0xff] }
 0x43f   : > { %18639 = vst [vmem:[#allocation190_spill] sm:$0xff] %v14221_v49  ;;  %v18644_v49 = vld [vmem:[#allocation198_spill] sm:$0xff]  ;;  %v3090_v6 = vcombine.low %v18666_v60, %v18665_v2 }
 0x440   : > { %7668 = vrot.lane.b32.xlu0 %v4956_v22, %s10254_s29  ;;  %v14209_v38 = vpop.permute.xlu0 %7936 }
 0x441   : > { %18637 = vst [vmem:[#allocation113_spill] sm:$0xff] %v14209_v38  ;;  %v18645_v38 = vld [vmem:[#allocation188_spill] sm:$0xff]  ;;  %v14327_v32 = vrot.slane %v3090_v6, %v10693_v62 }
 0x442   : > { %v14232_v22 = vpop.permute.xlu1 %7578  ;;  %v3002_v50 = vcombine.low %v18645_v38, %v18644_v49  ;;  %v18654_v38 = vld [vmem:[#allocation46_spill] sm:$0xff] }
 0x443   : > { %18640 = vst [vmem:[#allocation88_spill] sm:$0xff] %v14232_v22  ;;  %v4957_v22 = vcombine.high %v4905_v46, %v4937_v1  ;;  %v18655_v49 = vld [vmem:[#allocation154_spill] sm:$0xff]  ;;  %v18658_v46 = vld [vmem:[#allocation63_spill] sm:$0xff] }
 0x444   : > { %7712 = vrot.lane.b32.xlu0 %v3053_v48, %s10256_s10  ;;  %v14216_v15 = vpop.permute.xlu0 %2060  ;;  %v3034_v48 = vcombine.low %v18642_v17, %v18641_v45  ;;  %v18650_v45 = vld [vmem:[#allocation172_spill] sm:$0xff]  ;;  %v18651_v17 = vld [vmem:[#allocation43_spill] sm:$0xff] }
 0x445   : > { %v3058_v9 = vcombine.low %v18651_v17, %v18650_v45 }
 0x446   : > { %v14242_v12 = vpop.permute.xlu1 %7590 }
 0x447   : > { %18646 = vst [vmem:[#allocation62_spill] sm:$0xff] %v14242_v12  ;;  %v18660_v12 = vld [vmem:[#allocation38_spill] sm:$0xff] }
 0x448   : > { %7716 = vrot.lane.b32.xlu0 %v3325_v19, %s10256_s10  ;;  %v14223_v34 = vpop.permute.xlu0 %2156  ;;  %v3074_v63 = vcombine.low %v18661_v0, %v18660_v12 }
 0x44a   : > { %v14281_v37 = vpop.permute.xlu1 %7638  ;;  %v14303_v51 = vrot.slane %v3074_v63, %v10693_v62  ;;  %v18679_v63 = vld [vmem:[#allocation189_spill] sm:$0xff] }
 0x44b   : > { %18664 = vst [vmem:[#allocation198_spill] sm:$0xff] %v14281_v37  ;;  %v3906_v25 = vcombine.low %v18679_v63, %v18678_v53  ;;  %v3907_v16 = vcombine.high %v18679_v63, %v18678_v53  ;;  %v4666_v53 = vcombine.low %v18685_v31, %v18684_v59  ;;  %v14356_v31 = vrot.slane %v4122_v13, %v10800_v54 }
 0x44c   : > { %7724 = vrot.lane.b32.xlu0 %v3869_v39, %s10256_s10  ;;  %v14228_v61 = vpop.permute.xlu0 %2284  ;;  %v18647_v39 = vld [vmem:[#allocation225_spill] sm:$0xff] }
 0x44d   : > { %v3306_v21 = vcombine.low %v18648_v42, %v18647_v39  ;;  %v3330_v42 = vcombine.low %v18655_v49, %v18654_v38  ;;  %v18656_v39 = vld [vmem:[#allocation175_spill] sm:$0xff]  ;;  %v14362_v40 = vrot.slane %v3906_v25, %v10693_v62 }
 0x44e   : > { %v3874_v1 = vcombine.low %v18657_v8, %v18656_v39  ;;  %v14279_v39 = vrot.slane %v3058_v9, %v10693_v62  ;;  %v14341_v33 = vpop.permute.xlu1 %7650 }
 0x44f   : > { %v14294_v8 = vrot.slane %v3330_v42, %v10693_v62  ;;  %18688 = vst [vmem:[#allocation172_spill] sm:$0xff] %v14341_v33 }
 0x450   : > { %7728 = vrot.lane.b32.xlu0 %v4141_v57, %s10256_s10  ;;  %v14237_v19 = vpop.permute.xlu0 %2380  ;;  %v14249_v57 = vrot.slane %v3034_v48, %v10800_v54  ;;  %v18659_v48 = vld [vmem:[#allocation27_spill] sm:$0xff]  ;;  %v14297_v9 = vrot.slane %v3874_v1, %v10693_v62  ;;  %v14314_v1 = vrot.slane %v3850_v5, %v10800_v54  ;;  %v18682_v5 = vld [vmem:[#allocation204_spill] sm:$0xff]  ;;  %v3122_v63 = vcombine.low %v14279_v39, %v14303_v51 }
 0x451   : > { %18643 = vst [vmem:[#allocation96_spill] sm:$0xff] %v14237_v19  ;;  %v4146_v18 = vcombine.low %v18659_v48, %v18658_v46  ;;  %18669 = vst [vmem:[#allocation188_spill] sm:$0xff] %v14294_v8  ;;  %v4090_v35 = vcombine.low %v18683_v44, %v18682_v5  ;;  %v18689_v44 = vld [vmem:[#allocation180_spill] sm:$0xff]  ;;  %v18690_v5 = vld [vmem:[#allocation171_spill] sm:$0xff] }
 0x452   : > { %18670 = vst [vmem:[#allocation225_spill] sm:$0xff] %v14297_v9  ;;  %v3870_v59 = vcombine.low %v14333_v4, %v14314_v1  ;;  %v18694_v46 = vld [vmem:[#allocation178_spill] sm:$0xff]  ;;  %v14402_v10 = vpop.permute.xlu1 %7662 }
 0x453   : > { %v14300_v37 = vrot.slane %v4146_v18, %v10693_v62  ;;  %v18677_v18 = vld [vmem:[#allocation78_spill] sm:$0xff]  ;;  %v4938_v24 = vcombine.low %v18695_v58, %v18694_v46  ;;  %v14377_v25 = vrot.slane %v4090_v35, %v10800_v54  ;;  %v18700_v46 = vld [vmem:[#allocation199_spill] sm:$0xff]  ;;  %18704 = vst [vmem:[#allocation175_spill] sm:$0xff] %v14402_v10 }
 0x454   : > { %7736 = vrot.lane.b32.xlu0 %v4685_v23, %s10256_s10  ;;  %v14246_v47 = vpop.permute.xlu0 %2508  ;;  %v14257_v23 = vrot.slane %v3002_v50, %v10800_v54  ;;  %v14274_v50 = vrot.slane %v3306_v21, %v10800_v54  ;;  %v14291_v21 = vrot.slane %v3274_v29, %v10800_v54  ;;  %v3362_v27 = vcombine.low %v18677_v18, %v18676_v56 }
 0x455   : > { %18649 = vst [vmem:[#allocation232_spill] sm:$0xff] %v14246_v47  ;;  %18671 = vst [vmem:[#allocation90_spill] sm:$0xff] %v14300_v37  ;;  %v14417_v10 = vrot.slane %v4938_v24, %v10800_v54 }
 0x456   : > { %v3326_v42 = vcombine.low %v14291_v21, %v14274_v50  ;;  %v14359_v26 = vrot.slane %v3362_v27, %v10693_v62  ;;  %v14380_v27 = vrot.slane %v3890_v28, %v10693_v62 }
 0x458   : > { %7740 = vrot.lane.b32.xlu0 %v4957_v22, %s10256_s10  ;;  %v14269_v55 = vpop.permute.xlu0 %2604  ;;  %v3054_v22 = vcombine.low %v14257_v23, %v14249_v57  ;;  %18696 = vst [vmem:[#allocation255_spill] sm:$0xff] %v14380_v27 }
 0x45c   : > { %7784 = vrot.lane.b32.xlu0 %v3054_v22, %s10257_s11  ;;  %v18675_v22 = vld [vmem:[#allocation229_spill] sm:$0xff]  ;;  %v14309_v29 = vpop.permute.xlu0 %2068 }
 0x45d   : > { %v3346_v20 = vcombine.low %v18675_v22, %v18674_v36  ;;  %v3106_v7 = vcombine.low %v14216_v15, %v14309_v29 }
 0x45f   : > { %v14344_v6 = vrot.slane %v3106_v7, %v10693_v62  ;;  %v14349_v30 = vrot.slane %v3346_v20, %v10693_v62  ;;  %v14365_v7 = vrot.slane %v3907_v16, %v10693_v62  ;;  %v14383_v16 = vrot.slane %v3122_v63, %v10800_v54 }
 0x460   : > { %7788 = vrot.lane.b32.xlu0 %v3326_v42, %s10257_s11  ;;  %v4962_v42 = vcombine.low %v18690_v5, %v18689_v44  ;;  %v14351_v48 = vpop.permute.xlu0 %2164  ;;  %v18692_v44 = vld [vmem:[#allocation237_spill] sm:$0xff]  ;;  %v4142_v63 = vcombine.low %v14377_v25, %v14356_v31 }
 0x461   : > { %18691 = vst [vmem:[#allocation43_spill] sm:$0xff] %v14349_v30  ;;  %v3154_v20 = vcombine.low %v14327_v32, %v14344_v6  ;;  %v18693_v5 = vld [vmem:[#allocation25_spill] sm:$0xff]  ;;  %v3378_v13 = vcombine.low %v14223_v34, %v14351_v48  ;;  %18697 = vst [vmem:[#allocation118_spill] sm:$0xff] %v14383_v16  ;;  %v3394_v58 = vcombine.low %v14294_v8, %v14349_v30 }
 0x462   : > { %v4634_v33 = vcombine.low %v18693_v5, %v18692_v44  ;;  %v14389_v44 = vrot.slane %v4666_v53, %v10800_v54 }
 0x463   : > { %v14386_v14 = vrot.slane %v3154_v20, %v10800_v54  ;;  %v14396_v35 = vrot.slane %v3378_v13, %v10693_v62  ;;  %v4178_v20 = vcombine.low %v18703_v11, %v18702_v43  ;;  %v18709_v11 = vld [vmem:[#allocation176_spill] sm:$0xff] }
 0x464   : > { %7796 = vrot.lane.b32.xlu0 %v3870_v59, %s10257_s11  ;;  %18699 = vst [vmem:[#allocation154_spill] sm:$0xff] %v14389_v44  ;;  %v18701_v59 = vld [vmem:[#allocation240_spill] sm:$0xff]  ;;  %v2293_v28 = vpop.permute.xlu0 %2292  ;;  %v14414_v30 = vrot.slane %v4634_v33, %v10800_v54 }
 0x465   : > { %18698 = vst [vmem:[#allocation46_spill] sm:$0xff] %v14386_v14  ;;  %v4162_v5 = vcombine.low %v18701_v59, %v18700_v46  ;;  %v3922_v53 = vcombine.low %v14228_v61, %v2293_v28  ;;  %v3923_v41 = vcombine.high %v14228_v61, %v2293_v28  ;;  %v3187_v52 = vcombine.high %v14383_v16, %v14386_v14  ;;  %v18705_v59 = vld [vmem:[#allocation220_spill] sm:$0xff]  ;;  %v18706_v46 = vld [vmem:[#allocation219_spill] sm:$0xff]  ;;  %v18708_v28 = vld [vmem:[#allocation86_spill] sm:$0xff] }
 0x466   : > { %v4906_v13 = vcombine.low %v18706_v46, %v18705_v59  ;;  %v3426_v8 = vcombine.low %v14359_v26, %v14396_v35  ;;  %18707 = vst [vmem:[#allocation166_spill] sm:$0xff] %v14414_v30  ;;  %v3938_v61 = vcombine.low %v14297_v9, %v14380_v27  ;;  %v4706_v43 = vcombine.low %v18709_v11, %v18708_v28  ;;  %v18714_v28 = vld [vmem:[#allocation212_spill] sm:$0xff]  ;;  %v18723_v27 = vld [vmem:[#allocation191_spill] sm:$0xff] }
 0x467   : > { %v14424_v16 = vrot.slane %v3922_v53, %v10693_v62  ;;  %v14427_v46 = vrot.slane %v3923_v41, %v10693_v62  ;;  %7570 = vrot.lane.b32.xlu1 %v3187_v52, %s10255_s9  ;;  %v14431_v33 = vrot.slane %v4162_v5, %v10693_v62  ;;  %v4686_v24 = vcombine.low %v14414_v30, %v14389_v44  ;;  %v18715_v30 = vld [vmem:[#allocation73_spill] sm:$0xff]  ;;  %v14469_v5 = vpop.permute.xlu1 %7710 }
 0x468   : > { %7800 = vrot.lane.b32.xlu0 %v4142_v63, %s10257_s11  ;;  %v14433_v59 = vpop.permute.xlu0 %2388  ;;  %v14438_v63 = vrot.slane %v3394_v58, %v10800_v54  ;;  %v14441_v11 = vrot.slane %v3426_v8, %v10800_v54  ;;  %v14444_v53 = vrot.slane %v4690_v3, %v10693_v62  ;;  %v14447_v41 = vrot.slane %v4962_v42, %v10693_v62 }
 0x469   : > { %18710 = vst [vmem:[#allocation38_spill] sm:$0xff] %v14427_v46  ;;  %18711 = vst [vmem:[#allocation234_spill] sm:$0xff] %v14433_v59  ;;  %v3970_v52 = vcombine.low %v14362_v40, %v14424_v16  ;;  %v4722_v44 = vcombine.low %v18715_v30, %v18714_v28  ;;  %v4194_v58 = vcombine.low %v14237_v19, %v14433_v59  ;;  %v18720_v59 = vld [vmem:[#allocation61_spill] sm:$0xff] }
 0x46a   : > { %18712 = vst [vmem:[#allocation230_spill] sm:$0xff] %v14438_v63  ;;  %18713 = vst [vmem:[#allocation244_spill] sm:$0xff] %v14441_v11  ;;  %v3459_v3 = vcombine.high %v14438_v63, %v14441_v11  ;;  %v14461_v8 = vrot.slane %v4906_v13, %v10800_v54  ;;  %v14464_v42 = vrot.slane %v4178_v20, %v10693_v62  ;;  %v18721_v13 = vld [vmem:[#allocation60_spill] sm:$0xff]  ;;  %v18746_v11 = vld [vmem:[#allocation255_spill] sm:$0xff] }
 0x46b   : > { %v14467_v9 = vrot.slane %v4706_v43, %v10693_v62  ;;  %18717 = vst [vmem:[#allocation183_spill] sm:$0xff] %v14469_v5  ;;  %v14472_v30 = vrot.slane %v3938_v61, %v10800_v54  ;;  %v14475_v19 = vrot.slane %v3970_v52, %v10800_v54  ;;  %v4978_v28 = vcombine.low %v18721_v13, %v18720_v59  ;;  %v18722_v5 = vld [vmem:[#allocation222_spill] sm:$0xff]  ;;  %v18747_v63 = vld [vmem:[#allocation225_spill] sm:$0xff] }
 0x46c   : > { %7808 = vrot.lane.b32.xlu0 %v4686_v24, %s10257_s11  ;;  %18716 = vst [vmem:[#allocation196_spill] sm:$0xff] %v14461_v8  ;;  %v4210_v24 = vcombine.low %v14300_v37, %v14431_v33  ;;  %v14482_v20 = vrot.slane %v4194_v58, %v10693_v62  ;;  %7574 = vrot.lane.b32.xlu1 %v3459_v3, %s10255_s9  ;;  %v14485_v43 = vpop.permute.xlu0 %2516 }
 0x46d   : > { %18718 = vst [vmem:[#allocation135_spill] sm:$0xff] %v14472_v30  ;;  %18719 = vst [vmem:[#allocation22_spill] sm:$0xff] %v14475_v19  ;;  %v4958_v61 = vcombine.low %v14461_v8, %v14417_v10  ;;  %v4994_v52 = vcombine.low %v18723_v27, %v18722_v5  ;;  %v4995_v46 = vcombine.high %v18723_v27, %v18722_v5 }
 0x46e   : > { %v4738_v37 = vcombine.low %v14246_v47, %v14485_v43  ;;  %v4003_v59 = vcombine.high %v14472_v30, %v14475_v19  ;;  %v3091_v58 = vcombine.high %v18666_v60, %v18665_v2  ;;  %v3363_v3 = vcombine.high %v18677_v18, %v18676_v56  ;;  %v18749_v19 = vld [vmem:[#allocation166_spill] sm:$0xff] }
 0x46f   : > { %v14502_v13 = vrot.slane %v4722_v44, %v10693_v62  ;;  %v4242_v8 = vcombine.low %v14464_v42, %v14482_v20  ;;  %v3347_v27 = vcombine.high %v18675_v22, %v18674_v36  ;;  %v4754_v5 = vcombine.low %v14444_v53, %v14467_v9  ;;  %v18773_v30 = vld [vmem:[#allocation54_spill] sm:$0xff] }
 0x470   : > { %7812 = vrot.lane.b32.xlu0 %v4958_v61, %s10257_s11  ;;  %v14512_v47 = vrot.slane %v4738_v37, %v10693_v62  ;;  %v3055_v56 = vcombine.high %v14257_v23, %v14249_v57  ;;  %v14517_v2 = vrot.slane %v4978_v28, %v10693_v62  ;;  %v3107_v60 = vcombine.high %v14216_v15, %v14309_v29  ;;  %v2613_v18 = vpop.permute.xlu0 %2612  ;;  %v14534_v23 = vpop.permute.xlu1 %7722 }
 0x471   : > { %7582 = vrot.lane.b32.xlu1 %v4003_v59, %s10255_s9  ;;  %v14523_v36 = vrot.slane %v4210_v24, %v10800_v54  ;;  %v14526_v22 = vrot.slane %v4242_v8, %v10800_v54  ;;  %v14529_v37 = vrot.slane %v4994_v52, %v10693_v62  ;;  %v14532_v57 = vrot.slane %v4995_v46, %v10693_v62 }
 0x472   : > { %18726 = vst [vmem:[#allocation256_spill] sm:$0xff] %v14534_v23  ;;  %v3379_v15 = vcombine.high %v14223_v34, %v14351_v48  ;;  %v4786_v29 = vcombine.low %v14502_v13, %v14512_v47  ;;  %v3075_v44 = vcombine.high %v18661_v0, %v18660_v12  ;;  %v5010_v28 = vcombine.low %v14269_v55, %v2613_v18  ;;  %v18748_v23 = vld [vmem:[#allocation154_spill] sm:$0xff] }
 0x473   : > { %18724 = vst [vmem:[#allocation157_spill] sm:$0xff] %v14523_v36  ;;  %18725 = vst [vmem:[#allocation174_spill] sm:$0xff] %v14526_v22  ;;  %v5011_v8 = vcombine.high %v14269_v55, %v2613_v18  ;;  %v4275_v46 = vcombine.high %v14523_v36, %v14526_v22  ;;  %v14548_v24 = vrot.slane %v3347_v27, %v10693_v62  ;;  %v18779_v36 = vld [vmem:[#allocation86_spill] sm:$0xff] }
 0x474   : > { %7856 = vrot.lane.b32.xlu0 %v3055_v56, %s10258_s12  ;;  %v3327_v34 = vcombine.high %v14291_v21, %v14274_v50  ;;  %v14553_v48 = vrot.slane %v4754_v5, %v10800_v54  ;;  %v14556_v0 = vrot.slane %v4786_v29, %v10800_v54  ;;  %v5026_v12 = vcombine.low %v14447_v41, %v14517_v2 }
 0x475   : > { %v14561_v55 = vrot.slane %v3107_v60, %v10693_v62  ;;  %v14564_v61 = vrot.slane %v5010_v28, %v10693_v62  ;;  %v14567_v52 = vrot.slane %v5011_v8, %v10693_v62  ;;  %7586 = vrot.lane.b32.xlu1 %v4275_v46, %s10255_s9  ;;  %v14570_v50 = vpop.permute.xlu0 %8166  ;;  %v18730_v21 = vcombine.high %v18655_v49, %v18654_v38 }
 0x476   : > { %18727 = vst [vmem:[#allocation229_spill] sm:$0xff] %v14553_v48  ;;  %18728 = vst [vmem:[#allocation82_spill] sm:$0xff] %v14556_v0  ;;  %v3155_v27 = vcombine.high %v14327_v32, %v14344_v6  ;;  %v14581_v5 = vrot.slane %v3379_v15, %v10693_v62  ;;  %v4819_v56 = vcombine.high %v14553_v48, %v14556_v0  ;;  %v18869_v48 = vld [vmem:[#allocation55_spill] sm:$0xff] }
 0x477   : > { %18729 = vst [vmem:[#allocation78_spill] sm:$0xff] %v14570_v50  ;;  %v14576_v59 = vrot.slane %v18730_v21, %v10693_v62  ;;  %v14586_v60 = vrot.slane %v3091_v58, %v10693_v62  ;;  %v14589_v18 = vrot.slane %v3075_v44, %v10693_v62  ;;  %v5058_v38 = vcombine.low %v14529_v37, %v14564_v61  ;;  %v14609_v44 = vpop.permute.xlu1 %7734  ;;  %v18737_v21 = vld [vmem:[#allocation188_spill] sm:$0xff] }
 0x478   : > { %v5075_v49 = vcombine.high %v14532_v57, %v14567_v52  ;;  %7860 = vrot.lane.b32.xlu0 %v3327_v34, %s10258_s12  ;;  %v18731_v32 = vcombine.high %v18651_v17, %v18650_v45  ;;  %v14603_v58 = vrot.slane %v3363_v3, %v10693_v62  ;;  %v3123_v15 = vcombine.high %v14279_v39, %v14303_v51 }
 0x479   : > { %v3411_v29 = vcombine.high %v14576_v59, %v14548_v24  ;;  %18732 = vst [vmem:[#allocation201_spill] sm:$0xff] %v14609_v44  ;;  %v3171_v28 = vcombine.high %v14586_v60, %v14561_v55  ;;  %7594 = vrot.lane.b32.xlu1 %v4819_v56, %s10255_s9  ;;  %v14614_v8 = vpop.permute.xlu0 %8310  ;;  %v3871_v45 = vcombine.high %v14333_v4, %v14314_v1 }
 0x47a   : > { %v14600_v6 = vrot.slane %v18731_v32, %v10693_v62  ;;  %18733 = vst [vmem:[#allocation189_spill] sm:$0xff] %v14614_v8  ;;  %v14619_v17 = vrot.slane %v5026_v12, %v10800_v54  ;;  %v14622_v51 = vrot.slane %v5058_v38, %v10800_v54  ;;  %v3427_v39 = vcombine.high %v14359_v26, %v14396_v35  ;;  %v18736_v12 = vld [vmem:[#allocation43_spill] sm:$0xff]  ;;  %v18835_v8 = vld [vmem:[#allocation41_spill] sm:$0xff] }
 0x47b   : > { %v3443_v3 = vcombine.high %v14603_v58, %v14581_v5  ;;  %v14629_v46 = vrot.slane %v3155_v27, %v10800_v54  ;;  %v4143_v1 = vcombine.high %v14377_v25, %v14356_v31  ;;  %v3395_v26 = vcombine.high %v18737_v21, %v18736_v12  ;;  %v18741_v12 = vld [vmem:[#allocation17_spill] sm:$0xff] }
 0x47c   : > { %18734 = vst [vmem:[#allocation204_spill] sm:$0xff] %v14619_v17  ;;  %18735 = vst [vmem:[#allocation203_spill] sm:$0xff] %v14622_v51  ;;  %v3139_v34 = vcombine.high %v14600_v6, %v14589_v18  ;;  %7868 = vrot.lane.b32.xlu0 %v3871_v45, %s10258_s12  ;;  %v5091_v4 = vcombine.high %v14619_v17, %v14622_v51  ;;  %v14641_v35 = vrot.slane %v3123_v15, %v10800_v54  ;;  %v18740_v15 = vld [vmem:[#allocation156_spill] sm:$0xff] }
 0x47d   : > { %v14646_v38 = vrot.slane %v3411_v29, %v10800_v54  ;;  %v14649_v32 = vpop.permute.xlu0 %8240  ;;  %v14654_v31 = vrot.slane %v3171_v28, %v10800_v54  ;;  %v18742_v21 = vcombine.high %v18740_v15, %v18741_v12  ;;  %v14664_v29 = vpop.permute.xlu1 %7782  ;;  %v14669_v14 = vrot.slane %v3427_v39, %v10800_v54  ;;  %v18744_v39 = vld [vmem:[#allocation38_spill] sm:$0xff] }
 0x47e   : > { %7598 = vrot.lane.b32.xlu1 %v5091_v4, %s10255_s9  ;;  %18739 = vst [vmem:[#allocation233_spill] sm:$0xff] %v14649_v32  ;;  %18743 = vst [vmem:[#allocation136_spill] sm:$0xff] %v14664_v29  ;;  %v3188_v4 = vcombine.low %v14641_v35, %v14629_v46  ;;  %v14672_v28 = vrot.slane %v3443_v3, %v10800_v54  ;;  %v3971_v25 = vcombine.high %v14362_v40, %v14424_v16 }
 0x47f   : > { %v14662_v56 = vrot.slane %v18742_v21, %v10800_v54  ;;  %v18745_v27 = vcombine.high %v14365_v7, %v18744_v39  ;;  %v3939_v45 = vcombine.high %v18747_v63, %v18746_v11  ;;  %v4687_v40 = vcombine.high %v18749_v19, %v18748_v23  ;;  %v18751_v63 = vld [vmem:[#allocation149_spill] sm:$0xff]  ;;  %v18752_v23 = vld [vmem:[#allocation10_spill] sm:$0xff] }
 0x480   : > { %7872 = vrot.lane.b32.xlu0 %v4143_v1, %s10258_s12  ;;  %v14694_v16 = vrot.slane %v3139_v34, %v10800_v54  ;;  %v14700_v29 = vrot.slane %v3395_v26, %v10800_v54  ;;  %v18753_v34 = vcombine.high %v18751_v63, %v18752_v23  ;;  %v14717_v26 = vrot.slane %v5075_v49, %v10800_v54  ;;  %v18757_v49 = vld [vmem:[#allocation90_spill] sm:$0xff] }
 0x481   : > { %v14687_v3 = vrot.slane %v18745_v27, %v10800_v54  ;;  %v14697_v1 = vpop.permute.xlu0 %8384  ;;  %v4243_v27 = vcombine.high %v14464_v42, %v14482_v20  ;;  %v3985_v21 = vrot.slane %v3971_v25, %v10800_v54  ;;  %v14725_v19 = vpop.permute.xlu1 %7794  ;;  %v4211_v17 = vcombine.high %v18757_v49, %v14431_v33  ;;  %v18759_v20 = vld [vmem:[#allocation196_spill] sm:$0xff]  ;;  %v18761_v49 = vld [vmem:[#allocation177_spill] sm:$0xff] }
 0x482   : > { %7642 = vrot.lane.b32.xlu1 %v3188_v4, %s10254_s29  ;;  %18750 = vst [vmem:[#allocation184_spill] sm:$0xff] %v14697_v1  ;;  %v14714_v4 = vrot.slane %v18753_v34, %v10800_v54  ;;  %18755 = vst [vmem:[#allocation180_spill] sm:$0xff] %v14717_v26  ;;  %v3460_v11 = vcombine.low %v14700_v29, %v14669_v14  ;;  %v3953_v25 = vrot.slane %v3939_v45, %v10800_v54  ;;  %v18840_v1 = vld [vmem:[#allocation165_spill] sm:$0xff] }
 0x483   : > { %18756 = vst [vmem:[#allocation171_spill] sm:$0xff] %v14725_v19  ;;  %v4787_v19 = vcombine.high %v14502_v13, %v14512_v47  ;;  %v4257_v34 = vrot.slane %v4243_v27, %v10800_v54  ;;  %v4755_v33 = vcombine.high %v14444_v53, %v14467_v9  ;;  %v4225_v45 = vrot.slane %v4211_v17, %v10800_v54 }
 0x484   : > { %18754 = vst [vmem:[#allocation101_spill] sm:$0xff] %v14714_v4  ;;  %7880 = vrot.lane.b32.xlu0 %v4687_v40, %s10258_s12  ;;  %v4959_v40 = vcombine.high %v18759_v20, %v14417_v10  ;;  %v4004_v51 = vcombine.low %v3953_v25, %v3985_v21  ;;  %v5059_v47 = vcombine.high %v14529_v37, %v14564_v61  ;;  %v18778_v4 = vld [vmem:[#allocation73_spill] sm:$0xff] }
 0x485   : > { %v14734_v42 = vpop.permute.xlu0 %7568  ;;  %v14751_v20 = vpop.permute.xlu1 %7806  ;;  %v4276_v13 = vcombine.low %v4225_v45, %v4257_v34  ;;  %v4801_v27 = vrot.slane %v4787_v19, %v10800_v54  ;;  %v5027_v9 = vcombine.high %v14447_v41, %v14517_v2  ;;  %v18769_v2 = vld [vmem:[#allocation35_spill] sm:$0xff]  ;;  %v18770_v19 = vld [vmem:[#allocation169_spill] sm:$0xff] }
 0x486   : > { %7646 = vrot.lane.b32.xlu1 %v3460_v11, %s10254_s29  ;;  %18758 = vst [vmem:[#allocation237_spill] sm:$0xff] %v14734_v42  ;;  %v18762_v42 = vld [vmem:[#allocation65_spill] sm:$0xff]  ;;  %18763 = vst [vmem:[#allocation178_spill] sm:$0xff] %v14751_v20  ;;  %v14767_v61 = vrot.slane %v5059_v47, %v10800_v54  ;;  %v18772_v47 = vld [vmem:[#allocation94_spill] sm:$0xff] }
 0x487   : > { %v3056_v10 = vcombine.low %v18762_v42, %v18761_v49  ;;  %v18780_v49 = vld [vmem:[#allocation176_spill] sm:$0xff]  ;;  %v18782_v20 = vld [vmem:[#allocation130_spill] sm:$0xff] }
 0x488   : > { %7884 = vrot.lane.b32.xlu0 %v4959_v40, %s10258_s12  ;;  %v18766_v40 = vld [vmem:[#allocation186_spill] sm:$0xff]  ;;  %v4707_v42 = vcombine.high %v18780_v49, %v18779_v36 }
 0x489   : > { %v14746_v11 = vpop.permute.xlu0 %7572 }
 0x48a   : > { %7654 = vrot.lane.b32.xlu1 %v4004_v51, %s10254_s29  ;;  %18760 = vst [vmem:[#allocation25_spill] sm:$0xff] %v14746_v11  ;;  %v18765_v51 = vld [vmem:[#allocation100_spill] sm:$0xff]  ;;  %v4769_v11 = vrot.slane %v4755_v33, %v10800_v54  ;;  %v14818_v49 = vrot.slane %v4707_v42, %v10693_v62 }
 0x48b   : > { %v3328_v17 = vcombine.low %v18766_v40, %v18765_v51 }
 0x48c   : > { %7928 = vrot.lane.b32.xlu0 %v3056_v10, %s10259_s13  ;;  %v4820_v37 = vcombine.low %v4769_v11, %v4801_v27  ;;  %v14769_v10 = vpop.permute.xlu1 %7854 }
 0x48d   : > { %v14760_v53 = vpop.permute.xlu0 %7580  ;;  %18767 = vst [vmem:[#allocation220_spill] sm:$0xff] %v14769_v10  ;;  %v4688_v10 = vcombine.low %v18773_v30, %v18772_v47 }
 0x48e   : > { %7658 = vrot.lane.b32.xlu1 %v4276_v13, %s10254_s29  ;;  %18764 = vst [vmem:[#allocation211_spill] sm:$0xff] %v14760_v53  ;;  %v3872_v13 = vcombine.low %v18770_v19, %v18769_v2  ;;  %v5041_v53 = vrot.slane %v5027_v9, %v10800_v54  ;;  %v18775_v9 = vld [vmem:[#allocation232_spill] sm:$0xff] }
 0x490   : > { %7932 = vrot.lane.b32.xlu0 %v3328_v17, %s10259_s13  ;;  %v5092_v33 = vcombine.low %v5041_v53, %v14767_v61  ;;  %v14784_v26 = vpop.permute.xlu1 %7866 }
 0x491   : > { %18774 = vst [vmem:[#allocation60_spill] sm:$0xff] %v14784_v26  ;;  %v18781_v26 = vld [vmem:[#allocation117_spill] sm:$0xff] }
 0x492   : > { %7666 = vrot.lane.b32.xlu1 %v4820_v37, %s10254_s29  ;;  %v14772_v41 = vpop.permute.xlu0 %7584  ;;  %v3189_v37 = vcombine.high %v14641_v35, %v14629_v46  ;;  %v3461_v46 = vcombine.high %v14700_v29, %v14669_v14  ;;  %v18788_v14 = vcombine.high %v18781_v26, %v18782_v20  ;;  %v4005_v29 = vcombine.high %v3953_v25, %v3985_v21 }
 0x493   : > { %18768 = vst [vmem:[#allocation219_spill] sm:$0xff] %v14772_v41  ;;  %v4739_v41 = vcombine.high %v18775_v9, %v14485_v43  ;;  %v18785_v43 = vld [vmem:[#allocation68_spill] sm:$0xff]  ;;  %v4277_v21 = vcombine.high %v4225_v45, %v4257_v34  ;;  %v3138_v45 = vcombine.low %v14600_v6, %v14589_v18  ;;  %v10179_v6 = vld [vmem:[#allocation2 + $0x9a] sm:$0xff] }
 0x494   : > { %7940 = vrot.lane.b32.xlu0 %v3872_v13, %s10259_s13  ;;  %v14804_v35 = vpop.permute.xlu1 %7878  ;;  %v10178_v18 = vld [vmem:[#allocation2 + $0x6a] sm:$0xff] }
 0x495   : > { %18784 = vst [vmem:[#allocation191_spill] sm:$0xff] %v14804_v35 }
 0x496   : > { %7670 = vrot.lane.b32.xlu1 %v5092_v33, %s10254_s29  ;;  %v14780_v17 = vpop.permute.xlu0 %7592  ;;  %v18777_v33 = vld [vmem:[#allocation212_spill] sm:$0xff] }
 0x497   : > { %18771 = vst [vmem:[#allocation61_spill] sm:$0xff] %v14780_v17  ;;  %v4723_v22 = vcombine.high %v18778_v4, %v18777_v33 }
 0x498   : > { %7952 = vrot.lane.b32.xlu0 %v4688_v10, %s10259_s13  ;;  %v18783_v10 = vcombine.low %v18781_v26, %v18782_v20  ;;  %v18792_v26 = vld [vmem:[#allocation276_spill] sm:$0xff] }
 0x499   : > { %v14815_v36 = vrot.slane %v4723_v22, %v10693_v62  ;;  %v14832_v22 = vpop.permute.xlu1 %7926 }
 0x49a   : > { %7714 = vrot.lane.b32.xlu1 %v3189_v37, %s10256_s10  ;;  %v14792_v13 = vpop.permute.xlu0 %7596  ;;  %v18786_v37 = vld [vmem:[#allocation30_spill] sm:$0xff]  ;;  %18790 = vst [vmem:[#allocation156_spill] sm:$0xff] %v14832_v22  ;;  %v4821_v22 = vcombine.high %v4769_v11, %v4801_v27  ;;  %v18801_v11 = vld [vmem:[#allocation96_spill] sm:$0xff] }
 0x49b   : > { %18776 = vst [vmem:[#allocation222_spill] sm:$0xff] %v14792_v13  ;;  %v4691_v9 = vcombine.high %v18786_v37, %v18785_v43  ;;  %v14809_v13 = vrot.slane %v4739_v41, %v10693_v62  ;;  %v3170_v37 = vcombine.low %v14586_v60, %v14561_v55  ;;  %v3442_v60 = vcombine.low %v14603_v58, %v14581_v5  ;;  %v18804_v58 = vld [vmem:[#allocation199_spill] sm:$0xff] }
 0x49c   : > { %8170 = vrot.lane.b32.xlu0 %v18783_v10, %s10254_s29  ;;  %v3410_v5 = vcombine.low %v14576_v59, %v14548_v24  ;;  %v18809_v59 = vld [vmem:[#allocation167_spill] sm:$0xff] }
 0x49d   : > { %v14825_v33 = vrot.slane %v4691_v9, %v10693_v62  ;;  %v4803_v41 = vcombine.high %v14815_v36, %v14809_v13  ;;  %v18795_v9 = vld [vmem:[#allocation97_spill] sm:$0xff]  ;;  %v14855_v34 = vpop.permute.xlu1 %7938 }
 0x49e   : > { %7718 = vrot.lane.b32.xlu1 %v3461_v46, %s10256_s10  ;;  %v14812_v4 = vpop.permute.xlu0 %7640  ;;  %v18791_v46 = vld [vmem:[#allocation64_spill] sm:$0xff]  ;;  %18798 = vst [vmem:[#allocation38_spill] sm:$0xff] %v14855_v34 }
 0x49f   : > { %18787 = vst [vmem:[#allocation43_spill] sm:$0xff] %v14812_v4  ;;  %v4771_v42 = vcombine.high %v14825_v33, %v14818_v49  ;;  %v18793_v20 = vcombine.low %v18791_v46, %v18792_v26  ;;  %v14844_v43 = vrot.slane %v4803_v41, %v10800_v54  ;;  %v18800_v26 = vld [vmem:[#allocation234_spill] sm:$0xff] }
 0x4a0   : > { %8242 = vrot.lane.b32.xlu0 %v18788_v14, %s10256_s10  ;;  %v18796_v14 = vld [vmem:[#allocation279_spill] sm:$0xff]  ;;  %v4195_v27 = vcombine.high %v18801_v11, %v18800_v26  ;;  %v18803_v4 = vld [vmem:[#allocation70_spill] sm:$0xff]  ;;  %v18805_v26 = vld [vmem:[#allocation240_spill] sm:$0xff] }
 0x4a1   : > { %v14853_v46 = vrot.slane %v4771_v42, %v10800_v54  ;;  %v5093_v42 = vcombine.high %v5041_v53, %v14767_v61  ;;  %v14883_v61 = vrot.slane %v3138_v45, %v10800_v54  ;;  %v18808_v11 = vld [vmem:[#allocation27_spill] sm:$0xff] }
 0x4a2   : > { %7726 = vrot.lane.b32.xlu1 %v4005_v29, %s10256_s10  ;;  %v14830_v10 = vpop.permute.xlu0 %7644  ;;  %v18797_v29 = vcombine.low %v18795_v9, %v18796_v14  ;;  %v10181_v9 = vld [vmem:[#allocation2 + $0xb2] sm:$0xff]  ;;  %v14892_v24 = vrot.slane %v4195_v27, %v10693_v62 }
 0x4a3   : > { %18789 = vst [vmem:[#allocation188_spill] sm:$0xff] %v14830_v10  ;;  %v4825_v55 = vcombine.high %v14853_v46, %v14844_v43 }
 0x4a4   : > { %8314 = vrot.lane.b32.xlu0 %v18793_v20, %s10257_s11  ;;  %v14871_v20 = vrot.slane %v3170_v37, %v10800_v54  ;;  %v18807_v37 = vld [vmem:[#allocation63_spill] sm:$0xff] }
 0x4a6   : > { %7730 = vrot.lane.b32.xlu1 %v4277_v21, %s10256_s10  ;;  %v14841_v25 = vpop.permute.xlu0 %7652  ;;  %v10180_v21 = vld [vmem:[#allocation2 + $0x82] sm:$0xff]  ;;  %v3190_v45 = vcombine.low %v14883_v61, %v14871_v20 }
 0x4a7   : > { %18794 = vst [vmem:[#allocation17_spill] sm:$0xff] %v14841_v25  ;;  %v6779_v14 = vcombine.high %v10180_v21, %v10181_v9  ;;  %v18810_v21 = vld [vmem:[#allocation247_spill] sm:$0xff]  ;;  %v14901_v9 = vrot.slane %v3442_v60, %v10800_v54  ;;  %v3418_v60 = vrot.slane %v3410_v5, %v10800_v54  ;;  %v18823_v25 = vld [vmem:[#allocation18_spill] sm:$0xff] }
 0x4a8   : > { %8458 = vrot.lane.b32.xlu0 %v18797_v29, %s10259_s13  ;;  %v18802_v29 = vld [vmem:[#allocation205_spill] sm:$0xff] }
 0x4a9   : > { %v4179_v10 = vcombine.high %v18803_v4, %v18802_v29  ;;  %v3986_v4 = vcombine.low %v14365_v7, %v18744_v39  ;;  %v3954_v39 = vcombine.low %v18740_v15, %v18741_v12  ;;  %v3462_v15 = vcombine.low %v3418_v60, %v14901_v9 }
 0x4aa   : > { %7738 = vrot.lane.b32.xlu1 %v4821_v22, %s10256_s10  ;;  %v14860_v41 = vpop.permute.xlu0 %7656  ;;  %v6763_v22 = vcombine.high %v10178_v18, %v10179_v6  ;;  %v4147_v18 = vcombine.high %v18808_v11, %v18807_v37  ;;  %v14887_v6 = vpop.permute.xlu1 %8096  ;;  %v18814_v37 = vld [vmem:[#allocation137_spill] sm:$0xff] }
 0x4ab   : > { %18799 = vst [vmem:[#allocation255_spill] sm:$0xff] %v14860_v41  ;;  %v14910_v7 = vrot.slane %v4179_v10, %v10693_v62  ;;  %v18813_v10 = vld [vmem:[#allocation251_spill] sm:$0xff]  ;;  %v14932_v12 = vrot.slane %v3986_v4, %v10800_v54 }
 0x4ac   : > { %8026 = vrot.lane.b32.xlu0 %v4825_v55, %s10260_s14  ;;  %v4163_v55 = vcombine.high %v18805_v26, %v18804_v58  ;;  %v14904_v29 = vrot.slane %v6763_v22, %v10693_v62  ;;  %v14907_v58 = vrot.slane %v6779_v14, %v10693_v62  ;;  %v14922_v22 = vrot.slane %v4147_v18, %v10693_v62  ;;  %v18818_v4 = vld [vmem:[#allocation139_spill] sm:$0xff] }
 0x4ad   : > { %v4258_v14 = vcombine.low %v14910_v7, %v14892_v24  ;;  %v18815_v11 = vcombine.low %v18813_v10, %v18814_v37 }
 0x4ae   : > { %7742 = vrot.lane.b32.xlu1 %v5093_v42, %s10256_s10  ;;  %v14880_v53 = vpop.permute.xlu0 %7664  ;;  %v18811_v42 = vcombine.high %v18809_v59, %v18810_v21  ;;  %v14915_v27 = vrot.slane %v4163_v55, %v10693_v62  ;;  %v14934_v55 = vpop.permute.xlu1 %8168  ;;  %v3962_v59 = vrot.slane %v3954_v39, %v10800_v54  ;;  %v6842_v21 = vcombine.low %v14904_v29, %v14907_v58 }
 0x4af   : > { %18806 = vst [vmem:[#allocation225_spill] sm:$0xff] %v14880_v53  ;;  %18816 = vst [vmem:[#allocation166_spill] sm:$0xff] %v14934_v55  ;;  %v14952_v34 = vrot.slane %v4258_v14, %v10800_v54  ;;  %v5074_v14 = vcombine.low %v14532_v57, %v14567_v52  ;;  %v18848_v53 = vld [vmem:[#allocation79_spill] sm:$0xff] }
 0x4b0   : > { %8528 = vrot.lane.b32.xlu0 %v18811_v42, %s10260_s14  ;;  %v4226_v5 = vcombine.low %v14922_v22, %v14915_v27  ;;  %v4802_v42 = vcombine.low %v14815_v36, %v14809_v13 }
 0x4b2   : > { %7786 = vrot.lane.b32.xlu1 %v3190_v45, %s10257_s11  ;;  %v14918_v26 = vpop.permute.xlu0 %7668  ;;  %v18819_v45 = vld [vmem:[#allocation140_spill] sm:$0xff]  ;;  %v14962_v36 = vrot.slane %v4226_v5, %v10800_v54  ;;  %v14967_v41 = vpop.permute.xlu1 %8312  ;;  %v14981_v5 = vrot.slane %v4802_v42, %v10800_v54  ;;  %v14997_v42 = vrot.slane %v5074_v14, %v10800_v54  ;;  %v18834_v14 = vld [vmem:[#allocation215_spill] sm:$0xff] }
 0x4b3   : > { %18812 = vst [vmem:[#allocation154_spill] sm:$0xff] %v14918_v26  ;;  %v4006_v26 = vcombine.low %v3962_v59, %v14932_v12  ;;  %18824 = vst [vmem:[#allocation90_spill] sm:$0xff] %v14967_v41  ;;  %v6555_v44 = vcombine.high %v18835_v8, %v18834_v14  ;;  %v18854_v41 = vld [vmem:[#allocation92_spill] sm:$0xff] }
 0x4b4   : > { %8162 = vrot.lane.b32.xlu0 %v18815_v11, %s10254_s29  ;;  %v18820_v11 = vcombine.low %v18818_v4, %v18819_v45 }
 0x4b5   : > { %v15031_v8 = vrot.slane %v6555_v44, %v10800_v54 }
 0x4b6   : > { %7790 = vrot.lane.b32.xlu1 %v3462_v15, %s10257_s11  ;;  %v14939_v18 = vpop.permute.xlu0 %7712  ;;  %v4770_v15 = vcombine.low %v14825_v33, %v14818_v49  ;;  %v4278_v49 = vcombine.low %v14962_v36, %v14952_v34  ;;  %v18825_v33 = vld [vmem:[#allocation34_spill] sm:$0xff] }
 0x4b7   : > { %18817 = vst [vmem:[#allocation149_spill] sm:$0xff] %v14939_v18  ;;  %v18822_v18 = vld [vmem:[#allocation226_spill] sm:$0xff] }
 0x4b8   : > { %8454 = vrot.lane.b32.xlu0 %v18820_v11, %s10259_s13  ;;  %v6587_v13 = vcombine.high %v18823_v25, %v18822_v18  ;;  %v14965_v11 = vrot.slane %v6842_v21, %v10800_v54  ;;  %v5042_v21 = vcombine.low %v18751_v63, %v18752_v23  ;;  %v14999_v25 = vpop.permute.xlu1 %8456 }
 0x4b9   : > { %18829 = vst [vmem:[#allocation35_spill] sm:$0xff] %v14999_v25  ;;  %v18839_v25 = vld [vmem:[#allocation173_spill] sm:$0xff] }
 0x4ba   : > { %7798 = vrot.lane.b32.xlu1 %v4006_v26, %s10257_s11  ;;  %v14957_v39 = vpop.permute.xlu0 %7716  ;;  %v18826_v26 = vld [vmem:[#allocation49_spill] sm:$0xff]  ;;  %v15005_v23 = vrot.slane %v5042_v21, %v10800_v54  ;;  %v18838_v21 = vld [vmem:[#allocation274_spill] sm:$0xff]  ;;  %v6523_v51 = vcombine.high %v18840_v1, %v18839_v25  ;;  %v18843_v1 = vld [vmem:[#allocation144_spill] sm:$0xff] }
 0x4bb   : > { %18821 = vst [vmem:[#allocation10_spill] sm:$0xff] %v14957_v39  ;;  %v18827_v39 = vcombine.low %v18825_v33, %v18826_v26 }
 0x4bc   : > { %8088 = vrot.lane.b32.xlu0 %v6587_v13, %s10255_s9  ;;  %v14991_v13 = vrot.slane %v4770_v15, %v10800_v54  ;;  %v18831_v15 = vld [vmem:[#allocation141_spill] sm:$0xff]  ;;  %v15013_v35 = vpop.permute.xlu1 %8098 }
 0x4bd   : > { %v14978_v18 = vrot.slane %v18827_v39, %v10800_v54 }
 0x4be   : > { %7802 = vrot.lane.b32.xlu1 %v4278_v49, %s10257_s11  ;;  %v14986_v57 = vpop.permute.xlu0 %7724  ;;  %v4822_v39 = vcombine.low %v14991_v13, %v14981_v5  ;;  %v18832_v49 = vld [vmem:[#allocation142_spill] sm:$0xff] }
 0x4bf   : > { %18828 = vst [vmem:[#allocation196_spill] sm:$0xff] %v14986_v57  ;;  %v6863_v52 = vcombine.high %v14978_v18, %v14965_v11  ;;  %v18833_v57 = vcombine.high %v18831_v15, %v18832_v49 }
 0x4c0   : > { %v15035_v14 = vpop.permute.xlu1 %8386 }
 0x4c1   : > { %8380 = vrot.lane.b32.xlu0 %v6863_v52, %s10258_s12  ;;  %v5094_v52 = vcombine.low %v15005_v23, %v14997_v42 }
 0x4c2   : > { %7810 = vrot.lane.b32.xlu1 %v4822_v39, %s10257_s11  ;;  %v15002_v63 = vpop.permute.xlu0 %7728 }
 0x4c3   : > { %18830 = vst [vmem:[#allocation169_spill] sm:$0xff] %v15002_v63  ;;  %v18837_v63 = vld [vmem:[#allocation259_spill] sm:$0xff] }
 0x4c4   : > { %v6726_v50 = vcombine.low %v18838_v21, %v18837_v63  ;;  %v15069_v32 = vpop.permute.xlu1 %8530 }
 0x4c5   : > { %8022 = vrot.lane.b32.xlu0 %v18833_v57, %s10260_s14  ;;  %v3191_v57 = vcombine.high %v14883_v61, %v14871_v20  ;;  %v15043_v20 = vrot.slane %v6523_v51, %v10800_v54  ;;  %v18845_v61 = vld [vmem:[#allocation102_spill] sm:$0xff] }
 0x4c6   : > { %7814 = vrot.lane.b32.xlu1 %v5094_v52, %s10257_s11  ;;  %v15018_v39 = vpop.permute.xlu0 %7736  ;;  %v6843_v52 = vcombine.high %v14904_v29, %v14907_v58 }
 0x4c7   : > { %18836 = vst [vmem:[#allocation94_spill] sm:$0xff] %v15018_v39  ;;  %v18842_v39 = vld [vmem:[#allocation143_spill] sm:$0xff]  ;;  %v6589_v29 = vcombine.high %v15043_v20, %v15031_v8 }
 0x4c8   : > { %v18844_v25 = vcombine.low %v18842_v39, %v18843_v1  ;;  %v15053_v58 = vrot.slane %v6843_v52, %v10800_v54 }
 0x4c9   : > { %8306 = vrot.lane.b32.xlu0 %v6726_v50, %s10257_s11  ;;  %v3463_v50 = vcombine.high %v3418_v60, %v14901_v9  ;;  %v18850_v9 = vld [vmem:[#allocation103_spill] sm:$0xff]  ;;  %v18851_v60 = vld [vmem:[#allocation221_spill] sm:$0xff] }
 0x4ca   : > { %7858 = vrot.lane.b32.xlu1 %v3191_v57, %s10258_s12  ;;  %v15028_v40 = vpop.permute.xlu0 %7740  ;;  %v18846_v57 = vld [vmem:[#allocation104_spill] sm:$0xff]  ;;  %v6218_v51 = vcombine.low %v18851_v60, %v18850_v9  ;;  %v18856_v9 = vld [vmem:[#allocation15_spill] sm:$0xff] }
 0x4cb   : > { %18841 = vst [vmem:[#allocation54_spill] sm:$0xff] %v15028_v40  ;;  %v6234_v40 = vcombine.low %v18846_v57, %v18845_v61  ;;  %v4007_v61 = vcombine.high %v3962_v59, %v14932_v12 }
 0x4cd   : > { %7948 = vrot.lane.b32.xlu0 %v18844_v25, %s10259_s13  ;;  %v18849_v25 = vld [vmem:[#allocation170_spill] sm:$0xff] }
 0x4ce   : > { %7862 = vrot.lane.b32.xlu1 %v3463_v50, %s10258_s12  ;;  %v15048_v44 = vpop.permute.xlu0 %7784  ;;  %v6202_v17 = vcombine.low %v18849_v25, %v18848_v53  ;;  %v18852_v50 = vcombine.high %v18825_v33, %v18826_v26  ;;  %v15072_v53 = vrot.slane %v6234_v40, %v10693_v62  ;;  %v18855_v25 = vld [vmem:[#allocation52_spill] sm:$0xff]  ;;  %v18858_v26 = vld [vmem:[#allocation195_spill] sm:$0xff] }
 0x4cf   : > { %18847 = vst [vmem:[#allocation232_spill] sm:$0xff] %v15048_v44  ;;  %v18853_v44 = vld [vmem:[#allocation69_spill] sm:$0xff]  ;;  %v6507_v60 = vcombine.high %v18856_v9, %v18855_v25  ;;  %v18860_v40 = vld [vmem:[#allocation107_spill] sm:$0xff]  ;;  %v18862_v9 = vld [vmem:[#allocation182_spill] sm:$0xff] }
 0x4d0   : > { %v15065_v57 = vrot.slane %v18852_v50, %v10800_v54  ;;  %v6186_v52 = vcombine.low %v18854_v41, %v18853_v44  ;;  %v15082_v33 = vrot.slane %v6202_v17, %v10693_v62  ;;  %v18859_v41 = vld [vmem:[#allocation45_spill] sm:$0xff] }
 0x4d1   : > { %8232 = vrot.lane.b32.xlu0 %v6589_v29, %s10256_s10  ;;  %v6475_v44 = vcombine.high %v18859_v41, %v18858_v26  ;;  %v15087_v29 = vrot.slane %v6218_v51, %v10693_v62  ;;  %v18861_v50 = vld [vmem:[#allocation105_spill] sm:$0xff]  ;;  %v15102_v51 = vrot.slane %v6507_v60, %v10693_v62  ;;  %v4823_v60 = vcombine.high %v14991_v13, %v14981_v5 }
 0x4d2   : > { %7870 = vrot.lane.b32.xlu1 %v4007_v61, %s10258_s12  ;;  %v15077_v12 = vpop.permute.xlu0 %7788  ;;  %v6865_v59 = vcombine.high %v15065_v57, %v15053_v58  ;;  %v6491_v0 = vcombine.high %v18861_v50, %v18860_v40  ;;  %v4279_v61 = vcombine.high %v14962_v36, %v14952_v34  ;;  %v15095_v25 = vrot.slane %v6186_v52, %v10693_v62  ;;  %v18863_v17 = vld [vmem:[#allocation93_spill] sm:$0xff]  ;;  %v15109_v34 = vpop.permute.xlu1 %8090 }
 0x4d3   : > { %18857 = vst [vmem:[#allocation212_spill] sm:$0xff] %v15077_v12  ;;  %v6459_v12 = vcombine.high %v18863_v17, %v18862_v9  ;;  %v6282_v26 = vcombine.low %v15087_v29, %v15072_v53  ;;  %v18866_v40 = vld [vmem:[#allocation197_spill] sm:$0xff]  ;;  %18867 = vst [vmem:[#allocation86_spill] sm:$0xff] %v15109_v34  ;;  %v6489_v52 = vrot.slane %v6475_v44, %v10693_v62 }
 0x4d4   : > { %v6250_v36 = vcombine.low %v15095_v25, %v15082_v33  ;;  %v6505_v9 = vrot.slane %v6491_v0, %v10693_v62  ;;  %v18868_v34 = vld [vmem:[#allocation281_spill] sm:$0xff]  ;;  %v5095_v5 = vcombine.high %v15005_v23, %v14997_v42 }
 0x4d5   : > { %8524 = vrot.lane.b32.xlu0 %v6865_v59, %s10260_s14  ;;  %v18865_v59 = vld [vmem:[#allocation277_spill] sm:$0xff]  ;;  %v6728_v55 = vcombine.low %v18869_v48, %v18868_v34  ;;  %v15126_v44 = vrot.slane %v6282_v26, %v10800_v54 }
 0x4d6   : > { %7874 = vrot.lane.b32.xlu1 %v4279_v61, %s10258_s12  ;;  %v15105_v41 = vpop.permute.xlu0 %7796  ;;  %v6452_v50 = vcombine.low %v18866_v40, %v18865_v59  ;;  %v6473_v61 = vrot.slane %v6459_v12, %v10693_v62  ;;  %v6570_v17 = vcombine.low %v6505_v9, %v15102_v51  ;;  %v15134_v13 = vrot.slane %v6250_v36, %v10800_v54 }
 0x4d7   : > { %18864 = vst [vmem:[#allocation73_spill] sm:$0xff] %v15105_v41  ;;  %18870 = vst [vmem:[#allocation176_spill] sm:$0xff] %v15126_v44  ;;  %v4259_v12 = vcombine.high %v14910_v7, %v14892_v24  ;;  %v3192_v24 = vcombine.low %v14694_v16, %v14654_v31 }
 0x4d8   : > { %18872 = vst [vmem:[#allocation130_spill] sm:$0xff] %v15134_v13  ;;  %v6315_v26 = vcombine.high %v15134_v13, %v15126_v44 }
 0x4d9   : > { %8158 = vrot.lane.b32.xlu0 %v6452_v50, %s10254_s29  ;;  %v15128_v0 = vpop.permute.xlu1 %7570  ;;  %v6538_v50 = vcombine.low %v6473_v61, %v6489_v52 }
 0x4da   : > { %7882 = vrot.lane.b32.xlu1 %v4823_v60, %s10258_s12  ;;  %v15121_v41 = vpop.permute.xlu0 %7800  ;;  %18871 = vst [vmem:[#allocation117_spill] sm:$0xff] %v15128_v0  ;;  %v15144_v0 = vrot.slane %v6570_v17, %v10800_v54  ;;  %v15162_v17 = vrot.slane %v4259_v12, %v10800_v54  ;;  %v4824_v12 = vcombine.low %v14853_v46, %v14844_v43 }
 0x4db   : > { %v15154_v7 = vrot.slane %v6538_v50, %v10800_v54  ;;  %v18879_v43 = vcombine.high %v18773_v30, %v18772_v47 }
 0x4dd   : > { %8450 = vrot.lane.b32.xlu0 %v6728_v55, %s10259_s13  ;;  %v4227_v55 = vcombine.high %v14922_v22, %v14915_v27  ;;  %v6591_v36 = vcombine.high %v15154_v7, %v15144_v0  ;;  %v3464_v22 = vcombine.low %v14646_v38, %v14672_v28 }
 0x4de   : > { %7886 = vrot.lane.b32.xlu1 %v5095_v5, %s10258_s12  ;;  %v15139_v60 = vpop.permute.xlu0 %7808  ;;  %v15148_v42 = vpop.permute.xlu1 %7574 }
 0x4df   : > { %18873 = vst [vmem:[#allocation68_spill] sm:$0xff] %v15148_v42  ;;  %v15170_v50 = vrot.slane %v4227_v55, %v10800_v54  ;;  %v6251_v42 = vcombine.high %v15095_v25, %v15082_v33  ;;  %v18882_v33 = vld [vmem:[#allocation253_spill] sm:$0xff]  ;;  %v18883_v25 = vld [vmem:[#allocation254_spill] sm:$0xff] }
 0x4e1   : > { %8084 = vrot.lane.b32.xlu0 %v6315_v26, %s10255_s9  ;;  %v4281_v26 = vcombine.high %v15170_v50, %v15162_v17 }
 0x4e2   : > { %7930 = vrot.lane.b32.xlu1 %v3192_v24, %s10259_s13  ;;  %v15157_v23 = vpop.permute.xlu0 %7812 }
 0x4e3   : > { %18874 = vst [vmem:[#allocation30_spill] sm:$0xff] %v15157_v23  ;;  %v15164_v27 = vpop.permute.xlu1 %7582  ;;  %v18878_v23 = vld [vmem:[#allocation194_spill] sm:$0xff] }
 0x4e5   : > { %8376 = vrot.lane.b32.xlu0 %v6591_v36, %s10258_s12  ;;  %v6283_v36 = vcombine.high %v15087_v29, %v15072_v53  ;;  %v6539_v29 = vcombine.high %v6473_v61, %v6489_v52 }
 0x4e6   : > { %7934 = vrot.lane.b32.xlu1 %v3464_v22, %s10259_s13  ;;  %v15173_v5 = vpop.permute.xlu0 %7856  ;;  %v18877_v22 = vld [vmem:[#allocation282_spill] sm:$0xff] }
 0x4e7   : > { %18875 = vst [vmem:[#allocation64_spill] sm:$0xff] %v15173_v5  ;;  %v15177_v24 = vpop.permute.xlu1 %7586  ;;  %v6454_v5 = vcombine.low %v18878_v23, %v18877_v22  ;;  %v15202_v53 = vrot.slane %v6283_v36, %v10800_v54 }
 0x4e9   : > { %8018 = vrot.lane.b32.xlu0 %v4281_v26, %s10260_s14  ;;  %v6571_v26 = vcombine.high %v6505_v9, %v15102_v51  ;;  %v6862_v51 = vcombine.low %v14978_v18, %v14965_v11  ;;  %v15213_v9 = vrot.slane %v6251_v42, %v10800_v54  ;;  %v18886_v18 = vcombine.low %v18831_v15, %v18832_v49 }
 0x4ea   : > { %7954 = vrot.lane.b32.xlu1 %v4824_v12, %s10259_s13  ;;  %v15185_v55 = vpop.permute.xlu0 %7860 }
 0x4eb   : > { %18876 = vst [vmem:[#allocation276_spill] sm:$0xff] %v15185_v55  ;;  %v15191_v13 = vpop.permute.xlu1 %7594  ;;  %v18884_v55 = vcombine.low %v18882_v33, %v18883_v25  ;;  %v6317_v47 = vcombine.high %v15213_v9, %v15202_v53  ;;  %v15221_v52 = vrot.slane %v6571_v26, %v10800_v54 }
 0x4ed   : > { %8302 = vrot.lane.b32.xlu0 %v6454_v5, %s10257_s11  ;;  %v15227_v5 = vrot.slane %v6539_v29, %v10800_v54  ;;  %v18891_v29 = vld [vmem:[#allocation36_spill] sm:$0xff] }
 0x4ee   : > { %8024 = vrot.lane.b32.xlu1 %v18879_v43, %s10260_s14  ;;  %v15199_v46 = vpop.permute.xlu0 %7868  ;;  %v18890_v43 = vld [vmem:[#allocation6_spill] sm:$0xff] }
 0x4ef   : > { %18880 = vst [vmem:[#allocation97_spill] sm:$0xff] %v15199_v46  ;;  %v6593_v42 = vcombine.high %v15227_v5, %v15221_v52  ;;  %v6180_v15 = vcombine.low %v18891_v29, %v18890_v43 }
 0x4f0   : > { %v15204_v12 = vpop.permute.xlu1 %7598 }
 0x4f1   : > { %18881 = vst [vmem:[#allocation279_spill] sm:$0xff] %v15204_v12  ;;  %7944 = vrot.lane.b32.xlu0 %v18884_v55, %s10259_s13  ;;  %v18888_v55 = vcombine.high %v18813_v10, %v18814_v37  ;;  %v18897_v10 = vld [vmem:[#allocation283_spill] sm:$0xff]  ;;  %v18898_v37 = vld [vmem:[#allocation228_spill] sm:$0xff] }
 0x4f2   : > { %8308 = vrot.lane.b32.xlu1 %v6862_v51, %s10257_s11  ;;  %v15216_v30 = vpop.permute.xlu0 %7872  ;;  %v18893_v51 = vld [vmem:[#allocation115_spill] sm:$0xff] }
 0x4f4   : > { %v15223_v61 = vpop.permute.xlu1 %7642 }
 0x4f5   : > { %18885 = vst [vmem:[#allocation234_spill] sm:$0xff] %v15223_v61  ;;  %8228 = vrot.lane.b32.xlu0 %v6317_v47, %s10256_s10  ;;  %v18894_v47 = vld [vmem:[#allocation50_spill] sm:$0xff]  ;;  %v18900_v61 = vld [vmem:[#allocation80_spill] sm:$0xff] }
 0x4f6   : > { %7950 = vrot.lane.b32.xlu1 %v18886_v18, %s10259_s13  ;;  %v15233_v11 = vpop.permute.xlu0 %7880  ;;  %v6298_v18 = vcombine.low %v18894_v47, %v18893_v51 }
 0x4f8   : > { %v15237_v36 = vpop.permute.xlu1 %7646 }
 0x4f9   : > { %18887 = vst [vmem:[#allocation96_spill] sm:$0xff] %v15237_v36  ;;  %8520 = vrot.lane.b32.xlu0 %v6593_v42, %s10260_s14  ;;  %v18895_v42 = vcombine.high %v18818_v4, %v18819_v45  ;;  %v18902_v4 = vld [vmem:[#allocation66_spill] sm:$0xff]  ;;  %v18903_v45 = vld [vmem:[#allocation89_spill] sm:$0xff] }
 0x4fa   : > { %8234 = vrot.lane.b32.xlu1 %v18888_v55, %s10256_s10  ;;  %v15244_v26 = vpop.permute.xlu0 %7884  ;;  %v6456_v55 = vcombine.low %v18898_v37, %v18897_v10  ;;  %v6043_v47 = vcombine.high %v18903_v45, %v18902_v4  ;;  %v18909_v4 = vld [vmem:[#allocation58_spill] sm:$0xff] }
 0x4fb   : > { %18889 = vst [vmem:[#allocation205_spill] sm:$0xff] %v15244_v26  ;;  %v18899_v26 = vld [vmem:[#allocation192_spill] sm:$0xff] }
 0x4fc   : > { %v15248_v49 = vpop.permute.xlu1 %7654  ;;  %v6266_v36 = vcombine.low %v18900_v61, %v18899_v26  ;;  %v6864_v61 = vcombine.low %v15065_v57, %v15053_v58  ;;  %v18910_v57 = vld [vmem:[#allocation44_spill] sm:$0xff] }
 0x4fd   : > { %18892 = vst [vmem:[#allocation70_spill] sm:$0xff] %v15248_v49  ;;  %8154 = vrot.lane.b32.xlu0 %v6180_v15, %s10254_s29  ;;  %v6588_v15 = vcombine.low %v15043_v20, %v15031_v8 }
 0x4fe   : > { %8526 = vrot.lane.b32.xlu1 %v18895_v42, %s10260_s14  ;;  %v15257_v12 = vpop.permute.xlu0 %7928  ;;  %v15274_v42 = vrot.slane %v6298_v18, %v10800_v54  ;;  %v15282_v26 = vrot.slane %v6266_v36, %v10800_v54  ;;  %v18906_v18 = vld [vmem:[#allocation57_spill] sm:$0xff]  ;;  %v18911_v36 = vld [vmem:[#allocation20_spill] sm:$0xff] }
 0x4ff   : > { %18896 = vst [vmem:[#allocation199_spill] sm:$0xff] %v15257_v12  ;;  %v6130_v45 = vcombine.low %v18911_v36, %v18910_v57 }
 0x500   : > { %v15263_v46 = vpop.permute.xlu1 %7658  ;;  %v6319_v20 = vcombine.high %v15282_v26, %v15274_v42 }
 0x501   : > { %8446 = vrot.lane.b32.xlu0 %v6456_v55, %s10259_s13  ;;  %v18905_v55 = vld [vmem:[#allocation19_spill] sm:$0xff] }
 0x502   : > { %8160 = vrot.lane.b32.xlu1 %v6588_v15, %s10254_s29  ;;  %v15269_v51 = vpop.permute.xlu0 %7932  ;;  %v6162_v15 = vcombine.low %v18906_v18, %v18905_v55  ;;  %v18913_v55 = vcombine.high %v14662_v56, %v14687_v3  ;;  %v18914_v18 = vcombine.high %v18838_v21, %v18837_v63  ;;  %v18919_v63 = vld [vmem:[#allocation21_spill] sm:$0xff] }
 0x503   : > { %18901 = vst [vmem:[#allocation240_spill] sm:$0xff] %v15269_v51  ;;  %v18920_v21 = vld [vmem:[#allocation109_spill] sm:$0xff] }
 0x504   : > { %v15276_v12 = vpop.permute.xlu1 %7666 }
 0x505   : > { %8080 = vrot.lane.b32.xlu0 %v6043_v47, %s10255_s9  ;;  %v18908_v47 = vld [vmem:[#allocation85_spill] sm:$0xff] }
 0x506   : > { %8452 = vrot.lane.b32.xlu1 %v6864_v61, %s10259_s13  ;;  %v15285_v8 = vpop.permute.xlu0 %7940  ;;  %v6451_v58 = vcombine.high %v18909_v4, %v18908_v47 }
 0x507   : > { %18904 = vst [vmem:[#allocation63_spill] sm:$0xff] %v15285_v8  ;;  %v6170_v8 = vrot.slane %v6162_v15, %v10800_v54  ;;  %v18916_v15 = vcombine.high %v18842_v39, %v18843_v1  ;;  %v6590_v39 = vcombine.low %v15154_v7, %v15144_v0  ;;  %v4280_v0 = vcombine.low %v15170_v50, %v15162_v17  ;;  %v18925_v50 = vld [vmem:[#allocation32_spill] sm:$0xff] }
 0x508   : > { %v15291_v51 = vpop.permute.xlu1 %7670 }
 0x509   : > { %18907 = vst [vmem:[#allocation27_spill] sm:$0xff] %v15291_v51  ;;  %8372 = vrot.lane.b32.xlu0 %v6319_v20, %s10258_s12  ;;  %v6138_v20 = vrot.slane %v6130_v45, %v10800_v54 }
 0x50a   : > { %8086 = vrot.lane.b32.xlu1 %v6451_v58, %s10255_s9  ;;  %v15299_v61 = vpop.permute.xlu0 %7952 }
 0x50b   : > { %v6182_v58 = vcombine.low %v6138_v20, %v6170_v8 }
 0x50c   : > { %v15302_v44 = vpop.permute.xlu1 %7714 }
 0x50d   : > { %18912 = vst [vmem:[#allocation167_spill] sm:$0xff] %v15302_v44  ;;  %8014 = vrot.lane.b32.xlu0 %v18913_v55, %s10260_s14  ;;  %v18917_v55 = vld [vmem:[#allocation288_spill] sm:$0xff]  ;;  %v18918_v44 = vld [vmem:[#allocation291_spill] sm:$0xff] }
 0x50e   : > { %8378 = vrot.lane.b32.xlu1 %v18914_v18, %s10258_s12  ;;  %v8171_v57 = vpop.permute.xlu0 %8170  ;;  %v5907_v45 = vcombine.high %v18918_v44, %v18917_v55  ;;  %v18921_v18 = vcombine.low %v18919_v63, %v18920_v21  ;;  %v6183_v55 = vcombine.high %v6138_v20, %v6170_v8  ;;  %v18922_v63 = vld [vmem:[#allocation81_spill] sm:$0xff]  ;;  %v18923_v21 = vld [vmem:[#allocation95_spill] sm:$0xff] }
 0x510   : > { %v15313_v36 = vpop.permute.xlu1 %7718  ;;  %v8702_v49 = vsel %vm8554_vm4, %v18921_v18, %v15013_v35  ;;  %v6026_v35 = vcombine.low %v18923_v21, %v18922_v63  ;;  %v18932_v63 = vld [vmem:[#allocation217_spill] sm:$0xff] }
 0x511   : > { %18915 = vst [vmem:[#allocation247_spill] sm:$0xff] %v15313_v36  ;;  %8298 = vrot.lane.b32.xlu0 %v6182_v58, %s10257_s11  ;;  %v8720_v1 = vsel %vm8573_vm5, %v8702_v49, %v8171_v57  ;;  %v18924_v57 = vcombine.high %v18770_v19, %v18769_v2  ;;  %v18931_v19 = vld [vmem:[#allocation121_spill] sm:$0xff] }
 0x512   : > { %8020 = vrot.lane.b32.xlu1 %v18916_v15, %s10260_s14  ;;  %v8243_v51 = vpop.permute.xlu0 %8242  ;;  %v5771_v21 = vcombine.high %v18932_v63, %v18931_v19  ;;  %v19005_v63 = vld [vmem:[#allocation184_spill] sm:$0xff] }
 0x513   : > { %v8738_v58 = vsel %vm8592_vm6, %v8720_v1, %v8243_v51  ;;  %v6034_v51 = vrot.slane %v6026_v35, %v10800_v54 }
 0x514   : > { %v15327_v36 = vpop.permute.xlu1 %7726 }
 0x515   : > { %8078 = vrot.lane.b32.xlu0 %v5907_v45, %s10255_s9 }
 0x516   : > { %8304 = vrot.lane.b32.xlu1 %v6590_v39, %s10257_s11  ;;  %v8315_v15 = vpop.permute.xlu0 %8314  ;;  %v18928_v39 = vcombine.high %v18866_v40, %v18865_v59  ;;  %v6316_v59 = vcombine.low %v15213_v9, %v15202_v53  ;;  %v18934_v40 = vld [vmem:[#allocation285_spill] sm:$0xff] }
 0x517   : > { %v8756_v18 = vsel %vm8611_vm7, %v8738_v58, %v8315_v15 }
 0x518   : > { %v15338_v44 = vpop.permute.xlu1 %7730  ;;  %v8774_v7 = vsel %vm8630_vm8, %v8756_v18, %v15035_v14  ;;  %v18935_v18 = vld [vmem:[#allocation270_spill] sm:$0xff] }
 0x519   : > { %8370 = vrot.lane.b32.xlu0 %v6183_v55, %s10258_s12  ;;  %v18926_v55 = vld [vmem:[#allocation48_spill] sm:$0xff] }
 0x51a   : > { %7946 = vrot.lane.b32.xlu1 %v4280_v0, %s10259_s13  ;;  %v8459_v49 = vpop.permute.xlu0 %8458  ;;  %v18927_v45 = vcombine.low %v18925_v50, %v18926_v55  ;;  %v5890_v0 = vcombine.low %v18935_v18, %v18934_v40  ;;  %v18940_v55 = vld [vmem:[#allocation91_spill] sm:$0xff]  ;;  %v18945_v18 = vld [vmem:[#allocation292_spill] sm:$0xff] }
 0x51b   : > { %v8792_v8 = vsel %vm8649_vm10, %v8774_v7, %v8459_v49  ;;  %v18937_v49 = vld [vmem:[#allocation185_spill] sm:$0xff] }
 0x51c   : > { %v15348_v20 = vpop.permute.xlu1 %7738  ;;  %v8810_v17 = vsel %vm8668_vm9, %v8792_v8, %v15069_v32  ;;  %v6002_v14 = vrot.slane %v18927_v45, %v10800_v54  ;;  %v18930_v32 = vcombine.high %v18869_v48, %v18868_v34  ;;  %v18936_v34 = vld [vmem:[#allocation263_spill] sm:$0xff]  ;;  %v5898_v9 = vrot.slane %v5890_v0, %v10800_v54  ;;  %v18946_v0 = vld [vmem:[#allocation294_spill] sm:$0xff] }
 0x51d   : > { %8012 = vrot.lane.b32.xlu0 %v18924_v57, %s10260_s14  ;;  %8907 = vmatprep.subr.mxu0 %v8810_v17  ;;  %v5858_v8 = vcombine.low %v18937_v49, %v18936_v34  ;;  %v6592_v17 = vcombine.low %v15227_v5, %v15221_v52  ;;  %v18947_v49 = vld [vmem:[#allocation12_spill] sm:$0xff] }
 0x51e   : > { %8230 = vrot.lane.b32.xlu1 %v18928_v39, %s10256_s10  ;;  %v15364_v1 = vpop.permute.xlu0 %8026  ;;  %v6046_v58 = vcombine.low %v6002_v14, %v6034_v51  ;;  %v6047_v48 = vcombine.high %v6002_v14, %v6034_v51  ;;  %v18939_v51 = vld [vmem:[#allocation56_spill] sm:$0xff]  ;;  %v18942_v14 = vld [vmem:[#allocation153_spill] sm:$0xff]  ;;  %v18943_v39 = vld [vmem:[#allocation42_spill] sm:$0xff] }
 0x51f   : > { %v18941_v45 = vcombine.high %v18939_v51, %v18940_v55  ;;  %v18949_v51 = vcombine.high %v18882_v33, %v18883_v25 }
 0x520   : > { %v15366_v15 = vpop.permute.xlu1 %7742 }
 0x521   : > { %18929 = vst [vmem:[#allocation251_spill] sm:$0xff] %v15366_v15  ;;  %8296 = vrot.lane.b32.xlu0 %v6046_v58, %s10257_s11  ;;  %v6179_v58 = vcombine.high %v18943_v39, %v18942_v14  ;;  %v18968_v15 = vld [vmem:[#allocation146_spill] sm:$0xff] }
 0x522   : > { %8522 = vrot.lane.b32.xlu1 %v18930_v32, %s10260_s14  ;;  %v15373_v2 = vpop.permute.xlu0 %8528  ;;  %v5866_v32 = vrot.slane %v5858_v8, %v10800_v54  ;;  %v18948_v8 = vld [vmem:[#allocation16_spill] sm:$0xff] }
 0x524   : > { %v15377_v35 = vpop.permute.xlu1 %7786  ;;  %v5910_v5 = vcombine.low %v5866_v32, %v5898_v9 }
 0x525   : > { %18933 = vst [vmem:[#allocation137_spill] sm:$0xff] %v15377_v35  ;;  %8076 = vrot.lane.b32.xlu0 %v5771_v21, %s10255_s9  ;;  %v18982_v35 = vld [vmem:[#allocation187_spill] sm:$0xff] }
 0x526   : > { %8156 = vrot.lane.b32.xlu1 %v6316_v59, %s10254_s29  ;;  %v15385_v7 = vpop.permute.xlu0 %8162  ;;  %v18944_v59 = vcombine.high %v18878_v23, %v18877_v22  ;;  %v5911_v23 = vcombine.high %v5866_v32, %v5898_v9  ;;  %v18950_v22 = vld [vmem:[#allocation216_spill] sm:$0xff]  ;;  %v18954_v9 = vld [vmem:[#allocation98_spill] sm:$0xff] }
 0x527   : > { %v18955_v32 = vld [vmem:[#allocation72_spill] sm:$0xff] }
 0x528   : > { %v15389_v57 = vpop.permute.xlu1 %7790 }
 0x529   : > { %18938 = vst [vmem:[#allocation139_spill] sm:$0xff] %v15389_v57  ;;  %8368 = vrot.lane.b32.xlu0 %v6047_v48, %s10258_s12  ;;  %v5635_v48 = vcombine.high %v18946_v0, %v18945_v18  ;;  %v18983_v18 = vld [vmem:[#allocation148_spill] sm:$0xff] }
 0x52a   : > { %8448 = vrot.lane.b32.xlu1 %v6592_v17, %s10259_s13  ;;  %v15395_v53 = vpop.permute.xlu0 %8454  ;;  %v5754_v17 = vcombine.low %v18948_v8, %v18947_v49  ;;  %v18956_v49 = vcombine.high %v18954_v9, %v18955_v32  ;;  %v5482_v0 = vcombine.low %v18983_v18, %v18982_v35 }
 0x52c   : > { %v15398_v50 = vpop.permute.xlu1 %7798  ;;  %v5762_v33 = vrot.slane %v5754_v17, %v10800_v54  ;;  %v18959_v17 = vcombine.high %v18891_v29, %v18890_v43  ;;  %v18965_v29 = vld [vmem:[#allocation208_spill] sm:$0xff] }
 0x52d   : > { %8010 = vrot.lane.b32.xlu0 %v18941_v45, %s10260_s14  ;;  %v18951_v45 = vld [vmem:[#allocation214_spill] sm:$0xff] }
 0x52e   : > { %8082 = vrot.lane.b32.xlu1 %v6179_v58, %s10255_s9  ;;  %v15408_v52 = vpop.permute.xlu0 %8088  ;;  %v5722_v58 = vcombine.low %v18951_v45, %v18950_v22  ;;  %v18960_v45 = vld [vmem:[#allocation235_spill] sm:$0xff] }
 0x530   : > { %v15410_v21 = vpop.permute.xlu1 %7802  ;;  %v5730_v8 = vrot.slane %v5722_v58, %v10800_v54  ;;  %v18961_v58 = vld [vmem:[#allocation262_spill] sm:$0xff] }
 0x531   : > { %8294 = vrot.lane.b32.xlu0 %v5910_v5, %s10257_s11 }
 0x532   : > { %8374 = vrot.lane.b32.xlu1 %v18944_v59, %s10258_s12  ;;  %v6318_v59 = vcombine.low %v15282_v26, %v15274_v42  ;;  %v5774_v26 = vcombine.low %v5730_v8, %v5762_v33  ;;  %v5775_v43 = vcombine.high %v5730_v8, %v5762_v33  ;;  %v18970_v33 = vcombine.high %v14646_v38, %v14672_v28  ;;  %v18976_v28 = vld [vmem:[#allocation155_spill] sm:$0xff] }
 0x533   : > { %v15417_v40 = vpop.permute.xlu0 %8380 }
 0x534   : > { %v15421_v34 = vpop.permute.xlu1 %7810 }
 0x535   : > { %8074 = vrot.lane.b32.xlu0 %v5635_v48, %s10255_s9 }
 0x536   : > { %8016 = vrot.lane.b32.xlu1 %v18949_v51, %s10260_s14  ;;  %v18957_v51 = vcombine.low %v14662_v56, %v14687_v3  ;;  %v18962_v56 = vld [vmem:[#allocation278_spill] sm:$0xff]  ;;  %v18963_v3 = vld [vmem:[#allocation213_spill] sm:$0xff] }
 0x537   : > { %v15430_v55 = vpop.permute.xlu0 %8022  ;;  %v5618_v32 = vcombine.low %v18963_v3, %v18962_v56  ;;  %v18971_v3 = vld [vmem:[#allocation200_spill] sm:$0xff] }
 0x538   : > { %v15434_v5 = vpop.permute.xlu1 %7814 }
 0x539   : > { %18952 = vst [vmem:[#allocation140_spill] sm:$0xff] %v15434_v5  ;;  %8366 = vrot.lane.b32.xlu0 %v5911_v23, %s10258_s12 }
 0x53a   : > { %8300 = vrot.lane.b32.xlu1 %v6318_v59, %s10257_s11  ;;  %v5499_v59 = vcombine.high %v18961_v58, %v18960_v45 }
 0x53b   : > { %v15440_v48 = vpop.permute.xlu0 %8306 }
 0x53c   : > { %v15443_v25 = vpop.permute.xlu1 %7858 }
 0x53d   : > { %18953 = vst [vmem:[#allocation34_spill] sm:$0xff] %v15443_v25  ;;  %8008 = vrot.lane.b32.xlu0 %v18956_v49, %s10260_s14  ;;  %v18964_v49 = vcombine.high %v18898_v37, %v18897_v10  ;;  %v5626_v10 = vrot.slane %v5618_v32, %v10800_v54  ;;  %v18980_v25 = vld [vmem:[#allocation227_spill] sm:$0xff] }
 0x53e   : > { %7942 = vrot.lane.b32.xlu1 %v18957_v51, %s10259_s13 }
 0x53f   : > { %v15454_v42 = vpop.permute.xlu0 %7948 }
 0x540   : > { %v15456_v23 = vpop.permute.xlu1 %7862 }
 0x541   : > { %18958 = vst [vmem:[#allocation49_spill] sm:$0xff] %v15456_v23  ;;  %8292 = vrot.lane.b32.xlu0 %v5774_v26, %s10257_s11  ;;  %v18966_v26 = vld [vmem:[#allocation145_spill] sm:$0xff] }
 0x542   : > { %8226 = vrot.lane.b32.xlu1 %v18959_v17, %s10256_s10  ;;  %v5586_v17 = vcombine.low %v18966_v26, %v18965_v29 }
 0x543   : > { %v15463_v22 = vpop.permute.xlu0 %8232 }
 0x544   : > { %v15467_v9 = vpop.permute.xlu1 %7870  ;;  %v5594_v8 = vrot.slane %v5586_v17, %v10800_v54  ;;  %v18977_v17 = vld [vmem:[#allocation8_spill] sm:$0xff] }
 0x545   : > { %8072 = vrot.lane.b32.xlu0 %v5499_v59, %s10255_s9  ;;  %v18967_v59 = vld [vmem:[#allocation53_spill] sm:$0xff] }
 0x546   : > { %8518 = vrot.lane.b32.xlu1 %v18964_v49, %s10260_s14  ;;  %v18969_v45 = vcombine.low %v18967_v59, %v18968_v15  ;;  %v18972_v49 = vld [vmem:[#allocation269_spill] sm:$0xff]  ;;  %v18975_v32 = vcombine.high %v18967_v59, %v18968_v15  ;;  %v18984_v15 = vld [vmem:[#allocation166_spill] sm:$0xff] }
 0x547   : > { %v15476_v51 = vpop.permute.xlu0 %8524 }
 0x548   : > { %v15480_v5 = vpop.permute.xlu1 %7874 }
 0x549   : > { %8364 = vrot.lane.b32.xlu0 %v5775_v43, %s10258_s12  ;;  %v18973_v43 = vcombine.low %v18971_v3, %v18972_v49 }
 0x54a   : > { %8152 = vrot.lane.b32.xlu1 %v18969_v45, %s10254_s29  ;;  %v5638_v45 = vcombine.low %v5594_v8, %v5626_v10 }
 0x54b   : > { %v15487_v56 = vpop.permute.xlu0 %8158 }
 0x54c   : > { %v7883_v37 = vpop.permute.xlu1 %7882 }
 0x54d   : > { %8006 = vrot.lane.b32.xlu0 %v18970_v33, %s10260_s14  ;;  %v5363_v33 = vcombine.high %v18977_v17, %v18976_v28  ;;  %v18986_v17 = vld [vmem:[#allocation209_spill] sm:$0xff] }
 0x54e   : > { %8444 = vrot.lane.b32.xlu1 %v18973_v43, %s10259_s13  ;;  %v18979_v43 = vld [vmem:[#allocation77_spill] sm:$0xff] }
 0x54f   : > { %v15499_v29 = vpop.permute.xlu0 %8450 }
 0x550   : > { %v15501_v26 = vpop.permute.xlu1 %7886 }
 0x551   : > { %18974 = vst [vmem:[#allocation141_spill] sm:$0xff] %v15501_v26  ;;  %8290 = vrot.lane.b32.xlu0 %v5638_v45, %s10257_s11  ;;  %v18981_v26 = vcombine.low %v18979_v43, %v18980_v25  ;;  %v18988_v25 = vld [vmem:[#allocation229_spill] sm:$0xff] }
 0x552   : > { %8224 = vrot.lane.b32.xlu1 %v18975_v32, %s10256_s10  ;;  %v18985_v32 = vcombine.high %v18971_v3, %v18972_v49  ;;  %v18992_v43 = vld [vmem:[#allocation233_spill] sm:$0xff] }
 0x553   : > { %v15508_v38 = vpop.permute.xlu0 %8084  ;;  %v8701_v45 = vsel %vm8554_vm4, %v18981_v26, %v14887_v6  ;;  %v18989_v6 = vld [vmem:[#allocation82_spill] sm:$0xff] }
 0x554   : > { %v15512_v58 = vpop.permute.xlu1 %7930  ;;  %v8719_v59 = vsel %vm8573_vm5, %v8701_v45, %v18984_v15  ;;  %v18990_v26 = vcombine.low %v18988_v25, %v18989_v6  ;;  %v18995_v45 = vld [vmem:[#allocation289_spill] sm:$0xff] }
 0x555   : > { %18978 = vst [vmem:[#allocation142_spill] sm:$0xff] %v15512_v58  ;;  %8070 = vrot.lane.b32.xlu0 %v5363_v33, %s10255_s9  ;;  %v5639_v33 = vcombine.high %v5594_v8, %v5626_v10  ;;  %v18987_v58 = vld [vmem:[#allocation207_spill] sm:$0xff]  ;;  %v8737_v3 = vsel %vm8592_vm6, %v8719_v59, %v18992_v43  ;;  %v18993_v10 = vld [vmem:[#allocation90_spill] sm:$0xff]  ;;  %v18998_v59 = vld [vmem:[#allocation249_spill] sm:$0xff] }
 0x556   : > { %8516 = vrot.lane.b32.xlu1 %v18985_v32, %s10260_s14  ;;  %v5450_v19 = vcombine.low %v18987_v58, %v18986_v17  ;;  %v8570_v35 = vsel %vm8554_vm4, %v18990_v26, %v15191_v13  ;;  %v8755_v8 = vsel %vm8611_vm7, %v8737_v3, %v18993_v10  ;;  %v18994_v17 = vld [vmem:[#allocation181_spill] sm:$0xff]  ;;  %v5490_v32 = vrot.slane %v5482_v0, %v10800_v54  ;;  %v19003_v10 = vld [vmem:[#allocation100_spill] sm:$0xff] }
 0x557   : > { %v15528_v28 = vpop.permute.xlu0 %8376  ;;  %v8589_v49 = vsel %vm8573_vm5, %v8570_v35, %v15276_v12  ;;  %v18996_v13 = vcombine.low %v18994_v17, %v18995_v45  ;;  %v18999_v25 = vld [vmem:[#allocation245_spill] sm:$0xff] }
 0x558   : > { %v15537_v18 = vpop.permute.xlu1 %7934  ;;  %v8608_v58 = vsel %vm8592_vm6, %v8589_v49, %v15348_v20  ;;  %v19000_v6 = vcombine.low %v18998_v59, %v18999_v25  ;;  %v19001_v35 = vld [vmem:[#allocation225_spill] sm:$0xff]  ;;  %v19002_v49 = vld [vmem:[#allocation186_spill] sm:$0xff]  ;;  %v5458_v0 = vrot.slane %v5450_v19, %v10800_v54  ;;  %v8773_v59 = vsel %vm8630_vm8, %v8755_v8, %v19005_v63 }
 0x559   : > { %18991 = vst [vmem:[#allocation215_spill] sm:$0xff] %v15537_v18  ;;  %8362 = vrot.lane.b32.xlu0 %v5639_v33, %s10258_s12  ;;  %v18997_v33 = vld [vmem:[#allocation61_spill] sm:$0xff]  ;;  %v8627_v26 = vsel %vm8611_vm7, %v8608_v58, %v15421_v34  ;;  %v19007_v58 = vld [vmem:[#allocation35_spill] sm:$0xff] }
 0x55a   : > { %8150 = vrot.lane.b32.xlu1 %v18996_v13, %s10254_s29  ;;  %v8569_v12 = vsel %vm8554_vm4, %v19000_v6, %v18997_v33  ;;  %v8646_v43 = vsel %vm8630_vm8, %v8627_v26, %v7883_v37  ;;  %v19004_v13 = vcombine.high %v19002_v49, %v19003_v10  ;;  %v19006_v33 = vld [vmem:[#allocation94_spill] sm:$0xff]  ;;  %v8791_v6 = vsel %vm8649_vm10, %v8773_v59, %v19007_v58  ;;  %v19009_v26 = vld [vmem:[#allocation147_spill] sm:$0xff]  ;;  %v19017_v58 = vld [vmem:[#allocation261_spill] sm:$0xff] }
 0x55b   : > { %v15552_v15 = vpop.permute.xlu0 %8018  ;;  %v8588_v20 = vsel %vm8573_vm5, %v8569_v12, %v19001_v35  ;;  %v19008_v12 = vld [vmem:[#allocation39_spill] sm:$0xff]  ;;  %v5502_v8 = vcombine.low %v5458_v0, %v5490_v32  ;;  %v19012_v10 = vld [vmem:[#allocation158_spill] sm:$0xff] }
 0x55c   : > { %v7955_v3 = vpop.permute.xlu1 %7954  ;;  %v8607_v25 = vsel %vm8592_vm6, %v8588_v20, %v19006_v33  ;;  %v19010_v35 = vcombine.low %v19008_v12, %v19009_v26 }
 0x55d   : > { %8004 = vrot.lane.b32.xlu0 %v19004_v13, %s10260_s14  ;;  %v8665_v34 = vsel %vm8649_vm10, %v8646_v43, %v7955_v3  ;;  %v8626_v37 = vsel %vm8611_vm7, %v8607_v25, %v15139_v60  ;;  %v8809_v43 = vsel %vm8668_vm9, %v8791_v6, %v15373_v2  ;;  %v19013_v13 = vld [vmem:[#allocation51_spill] sm:$0xff]  ;;  %v5503_v25 = vcombine.high %v5458_v0, %v5490_v32  ;;  %v19025_v32 = vld [vmem:[#allocation134_spill] sm:$0xff]  ;;  %v19026_v0 = vld [vmem:[#allocation133_spill] sm:$0xff] }
 0x55e   : > { %8442 = vrot.lane.b32.xlu1 %v19010_v35, %s10259_s13  ;;  %v8684_v19 = vsel %vm8668_vm9, %v8665_v34, %v15364_v1  ;;  %v8645_v20 = vsel %vm8630_vm8, %v8626_v37, %v15233_v11  ;;  %v19011_v1 = vcombine.high %v18994_v17, %v18995_v45  ;;  %v5227_v2 = vcombine.high %v19013_v13, %v19012_v10  ;;  %v19015_v34 = vld [vmem:[#allocation152_spill] sm:$0xff]  ;;  %v19016_v17 = vld [vmem:[#allocation75_spill] sm:$0xff] }
 0x55f   : > { %v15585_v63 = vpop.permute.xlu0 %8302  ;;  %8908 = vmatpush1.msra.mxu0 %v8684_v19  ;;  %v8664_v60 = vsel %vm8649_vm10, %v8645_v20, %v15299_v61  ;;  %v19014_v61 = vcombine.high %v19008_v12, %v19009_v26  ;;  %v5346_v45 = vcombine.low %v19016_v17, %v19015_v34  ;;  %v19018_v6 = vld [vmem:[#allocation123_spill] sm:$0xff]  ;;  %v19019_v37 = vld [vmem:[#allocation124_spill] sm:$0xff]  ;;  %v19022_v12 = vld [vmem:[#allocation26_spill] sm:$0xff] }
 0x560   : > { %v8025_v3 = vpop.permute.xlu1 %8024  ;;  %8909 = vmatprep.subr.mxu0 %v8809_v43  ;;  %v19020_v35 = vcombine.low %v19018_v6, %v19019_v37  ;;  %v19023_v26 = vld [vmem:[#allocation13_spill] sm:$0xff]  ;;  %v19031_v6 = vld [vmem:[#allocation175_spill] sm:$0xff]  ;;  %v19032_v37 = vld [vmem:[#allocation106_spill] sm:$0xff] }
 0x561   : > { %8288 = vrot.lane.b32.xlu0 %v5502_v8, %s10257_s11  ;;  %v8683_v49 = vsel %vm8668_vm9, %v8664_v60, %v8025_v3  ;;  %v19021_v8 = vld [vmem:[#allocation78_spill] sm:$0xff]  ;;  %v5314_v60 = vcombine.low %v19023_v26, %v19022_v12  ;;  %v19034_v12 = vld [vmem:[#allocation189_spill] sm:$0xff]  ;;  %v19039_v10 = vld [vmem:[#allocation23_spill] sm:$0xff] }
 0x562   : > { %8222 = vrot.lane.b32.xlu1 %v19011_v1, %s10256_s10  ;;  %8910 = vmatpush1.msra.mxu0 %v8683_v49  ;;  %v8700_v19 = vsel %vm8554_vm4, %v19020_v35, %v19017_v58  ;;  %v19024_v3 = vld [vmem:[#allocation62_spill] sm:$0xff]  ;;  %v19027_v49 = vcombine.low %v19025_v32, %v19026_v0  ;;  %v5354_v58 = vrot.slane %v5346_v45, %v10800_v54  ;;  %v10182_v0 = vld [vmem:[#allocation2 + $0x68] sm:$0xff] }
 0x563   : > { %v15599_v11 = vpop.permute.xlu0 %7944  ;;  %v8718_v20 = vsel %vm8573_vm5, %v8700_v19, %v19021_v8  ;;  %v19033_v19 = vld [vmem:[#allocation201_spill] sm:$0xff]  ;;  %v19035_v32 = vcombine.high %v14694_v16, %v14654_v31  ;;  %v5322_v45 = vrot.slane %v5314_v60, %v10800_v54  ;;  %v19041_v60 = vld [vmem:[#allocation138_spill] sm:$0xff] }
 0x564   : > { %v8309_v59 = vpop.permute.xlu1 %8308  ;;  %v8568_v1 = vsel %vm8554_vm4, %v19027_v49, %v19024_v3  ;;  %v8736_v35 = vsel %vm8592_vm6, %v8718_v20, %v19032_v37  ;;  %v10183_v49 = vld [vmem:[#allocation2 + $0x98] sm:$0xff] }
 0x565   : > { %8068 = vrot.lane.b32.xlu0 %v5227_v2, %s10255_s9  ;;  %v19028_v2 = vld [vmem:[#allocation112_spill] sm:$0xff]  ;;  %v8754_v26 = vsel %vm8611_vm7, %v8736_v35, %v19034_v12  ;;  %v19038_v12 = vld [vmem:[#allocation74_spill] sm:$0xff]  ;;  %v5366_v16 = vcombine.low %v5322_v45, %v5354_v58 }
 0x566   : > { %8514 = vrot.lane.b32.xlu1 %v19014_v61, %s10260_s14  ;;  %v19029_v61 = vld [vmem:[#allocation179_spill] sm:$0xff]  ;;  %v19040_v13 = vcombine.low %v19038_v12, %v19039_v10 }
 0x567   : > { %v15608_v33 = vpop.permute.xlu0 %8228  ;;  %v19030_v34 = vcombine.low %v19028_v2, %v19029_v61 }
 0x568   : > { %v7951_v43 = vpop.permute.xlu1 %7950 }
 0x569   : > { %8360 = vrot.lane.b32.xlu0 %v5503_v25, %s10258_s12  ;;  %v8587_v25 = vsel %vm8573_vm5, %v8568_v1, %v19031_v6  ;;  %v5131_v1 = vcombine.high %v10182_v0, %v10183_v49  ;;  %v10184_v6 = vld [vmem:[#allocation2 + $0x80] sm:$0xff]  ;;  %v19043_v49 = vld [vmem:[#allocation83_spill] sm:$0xff] }
 0x56a   : > { %8148 = vrot.lane.b32.xlu1 %v19030_v34, %s10254_s29  ;;  %v8606_v8 = vsel %vm8592_vm6, %v8587_v25, %v19033_v19  ;;  %v19036_v34 = vld [vmem:[#allocation178_spill] sm:$0xff]  ;;  %v10185_v25 = vld [vmem:[#allocation2 + $0xb0] sm:$0xff]  ;;  %v19037_v19 = vld [vmem:[#allocation191_spill] sm:$0xff] }
 0x56b   : > { %v15631_v17 = vpop.permute.xlu0 %8520  ;;  %v8625_v20 = vsel %vm8611_vm7, %v8606_v8, %v19036_v34  ;;  %v5147_v37 = vcombine.high %v10184_v6, %v10185_v25  ;;  %v19042_v8 = vld [vmem:[#allocation11_spill] sm:$0xff]  ;;  %v19044_v34 = vld [vmem:[#allocation114_spill] sm:$0xff] }
 0x56c   : > { %v15642_v3 = vpop.permute.xlu1 %8234  ;;  %v8644_v35 = vsel %vm8630_vm8, %v8625_v20, %v19037_v19  ;;  %v19045_v6 = vcombine.low %v19043_v49, %v19044_v34 }
 0x56d   : > { %8002 = vrot.lane.b32.xlu0 %v19035_v32, %s10260_s14  ;;  %v8772_v32 = vsel %vm8630_vm8, %v8754_v26, %v19041_v60  ;;  %v8663_v0 = vsel %vm8649_vm10, %v8644_v35, %v7951_v43  ;;  %v15675_v26 = vrot.slane %v5147_v37, %v10693_v62  ;;  %v19046_v43 = vcombine.high %v19028_v2, %v19029_v61  ;;  %v19048_v60 = vld [vmem:[#allocation305_spill] sm:$0xff]  ;;  %v19050_v37 = vld [vmem:[#allocation223_spill] sm:$0xff] }
 0x56e   : > { %8440 = vrot.lane.b32.xlu1 %v19040_v13, %s10259_s13  ;;  %v8699_v25 = vsel %vm8554_vm4, %v19045_v6, %v19042_v8  ;;  %v8790_v20 = vsel %vm8649_vm10, %v8772_v32, %v15395_v53  ;;  %v15671_v13 = vrot.slane %v5131_v1, %v10693_v62  ;;  %v8682_v53 = vsel %vm8668_vm9, %v8663_v0, %v15430_v55  ;;  %v19049_v32 = vld [vmem:[#allocation210_spill] sm:$0xff]  ;;  %v19098_v62 = vld [vmem:[#allocation296_spill] sm:$0xff] }
 0x56f   : > { %v15657_v31 = vpop.permute.xlu0 %8154  ;;  %v8717_v8 = vsel %vm8573_vm5, %v8699_v25, %v19049_v32  ;;  %v19051_v55 = vcombine.high %v19038_v12, %v19039_v10  ;;  %v5367_v61 = vcombine.high %v5322_v45, %v5354_v58  ;;  %v19058_v32 = vld [vmem:[#allocation40_spill] sm:$0xff] }
 0x570   : > { %v8527_v19 = vpop.permute.xlu1 %8526  ;;  %v8735_v49 = vsel %vm8592_vm6, %v8717_v8, %v19050_v37  ;;  %v5210_v0 = vcombine.low %v15671_v13, %v15675_v26  ;;  %v19059_v8 = vld [vmem:[#allocation67_spill] sm:$0xff] }
 0x571   : > { %8286 = vrot.lane.b32.xlu0 %v5366_v16, %s10257_s11  ;;  %v8808_v18 = vsel %vm8668_vm9, %v8790_v20, %v8527_v19  ;;  %v19047_v16 = vld [vmem:[#allocation300_spill] sm:$0xff]  ;;  %v19053_v19 = vld [vmem:[#allocation290_spill] sm:$0xff]  ;;  %v19060_v37 = vcombine.low %v19058_v32, %v19059_v8 }
 0x572   : > { %8220 = vrot.lane.b32.xlu1 %v19046_v43, %s10256_s10  ;;  %8911 = vmatprep.subr.mxu0 %v8808_v18  ;;  %v7539_v1 = vcombine.high %v19048_v60, %v19047_v16  ;;  %v8753_v18 = vsel %vm8611_vm7, %v8735_v49, %v8309_v59  ;;  %v19052_v59 = vld [vmem:[#allocation293_spill] sm:$0xff]  ;;  %v5218_v45 = vrot.slane %v5210_v0, %v10800_v54  ;;  %v19070_v60 = vld [vmem:[#allocation287_spill] sm:$0xff] }
 0x573   : > { %v15683_v35 = vpop.permute.xlu0 %8446  ;;  %8912 = vmatpush1.msra.mxu0 %v8682_v53  ;;  %v8771_v25 = vsel %vm8630_vm8, %v8753_v18, %v15417_v40  ;;  %v19054_v43 = vcombine.low %v19052_v59, %v19053_v19  ;;  %v19055_v40 = vld [vmem:[#allocation65_spill] sm:$0xff]  ;;  %v5186_v49 = vrot.slane %v19060_v37, %v10800_v54  ;;  %v19061_v18 = vld [vmem:[#allocation295_spill] sm:$0xff]  ;;  %v19071_v23 = vcombine.high %v19052_v59, %v19053_v19 }
 0x574   : > { %v15691_v34 = vpop.permute.xlu1 %8160  ;;  %v19056_v53 = vld [vmem:[#allocation177_spill] sm:$0xff]  ;;  %v19069_v37 = vld [vmem:[#allocation275_spill] sm:$0xff] }
 0x575   : > { %8102 = vrot.lane.b32.xlu0 %v7539_v1, %s10255_s9  ;;  %v19057_v1 = vcombine.high %v19055_v40, %v19056_v53  ;;  %v5230_v0 = vcombine.low %v5186_v49, %v5218_v45  ;;  %v19068_v40 = vld [vmem:[#allocation218_spill] sm:$0xff]  ;;  %v5231_v59 = vcombine.high %v5186_v49, %v5218_v45  ;;  %v19086_v45 = vld [vmem:[#allocation76_spill] sm:$0xff]  ;;  %v19087_v49 = vld [vmem:[#allocation111_spill] sm:$0xff] }
 0x576   : > { %8512 = vrot.lane.b32.xlu1 %v19051_v55, %s10260_s14 }
 0x577   : > { %v15699_v2 = vpop.permute.xlu0 %8080 }
 0x578   : > { %v8453_v6 = vpop.permute.xlu1 %8452 }
 0x579   : > { %8358 = vrot.lane.b32.xlu0 %v5367_v61, %s10258_s12  ;;  %v8789_v20 = vsel %vm8649_vm10, %v8771_v25, %v8453_v6  ;;  %v19064_v6 = vld [vmem:[#allocation236_spill] sm:$0xff] }
 0x57a   : > { %8146 = vrot.lane.b32.xlu1 %v19054_v43, %s10254_s29  ;;  %v8807_v10 = vsel %vm8668_vm9, %v8789_v20, %v15476_v51  ;;  %v19062_v51 = vld [vmem:[#allocation298_spill] sm:$0xff]  ;;  %v19065_v25 = vld [vmem:[#allocation120_spill] sm:$0xff] }
 0x57b   : > { %v15713_v58 = vpop.permute.xlu0 %8372  ;;  %8913 = vmatprep.subr.mxu0 %v8807_v10  ;;  %v19063_v55 = vcombine.low %v19061_v18, %v19062_v51  ;;  %v19066_v20 = vld [vmem:[#allocation122_spill] sm:$0xff] }
 0x57c   : > { %v15716_v12 = vpop.permute.xlu1 %8086  ;;  %v19067_v43 = vcombine.low %v19065_v25, %v19066_v20  ;;  %v19073_v20 = vld [vmem:[#allocation206_spill] sm:$0xff] }
 0x57d   : > { %8000 = vrot.lane.b32.xlu0 %v19057_v1, %s10260_s14 }
 0x57e   : > { %8438 = vrot.lane.b32.xlu1 %v19063_v55, %s10259_s13  ;;  %v8567_v10 = vsel %vm8554_vm4, %v19067_v43, %v19064_v6  ;;  %v19072_v6 = vld [vmem:[#allocation202_spill] sm:$0xff] }
 0x57f   : > { %v15730_v61 = vpop.permute.xlu0 %8014  ;;  %v8586_v53 = vsel %vm8573_vm5, %v8567_v10, %v19068_v40  ;;  %v7403_v43 = vcombine.high %v19073_v20, %v19072_v6  ;;  %v19074_v10 = vld [vmem:[#allocation224_spill] sm:$0xff]  ;;  %v7339_v6 = vcombine.high %v19087_v49, %v19086_v45  ;;  %v19089_v20 = vld [vmem:[#allocation151_spill] sm:$0xff] }
 0x580   : > { %v8379_v1 = vpop.permute.xlu1 %8378  ;;  %v8605_v16 = vsel %vm8592_vm6, %v8586_v53, %v19069_v37  ;;  %v19077_v37 = vld [vmem:[#allocation108_spill] sm:$0xff]  ;;  %v19095_v45 = vld [vmem:[#allocation7_spill] sm:$0xff] }
 0x581   : > { %8284 = vrot.lane.b32.xlu0 %v5230_v0, %s10257_s11  ;;  %v8624_v55 = vsel %vm8611_vm7, %v8605_v16, %v19070_v60 }
 0x582   : > { %8218 = vrot.lane.b32.xlu1 %v19071_v23, %s10256_s10  ;;  %v8643_v40 = vsel %vm8630_vm8, %v8624_v55, %v19074_v10  ;;  %v19075_v23 = vcombine.high %v19061_v18, %v19062_v51  ;;  %v19078_v55 = vld [vmem:[#allocation267_spill] sm:$0xff]  ;;  %v19079_v10 = vld [vmem:[#allocation264_spill] sm:$0xff]  ;;  %v19083_v18 = vld [vmem:[#allocation110_spill] sm:$0xff] }
 0x583   : > { %v15748_v25 = vpop.permute.xlu0 %8298  ;;  %v8662_v0 = vsel %vm8649_vm10, %v8643_v40, %v15454_v42  ;;  %v7371_v42 = vcombine.high %v19078_v55, %v19077_v37  ;;  %v19084_v51 = vld [vmem:[#allocation231_spill] sm:$0xff]  ;;  %v19088_v55 = vld [vmem:[#allocation150_spill] sm:$0xff] }
 0x584   : > { %v8021_v53 = vpop.permute.xlu1 %8020  ;;  %v19090_v57 = vcombine.high %v19088_v55, %v19089_v20 }
 0x585   : > { %8100 = vrot.lane.b32.xlu0 %v7403_v43, %s10255_s9  ;;  %v8681_v16 = vsel %vm8668_vm9, %v8662_v0, %v8021_v53  ;;  %v19080_v43 = vld [vmem:[#allocation99_spill] sm:$0xff]  ;;  %v19082_v53 = vld [vmem:[#allocation86_spill] sm:$0xff] }
 0x586   : > { %8510 = vrot.lane.b32.xlu1 %v19075_v23, %s10260_s14  ;;  %8914 = vmatpush1.msra.mxu0 %v8681_v16  ;;  %v19081_v40 = vcombine.low %v19079_v10, %v19080_v43  ;;  %v19085_v16 = vcombine.low %v19083_v18, %v19084_v51  ;;  %v19092_v18 = vld [vmem:[#allocation174_spill] sm:$0xff] }
 0x587   : > { %v15762_v60 = vpop.permute.xlu0 %8078 }
 0x588   : > { %19076 = vst [vmem:[#allocation41_spill] sm:$0xff] %v15762_v60  ;;  %v8305_v19 = vpop.permute.xlu1 %8304  ;;  %v8698_v23 = vsel %vm8554_vm4, %v19085_v16, %v19082_v53  ;;  %v19091_v60 = vld [vmem:[#allocation157_spill] sm:$0xff]  ;;  %v19094_v16 = vld [vmem:[#allocation266_spill] sm:$0xff] }
 0x589   : > { %8356 = vrot.lane.b32.xlu0 %v5231_v59, %s10258_s12  ;;  %v8716_v59 = vsel %vm8573_vm5, %v8698_v23, %v15385_v7  ;;  %v19093_v51 = vcombine.low %v19091_v60, %v19092_v18  ;;  %v19096_v49 = vcombine.low %v19094_v16, %v19095_v45  ;;  %v19097_v23 = vld [vmem:[#allocation299_spill] sm:$0xff]  ;;  %v15816_v18 = vrot.slane %v7339_v6, %v10800_v54 }
 0x58a   : > { %8144 = vrot.lane.b32.xlu1 %v19081_v40, %s10254_s29  ;;  %v8734_v40 = vsel %vm8592_vm6, %v8716_v59, %v15642_v3  ;;  %v7542_v20 = vcombine.low %v19098_v62, %v19097_v23  ;;  %v5211_v3 = vcombine.high %v15671_v13, %v15675_v26 }
 0x58b   : > { %v15771_v0 = vpop.permute.xlu0 %8370  ;;  %v8566_v53 = vsel %vm8554_vm4, %v19093_v51, %v15177_v24  ;;  %v8752_v59 = vsel %vm8611_vm7, %v8734_v40, %v15440_v48  ;;  %v19101_v40 = vld [vmem:[#allocation226_spill] sm:$0xff] }
 0x58c   : > { %v7947_v37 = vpop.permute.xlu1 %7946  ;;  %v8585_v60 = vsel %vm8573_vm5, %v8566_v53, %v15263_v46  ;;  %v8770_v13 = vsel %vm8630_vm8, %v8752_v59, %v8379_v1  ;;  %v15832_v6 = vrot.slane %v5211_v3, %v10800_v54  ;;  %v19100_v1 = vld [vmem:[#allocation18_spill] sm:$0xff]  ;;  %v19108_v59 = vld [vmem:[#allocation160_spill] sm:$0xff] }
 0x58d   : > { %7998 = vrot.lane.b32.xlu0 %v19090_v57, %s10260_s14  ;;  %v15802_v57 = vrot.slane %v7371_v42, %v10800_v54  ;;  %v8604_v24 = vsel %vm8592_vm6, %v8585_v60, %v15338_v44  ;;  %v19099_v44 = vcombine.high %v19079_v10, %v19080_v43  ;;  %v19102_v51 = vcombine.low %v19100_v1, %v19101_v40  ;;  %v19106_v60 = vld [vmem:[#allocation260_spill] sm:$0xff] }
 0x58e   : > { %8436 = vrot.lane.b32.xlu1 %v19096_v49, %s10259_s13  ;;  %v8623_v42 = vsel %vm8611_vm7, %v8604_v24, %v15410_v21  ;;  %v8788_v10 = vsel %vm8649_vm10, %v8770_v13, %v15499_v29  ;;  %v19103_v43 = vcombine.high %v19058_v32, %v19059_v8 }
 0x58f   : > { %v15797_v7 = vpop.permute.xlu0 %8012  ;;  %v8642_v46 = vsel %vm8630_vm8, %v8623_v42, %v15480_v5  ;;  %v7405_v26 = vcombine.high %v15816_v18, %v15802_v57  ;;  %v8697_v5 = vsel %vm8554_vm4, %v19102_v51, %v15408_v52  ;;  %v19104_v52 = vcombine.high %v19094_v16, %v19095_v45  ;;  %v19105_v45 = vld [vmem:[#allocation284_spill] sm:$0xff] }
 0x590   : > { %v15812_v55 = vpop.permute.xlu1 %8230  ;;  %v8661_v21 = vsel %vm8649_vm10, %v8642_v46, %v7947_v37  ;;  %v15847_v49 = vrot.slane %v19103_v43, %v10800_v54  ;;  %v8715_v37 = vsel %vm8573_vm5, %v8697_v5, %v15691_v34  ;;  %v7523_v24 = vcombine.high %v19106_v60, %v19105_v45  ;;  %v19110_v46 = vld [vmem:[#allocation14_spill] sm:$0xff]  ;;  %v19114_v5 = vld [vmem:[#allocation268_spill] sm:$0xff]  ;;  %v19116_v43 = vld [vmem:[#allocation301_spill] sm:$0xff] }
 0x591   : > { %8318 = vrot.lane.b32.xlu0 %v7542_v20, %s10257_s11  ;;  %v8680_v29 = vsel %vm8668_vm9, %v8661_v21, %v15552_v15  ;;  %v8733_v34 = vsel %vm8592_vm6, %v8715_v37, %v15463_v22  ;;  %v19107_v15 = vld [vmem:[#allocation159_spill] sm:$0xff]  ;;  %v19112_v22 = vld [vmem:[#allocation193_spill] sm:$0xff]  ;;  %v19113_v21 = vld [vmem:[#allocation252_spill] sm:$0xff] }
 0x592   : > { %8216 = vrot.lane.b32.xlu1 %v19099_v44, %s10256_s10  ;;  %v5233_v32 = vcombine.high %v15847_v49, %v15832_v6  ;;  %v8751_v16 = vsel %vm8611_vm7, %v8733_v34, %v8305_v19  ;;  %v19109_v42 = vcombine.low %v19107_v15, %v19108_v59  ;;  %v19111_v44 = vld [vmem:[#allocation258_spill] sm:$0xff]  ;;  %v7491_v1 = vcombine.high %v19113_v21, %v19112_v22  ;;  %v19120_v34 = vld [vmem:[#allocation257_spill] sm:$0xff] }
 0x593   : > { %v15827_v48 = vpop.permute.xlu0 %8296  ;;  %v8769_v19 = vsel %vm8630_vm8, %v8751_v16, %v15528_v28  ;;  %v19117_v37 = vld [vmem:[#allocation302_spill] sm:$0xff]  ;;  %v19119_v28 = vld [vmem:[#allocation24_spill] sm:$0xff]  ;;  %v19121_v60 = vld [vmem:[#allocation101_spill] sm:$0xff] }
 0x594   : > { %v8523_v53 = vpop.permute.xlu1 %8522  ;;  %v7355_v16 = vcombine.high %v19120_v34, %v19119_v28  ;;  %v15906_v22 = vrot.slane %v7491_v1, %v10800_v54  ;;  %v19129_v1 = vld [vmem:[#allocation255_spill] sm:$0xff] }
 0x595   : > { %8244 = vrot.lane.b32.xlu0 %v7405_v26, %s10256_s10  ;;  %v8806_v20 = vsel %vm8668_vm9, %v8788_v10, %v8523_v53  ;;  %v7406_v26 = vcombine.low %v19111_v44, %v19110_v46  ;;  %v19115_v53 = vld [vmem:[#allocation271_spill] sm:$0xff] }
 0x596   : > { %8508 = vrot.lane.b32.xlu1 %v19104_v52, %s10260_s14  ;;  %8915 = vmatprep.subr.mxu0 %v8806_v20  ;;  %v7387_v10 = vcombine.high %v19115_v53, %v19114_v5  ;;  %v19118_v20 = vcombine.low %v19116_v43, %v19117_v37  ;;  %v19127_v5 = vld [vmem:[#allocation243_spill] sm:$0xff] }
 0x597   : > { %v15858_v3 = vpop.permute.xlu0 %8076  ;;  %8916 = vmatpush1.msra.mxu0 %v8680_v29 }
 0x598   : > { %v15864_v8 = vpop.permute.xlu1 %8156 }
 0x599   : > { %8500 = vrot.lane.b32.xlu0 %v5233_v32, %s10260_s14  ;;  %v15895_v32 = vrot.slane %v7523_v24, %v10800_v54 }
 0x59a   : > { %8142 = vrot.lane.b32.xlu1 %v19109_v42, %s10254_s29  ;;  %v19122_v42 = vld [vmem:[#allocation180_spill] sm:$0xff] }
 0x59b   : > { %v15874_v13 = vpop.permute.xlu0 %8368  ;;  %v7545_v21 = vcombine.high %v15906_v22, %v15895_v32 }
 0x59c   : > { %v8449_v40 = vpop.permute.xlu1 %8448 }
 0x59d   : > { %8316 = vrot.lane.b32.xlu0 %v7406_v26, %s10257_s11  ;;  %v8787_v51 = vsel %vm8649_vm10, %v8769_v19, %v8449_v40  ;;  %v19123_v26 = vcombine.low %v19121_v60, %v19122_v42  ;;  %v7401_v40 = vrot.slane %v7387_v10, %v10800_v54  ;;  %v19125_v19 = vld [vmem:[#allocation219_spill] sm:$0xff] }
 0x59e   : > { %8434 = vrot.lane.b32.xlu1 %v19118_v20, %s10259_s13  ;;  %v8805_v52 = vsel %vm8668_vm9, %v8787_v51, %v15631_v17  ;;  %v19124_v17 = vcombine.high %v19107_v15, %v19108_v59  ;;  %v19126_v51 = vld [vmem:[#allocation248_spill] sm:$0xff]  ;;  %v7369_v15 = vrot.slane %v7355_v16, %v10800_v54  ;;  %v19130_v59 = vld [vmem:[#allocation169_spill] sm:$0xff] }
 0x59f   : > { %v15892_v29 = vpop.permute.xlu0 %8010  ;;  %8917 = vmatprep.subr.mxu0 %v8805_v52  ;;  %v19128_v53 = vcombine.low %v19126_v51, %v19127_v5 }
 0x5a0   : > { %v15899_v45 = vpop.permute.xlu1 %8082 }
 0x5a1   : > { %7958 = vrot.lane.b32.xlu0 %v19123_v26, %s10259_s13  ;;  %v8565_v20 = vsel %vm8554_vm4, %v19128_v53, %v19125_v19  ;;  %v19131_v26 = vcombine.high %v19116_v43, %v19117_v37  ;;  %v7408_v19 = vcombine.low %v7369_v15, %v7401_v40  ;;  %v19133_v53 = vld [vmem:[#allocation162_spill] sm:$0xff]  ;;  %v7409_v37 = vcombine.high %v7369_v15, %v7401_v40 }
 0x5a2   : > { %8214 = vrot.lane.b32.xlu1 %v19124_v17, %s10256_s10  ;;  %v8584_v52 = vsel %vm8573_vm5, %v8565_v20, %v19129_v1 }
 0x5a3   : > { %v15912_v24 = vpop.permute.xlu0 %8294  ;;  %v8603_v34 = vsel %vm8592_vm6, %v8584_v52, %v19130_v59  ;;  %v19136_v52 = vld [vmem:[#allocation265_spill] sm:$0xff]  ;;  %v19137_v59 = vld [vmem:[#allocation127_spill] sm:$0xff] }
 0x5a4   : > { %v8375_v28 = vpop.permute.xlu1 %8374  ;;  %v8622_v10 = vsel %vm8611_vm7, %v8603_v34, %v15121_v41  ;;  %v19132_v41 = vld [vmem:[#allocation161_spill] sm:$0xff]  ;;  %v19138_v34 = vcombine.low %v19136_v52, %v19137_v59 }
 0x5a5   : > { %8534 = vrot.lane.b32.xlu0 %v7545_v21, %s10260_s14  ;;  %v8641_v51 = vsel %vm8630_vm8, %v8622_v10, %v15216_v30  ;;  %v19134_v20 = vcombine.low %v19132_v41, %v19133_v53  ;;  %v19135_v30 = vcombine.low %v18909_v4, %v18908_v47 }
 0x5a6   : > { %8506 = vrot.lane.b32.xlu1 %v19131_v26, %s10260_s14  ;;  %v8660_v16 = vsel %vm8649_vm10, %v8641_v51, %v15599_v11  ;;  %v19140_v51 = vld [vmem:[#allocation22_spill] sm:$0xff] }
 0x5a7   : > { %v15934_v17 = vpop.permute.xlu0 %8074  ;;  %v8696_v11 = vsel %vm8554_vm4, %v19135_v30, %v15716_v12  ;;  %v19142_v12 = vcombine.high %v19132_v41, %v19133_v53  ;;  %v19144_v53 = vcombine.high %v19136_v52, %v19137_v59  ;;  %v19148_v59 = vld [vmem:[#allocation176_spill] sm:$0xff] }
 0x5a8   : > { %v8017_v21 = vpop.permute.xlu1 %8016  ;;  %v8714_v26 = vsel %vm8573_vm5, %v8696_v11, %v15487_v56 }
 0x5a9   : > { %8460 = vrot.lane.b32.xlu0 %v7408_v19, %s10259_s13  ;;  %v8679_v5 = vsel %vm8668_vm9, %v8660_v16, %v8017_v21  ;;  %v8732_v15 = vsel %vm8592_vm6, %v8714_v26, %v15812_v55  ;;  %v19139_v19 = vld [vmem:[#allocation135_spill] sm:$0xff]  ;;  %v19143_v16 = vld [vmem:[#allocation70_spill] sm:$0xff] }
 0x5aa   : > { %8140 = vrot.lane.b32.xlu1 %v19134_v20, %s10254_s29  ;;  %8918 = vmatpush1.msra.mxu0 %v8679_v5  ;;  %v19141_v4 = vcombine.low %v19139_v19, %v19140_v51  ;;  %v8750_v55 = vsel %vm8611_vm7, %v8732_v15, %v15585_v63  ;;  %v19151_v19 = vld [vmem:[#allocation164_spill] sm:$0xff] }
 0x5ab   : > { %v15946_v43 = vpop.permute.xlu0 %8366 }
 0x5ac   : > { %v8301_v1 = vpop.permute.xlu1 %8300  ;;  %v8564_v47 = vsel %vm8554_vm4, %v19141_v4, %v15164_v27 }
 0x5ad   : > { %8532 = vrot.lane.b32.xlu0 %v7409_v37, %s10260_s14  ;;  %v8583_v21 = vsel %vm8573_vm5, %v8564_v47, %v19143_v16  ;;  %v8768_v37 = vsel %vm8630_vm8, %v8750_v55, %v8375_v28  ;;  %v19145_v28 = vld [vmem:[#allocation303_spill] sm:$0xff]  ;;  %v19155_v55 = vld [vmem:[#allocation241_spill] sm:$0xff] }
 0x5ae   : > { %8432 = vrot.lane.b32.xlu1 %v19138_v34, %s10259_s13  ;;  %v8602_v56 = vsel %vm8592_vm6, %v8583_v21, %v15327_v36  ;;  %v8786_v63 = vsel %vm8649_vm10, %v8768_v37, %v15683_v35  ;;  %v19146_v34 = vld [vmem:[#allocation304_spill] sm:$0xff]  ;;  %v19150_v35 = vld [vmem:[#allocation163_spill] sm:$0xff] }
 0x5af   : > { %v15958_v10 = vpop.permute.xlu0 %8008  ;;  %v8621_v27 = vsel %vm8611_vm7, %v8602_v56, %v15398_v50  ;;  %v19147_v26 = vcombine.low %v19145_v28, %v19146_v34  ;;  %v19152_v51 = vcombine.low %v19150_v35, %v19151_v19  ;;  %v19153_v16 = vcombine.high %v19145_v28, %v19146_v34  ;;  %v19154_v56 = vld [vmem:[#allocation211_spill] sm:$0xff]  ;;  %v19161_v28 = vld [vmem:[#allocation73_spill] sm:$0xff] }
 0x5b0   : > { %v7943_v40 = vpop.permute.xlu1 %7942  ;;  %v8640_v41 = vsel %vm8630_vm8, %v8621_v27, %v15467_v9  ;;  %v19156_v27 = vld [vmem:[#allocation242_spill] sm:$0xff] }
 0x5b1   : > { %v8659_v30 = vsel %vm8649_vm10, %v8640_v41, %v7943_v40  ;;  %v19149_v40 = vld [vmem:[#allocation130_spill] sm:$0xff]  ;;  %v19157_v37 = vcombine.low %v19155_v55, %v19156_v27  ;;  %v19167_v55 = vld [vmem:[#allocation131_spill] sm:$0xff] }
 0x5b2   : > { %8212 = vrot.lane.b32.xlu1 %v19142_v12, %s10256_s10  ;;  %v8678_v9 = vsel %vm8668_vm9, %v8659_v30, %v15730_v61  ;;  %v6314_v15 = vcombine.low %v19149_v40, %v19148_v59  ;;  %v19158_v30 = vld [vmem:[#allocation17_spill] sm:$0xff] }
 0x5b3   : > { %v15975_v5 = vpop.permute.xlu0 %8292 }
 0x5b4   : > { %v8227_v20 = vpop.permute.xlu1 %8226  ;;  %v8695_v4 = vsel %vm8554_vm4, %v6314_v15, %v15508_v38  ;;  %v8563_v38 = vsel %vm8554_vm4, %v19157_v37, %v19154_v56  ;;  %v7404_v15 = vcombine.low %v15816_v18, %v15802_v57  ;;  %v19164_v57 = vcombine.low %v18943_v39, %v18942_v14  ;;  %v19168_v14 = vld [vmem:[#allocation132_spill] sm:$0xff] }
 0x5b5   : > { %v8713_v12 = vsel %vm8573_vm5, %v8695_v4, %v15864_v8  ;;  %v8582_v8 = vsel %vm8573_vm5, %v8563_v38, %v19158_v30  ;;  %v19169_v39 = vcombine.low %v19167_v55, %v19168_v14  ;;  %v19170_v37 = vld [vmem:[#allocation172_spill] sm:$0xff]  ;;  %v19185_v55 = vld [vmem:[#allocation126_spill] sm:$0xff]  ;;  %v19186_v14 = vld [vmem:[#allocation87_spill] sm:$0xff] }
 0x5b6   : > { %8504 = vrot.lane.b32.xlu1 %v19144_v53, %s10260_s14  ;;  %v8731_v21 = vsel %vm8592_vm6, %v8713_v12, %v15608_v33  ;;  %v19160_v33 = vcombine.high %v19150_v35, %v19151_v19  ;;  %v8694_v18 = vsel %vm8554_vm4, %v19164_v57, %v15899_v45  ;;  %v19171_v38 = vld [vmem:[#allocation256_spill] sm:$0xff] }
 0x5b7   : > { %v15993_v11 = vpop.permute.xlu0 %8072  ;;  %v8749_v41 = vsel %vm8611_vm7, %v8731_v21, %v8301_v1 }
 0x5b8   : > { %v8519_v36 = vpop.permute.xlu1 %8518  ;;  %v8767_v1 = vsel %vm8630_vm8, %v8749_v41, %v15713_v58 }
 0x5b9   : > { %v8804_v50 = vsel %vm8668_vm9, %v8786_v63, %v8519_v36  ;;  %v19159_v63 = vld [vmem:[#allocation196_spill] sm:$0xff] }
 0x5ba   : > { %8174 = vrot.lane.b32.xlu1 %v19147_v26, %s10254_s29  ;;  %8919 = vmatprep.subr.mxu0 %v8804_v50  ;;  %v8601_v50 = vsel %vm8592_vm6, %v8582_v8, %v19159_v63  ;;  %v19162_v26 = vld [vmem:[#allocation97_spill] sm:$0xff]  ;;  %v19175_v8 = vld [vmem:[#allocation171_spill] sm:$0xff] }
 0x5bb   : > { %8920 = vmatpush1.msra.mxu0 %v8678_v9  ;;  %v16012_v47 = vpop.permute.xlu0 %8364  ;;  %v8620_v34 = vsel %vm8611_vm7, %v8601_v50, %v19161_v28 }
 0x5bc   : > { %v16002_v52 = vpop.permute.xlu1 %8152  ;;  %v8639_v9 = vsel %vm8630_vm8, %v8620_v34, %v19162_v26  ;;  %v7544_v26 = vcombine.low %v15906_v22, %v15895_v32  ;;  %v19178_v32 = vcombine.high %v19111_v44, %v19110_v46  ;;  %v2649_v22 = vld [vmem:[%s16828_s3 + $0x8] sm:$0xff] }
 0x5bd   : > { %9777 = vmatprep.mubr.msk.f32.mxu0 %vm8554_vm4, %v2649_v22 }
 0x5be   : > { %8430 = vrot.lane.b32.xlu1 %v19152_v51, %s10259_s13  ;;  %v19163_v51 = vld [vmem:[#allocation63_spill] sm:$0xff] }
 0x5bf   : > { %v16030_v36 = vpop.permute.xlu0 %8006  ;;  %v8658_v4 = vsel %vm8649_vm10, %v8639_v9, %v19163_v51  ;;  %v19177_v9 = vld [vmem:[#allocation38_spill] sm:$0xff] }
 0x5c0   : > { %v8445_v61 = vpop.permute.xlu1 %8444  ;;  %v8677_v19 = vsel %vm8668_vm9, %v8658_v4, %v15797_v7  ;;  %v8712_v7 = vsel %vm8573_vm5, %v8694_v18, %v15657_v31  ;;  %v19179_v4 = vld [vmem:[#allocation89_spill] sm:$0xff] }
 0x5c1   : > { %v8785_v59 = vsel %vm8649_vm10, %v8767_v1, %v8445_v61  ;;  %v5232_v61 = vcombine.low %v15847_v49, %v15832_v6  ;;  %v8730_v21 = vsel %vm8592_vm6, %v8712_v7, %v8227_v20  ;;  %v19165_v6 = vcombine.high %v19098_v62, %v19097_v23  ;;  %v19166_v49 = vld [vmem:[#allocation88_spill] sm:$0xff]  ;;  %v19172_v62 = vld [vmem:[#allocation33_spill] sm:$0xff]  ;;  %v19173_v23 = vld [vmem:[#allocation47_spill] sm:$0xff] }
 0x5c2   : > { %8246 = vrot.lane.b32.xlu1 %v19153_v16, %s10256_s10  ;;  %v8562_v45 = vsel %vm8554_vm4, %v19169_v39, %v19166_v49  ;;  %v8748_v27 = vsel %vm8611_vm7, %v8730_v21, %v15748_v25  ;;  %v19174_v30 = vcombine.high %v19172_v62, %v19173_v23  ;;  %v10261_v7 = vmov 0   ;;  %v19183_v21 = vld [vmem:[#allocation9_spill] sm:$0xff]  ;;  %v19187_v39 = vld [vmem:[#allocation119_spill] sm:$0xff] }
 0x5c3   : > { %v16053_v58 = vpop.permute.xlu0 %8290  ;;  %v8581_v20 = vsel %vm8573_vm5, %v8562_v45, %v19170_v37  ;;  %v8766_v25 = vsel %vm8630_vm8, %v8748_v27, %v15771_v0  ;;  %10029 = vset.pattern.permute.xlu1 %v10261_v7  ;;  %10030 = vset.pattern.permute.xlu0 %v10261_v7  ;;  %v19184_v49 = vcombine.high %v19121_v60, %v19122_v42  ;;  %v19190_v60 = vld [vmem:[#allocation37_spill] sm:$0xff] }
 0x5c4   : > { %v8225_v53 = vpop.permute.xlu1 %8224  ;;  %v8600_v41 = vsel %vm8592_vm6, %v8581_v20, %v19171_v38  ;;  %v19188_v45 = vcombine.low %v19186_v14, %v19187_v39 }
 0x5c5   : > { %v8619_v63 = vsel %vm8611_vm7, %v8600_v41, %v19175_v8 }
 0x5c6   : > { %8502 = vrot.lane.b32.xlu1 %v19160_v33, %s10260_s14  ;;  %v19176_v33 = vld [vmem:[#allocation60_spill] sm:$0xff] }
 0x5c7   : > { %v16068_v56 = vpop.permute.xlu0 %8070  ;;  %v8638_v28 = vsel %vm8630_vm8, %v8619_v63, %v19176_v33  ;;  %v19191_v63 = vld [vmem:[#allocation286_spill] sm:$0xff]  ;;  %v19192_v33 = vld [vmem:[#allocation273_spill] sm:$0xff] }
 0x5c8   : > { %v8517_v40 = vpop.permute.xlu1 %8516 }
 0x5c9   : > { %v8803_v35 = vsel %vm8668_vm9, %v8785_v59, %v8517_v40  ;;  %v8657_v59 = vsel %vm8649_vm10, %v8638_v28, %v19177_v9  ;;  %v19193_v28 = vld [vmem:[#allocation71_spill] sm:$0xff] }
 0x5ca   : > { %8172 = vrot.lane.b32.xlu1 %v7404_v15, %s10254_s29  ;;  %8921 = vmatprep.subr.mxu0 %v8803_v35  ;;  %v8676_v15 = vsel %vm8668_vm9, %v8657_v59, %v15892_v29  ;;  %v19180_v29 = vld [vmem:[#allocation66_spill] sm:$0xff]  ;;  %v19196_v59 = vld [vmem:[#allocation113_spill] sm:$0xff] }
 0x5cb   : > { %8922 = vmatpush1.msra.mxu0 %v8677_v19  ;;  %v16093_v50 = vpop.permute.xlu0 %8362  ;;  %v19181_v35 = vcombine.low %v19179_v4, %v19180_v29 }
 0x5cc   : > { %v16055_v12 = vpop.permute.xlu1 %8150 }
 0x5cd   : > { %v8693_v19 = vsel %vm8554_vm4, %v19181_v35, %v15699_v2 }
 0x5ce   : > { %8428 = vrot.lane.b32.xlu1 %v5232_v61, %s10259_s13  ;;  %v19182_v61 = vmov 0.0   ;;  %v8711_v46 = vsel %vm8573_vm5, %v8693_v19, %v16002_v52  ;;  %v8561_v52 = vsel %vm8554_vm4, %v19188_v45, %v19185_v55 }
 0x5cf   : > { %v16110_v51 = vpop.permute.xlu0 %8004  ;;  %v8813_v57 = vcombine.low %v19182_v61, %v19182_v61  ;;  %v8814_v18 = vcombine.high %v19182_v61, %v19182_v61  ;;  %v19197_v61 = vcombine.high %v19192_v33, %v19193_v28 }
 0x5d0   : > { %v8443_v16 = vpop.permute.xlu1 %8442 }
 0x5d1   : > { %v8784_v34 = vsel %vm8649_vm10, %v8766_v25, %v8443_v16  ;;  %v8729_v16 = vsel %vm8592_vm6, %v8711_v46, %v8225_v53  ;;  %v8828_v2 = vrot.slane %v8814_v18, %v19183_v21  ;;  %v19189_v53 = vld [vmem:[#allocation125_spill] sm:$0xff] }
 0x5d2   : > { %8390 = vrot.lane.b32.xlu1 %v19165_v6, %s10258_s12  ;;  %v8821_v6 = vrot.slane %v8813_v57, %v19183_v21  ;;  %v8580_v38 = vsel %vm8573_vm5, %v8561_v52, %v19189_v53  ;;  %v8747_v41 = vsel %vm8611_vm7, %v8729_v16, %v15827_v48  ;;  %v19195_v48 = vld [vmem:[#allocation306_spill] sm:$0xff]  ;;  %v19198_v16 = vld [vmem:[#allocation41_spill] sm:$0xff] }
 0x5d3   : > { %v16143_v27 = vpop.permute.xlu0 %8288  ;;  %v8599_v42 = vsel %vm8592_vm6, %v8580_v38, %v19190_v60  ;;  %v8845_v8 = vcombine.low %v8828_v2, %v8828_v2  ;;  %v8846_v19 = vcombine.high %v8828_v2, %v8828_v2  ;;  %v19203_v53 = vld [vmem:[#allocation230_spill] sm:$0xff]  ;;  %v19204_v38 = vld [vmem:[#allocation244_spill] sm:$0xff] }
 0x5d4   : > { %v16081_v31 = vpop.permute.xlu1 %8222  ;;  %v8829_v37 = vcombine.low %v8821_v6, %v8821_v6  ;;  %v8830_v20 = vcombine.high %v8821_v6, %v8821_v6  ;;  %v8618_v25 = vsel %vm8611_vm7, %v8599_v42, %v19191_v63  ;;  %v19200_v6 = vld [vmem:[#allocation288_spill] sm:$0xff]  ;;  %v19207_v63 = vld [vmem:[#allocation247_spill] sm:$0xff] }
 0x5d5   : > { %v8853_v35 = vrot.slane %v8845_v8, %v10800_v54 }
 0x5d6   : > { %7996 = vrot.lane.b32.xlu1 %v19174_v30, %s10260_s14  ;;  %v16154_v23 = vrot.slane %v8829_v37, %v10800_v54  ;;  %v8844_v30 = vrot.slane %v8830_v20, %v10800_v54  ;;  %v19202_v20 = vld [vmem:[#allocation68_spill] sm:$0xff] }
 0x5d7   : > { %v16172_v22 = vpop.permute.xlu0 %8068  ;;  %v8866_v46 = vcombine.high %v8853_v35, %v8853_v35  ;;  %v8865_v7 = vcombine.low %v8853_v35, %v8853_v35  ;;  %v9780_v35 = vld [vmem:[%s16829_s4 + $0x2] ss:$0 sm:$0xff] }
 0x5d8   : > { %v8515_v1 = vpop.permute.xlu1 %8514  ;;  %v8862_v9 = vcombine.high %v16154_v23, %v16154_v23  ;;  %v8864_v29 = vcombine.high %v8844_v30, %v8844_v30  ;;  %v8863_v57 = vcombine.low %v8844_v30, %v8844_v30  ;;  %v19206_v30 = vld [vmem:[#allocation96_spill] sm:$0xff] }
 0x5d9   : > { %v8802_v40 = vsel %vm8668_vm9, %v8784_v34, %v8515_v1  ;;  %v19194_v34 = vcombine.low %v19192_v33, %v19193_v28  ;;  %v8637_v1 = vsel %vm8630_vm8, %v8618_v25, %v19195_v48  ;;  %v9779_v33 = vld [vmem:[%s16829_s4 + $0x1] ss:$0 sm:$0xff]  ;;  %v19208_v28 = vld [vmem:[#allocation139_spill] sm:$0xff]  ;;  %v9778_v48 = vld [vmem:[%s16829_s4] ss:$0 sm:$0xff] }
 0x5da   : > { %8462 = vrot.lane.b32.xlu1 %v7544_v26, %s10259_s13  ;;  %8923 = vmatprep.subr.mxu0 %v8802_v40  ;;  %v8765_v26 = vsel %vm8630_vm8, %v8747_v41, %v15874_v13  ;;  %v8656_v40 = vsel %vm8649_vm10, %v8637_v1, %v19196_v59  ;;  %v19205_v41 = vcombine.low %v19203_v53, %v19204_v38  ;;  %v19209_v1 = vld [vmem:[#allocation49_spill] sm:$0xff]  ;;  %v19219_v53 = vld [vmem:[#allocation10_spill] sm:$0xff] }
 0x5db   : > { %8924 = vmatpush1.msra.mxu0 %v8676_v15  ;;  %8870 = vrot.lane.b32.xlu0 %v8862_v9, %s10255_s9  ;;  %v8675_v13 = vsel %vm8668_vm9, %v8656_v40, %v15958_v10  ;;  %v19199_v10 = vld [vmem:[#allocation291_spill] sm:$0xff]  ;;  %v16193_v55 = vpop.permute.xlu0 %8360 }
 0x5dc   : > { %v16108_v0 = vpop.permute.xlu1 %8148  ;;  %v19201_v2 = vcombine.low %v19199_v10, %v19200_v6  ;;  %v8560_v60 = vsel %vm8554_vm4, %v19205_v41, %v19202_v20  ;;  %v19210_v40 = vld [vmem:[#allocation215_spill] sm:$0xff]  ;;  %v9788_v41 = vld [vmem:[%s16830_s5 + $0x2] ss:$0 sm:$0xff] }
 0x5de   : > { %8388 = vrot.lane.b32.xlu1 %v19178_v32, %s10258_s12 }
 0x5df   : > { %8878 = vrot.lane.b32.xlu0 %v8864_v29, %s10256_s10  ;;  %v16212_v8 = vpop.permute.xlu0 %8002 }
 0x5e0   : > { %v8441_v44 = vpop.permute.xlu1 %8440 }
 0x5e1   : > { %v8783_v15 = vsel %vm8649_vm10, %v8765_v26, %v8441_v44  ;;  %v8860_v44 = vrot.slane %v8846_v19, %v10800_v54 }
 0x5e2   : > { %8030 = vrot.lane.b32.xlu1 %v19184_v49, %s10260_s14  ;;  %v8692_v49 = vsel %vm8554_vm4, %v19201_v2, %v19198_v16  ;;  %v9786_v2 = vld [vmem:[%s16830_s5] ss:$0 sm:$0xff] }
 0x5e3   : > { %v8710_v14 = vsel %vm8573_vm5, %v8692_v49, %v16055_v12  ;;  %8886 = vrot.lane.b32.xlu0 %v8866_v46, %s10258_s12  ;;  %v8868_v52 = vcombine.high %v8860_v44, %v8860_v44  ;;  %v8867_v37 = vcombine.low %v8860_v44, %v8860_v44  ;;  %v16239_v29 = vpop.permute.xlu0 %8286  ;;  %v9781_v44 = vld [vmem:[%s16829_s4 + $0x3] ss:$0 sm:$0xff]  ;;  %v19214_v49 = vld [vmem:[#allocation25_spill] sm:$0xff] }
 0x5e4   : > { %v16149_v62 = vpop.permute.xlu1 %8220  ;;  %v8728_v45 = vsel %vm8592_vm6, %v8710_v14, %v16081_v31  ;;  %v8579_v31 = vsel %vm8573_vm5, %v8560_v60, %v19206_v30  ;;  %v19215_v14 = vld [vmem:[#allocation31_spill] sm:$0xff]  ;;  %v19220_v60 = vld [vmem:[#allocation212_spill] sm:$0xff] }
 0x5e5   : > { %v8746_v42 = vsel %vm8611_vm7, %v8728_v45, %v15912_v24  ;;  %v8598_v25 = vsel %vm8592_vm6, %v8579_v31, %v19207_v63  ;;  %v9785_v31 = vld [vmem:[%s16829_s4 + $0x7] ss:$0 sm:$0xff]  ;;  %v19221_v63 = vld [vmem:[#allocation276_spill] sm:$0xff] }
 0x5e6   : > { %7956 = vrot.lane.b32.xlu1 %v19194_v34, %s10259_s13  ;;  %v8617_v24 = vsel %vm8611_vm7, %v8598_v25, %v19208_v28  ;;  %v8764_v34 = vsel %vm8630_vm8, %v8746_v42, %v15946_v43  ;;  %v9782_v43 = vld [vmem:[%s16829_s4 + $0x4] ss:$0 sm:$0xff] }
 0x5e7   : > { %8894 = vrot.lane.b32.xlu0 %v8868_v52, %s10260_s14  ;;  %v8636_v26 = vsel %vm8630_vm8, %v8617_v24, %v19209_v1  ;;  %v16261_v6 = vpop.permute.xlu0 %8102  ;;  %v19222_v24 = vld [vmem:[#allocation240_spill] sm:$0xff] }
 0x5e8   : > { %v8513_v32 = vpop.permute.xlu1 %8512 }
 0x5e9   : > { %v8801_v4 = vsel %vm8668_vm9, %v8783_v15, %v8513_v32  ;;  %v8655_v15 = vsel %vm8649_vm10, %v8636_v26, %v19210_v40  ;;  %v19224_v40 = vld [vmem:[#allocation292_spill] sm:$0xff] }
 0x5ea   : > { %8028 = vrot.lane.b32.xlu1 %v19197_v61, %s10260_s14  ;;  %8925 = vmatprep.subr.mxu0 %v8801_v4  ;;  %v8674_v4 = vsel %vm8668_vm9, %v8655_v15, %v16030_v36  ;;  %v9784_v36 = vld [vmem:[%s16829_s4 + $0x6] ss:$0 sm:$0xff]  ;;  %v19212_v61 = vld [vmem:[#allocation121_spill] sm:$0xff] }
 0x5eb   : > { %8926 = vmatpush1.msra.mxu0 %v8675_v13  ;;  %9347 = vperm.xlu0 %10030, %v9779_v33   ;;  %v19211_v13 = vld [vmem:[#allocation217_spill] sm:$0xff]  ;;  %v16285_v30 = vpop.permute.xlu0 %8358 }
 0x5ec   : > { %v16183_v18 = vpop.permute.xlu1 %8146 }
 0x5ee   : > { %8874 = vrot.lane.b32.xlu1 %v8863_v57, %s10254_s29  ;;  %v19213_v57 = vcombine.low %v19211_v13, %v19212_v61  ;;  %v19226_v13 = vld [vmem:[#allocation117_spill] sm:$0xff]  ;;  %v19227_v61 = vld [vmem:[#allocation118_spill] sm:$0xff] }
 0x5ef   : > { %9359 = vperm.xlu0 %10030, %v9782_v43  }
 0x5f0   : > { %v8439_v39 = vpop.permute.xlu1 %8438  ;;  %v8691_v46 = vsel %vm8554_vm4, %v19213_v57, %v15858_v3  ;;  %v9783_v3 = vld [vmem:[%s16829_s4 + $0x5] ss:$0 sm:$0xff] }
 0x5f1   : > { %v8782_v9 = vsel %vm8649_vm10, %v8764_v34, %v8439_v39  ;;  %v19216_v39 = vld [vmem:[#allocation239_spill] sm:$0xff]  ;;  %v19228_v57 = vld [vmem:[#allocation46_spill] sm:$0xff] }
 0x5f2   : > { %8882 = vrot.lane.b32.xlu1 %v8865_v7, %s10257_s11  ;;  %v8709_v7 = vsel %vm8573_vm5, %v8691_v46, %v16108_v0  ;;  %v19217_v0 = vcombine.low %v19215_v14, %v19216_v39  ;;  %v19229_v46 = vcombine.low %v19227_v61, %v19228_v57  ;;  %v19233_v14 = vld [vmem:[#allocation34_spill] sm:$0xff] }
 0x5f3   : > { %v8727_v10 = vsel %vm8592_vm6, %v8709_v7, %v16149_v62  ;;  %9367 = vperm.xlu0 %10030, %v9784_v36  }
 0x5f4   : > { %v16208_v12 = vpop.permute.xlu1 %8218  ;;  %v8559_v45 = vsel %vm8554_vm4, %v19217_v0, %v19214_v49  ;;  %v8745_v62 = vsel %vm8611_vm7, %v8727_v10, %v15975_v5  ;;  %v19231_v10 = vld [vmem:[#allocation167_spill] sm:$0xff] }
 0x5f5   : > { %v8763_v5 = vsel %vm8630_vm8, %v8745_v62, %v16012_v47  ;;  %v9787_v47 = vld [vmem:[%s16830_s5 + $0x1] ss:$0 sm:$0xff] }
 0x5f6   : > { %8890 = vrot.lane.b32.xlu1 %v8867_v37, %s10259_s13  ;;  %v19218_v37 = vld [vmem:[#allocation188_spill] sm:$0xff] }
 0x5f7   : > { %v8578_v20 = vsel %vm8573_vm5, %v8559_v45, %v19218_v37  ;;  %9439 = vperm.xlu0 %10030, %v9786_v2  }
 0x5f8   : > { %v8511_v59 = vpop.permute.xlu1 %8510  ;;  %v8597_v38 = vsel %vm8592_vm6, %v8578_v20, %v19219_v53 }
 0x5f9   : > { %v8800_v32 = vsel %vm8668_vm9, %v8782_v9, %v8511_v59  ;;  %v8616_v42 = vsel %vm8611_vm7, %v8597_v38, %v19220_v60  ;;  %v8001_v9 = vpop.permute.xlu0 %8000  ;;  %v19223_v59 = vld [vmem:[#allocation294_spill] sm:$0xff] }
 0x5fa   : > { %8927 = vmatprep.subr.mxu0 %v8800_v32  ;;  %9343 = vperm.xlu1 %10029, %v9778_v48   ;;  %v8635_v25 = vsel %vm8630_vm8, %v8616_v42, %v19221_v63  ;;  %v19225_v15 = vcombine.low %v19223_v59, %v19224_v40  ;;  %v19243_v40 = vld [vmem:[#allocation149_spill] sm:$0xff] }
 0x5fb   : > { %8928 = vmatpush1.msra.mxu0 %v8674_v4  ;;  %v8654_v34 = vsel %vm8649_vm10, %v8635_v25, %v19222_v24  ;;  %9447 = vperm.xlu0 %10030, %v9788_v41   ;;  %v19236_v41 = vld [vmem:[#allocation235_spill] sm:$0xff]  ;;  %v19240_v24 = vld [vmem:[#allocation238_spill] sm:$0xff] }
 0x5fc   : > { %v16244_v19 = vpop.permute.xlu1 %8144  ;;  %v8673_v1 = vsel %vm8668_vm9, %v8654_v34, %v16110_v51  ;;  %v8690_v32 = vsel %vm8554_vm4, %v19225_v15, %v15934_v17  ;;  %v9789_v51 = vld [vmem:[%s16830_s5 + $0x3] ss:$0 sm:$0xff]  ;;  %v8558_v17 = vsel %vm8554_vm4, %v19229_v46, %v19226_v13  ;;  %v19244_v15 = vld [vmem:[#allocation232_spill] sm:$0xff] }
 0x5fd   : > { %v8708_v4 = vsel %vm8573_vm5, %v8690_v32, %v16183_v18  ;;  %v16315_v36 = vpop.permute.xlu0 %8284 }
 0x5fe   : > { %9351 = vperm.xlu1 %10029, %v9780_v35   ;;  %v8726_v35 = vsel %vm8592_vm6, %v8708_v4, %v16208_v12  ;;  %v19232_v12 = vld [vmem:[#allocation137_spill] sm:$0xff] }
 0x600   : > { %v8437_v16 = vpop.permute.xlu1 %8436 }
 0x601   : > { %v8781_v33 = vsel %vm8649_vm10, %v8763_v5, %v8437_v16  ;;  %v19230_v16 = vld [vmem:[#allocation234_spill] sm:$0xff]  ;;  %v16337_v37 = vpop.permute.xlu0 %8100 }
 0x602   : > { %9355 = vperm.xlu1 %10029, %v9781_v44   ;;  %v8744_v44 = vsel %vm8611_vm7, %v8726_v35, %v16053_v58  ;;  %v8577_v18 = vsel %vm8573_vm5, %v8558_v17, %v19230_v16  ;;  %v19234_v58 = vld [vmem:[#allocation142_spill] sm:$0xff]  ;;  %v19246_v35 = vld [vmem:[#allocation199_spill] sm:$0xff] }
 0x603   : > { %v8596_v2 = vsel %vm8592_vm6, %v8577_v18, %v19231_v10  ;;  %v8762_v49 = vsel %vm8630_vm8, %v8744_v44, %v16093_v50  ;;  %v19235_v50 = vld [vmem:[#allocation262_spill] sm:$0xff]  ;;  %v19247_v44 = vld [vmem:[#allocation8_spill] sm:$0xff] }
 0x604   : > { %v8217_v52 = vpop.permute.xlu1 %8216  ;;  %v19237_v60 = vcombine.low %v19235_v50, %v19236_v41 }
 0x605   : > { %v8357_v5 = vpop.permute.xlu0 %8356 }
 0x606   : > { %9363 = vperm.xlu1 %10029, %v9783_v3   ;;  %v8615_v3 = vsel %vm8611_vm7, %v8596_v2, %v19232_v12  ;;  %v8689_v42 = vsel %vm8554_vm4, %v19237_v60, %v15993_v11  ;;  %v19257_v60 = vld [vmem:[#allocation220_spill] sm:$0xff] }
 0x607   : > { %v8634_v39 = vsel %vm8630_vm8, %v8615_v3, %v19233_v14  ;;  %v19251_v14 = vld [vmem:[#allocation128_spill] sm:$0xff] }
 0x608   : > { %v8509_v28 = vpop.permute.xlu1 %8508  ;;  %v8653_v62 = vsel %vm8649_vm10, %v8634_v39, %v19234_v58  ;;  %v19252_v39 = vld [vmem:[#allocation129_spill] sm:$0xff] }
 0x609   : > { %v8799_v48 = vsel %vm8668_vm9, %v8781_v33, %v8509_v28  ;;  %v8672_v53 = vsel %vm8668_vm9, %v8653_v62, %v16212_v8  ;;  %v19238_v33 = vld [vmem:[#allocation237_spill] sm:$0xff]  ;;  %v7999_v59 = vpop.permute.xlu0 %7998  ;;  %v19254_v62 = vld [vmem:[#allocation198_spill] sm:$0xff] }
 0x60a   : > { %8929 = vmatprep.subr.mxu0 %v8799_v48  ;;  %9371 = vperm.xlu1 %10029, %v9785_v31   ;;  %v8707_v31 = vsel %vm8573_vm5, %v8689_v42, %v16244_v19  ;;  %v19239_v28 = vld [vmem:[#allocation29_spill] sm:$0xff] }
 0x60b   : > { %8930 = vmatpush1.msra.mxu0 %v8673_v1  ;;  %v8725_v25 = vsel %vm8592_vm6, %v8707_v31, %v8217_v52  ;;  %v19241_v8 = vcombine.low %v19239_v28, %v19240_v24  ;;  %v19258_v31 = vld [vmem:[#allocation51_spill] sm:$0xff]  ;;  %v19261_v24 = vld [vmem:[#allocation156_spill] sm:$0xff] }
 0x60c   : > { %v8143_v26 = vpop.permute.xlu1 %8142  ;;  %v8743_v48 = vsel %vm8611_vm7, %v8725_v25, %v16143_v27 }
 0x60d   : > { %v8557_v34 = vsel %vm8554_vm4, %v19241_v8, %v19238_v33  ;;  %v8761_v32 = vsel %vm8630_vm8, %v8743_v48, %v16193_v55  ;;  %v8319_v46 = vpop.permute.xlu0 %8318  ;;  %v19248_v55 = vld [vmem:[#allocation155_spill] sm:$0xff] }
 0x60e   : > { %9443 = vperm.xlu1 %10029, %v9787_v47   ;;  %v19242_v47 = vld [vmem:[#allocation43_spill] sm:$0xff]  ;;  %v19249_v16 = vcombine.low %v19247_v44, %v19248_v55  ;;  %v19269_v44 = vld [vmem:[#allocation305_spill] sm:$0xff]  ;;  %v19270_v55 = vld [vmem:[#allocation300_spill] sm:$0xff] }
 0x60f   : > { %v8576_v11 = vsel %vm8573_vm5, %v8557_v34, %v19242_v47 }
 0x610   : > { %v8435_v43 = vpop.permute.xlu1 %8434  ;;  %v8595_v19 = vsel %vm8592_vm6, %v8576_v11, %v19243_v40  ;;  %v8688_v18 = vsel %vm8554_vm4, %v19249_v16, %v16068_v56  ;;  %v19255_v56 = vld [vmem:[#allocation183_spill] sm:$0xff]  ;;  %v19271_v16 = vcombine.low %v19269_v44, %v19270_v55 }
 0x611   : > { %v8780_v0 = vsel %vm8649_vm10, %v8762_v49, %v8435_v43  ;;  %v8614_v52 = vsel %vm8611_vm7, %v8595_v19, %v19244_v15  ;;  %v8706_v10 = vsel %vm8573_vm5, %v8688_v18, %v8143_v26  ;;  %v8245_v12 = vpop.permute.xlu0 %8244  ;;  %v19250_v49 = vld [vmem:[#allocation190_spill] sm:$0xff] }
 0x612   : > { %9451 = vperm.xlu1 %10029, %v9789_v51   ;;  %v19245_v51 = vld [vmem:[#allocation64_spill] sm:$0xff]  ;;  %v8704_v18 = vsel %vm8554_vm4, %v19271_v16, %v16261_v6  ;;  %v2648_v16 = vld [vmem:[%s16828_s3] sm:$0xff] }
 0x613   : > { %v8633_v4 = vsel %vm8630_vm8, %v8614_v52, %v19245_v51  ;;  %v19263_v51 = vld [vmem:[#allocation84_spill] sm:$0xff] }
 0x614   : > { %v8215_v7 = vpop.permute.xlu1 %8214  ;;  %v8652_v13 = vsel %vm8649_vm10, %v8633_v4, %v19246_v35  ;;  %v19264_v4 = vld [vmem:[#allocation116_spill] sm:$0xff] }
 0x615   : > { %v8671_v57 = vsel %vm8668_vm9, %v8652_v13, %v8001_v9  ;;  %v8724_v3 = vsel %vm8592_vm6, %v8706_v10, %v8215_v7  ;;  %v19253_v9 = vcombine.low %v19251_v14, %v19252_v39  ;;  %v8501_v7 = vpop.permute.xlu0 %8500  ;;  %v19272_v10 = vld [vmem:[#allocation297_spill] sm:$0xff] }
 0x618   : > { %v8507_v45 = vpop.permute.xlu1 %8506 }
 0x619   : > { %v8798_v20 = vsel %vm8668_vm9, %v8780_v0, %v8507_v45  ;;  %v8556_v0 = vsel %vm8554_vm4, %v19253_v9, %v19250_v49  ;;  %v8742_v45 = vsel %vm8611_vm7, %v8724_v3, %v16239_v29  ;;  %v19259_v29 = vld [vmem:[#allocation158_spill] sm:$0xff]  ;;  %v8317_v40 = vpop.permute.xlu0 %8316  ;;  %v19273_v49 = vld [vmem:[#allocation168_spill] sm:$0xff] }
 0x61a   : > { %8931 = vmatprep.subr.mxu0 %v8798_v20  ;;  %v8575_v20 = vsel %vm8573_vm5, %v8556_v0, %v19254_v62  ;;  %v8760_v41 = vsel %vm8630_vm8, %v8742_v45, %v16285_v30  ;;  %v19274_v0 = vld [vmem:[#allocation206_spill] sm:$0xff] }
 0x61b   : > { %8932 = vmatpush1.msra.mxu0 %v8672_v53  ;;  %v8594_v26 = vsel %vm8592_vm6, %v8575_v20, %v19255_v56  ;;  %v19256_v53 = vld [vmem:[#allocation136_spill] sm:$0xff]  ;;  %v19275_v45 = vld [vmem:[#allocation202_spill] sm:$0xff] }
 0x61c   : > { %v8141_v38 = vpop.permute.xlu1 %8140  ;;  %v8613_v50 = vsel %vm8611_vm7, %v8594_v26, %v19256_v53  ;;  %v19276_v62 = vcombine.low %v19274_v0, %v19275_v45 }
 0x61d   : > { %v8632_v42 = vsel %vm8630_vm8, %v8613_v50, %v19257_v60  ;;  %v19277_v60 = vld [vmem:[#allocation279_spill] sm:$0xff] }
 0x61e   : > { %v8651_v8 = vsel %vm8649_vm10, %v8632_v42, %v19261_v24  ;;  %v8703_v20 = vsel %vm8554_vm4, %v19276_v62, %v16337_v37  ;;  %v19278_v42 = vld [vmem:[#allocation204_spill] sm:$0xff]  ;;  %v19279_v37 = vld [vmem:[#allocation203_spill] sm:$0xff] }
 0x61f   : > { %v8670_v30 = vsel %vm8668_vm9, %v8651_v8, %v7999_v59  ;;  %v19265_v59 = vcombine.low %v19263_v51, %v19264_v4  ;;  %v19282_v24 = vld [vmem:[#allocation251_spill] sm:$0xff]  ;;  %v19287_v51 = vld [vmem:[#allocation246_spill] sm:$0xff] }
 0x620   : > { %v8433_v63 = vpop.permute.xlu1 %8432 }
 0x621   : > { %v8779_v43 = vsel %vm8649_vm10, %v8761_v32, %v8433_v63  ;;  %v19260_v63 = vcombine.low %v19258_v31, %v19259_v29  ;;  %v19262_v32 = vld [vmem:[#allocation272_spill] sm:$0xff]  ;;  %v19280_v31 = vcombine.low %v19278_v42, %v19279_v37  ;;  %v9793_v42 = vld [vmem:[%s16830_s5 + $0x7] ss:$0 sm:$0xff] }
 0x623   : > { %v8687_v25 = vsel %vm8554_vm4, %v19260_v63, %v16172_v22  ;;  %v8572_v29 = vsel %vm8554_vm4, %v19280_v31, %v19277_v60  ;;  %v9792_v60 = vld [vmem:[%s16830_s5 + $0x6] ss:$0 sm:$0xff] }
 0x624   : > { %v8213_v1 = vpop.permute.xlu1 %8212  ;;  %v8705_v34 = vsel %vm8573_vm5, %v8687_v25, %v8141_v38  ;;  %v19281_v25 = vld [vmem:[#allocation27_spill] sm:$0xff] }
 0x625   : > { %v8723_v47 = vsel %vm8592_vm6, %v8705_v34, %v8213_v1  ;;  %v8555_v1 = vsel %vm8554_vm4, %v19265_v59, %v19262_v32  ;;  %v19283_v34 = vld [vmem:[#allocation140_spill] sm:$0xff]  ;;  %v19286_v32 = vld [vmem:[#allocation250_spill] sm:$0xff] }
 0x626   : > { %v8741_v22 = vsel %vm8611_vm7, %v8723_v47, %v16315_v36  ;;  %v19267_v36 = vld [vmem:[#allocation28_spill] sm:$0xff]  ;;  %v19288_v4 = vcombine.low %v19286_v32, %v19287_v51 }
 0x627   : > { %v8759_v15 = vsel %vm8630_vm8, %v8741_v22, %v8357_v5  ;;  %v19268_v5 = vld [vmem:[#allocation280_spill] sm:$0xff] }
 0x628   : > { %v8505_v27 = vpop.permute.xlu1 %8504 }
 0x629   : > { %v8797_v61 = vsel %vm8668_vm9, %v8779_v43, %v8505_v27  ;;  %v7959_v43 = vpop.permute.xlu0 %7958  ;;  %v19266_v27 = vld [vmem:[#allocation59_spill] sm:$0xff] }
 0x62a   : > { %8933 = vmatprep.subr.mxu0 %v8797_v61  ;;  %v8574_v35 = vsel %vm8573_vm5, %v8555_v1, %v19266_v27  ;;  %v19289_v1 = vld [vmem:[#allocation154_spill] sm:$0xff] }
 0x62b   : > { %8934 = vmatpush1.msra.mxu0 %v8671_v57  ;;  %v8593_v61 = vsel %vm8592_vm6, %v8574_v35, %v19267_v36  ;;  %v19291_v36 = vld [vmem:[#allocation30_spill] sm:$0xff] }
 0x62c   : > { %v8175_v17 = vpop.permute.xlu1 %8174  ;;  %v8612_v57 = vsel %vm8611_vm7, %v8593_v61, %v19268_v5  ;;  %v19292_v5 = vld [vmem:[#allocation205_spill] sm:$0xff] }
 0x62d   : > { %v8722_v3 = vsel %vm8573_vm5, %v8704_v18, %v8175_v17  ;;  %v8535_v56 = vpop.permute.xlu0 %8534 }
 0x630   : > { %v8431_v2 = vpop.permute.xlu1 %8430 }
 0x631   : > { %v8778_v33 = vsel %vm8649_vm10, %v8760_v41, %v8431_v2  ;;  %v8631_v2 = vsel %vm8630_vm8, %v8612_v57, %v19272_v10  ;;  %v8461_v63 = vpop.permute.xlu0 %8460  ;;  %v8861_v10 = vcombine.low %v16154_v23, %v16154_v23 }
 0x632   : > { %v8650_v14 = vsel %vm8649_vm10, %v8631_v2, %v19273_v49 }
 0x634   : > { %v8247_v58 = vpop.permute.xlu1 %8246 }
 0x635   : > { %v8740_v39 = vsel %vm8592_vm6, %v8722_v3, %v8247_v58 }
 0x636   : > { %v8758_v17 = vsel %vm8611_vm7, %v8740_v39, %v8319_v46  ;;  %v8591_v46 = vsel %vm8573_vm5, %v8572_v29, %v19281_v25 }
 0x638   : > { %v8503_v28 = vpop.permute.xlu1 %8502 }
 0x639   : > { %v8796_v48 = vsel %vm8668_vm9, %v8778_v33, %v8503_v28 }
 0x63a   : > { %8935 = vmatprep.subr.mxu0 %v8796_v48 }
 0x63b   : > { %8936 = vmatpush1.msra.mxu0 %v8670_v30  ;;  %v19284_v30 = vld [vmem:[#allocation141_spill] sm:$0xff] }
 0x63c   : > { %v8173_v11 = vpop.permute.xlu1 %8172 }
 0x63d   : > { %v8721_v26 = vsel %vm8573_vm5, %v8703_v20, %v8173_v11 }
 0x63e   : > { %v8739_v58 = vsel %vm8592_vm6, %v8721_v26, %v8245_v12  ;;  %v8610_v12 = vsel %vm8592_vm6, %v8591_v46, %v19282_v24 }
 0x63f   : > { %v8757_v28 = vsel %vm8611_vm7, %v8739_v58, %v8317_v40  ;;  %v8629_v48 = vsel %vm8611_vm7, %v8610_v12, %v19283_v34 }
 0x640   : > { %v8429_v19 = vpop.permute.xlu1 %8428  ;;  %v8648_v47 = vsel %vm8630_vm8, %v8629_v48, %v19284_v30 }
 0x641   : > { %v8777_v52 = vsel %vm8649_vm10, %v8759_v15, %v8429_v19  ;;  %v8667_v22 = vsel %vm8649_vm10, %v8648_v47, %v7959_v43  ;;  %v8533_v15 = vpop.permute.xlu0 %8532 }
 0x642   : > { %v8795_v38 = vsel %vm8668_vm9, %v8777_v52, %v8501_v7 }
 0x643   : > { %8937 = vmatprep.subr.mxu0 %v8795_v38  ;;  %v19285_v38 = vld [vmem:[#allocation222_spill] sm:$0xff] }
 0x644   : > { %v8391_v13 = vpop.permute.xlu1 %8390  ;;  %v8571_v59 = vsel %vm8554_vm4, %v19288_v4, %v19285_v38 }
 0x645   : > { %v8776_v53 = vsel %vm8630_vm8, %v8758_v17, %v8391_v13  ;;  %v8590_v27 = vsel %vm8573_vm5, %v8571_v59, %v19289_v1  ;;  %v19290_v13 = vld [vmem:[#allocation54_spill] sm:$0xff] }
 0x646   : > { %v8609_v43 = vsel %vm8592_vm6, %v8590_v27, %v19290_v13 }
 0x647   : > { %v8628_v61 = vsel %vm8611_vm7, %v8609_v43, %v19291_v36 }
 0x648   : > { %v7997_v9 = vpop.permute.xlu1 %7996  ;;  %v8647_v57 = vsel %vm8630_vm8, %v8628_v61, %v19292_v5 }
 0x649   : > { %v8669_v6 = vsel %vm8668_vm9, %v8650_v14, %v7997_v9 }
 0x64a   : > { %8938 = vmatpush1.msra.mxu0 %v8669_v6 }
 0x64c   : > { %v8463_v50 = vpop.permute.xlu1 %8462 }
 0x64d   : > { %v8794_v7 = vsel %vm8649_vm10, %v8776_v53, %v8463_v50  ;;  %v8871_v2 = vpop.permute.xlu0 %8870 }
 0x64e   : > { %v8812_v41 = vsel %vm8668_vm9, %v8794_v7, %v8535_v56  ;;  %v8897_v3 = vsel %vm8554_vm4, %v8861_v10, %v8871_v2  ;;  %v9790_v7 = vld [vmem:[%s16830_s5 + $0x4] ss:$0 sm:$0xff] }
 0x64f   : > { %8967 = vmatprep.subr.mxu0 %v8812_v41  ;;  %v9791_v41 = vld [vmem:[%s16830_s5 + $0x5] ss:$0 sm:$0xff] }
 0x650   : > { %v8389_v33 = vpop.permute.xlu1 %8388 }
 0x651   : > { %v8775_v8 = vsel %vm8630_vm8, %v8757_v28, %v8389_v33  ;;  %v8879_v39 = vpop.permute.xlu0 %8878 }
 0x652   : > { %v8793_v11 = vsel %vm8649_vm10, %v8775_v8, %v8461_v63 }
 0x653   : > { %v8811_v40 = vsel %vm8668_vm9, %v8793_v11, %v8533_v15 }
 0x654   : > { %v8031_v19 = vpop.permute.xlu1 %8030 }
 0x655   : > { %v8686_v52 = vsel %vm8668_vm9, %v8667_v22, %v8031_v19  ;;  %v8887_v62 = vpop.permute.xlu0 %8886 }
 0x656   : > { %8968 = vmatpush2.msra.mxu0 %v8686_v52 }
 0x657   : > { %8969 = vmatprep.subr.mxu0 %v8811_v40 }
 0x658   : > { %v7957_v35 = vpop.permute.xlu1 %7956 }
 0x659   : > { %v8666_v44 = vsel %vm8649_vm10, %v8647_v57, %v7957_v35  ;;  %v8895_v26 = vpop.permute.xlu0 %8894 }
 0x65c   : > { %v8029_v55 = vpop.permute.xlu1 %8028 }
 0x65d   : > { %v8685_v18 = vsel %vm8668_vm9, %v8666_v44, %v8029_v55 }
 0x65e   : > { %8970 = vmatpush2.msra.mxu0 %v8685_v18 }
 0x65f   : > { %8972 = vmatmul.mubr.f32.vlgmr.msra.gmra.mxu0 %v2648_v16 }
 0x660   : > { %v8875_v49 = vpop.permute.xlu1 %8874 }
 0x661   : > { %v8898_v14 = vsel %vm8573_vm5, %v8897_v3, %v8875_v49 }
 0x662   : > { %v8899_v9 = vsel %vm8592_vm6, %v8898_v14, %v8879_v39 }
 0x664   : > { %v8883_v0 = vpop.permute.xlu1 %8882 }
 0x665   : > { %v8900_v45 = vsel %vm8611_vm7, %v8899_v9, %v8883_v0 }
 0x666   : > { %v8901_v20 = vsel %vm8630_vm8, %v8900_v45, %v8887_v62  ;;  %v16534_v63 = vpop.permute.xlu0 %9347 }
 0x668   : > { %v8891_v56 = vpop.permute.xlu1 %8890 }
 0x669   : > { %v8902_v6 = vsel %vm8649_vm10, %v8901_v20, %v8891_v56 }
 0x66a   : > { %v8903_v23 = vsel %vm8668_vm9, %v8902_v6, %v8895_v26  ;;  %v16538_v46 = vpop.permute.xlu0 %9359 }
 0x66e   : > { %v16542_v28 = vpop.permute.xlu0 %9367 }
 0x672   : > { %v16546_v12 = vpop.permute.xlu0 %9439 }
 0x675   : > { %v16528_v37 = vpop.permute.xlu1 %9343 }
 0x676   : > { %v16550_v34 = vpop.permute.xlu0 %9447 }
 0x679   : > { %v16530_v31 = vpop.permute.xlu1 %9351 }
 0x67d   : > { %v16532_v29 = vpop.permute.xlu1 %9355 }
 0x681   : > { %v16536_v25 = vpop.permute.xlu1 %9363 }
 0x685   : > { %v16540_v33 = vpop.permute.xlu1 %9371 }
 0x689   : > { %v16544_v24 = vpop.permute.xlu1 %9443 }
 0x68d   : > { %v16548_v8 = vpop.permute.xlu1 %9451 }
 0x71f   : > { %v8973_v17 = vpop.f32.mrf.mxu0 }
 0x720   : > { %v8974_v53 = vadd.f32 %v8973_v17, %v8903_v23 }
 0x721   : > { %v8975_v50 = vpop.f32.mrf.mxu0 }
 0x722   : > { %8982 = vrot.lane.b32.xlu0 %v8974_v53, %s10259_s13  ;;  %8979 = vrot.lane.b32.xlu1 %v8974_v53, %s10260_s14  ;;  %v16499_v58 = vadd.f32 %v8975_v50, %v8903_v23 }
 0x726   : > { %8988 = vrot.lane.b32.xlu0 %v8974_v53, %s10257_s11  ;;  %8985 = vrot.lane.b32.xlu1 %v8974_v53, %s10258_s12 }
 0x72a   : > { %8994 = vrot.lane.b32.xlu0 %v8974_v53, %s10254_s29  ;;  %8991 = vrot.lane.b32.xlu1 %v8974_v53, %s10256_s10 }
 0x72e   : > { %9001 = vrot.lane.b32.xlu0 %v16499_v58, %s10260_s14  ;;  %8997 = vrot.lane.b32.xlu1 %v8974_v53, %s10255_s9 }
 0x732   : > { %9007 = vrot.lane.b32.xlu0 %v16499_v58, %s10258_s12  ;;  %9004 = vrot.lane.b32.xlu1 %v16499_v58, %s10259_s13  ;;  %s10262_s12 = smov [#allocation3]  }
 0x733   : > { %s10190_s20 = sshll.u32 %s10262_s12, 4  ;;  %s10191_s20 = int_to_ptr.vmem [resolvable:$false] %s10190_s20 }
 0x736   : > { %9013 = vrot.lane.b32.xlu0 %v16499_v58, %s10256_s10  ;;  %9010 = vrot.lane.b32.xlu1 %v16499_v58, %s10257_s11  ;;  %s10192_s10 = scalar_lea.vmem %s10191_s20, 4096 }
 0x73a   : > { %9019 = vrot.lane.b32.xlu0 %v16499_v58, %s10255_s9  ;;  %9016 = vrot.lane.b32.xlu1 %v16499_v58, %s10254_s29  ;;  %s242_s29 = sand.u32 1, %s10238_s22  }
 0x73b   : > { %s16698_s9 = sshll.u32 %s242_s29, 7  ;;  %s16785_s14 = scalar_lea.sflag [#allocation4], %s242_s29 }
 0x73c   : > { %s16720_s28 = scalar_lea.vmem [#allocation3], %s16698_s9 }
 0x73d   : > { %s9660_s16 = sshll.u32 %s16720_s28, 4  ;;  %s16774_s16 = int_to_ptr.vmem [resolvable:$true] %s9660_s16 }
 0x73e   : > { %9455 = vperm.xlu0 %10030, %v9790_v7   ;;  %9459 = vperm.xlu1 %10029, %v9791_v41   ;;  %s10186_s19 = scalar_lea.vmem %s16774_s16, 2048  ;;  %p10193_p0 = scmp.lt.s32.totalorder %s16774_s16, %s10191_s20 }
 0x73f   : > { %p10187_p11 = scmp.ne.s32.totalorder %s16774_s16, %s10186_s19  ;;  %p10194_p1 = scmp.lt.s32.totalorder %s10192_s10, %s10186_s19 }
 0x741   : > { %p10188_p12 = pnand %p10187_p11, %p10338_p5  ;;  %p10195_p2 = por %p10194_p1, %p10193_p0 }
 0x742   : > { %9463 = vperm.xlu0 %10030, %v9792_v60   ;;  %9467 = vperm.xlu1 %10029, %v9793_v42  }
 0x743   : > { %p10189_p13 = pneg %p10188_p12 }
 0x745   : > { %p10196_p3 = pnand %p10195_p2, %p10189_p13 }
 0x794   : > { %v8980_v48 = vpop.permute.xlu1 %8979  ;;  %v8983_v30 = vpop.permute.xlu0 %8982 }
 0x795   : > { %v9022_v15 = vcombine.low %v8974_v53, %v8983_v30  ;;  %v9023_v52 = vcombine.high %v8974_v53, %v8983_v30 }
 0x797   : > { %v9030_v4 = vrot.slane %v9022_v15, %v19183_v21  ;;  %v9037_v59 = vrot.slane %v9023_v52, %v19183_v21 }
 0x798   : > { %v8986_v47 = vpop.permute.xlu1 %8985  ;;  %v8989_v11 = vpop.permute.xlu0 %8988 }
 0x799   : > { %v9038_v22 = vcombine.low %v8980_v48, %v8986_v47  ;;  %v9039_v19 = vcombine.high %v8980_v48, %v8986_v47 }
 0x79b   : > { %v9046_v40 = vrot.slane %v9038_v22, %v19183_v21  ;;  %v9053_v38 = vrot.slane %v9039_v19, %v19183_v21 }
 0x79c   : > { %v8992_v32 = vpop.permute.xlu1 %8991  ;;  %v8995_v51 = vpop.permute.xlu0 %8994 }
 0x79d   : > { %v9054_v1 = vcombine.low %v8989_v11, %v8995_v51  ;;  %v9055_v27 = vcombine.high %v8989_v11, %v8995_v51  ;;  %v9086_v35 = vcombine.low %v9030_v4, %v9046_v40  ;;  %v9087_v13 = vcombine.high %v9030_v4, %v9046_v40 }
 0x79e   : > { %v9102_v43 = vcombine.low %v9037_v59, %v9053_v38  ;;  %v9103_v44 = vcombine.high %v9037_v59, %v9053_v38 }
 0x79f   : > { %v9062_v55 = vrot.slane %v9054_v1, %v19183_v21  ;;  %v9069_v16 = vrot.slane %v9055_v27, %v19183_v21  ;;  %v9094_v2 = vrot.slane %v9086_v35, %v10800_v54  ;;  %v9101_v3 = vrot.slane %v9087_v13, %v10800_v54 }
 0x7a0   : > { %v8998_v36 = vpop.permute.xlu1 %8997  ;;  %v9002_v61 = vpop.permute.xlu0 %9001  ;;  %v16563_v39 = vrot.slane %v9102_v43, %v10800_v54  ;;  %v16573_v50 = vrot.slane %v9103_v44, %v10800_v54 }
 0x7a1   : > { %v9070_v5 = vcombine.low %v8992_v32, %v8998_v36  ;;  %v9071_v57 = vcombine.high %v8992_v32, %v8998_v36 }
 0x7a3   : > { %v9078_v18 = vrot.slane %v9070_v5, %v19183_v21  ;;  %v9085_v10 = vrot.slane %v9071_v57, %v19183_v21 }
 0x7a4   : > { %v9005_v49 = vpop.permute.xlu1 %9004  ;;  %v9008_v14 = vpop.permute.xlu0 %9007 }
 0x7a5   : > { %v9118_v9 = vcombine.low %v9062_v55, %v9078_v18  ;;  %v9119_v0 = vcombine.high %v9062_v55, %v9078_v18  ;;  %v9134_v45 = vcombine.low %v9069_v16, %v9085_v10  ;;  %v9135_v62 = vcombine.high %v9069_v16, %v9085_v10 }
 0x7a6   : > { %v9158_v20 = vcombine.low %v16499_v58, %v9005_v49  ;;  %v9159_v56 = vcombine.high %v16499_v58, %v9005_v49  ;;  %v9174_v6 = vcombine.low %v9002_v61, %v9008_v14  ;;  %v9175_v26 = vcombine.high %v9002_v61, %v9008_v14 }
 0x7a7   : > { %v9126_v23 = vrot.slane %v9118_v9, %v10800_v54  ;;  %v9133_v17 = vrot.slane %v9119_v0, %v10800_v54  ;;  %v16570_v53 = vrot.slane %v9134_v45, %v10800_v54  ;;  %v16580_v40 = vrot.slane %v9135_v62, %v10800_v54 }
 0x7a8   : > { %v9166_v7 = vrot.slane %v9158_v20, %v19183_v21  ;;  %v9173_v41 = vrot.slane %v9159_v56, %v19183_v21  ;;  %v9182_v60 = vrot.slane %v9174_v6, %v19183_v21  ;;  %v9189_v58 = vrot.slane %v9175_v26, %v19183_v21  ;;  %v9011_v42 = vpop.permute.xlu1 %9010  ;;  %v9014_v48 = vpop.permute.xlu0 %9013 }
 0x7a9   : > { %v9150_v30 = vcombine.low %v9094_v2, %v9126_v23  ;;  %v9151_v47 = vcombine.high %v9094_v2, %v9126_v23  ;;  %v9152_v11 = vcombine.low %v9101_v3, %v9133_v17  ;;  %v9153_v22 = vcombine.high %v9101_v3, %v9133_v17 }
 0x7aa   : > { %v9222_v19 = vcombine.low %v9166_v7, %v9182_v60  ;;  %v9223_v15 = vcombine.high %v9166_v7, %v9182_v60  ;;  %v9238_v52 = vcombine.low %v9173_v41, %v9189_v58  ;;  %v9239_v27 = vcombine.high %v9173_v41, %v9189_v58 }
 0x7ab   : > { %v9374_v38 = vmul.f32 %v16528_v37, %v9150_v30  ;;  %v9376_v32 = vmul.f32 %v16534_v63, %v9151_v47  ;;  %v9378_v51 = vmul.f32 %v16530_v31, %v9152_v11  ;;  %v9380_v4 = vmul.f32 %v16532_v29, %v9153_v22 }
 0x7ac   : > { %v9230_v59 = vrot.slane %v9222_v19, %v10800_v54  ;;  %v9237_v1 = vrot.slane %v9223_v15, %v10800_v54  ;;  %v9017_v35 = vpop.permute.xlu1 %9016  ;;  %v9020_v13 = vpop.permute.xlu0 %9019  ;;  %v9155_v43 = vcombine.high %v16563_v39, %v16570_v53  ;;  %v9246_v6 = vrot.slane %v9238_v52, %v10800_v54 }
 0x7ad   : > { %v16591_v36 = vadd.f32 %v16546_v12, %v9374_v38  ;;  %v16594_v61 = vadd.f32 %v16544_v24, %v9376_v32  ;;  %v16597_v5 = vadd.f32 %v16550_v34, %v9378_v51  ;;  %v16600_v57 = vadd.f32 %v16548_v8, %v9380_v4 }
 0x7ae   : > { %v9190_v44 = vcombine.low %v9011_v42, %v9017_v35  ;;  %v9191_v55 = vcombine.high %v9011_v42, %v9017_v35  ;;  %v9206_v16 = vcombine.low %v9014_v48, %v9020_v13  ;;  %v9207_v18 = vcombine.high %v9014_v48, %v9020_v13 }
 0x7af   : > { %v9486_v10 = vmin.f32 %v16591_v36, 30.0  ;;  %v9488_v2 = vmin.f32 %v16594_v61, 30.0  ;;  %v9490_v3 = vmin.f32 %v16597_v5, 30.0  ;;  %v9492_v49 = vmin.f32 %v16600_v57, 30.0 }
 0x7b0   : > { %v9198_v14 = vrot.slane %v9190_v44, %v19183_v21  ;;  %v9205_v9 = vrot.slane %v9191_v55, %v19183_v21  ;;  %v9214_v0 = vrot.slane %v9206_v16, %v19183_v21  ;;  %v9221_v45 = vrot.slane %v9207_v18, %v19183_v21 }
 0x7b1   : > { %v9502_v62 = vmul.f32 1.442695, %v9486_v10  ;;  %v9506_v20 = vmul.f32 1.442695, %v9488_v2  ;;  %v9510_v56 = vmul.f32 1.442695, %v9490_v3  ;;  %v9384_v60 = vmul.f32 %v16536_v25, %v9155_v43 }
 0x7b2   : > { %v9514_v26 = vmul.f32 1.442695, %v9492_v49  ;;  %v9254_v23 = vcombine.low %v9198_v14, %v9214_v0  ;;  %v9255_v17 = vcombine.high %v9198_v14, %v9214_v0  ;;  %v9270_v7 = vcombine.low %v9205_v9, %v9221_v45 }
 0x7b3   : > { %10101 = vpow2.f32 %v9502_v62  ;;  %v9271_v41 = vcombine.high %v9205_v9, %v9221_v45  ;;  %v9154_v58 = vcombine.low %v16563_v39, %v16570_v53  ;;  %v9157_v30 = vcombine.high %v16573_v50, %v16580_v40 }
 0x7b4   : > { %10103 = vpow2.f32 %v9506_v20  ;;  %v9262_v42 = vrot.slane %v9254_v23, %v10800_v54  ;;  %v9269_v21 = vrot.slane %v9255_v17, %v10800_v54  ;;  %v9278_v48 = vrot.slane %v9270_v7, %v10800_v54 }
 0x7b5   : > { %10105 = vpow2.f32 %v9510_v56  ;;  %v16620_v47 = vrot.slane %v9239_v27, %v10800_v54  ;;  %v16623_v11 = vrot.slane %v9271_v41, %v10800_v54  ;;  %v9382_v38 = vmul.f32 %v16538_v46, %v9154_v58 }
 0x7b6   : > { %10107 = vpow2.f32 %v9514_v26  ;;  %v9286_v22 = vcombine.low %v9230_v59, %v9262_v42  ;;  %v9287_v39 = vcombine.high %v9230_v59, %v9262_v42  ;;  %v9288_v53 = vcombine.low %v9237_v1, %v9269_v21 }
 0x7b7   : > { %v9289_v19 = vcombine.high %v9237_v1, %v9269_v21  ;;  %v9291_v15 = vcombine.high %v9246_v6, %v9278_v48  ;;  %v9290_v52 = vcombine.low %v9246_v6, %v9278_v48  ;;  %v9293_v27 = vcombine.high %v16620_v47, %v16623_v11 }
 0x7b8   : > { %v9375_v32 = vmul.f32 %v16528_v37, %v9286_v22  ;;  %v9377_v51 = vmul.f32 %v16534_v63, %v9287_v39  ;;  %v9379_v4 = vmul.f32 %v16530_v31, %v9288_v53  ;;  %v9388_v43 = vmul.f32 %v16540_v33, %v9157_v30 }
 0x7b9   : > { %v9381_v54 = vmul.f32 %v16532_v29, %v9289_v19  ;;  %v9460_v35 = vpop.permute.xlu1 %9459  ;;  %v9385_v59 = vmul.f32 %v16536_v25, %v9291_v15  ;;  %v9383_v1 = vmul.f32 %v16538_v46, %v9290_v52  ;;  %v9456_v13 = vpop.permute.xlu0 %9455  ;;  %v9389_v3 = vmul.f32 %v16540_v33, %v9293_v27 }
 0x7ba   : > { %v16636_v44 = vadd.f32 %v16546_v12, %v9375_v32  ;;  %v16639_v37 = vadd.f32 %v16544_v24, %v9377_v51  ;;  %v16642_v31 = vadd.f32 %v16550_v34, %v9379_v4  ;;  %v16644_v63 = vadd.f32 %v9460_v35, %v9384_v60 }
 0x7bb   : > { %v16647_v29 = vadd.f32 %v16548_v8, %v9381_v54  ;;  %v16649_v25 = vadd.f32 %v9460_v35, %v9385_v59  ;;  %v16651_v46 = vadd.f32 %v9456_v13, %v9382_v38  ;;  %v16653_v55 = vadd.f32 %v9456_v13, %v9383_v1 }
 0x7bc   : > { %v9487_v12 = vmin.f32 %v16636_v44, 30.0  ;;  %v9489_v16 = vmin.f32 %v16639_v37, 30.0  ;;  %v9491_v24 = vmin.f32 %v16642_v31, 30.0  ;;  %v9496_v34 = vmin.f32 %v16644_v63, 30.0 }
 0x7bd   : > { %v9493_v18 = vmin.f32 %v16647_v29, 30.0  ;;  %v9497_v10 = vmin.f32 %v16649_v25, 30.0  ;;  %v9494_v8 = vmin.f32 %v16651_v46, 30.0  ;;  %v9468_v2 = vpop.permute.xlu1 %9467  ;;  %v9495_v26 = vmin.f32 %v16653_v55, 30.0  ;;  %v9464_v39 = vpop.permute.xlu0 %9463 }
 0x7be   : > { %v9504_v49 = vmul.f32 1.442695, %v9487_v12  ;;  %v9508_v14 = vmul.f32 1.442695, %v9489_v16  ;;  %v9512_v9 = vmul.f32 1.442695, %v9491_v24  ;;  %v16663_v0 = vadd.f32 %v9468_v2, %v9388_v43 }
 0x7bf   : > { %v9516_v45 = vmul.f32 1.442695, %v9493_v18  ;;  %v16665_v62 = vadd.f32 %v9468_v2, %v9389_v3  ;;  %v9522_v56 = vmul.f32 1.442695, %v9496_v34  ;;  %v9524_v6 = vmul.f32 1.442695, %v9497_v10 }
 0x7c0   : > { %v10102_v20 = vpop.eup %10101  ;;  %10109 = vpow2.f32 %v9504_v49  ;;  %v9518_v7 = vmul.f32 1.442695, %v9494_v8  ;;  %v9156_v33 = vcombine.low %v16573_v50, %v16580_v40  ;;  %v9500_v58 = vmin.f32 %v16663_v0, 30.0 }
 0x7c1   : > { %v10104_v23 = vpop.eup %10103  ;;  %v9534_v17 = vadd.f32 2.0, %v10102_v20  ;;  %10111 = vpow2.f32 %v9508_v14  ;;  %v9292_v42 = vcombine.low %v16620_v47, %v16623_v11  ;;  %v9501_v22 = vmin.f32 %v16665_v62, 30.0 }
 0x7c2   : > { %v10106_v41 = vpop.eup %10105  ;;  %v9536_v60 = vadd.f32 2.0, %v10104_v23  ;;  %10113 = vpow2.f32 %v9512_v9  ;;  %v9386_v50 = vmul.f32 %v16542_v28, %v9156_v33  ;;  %v9520_v51 = vmul.f32 1.442695, %v9495_v26 }
 0x7c3   : > { %v10108_v21 = vpop.eup %10107  ;;  %v9538_v48 = vadd.f32 2.0, %v10106_v41  ;;  %v9550_v30 = vmul.f32 %v10102_v20, %v9534_v17  ;;  %10115 = vpow2.f32 %v9516_v45  ;;  %v9387_v52 = vmul.f32 %v16542_v28, %v9292_v42 }
 0x7c4   : > { %v9540_v53 = vadd.f32 2.0, %v10108_v21  ;;  %v9552_v19 = vmul.f32 %v10104_v23, %v9536_v60  ;;  %10117 = vpow2.f32 %v9522_v56  ;;  %v16680_v11 = vadd.f32 %v9464_v39, %v9386_v50 }
 0x7c5   : > { %v16675_v40 = vmul.f32 %v10106_v41, %v9538_v48  ;;  %v9566_v15 = vadd.f32 2.0, %v9550_v30  ;;  %10119 = vpow2.f32 %v9524_v6  ;;  %v16683_v4 = vadd.f32 %v9464_v39, %v9387_v52 }
 0x7c6   : > { %v16678_v38 = vmul.f32 %v10108_v21, %v9540_v53  ;;  %v9568_v47 = vadd.f32 2.0, %v9552_v19  ;;  %10121 = vpow2.f32 %v9518_v7  ;;  %v9530_v54 = vmul.f32 1.442695, %v9500_v58 }
 0x7c7   : > { %v9570_v32 = vadd.f32 2.0, %v16675_v40  ;;  %10123 = vrcp.f32 %v9566_v15  ;;  %v9498_v35 = vmin.f32 %v16680_v11, 30.0  ;;  %v9532_v28 = vmul.f32 1.442695, %v9501_v22 }
 0x7c8   : > { %v9572_v27 = vadd.f32 2.0, %v16678_v38  ;;  %10125 = vrcp.f32 %v9568_v47  ;;  %v9499_v59 = vmin.f32 %v16683_v4, 30.0 }
 0x7c9   : > { %10127 = vrcp.f32 %v9570_v32  ;;  %v9526_v1 = vmul.f32 1.442695, %v9498_v35 }
 0x7ca   : > { %10129 = vrcp.f32 %v9572_v27  ;;  %v9528_v13 = vmul.f32 1.442695, %v9499_v59 }
 0x7cb   : > { %10131 = vpow2.f32 %v9520_v51 }
 0x7cc   : > { %10133 = vpow2.f32 %v9530_v54 }
 0x7cd   : > { %v10110_v43 = vpop.eup %10109  ;;  %10135 = vpow2.f32 %v9532_v28 }
 0x7ce   : > { %v10112_v12 = vpop.eup %10111  ;;  %v9535_v16 = vadd.f32 2.0, %v10110_v43  ;;  %10137 = vpow2.f32 %v9526_v1 }
 0x7cf   : > { %v10114_v24 = vpop.eup %10113  ;;  %v9537_v34 = vadd.f32 2.0, %v10112_v12  ;;  %10139 = vpow2.f32 %v9528_v13 }
 0x7d0   : > { %v10116_v18 = vpop.eup %10115  ;;  %v9539_v10 = vadd.f32 2.0, %v10114_v24  ;;  %v16689_v8 = vmul.f32 %v10110_v43, %v9535_v16 }
 0x7d1   : > { %v10118_v2 = vpop.eup %10117  ;;  %v9541_v3 = vadd.f32 2.0, %v10116_v18  ;;  %v16691_v49 = vmul.f32 %v10112_v12, %v9537_v34 }
 0x7d2   : > { %v10120_v14 = vpop.eup %10119  ;;  %v16693_v9 = vmul.f32 %v10114_v24, %v9539_v10  ;;  %v9567_v45 = vadd.f32 2.0, %v16689_v8  ;;  %v9544_v20 = vadd.f32 2.0, %v10118_v2 }
 0x7d3   : > { %v10122_v56 = vpop.eup %10121  ;;  %v16700_v6 = vmul.f32 %v10116_v18, %v9541_v3  ;;  %v9569_v26 = vadd.f32 2.0, %v16691_v49  ;;  %v9545_v23 = vadd.f32 2.0, %v10120_v14 }
 0x7d4   : > { %v10124_v17 = vpop.eup %10123  ;;  %v9571_v7 = vadd.f32 2.0, %v16693_v9  ;;  %10141 = vrcp.f32 %v9567_v45  ;;  %v16704_v33 = vmul.f32 %v10118_v2, %v9544_v20  ;;  %v9542_v41 = vadd.f32 2.0, %v10122_v56 }
 0x7d5   : > { %v10126_v60 = vpop.eup %10125  ;;  %v9598_v58 = vmul.f32 %v10124_v17, %v9550_v30  ;;  %v9573_v42 = vadd.f32 2.0, %v16700_v6  ;;  %10143 = vrcp.f32 %v9569_v26  ;;  %v16707_v21 = vmul.f32 %v10120_v14, %v9545_v23 }
 0x7d6   : > { %v10128_v48 = vpop.eup %10127  ;;  %v9600_v22 = vmul.f32 %v10126_v60, %v9552_v19  ;;  %10145 = vrcp.f32 %v9571_v7  ;;  %v9576_v39 = vadd.f32 2.0, %v16704_v33  ;;  %v16710_v53 = vmul.f32 %v10122_v56, %v9542_v41 }
 0x7d7   : > { %v10130_v50 = vpop.eup %10129  ;;  %v9602_v15 = vmul.f32 %v10128_v48, %v16675_v40  ;;  %v9614_v52 = vmul.f32 %v9598_v58, %v16591_v36  ;;  %10147 = vrcp.f32 %v9573_v42  ;;  %v9577_v30 = vadd.f32 2.0, %v16707_v21 }
 0x7d8   : > { %v10132_v47 = vpop.eup %10131  ;;  %v9604_v32 = vmul.f32 %v10130_v50, %v16678_v38  ;;  %v9616_v51 = vmul.f32 %v9600_v22, %v16594_v61  ;;  %10149 = vrcp.f32 %v9576_v39  ;;  %v9574_v19 = vadd.f32 2.0, %v16710_v53 }
 0x7d9   : > { %v10134_v27 = vpop.eup %10133  ;;  %v9618_v54 = vmul.f32 %v9602_v15, %v16597_v5  ;;  %9630 = vst.msk [vmem:[%s16720_s28] sm:$0xff] %vm8554_vm4, %v9614_v52  ;;  %10151 = vrcp.f32 %v9577_v30  ;;  %v9543_v36 = vadd.f32 2.0, %v10132_v47 }
 0x7da   : > { %v10136_v40 = vpop.eup %10135  ;;  %v9620_v38 = vmul.f32 %v9604_v32, %v16600_v57  ;;  %9632 = vst.msk [vmem:[%s16720_s28 + $0x10] sm:$0xff] %vm8554_vm4, %v9616_v51  ;;  %10153 = vrcp.f32 %v9574_v19  ;;  %v9548_v61 = vadd.f32 2.0, %v10134_v27 }
 0x7db   : > { %v10138_v35 = vpop.eup %10137  ;;  %9634 = vst.msk [vmem:[%s16720_s28 + $0x20] sm:$0xff] %vm8554_vm4, %v9618_v54  ;;  %v9559_v5 = vmul.f32 %v10132_v47, %v9543_v36  ;;  %v9549_v28 = vadd.f32 2.0, %v10136_v40 }
 0x7dc   : > { %v10140_v59 = vpop.eup %10139  ;;  %9636 = vst.msk [vmem:[%s16720_s28 + $0x30] sm:$0xff] %vm8554_vm4, %v9620_v38  ;;  %v9564_v1 = vmul.f32 %v10134_v27, %v9548_v61  ;;  %v9546_v13 = vadd.f32 2.0, %v10138_v35 }
 0x7dd   : > { %v9575_v43 = vadd.f32 2.0, %v9559_v5  ;;  %v9565_v12 = vmul.f32 %v10136_v40, %v9549_v28  ;;  %v9547_v16 = vadd.f32 2.0, %v10140_v59 }
 0x7de   : > { %v9580_v24 = vadd.f32 2.0, %v9564_v1  ;;  %v9562_v34 = vmul.f32 %v10138_v35, %v9546_v13 }
 0x7df   : > { %10155 = vrcp.f32 %v9575_v43  ;;  %v9581_v57 = vadd.f32 2.0, %v9565_v12  ;;  %v9563_v18 = vmul.f32 %v10140_v59, %v9547_v16 }
 0x7e0   : > { %10157 = vrcp.f32 %v9580_v24  ;;  %v9578_v10 = vadd.f32 2.0, %v9562_v34 }
 0x7e1   : > { %v10142_v2 = vpop.eup %10141  ;;  %10159 = vrcp.f32 %v9581_v57  ;;  %v9579_v3 = vadd.f32 2.0, %v9563_v18 }
 0x7e2   : > { %v10144_v14 = vpop.eup %10143  ;;  %v9599_v45 = vmul.f32 %v10142_v2, %v16689_v8  ;;  %10161 = vrcp.f32 %v9578_v10 }
 0x7e3   : > { %v10146_v20 = vpop.eup %10145  ;;  %v9601_v56 = vmul.f32 %v10144_v14, %v16691_v49  ;;  %10163 = vrcp.f32 %v9579_v3 }
 0x7e4   : > { %v10148_v26 = vpop.eup %10147  ;;  %v9603_v23 = vmul.f32 %v10146_v20, %v16693_v9  ;;  %v9615_v17 = vmul.f32 %v9599_v45, %v16636_v44 }
 0x7e5   : > { %v10150_v7 = vpop.eup %10149  ;;  %v9605_v41 = vmul.f32 %v10148_v26, %v16700_v6  ;;  %v9617_v60 = vmul.f32 %v9601_v56, %v16639_v37 }
 0x7e6   : > { %v10152_v8 = vpop.eup %10151  ;;  %v9619_v58 = vmul.f32 %v9603_v23, %v16642_v31  ;;  %9631 = vst.msk [vmem:[%s16720_s28 + $0x8] sm:$0xff] %vm8554_vm4, %v9615_v17  ;;  %v9608_v49 = vmul.f32 %v10150_v7, %v16704_v33 }
 0x7e7   : > { %v10154_v42 = vpop.eup %10153  ;;  %v9621_v9 = vmul.f32 %v9605_v41, %v16647_v29  ;;  %9633 = vst.msk [vmem:[%s16720_s28 + $0x18] sm:$0xff] %vm8554_vm4, %v9617_v60  ;;  %v9609_v44 = vmul.f32 %v10152_v8, %v16707_v21 }
 0x7e8   : > { %9635 = vst.msk [vmem:[%s16720_s28 + $0x28] sm:$0xff] %vm8554_vm4, %v9619_v58  ;;  %v9624_v37 = vmul.f32 %v9608_v49, %v16644_v63  ;;  %v9606_v6 = vmul.f32 %v10154_v42, %v16710_v53 }
 0x7e9   : > { %9637 = vst.msk [vmem:[%s16720_s28 + $0x38] sm:$0xff] %vm8554_vm4, %v9621_v9  ;;  %v9625_v31 = vmul.f32 %v9609_v44, %v16649_v25 }
 0x7ea   : > { %9640 = vst.msk [vmem:[%s16720_s28 + $0x50] sm:$0xff] %vm8554_vm4, %v9624_v37  ;;  %v9622_v29 = vmul.f32 %v9606_v6, %v16651_v46 }
 0x7eb   : > { %9641 = vst.msk [vmem:[%s16720_s28 + $0x58] sm:$0xff] %vm8554_vm4, %v9625_v31 }
 0x7ec   : > { %v10156_v33 = vpop.eup %10155  ;;  %9638 = vst.msk [vmem:[%s16720_s28 + $0x40] sm:$0xff] %vm8554_vm4, %v9622_v29 }
 0x7ed   : > { %v10158_v63 = vpop.eup %10157  ;;  %v9607_v21 = vmul.f32 %v10156_v33, %v9559_v5 }
 0x7ee   : > { %v10160_v48 = vpop.eup %10159  ;;  %v9612_v22 = vmul.f32 %v10158_v63, %v9564_v1 }
 0x7ef   : > { %v10162_v39 = vpop.eup %10161  ;;  %v9623_v53 = vmul.f32 %v9607_v21, %v16653_v55  ;;  %v9613_v25 = vmul.f32 %v10160_v48, %v9565_v12 }
 0x7f0   : > { %v10164_v46 = vpop.eup %10163  ;;  %v9628_v50 = vmul.f32 %v9612_v22, %v16663_v0  ;;  %v9610_v15 = vmul.f32 %v10162_v39, %v9562_v34 }
 0x7f1   : > { %9639 = vst.msk [vmem:[%s16720_s28 + $0x48] sm:$0xff] %vm8554_vm4, %v9623_v53  ;;  %v9629_v52 = vmul.f32 %v9613_v25, %v16665_v62  ;;  %v9611_v30 = vmul.f32 %v10164_v46, %v9563_v18 }
 0x7f2   : > { %9644 = vst.msk [vmem:[%s16720_s28 + $0x70] sm:$0xff] %vm8554_vm4, %v9628_v50  ;;  %v9626_v55 = vmul.f32 %v9610_v15, %v16680_v11 }
 0x7f3   : > { %9645 = vst.msk [vmem:[%s16720_s28 + $0x78] sm:$0xff] %vm8554_vm4, %v9629_v52  ;;  %v9627_v0 = vmul.f32 %v9611_v30, %v16683_v4 }
 0x7f4   : > { %9642 = vst.msk [vmem:[%s16720_s28 + $0x60] sm:$0xff] %vm8554_vm4, %v9626_v55 }
 0x7f5   : > { %9643 = vst.msk [vmem:[%s16720_s28 + $0x68] sm:$0xff] %vm8554_vm4, %v9627_v0 }
 0x7f6   : > { %10199 = shalt.err (!%p10196_p3)
}
 0x7f7   : > { %s10200_s13 = scalar_lea.hbm %s16772_s25, 2048  ;;  %s10204_s29 = scalar_lea.hbm %s16831_s6, 4096 }
 0x7f8   : > { %p10201_p4 = scmp.ne.s32.totalorder %s16772_s25, %s10200_s13  ;;  %p10205_p9 = scmp.lt.s32.totalorder %s16772_s25, %s16831_s6 }
 0x7f9   : > { %p10206_p10 = scmp.lt.s32.totalorder %s10204_s29, %s10200_s13 }
 0x7fa   : > { %p10202_p7 = pnand %p10201_p4, %p10338_p5 }
 0x7fb   : > { %p10207_p11 = por %p10206_p10, %p10205_p9 }
 0x7fc   : > { %p10203_p8 = pneg %p10202_p7 }
 0x7fe   : > { %p10208_p12 = pnand %p10207_p11, %p10203_p8 }
 0x800   : > { %10211 = shalt.err (!%p10208_p12)
}
 0x801   : > { %s10263_s15 = smov 128   ;;  %s10264_s17 = smov 8  }
 0x802   : > { %9974 = dma.vmem_to_hbm [thread:$0]  (%p10338_p5), %s16774_s16, 2048, %s16772_s25, %s16785_s14, %s10263_s15, %s10263_s15, %s10264_s17  }
 0x803 PF: > { %p9980_p13 = scmp.ge.s32.totalorder %s10246_s24, 2  ;;  %s9675_s18 = sand.u32 1, %s10234_s21  }
 0x804   : > { %s9676_s19 = scalar_lea.sflag [#allocation4], %s9675_s18 }
 0x805   : > { %p9977_p0 = pnand %p9980_p13, %p10342_p6 }
 0x807   : > { %p9978_p1 = pneg %p9977_p0 }
 0x809   : > { %10229 = dma.done.wait (%p9978_p1), %s9676_s19, 2048  }
 0x80a   : > { %10231 = vsyncadd (%p9978_p1), %s9676_s19, 4294965248  ;;  %p16_p2 = scmp.ge.s32.totalorder %s10325_s27, 4   ;;  %s19293_s21 = smov %s10238_s22 }
 0x80b   : > { %s19294_s22 = smov %s10242_s23  ;;  %s19295_s23 = smov %s10336_s30 }
 0x80c   : > { %s19296_s24 = smov %s10325_s27  ;;  %18 = sbr.rel (!%p16_p2) target bundleno = 3 (0x3), region = 79 }
 0x811   :  { %9681 = vsyncpa [#allocation4], 1 }
 0x812   :  { %9683 = vsyncpa [#allocation4 + $0x1], 1 }

</bundles_post_ra>
